<compile_context>
chip_gen: v5e
topology: v5e:2x2
jax: 0.10.0
libtpu: 0.0.40
codegen_flags: <defaults>
</compile_context>

<pallas_src>
import functools

import jax
import jax.numpy as jnp
from jax.experimental import pallas as pl
from jax.experimental.pallas import tpu as pltpu

TN = 128  # lane-dense output tile width (channels)


def _round_up(x, m):
    return (x + m - 1) // m * m


# --------------------------------------------------------------------------
# Fused GEMM kernel: dot -> +bias -> [InstanceNorm] -> activation -> store.
# For the norm path the block is one sample's full spatial extent x a
# 128-channel tile, so the per-(sample, channel) reduction is over axis 0.
# --------------------------------------------------------------------------
def _gemm_kernel(a_ref, b_ref, bias_ref, o_ref, *, norm, act, slope, eps):
    y = jnp.dot(a_ref[...], b_ref[...], preferred_element_type=jnp.float32)
    y = y + bias_ref[...]
    if norm:
        mean = jnp.mean(y, axis=0, keepdims=True)
        var = jnp.mean(jnp.square(y - mean), axis=0, keepdims=True)  # biased
        y = (y - mean) * jax.lax.rsqrt(var + eps)
    if act == "leaky":
        y = jnp.where(y >= 0.0, y, slope * y)
    elif act == "sigmoid":
        y = 1.0 / (1.0 + jnp.exp(-y))
    o_ref[...] = y.astype(o_ref.dtype)


# --------------------------------------------------------------------------
# Final 512->1 conv: elementwise multiply + lane reduction + sigmoid (VPU).
# --------------------------------------------------------------------------
def _final_reduce_kernel(a_ref, w_ref, o_ref):
    a = a_ref[...].astype(jnp.float32)          # (M, K)
    w = w_ref[...].astype(jnp.float32)          # (1, K)
    z = jnp.sum(a * w, axis=1, keepdims=True)   # (M, 1)
    o_ref[...] = 1.0 / (1.0 + jnp.exp(-z))


# --------------------------------------------------------------------------
# im2col (built directly in bf16; zero-pad folded into the same pass)
# --------------------------------------------------------------------------
def _im2col(x, k, stride, pad):
    # x: [N, H, W, C] (bf16)  ->  [N*Ho*Wo, k*k*C], K-order = (kh, kw, C)
    if pad:
        x = jnp.pad(x, ((0, 0), (pad, pad), (pad, pad), (0, 0)))
    N, Hp, Wp, C = x.shape
    Ho = (Hp - k) // stride + 1
    Wo = (Wp - k) // stride + 1
    cols = []
    for ki in range(k):
        for kj in range(k):
            cols.append(x[:, ki:ki + (Ho - 1) * stride + 1:stride,
                          kj:kj + (Wo - 1) * stride + 1:stride, :])
    patches = jnp.stack(cols, axis=3)            # [N, Ho, Wo, k*k, C]
    return patches.reshape(N * Ho * Wo, k * k * C), (N, Ho, Wo)


# --------------------------------------------------------------------------
# Conv block 1: GEMM + bias + LeakyReLU (no norm), bf16 out.
# --------------------------------------------------------------------------
def conv2d_lrelu(x, wm, bias, cout, k, stride, pad, slope=0.2):
    a, (N, Ho, Wo) = _im2col(x, k, stride, pad)        # bf16 [M, K]
    M, K = a.shape
    Kp, Np = wm.shape
    assert Kp <= 4096, "GEMM path expects full-K tiles"
    a = jnp.pad(a, ((0, 0), (0, Kp - K)))
    tm = min(128, _round_up(M, 16))
    Mp = _round_up(M, tm)
    if Mp != M:
        a = jnp.pad(a, ((0, Mp - M), (0, 0)))

    out = pl.pallas_call(
        functools.partial(_gemm_kernel, norm=False, act="leaky",
                          slope=slope, eps=0.0),
        out_shape=jax.ShapeDtypeStruct((Mp, Np), jnp.bfloat16),
        grid_spec=pltpu.PrefetchScalarGridSpec(
            num_scalar_prefetch=0,
            grid=(Mp // tm, Np // TN),
            in_specs=[pl.BlockSpec((tm, Kp), lambda i, j: (i, 0)),
                      pl.BlockSpec((Kp, TN), lambda i, j: (0, j)),
                      pl.BlockSpec((1, TN), lambda i, j: (0, j))],
            out_specs=pl.BlockSpec((tm, TN), lambda i, j: (i, j))),
        compiler_params=pltpu.CompilerParams(
            dimension_semantics=("parallel", "parallel")),
        cost_estimate=pl.CostEstimate(
            flops=2 * Mp * Np * Kp, transcendentals=0,
            bytes_accessed=Mp * Kp * 2 + Kp * Np * 2 + Mp * Np * 2),
    )(a, wm, bias)
    return out[:M, :cout].reshape(N, Ho, Wo, cout)


# --------------------------------------------------------------------------
# Conv blocks 2-4: GEMM + bias + InstanceNorm + LeakyReLU fully fused.
# Patches are laid out [samples, Ho*Wo, K]; one grid point = one sample x one
# 128-channel tile, so the norm reduction lives entirely inside the epilogue.
# --------------------------------------------------------------------------
def conv2d_inorm_lrelu(x, wm, bias, cout, k, stride, pad, slope=0.2, eps=1e-5):
    a, (N, Ho, Wo) = _im2col(x, k, stride, pad)        # bf16 [N*hw, K]
    hw = Ho * Wo
    K = a.shape[1]
    Kp, Np = wm.shape
    assert Kp <= 4096, "GEMM path expects full-K tiles"
    a = jnp.pad(a, ((0, 0), (0, Kp - K))).reshape(N, hw, Kp)
    nc = Np // TN

    out = pl.pallas_call(
        functools.partial(_gemm_kernel, norm=True, act="leaky",
                          slope=slope, eps=eps),
        out_shape=jax.ShapeDtypeStruct((N, hw, Np), jnp.bfloat16),
        grid_spec=pltpu.PrefetchScalarGridSpec(
            num_scalar_prefetch=0,
            # channel tiles outer, samples inner -> weight tile held across
            # samples (no re-fetch); both axes parallel for megacore.
            grid=(nc, N),
            in_specs=[pl.BlockSpec((None, hw, Kp), lambda c, s: (s, 0, 0)),
                      pl.BlockSpec((Kp, TN), lambda c, s: (0, c)),
                      pl.BlockSpec((1, TN), lambda c, s: (0, c))],
            out_specs=pl.BlockSpec((None, hw, TN), lambda c, s: (s, 0, c))),
        compiler_params=pltpu.CompilerParams(
            dimension_semantics=("parallel", "parallel")),
        cost_estimate=pl.CostEstimate(
            flops=2 * N * hw * Np * Kp, transcendentals=0,
            bytes_accessed=N * hw * Kp * 2 + Kp * Np * 2 + N * hw * Np * 2),
    )(a, wm, bias)
    return out[:, :, :cout].reshape(N, Ho, Wo, cout)


# --------------------------------------------------------------------------
# Final conv (512 -> 1, no bias) + Sigmoid as a reduction kernel.
# --------------------------------------------------------------------------
def final_conv_sigmoid(x, w_row, k=4, stride=1, pad=1):
    a, (N, Ho, Wo) = _im2col(x, k, stride, pad)        # bf16 [M, 8192]
    M, K = a.shape
    assert w_row.shape == (1, K)
    Mp = _round_up(M, 8)
    if Mp != M:
        a = jnp.pad(a, ((0, Mp - M), (0, 0)))

    out = pl.pallas_call(
        _final_reduce_kernel,
        out_shape=jax.ShapeDtypeStruct((Mp, 1), jnp.float32),
        grid_spec=pltpu.PrefetchScalarGridSpec(
            num_scalar_prefetch=0,
            grid=(1,),
            in_specs=[pl.BlockSpec((Mp, K), lambda i: (0, 0)),
                      pl.BlockSpec((1, K), lambda i: (0, 0))],
            out_specs=pl.BlockSpec((Mp, 1), lambda i: (0, 0))),
        compiler_params=pltpu.CompilerParams(
            dimension_semantics=("arbitrary",)),
    )(a, w_row)
    return out[:M].reshape(N, Ho, Wo, 1)


# ------------------------------------------------------------ parameters ----
def init_params(key, in_channels=3):
    """PyTorch-layout parameters (used directly by the f32 reference)."""
    def nk():
        nonlocal key
        key, sub = jax.random.split(key)
        return sub

    def conv(cout, cin, k=4):
        fan_in = cin * k * k
        w = jax.random.normal(nk(), (cout, cin, k, k), jnp.float32) \
            * (2.0 / fan_in) ** 0.5
        b = jax.random.normal(nk(), (cout,), jnp.float32) * 0.05
        return w, b

    p = {}
    p["w1"], p["b1"] = conv(64, in_channels * 2)
    p["w2"], p["b2"] = conv(128, 64)
    p["w3"], p["b3"] = conv(256, 128)
    p["w4"], p["b4"] = conv(512, 256)
    p["w5"], _ = conv(1, 512)          # final Conv2d has bias=False
    return p


def prepare_params(params):
    """One-time conversion to GEMM layout: (k*k*Cin, Cout) padded, bf16."""
    def gemm_wb(w, b):
        cout, cin, k, _ = w.shape
        wm = jnp.transpose(w, (2, 3, 1, 0)).reshape(k * k * cin, cout)
        Kp = _round_up(wm.shape[0], 128)
        Np = _round_up(cout, TN)
        wm = jnp.pad(wm, ((0, Kp - wm.shape[0]),
                          (0, Np - cout))).astype(jnp.bfloat16)
        bias = jnp.pad(b.astype(jnp.float32), (0, Np - cout))[None, :]
        return wm, bias

    prep = {}
    prep["wm1"], prep["bias1"] = gemm_wb(params["w1"], params["b1"])
    prep["wm2"], prep["bias2"] = gemm_wb(params["w2"], params["b2"])
    prep["wm3"], prep["bias3"] = gemm_wb(params["w3"], params["b3"])
    prep["wm4"], prep["bias4"] = gemm_wb(params["w4"], params["b4"])
    # final conv: flatten in (kh, kw, cin) order to match im2col, bf16 row.
    w5 = params["w5"]                                  # (1, 512, 4, 4)
    prep["w5"] = jnp.transpose(w5, (2, 3, 1, 0)).reshape(1, -1) \
                    .astype(jnp.bfloat16)              # (1, 8192)
    return prep


# ---------------------------------------------------------------- forward ---
def discriminator(img_a_nchw, img_b_nchw, prep):
    xa = jnp.transpose(img_a_nchw, (0, 2, 3, 1))
    xb = jnp.transpose(img_b_nchw, (0, 2, 3, 1))
    h = jnp.concatenate([xa, xb], axis=-1).astype(jnp.bfloat16)  # torch.cat(dim=1)

    # block 1: Conv(6->64,4,2,1) + LeakyReLU(0.2)   (no norm)
    h = conv2d_lrelu(h, prep["wm1"], prep["bias1"], cout=64,
                     k=4, stride=2, pad=1)
    # blocks 2-4: Conv(4,2,1) + InstanceNorm2d + LeakyReLU(0.2), fully fused
    h = conv2d_inorm_lrelu(h, prep["wm2"], prep["bias2"], cout=128,
                           k=4, stride=2, pad=1)
    h = conv2d_inorm_lrelu(h, prep["wm3"], prep["bias3"], cout=256,
                           k=4, stride=2, pad=1)
    h = conv2d_inorm_lrelu(h, prep["wm4"], prep["bias4"], cout=512,
                           k=4, stride=2, pad=1)

    # ZeroPad2d((1,0,1,0)) -> Conv(512->1, 4, p=1, no bias) -> Sigmoid
    h = jnp.pad(h, ((0, 0), (1, 0), (1, 0), (0, 0)))
    out = final_conv_sigmoid(h, prep["w5"], k=4, stride=1, pad=1)
    return jnp.transpose(out, (0, 3, 1, 2))            # back to NCHW, f32


# -------------------------------------------------- pure-JAX reference ------
def _ref_conv(x, w, b, stride, pad):
    y = jax.lax.conv_general_dilated(
        x, w, window_strides=(stride, stride),
        padding=((pad, pad), (pad, pad)),
        dimension_numbers=("NHWC", "OIHW", "NHWC"),
        precision=jax.lax.Precision.HIGHEST)
    return y if b is None else y + b


def discriminator_ref(img_a, img_b, params, eps=1e-5):
    xa = jnp.transpose(img_a, (0, 2, 3, 1)).astype(jnp.float32)
    xb = jnp.transpose(img_b, (0, 2, 3, 1)).astype(jnp.float32)
    h = jnp.concatenate([xa, xb], axis=-1)

    def lrelu(v):
        return jnp.where(v >= 0, v, 0.2 * v)

    def inorm(v):
        m = jnp.mean(v, axis=(1, 2), keepdims=True)
        var = jnp.mean(jnp.square(v - m), axis=(1, 2), keepdims=True)
        return (v - m) * jax.lax.rsqrt(var + eps)

    h = lrelu(_ref_conv(h, params["w1"], params["b1"], 2, 1))
    h = lrelu(inorm(_ref_conv(h, params["w2"], params["b2"], 2, 1)))
    h = lrelu(inorm(_ref_conv(h, params["w3"], params["b3"], 2, 1)))
    h = lrelu(inorm(_ref_conv(h, params["w4"], params["b4"], 2, 1)))
    h = jnp.pad(h, ((0, 0), (1, 0), (1, 0), (0, 0)))
    h = jax.nn.sigmoid(_ref_conv(h, params["w5"], None, 1, 1))
    return jnp.transpose(h, (0, 3, 1, 2))


if __name__ == "__main__":
    key = jax.random.PRNGKey(0)
    kp, ka, kb = jax.random.split(key, 3)
    params = init_params(kp, in_channels=3)
    prep = prepare_params(params)                 # one-time GEMM-layout prep

    # Small shapes: batch=2, 3 channels, 32x32 -> PatchGAN output (2,1,2,2)
    img_a = jax.random.normal(ka, (2, 3, 32, 32), jnp.float32)
    img_b = jax.random.normal(kb, (2, 3, 32, 32), jnp.float32)

    out = jax.jit(discriminator)(img_a, img_b, prep)
    jax.block_until_ready(out)
    assert out.shape == (2, 1, 2, 2), out.shape
    assert bool(jnp.all(jnp.isfinite(out)))

    ref = discriminator_ref(img_a, img_b, params)
    err = float(jnp.max(jnp.abs(out - ref)))
    assert err < 6e-2, f"max abs diff vs f32 reference: {err}"
    print("KERNEL_OK")
</pallas_src>

<mosaic_0001>
module attributes {stable_mosaic.version = 11 : i64} {
  func.func @_gemm_kernel(%arg0: i32, %arg1: i32, %arg2: memref<128x128xbf16, #tpu.memory_space<vmem>>, %arg3: memref<128x128xbf16, #tpu.memory_space<vmem>>, %arg4: memref<1x128xf32, #tpu.memory_space<vmem>>, %arg5: memref<128x128xbf16, #tpu.memory_space<vmem>>) attributes {dimension_semantics = [#tpu.dimension_semantics<parallel>, #tpu.dimension_semantics<parallel>], iteration_bounds = array<i64: 4, 1>, scalar_prefetch = 0 : i64, scratch_operands = 0 : i64, tpu.core_type = #tpu.core_type<tc>, window_params = [{transform_indices = @transform_0, window_bounds = array<i64: 128, 128>}, {transform_indices = @transform_1, window_bounds = array<i64: 128, 128>}, {transform_indices = @transform_2, window_bounds = array<i64: 1, 128>}, {transform_indices = @transform_3, window_bounds = array<i64: 128, 128>}]} {
    %c0 = arith.constant 0 : index
    %c0_0 = arith.constant 0 : index
    %0 = vector.load %arg2[%c0, %c0_0] : memref<128x128xbf16, #tpu.memory_space<vmem>>, vector<128x128xbf16>
    %c0_1 = arith.constant 0 : index
    %c0_2 = arith.constant 0 : index
    %1 = vector.load %arg3[%c0_1, %c0_2] : memref<128x128xbf16, #tpu.memory_space<vmem>>, vector<128x128xbf16>
    %cst = arith.constant dense<0.000000e+00> : vector<128x128xf32>
    %2 = tpu.matmul %0, %1, %cst {dimension_numbers = #tpu.dot_dimension_numbers<[1], [0], [0], [1], [0, 0, 1, 1], [], []>} : vector<128x128xbf16>, vector<128x128xbf16>, vector<128x128xf32> -> vector<128x128xf32>
    %c0_3 = arith.constant 0 : index
    %c0_4 = arith.constant 0 : index
    %3 = vector.load %arg4[%c0_3, %c0_4] : memref<1x128xf32, #tpu.memory_space<vmem>>, vector<1x128xf32>
    %4 = vector.broadcast %3 : vector<1x128xf32> to vector<128x128xf32>
    %5 = arith.addf %2, %4 : vector<128x128xf32>
    %cst_5 = arith.constant 0.000000e+00 : f32
    %6 = vector.broadcast %cst_5 : f32 to vector<128x128xf32>
    %7 = arith.cmpf oge, %5, %6 : vector<128x128xf32>
    %cst_6 = arith.constant 2.000000e-01 : f32
    %8 = vector.broadcast %cst_6 : f32 to vector<128x128xf32>
    %9 = arith.mulf %8, %5 : vector<128x128xf32>
    %10 = arith.select %7, %5, %9 : vector<128x128xi1>, vector<128x128xf32>
    %11 = arith.truncf %10 : vector<128x128xf32> to vector<128x128xbf16>
    %c0_7 = arith.constant 0 : index
    %c0_8 = arith.constant 0 : index
    %12 = vector.load %arg5[%c0_7, %c0_8] : memref<128x128xbf16, #tpu.memory_space<vmem>>, vector<128x128xbf16>
    tpu.vector_store %arg5[%c0_7, %c0_8], %11 {strides = array<i32>} : memref<128x128xbf16, #tpu.memory_space<vmem>>, vector<128x128xbf16>,
    return
  }
  func.func @transform_0(%arg0: i32, %arg1: i32) -> (i32, i32) {
    %c0_i32 = arith.constant 0 : i32
    %c0_i32_0 = arith.constant 0 : i32
    return %arg0, %c0_i32 : i32, i32
  }
  func.func @transform_1(%arg0: i32, %arg1: i32) -> (i32, i32) {
    %c0_i32 = arith.constant 0 : i32
    %c0_i32_0 = arith.constant 0 : i32
    return %c0_i32, %arg1 : i32, i32
  }
  func.func @transform_2(%arg0: i32, %arg1: i32) -> (i32, i32) {
    %c0_i32 = arith.constant 0 : i32
    %c0_i32_0 = arith.constant 0 : i32
    return %c0_i32, %arg1 : i32, i32
  }
  func.func @transform_3(%arg0: i32, %arg1: i32) -> (i32, i32) {
    %c0_i32 = arith.constant 0 : i32
    return %arg0, %arg1 : i32, i32
  }
}

module attributes {stable_mosaic.version = 11 : i64} {
  func.func @_gemm_kernel(%arg0: i32, %arg1: i32, %arg2: memref<1x64x1024xbf16, #tpu.memory_space<vmem>>, %arg3: memref<1024x128xbf16, #tpu.memory_space<vmem>>, %arg4: memref<1x128xf32, #tpu.memory_space<vmem>>, %arg5: memref<1x64x128xbf16, #tpu.memory_space<vmem>>) attributes {dimension_semantics = [#tpu.dimension_semantics<parallel>, #tpu.dimension_semantics<parallel>], iteration_bounds = array<i64: 1, 2>, scalar_prefetch = 0 : i64, scratch_operands = 0 : i64, tpu.core_type = #tpu.core_type<tc>, window_params = [{transform_indices = @transform_0, window_bounds = array<i64: 1, 64, 1024>}, {transform_indices = @transform_1, window_bounds = array<i64: 1024, 128>}, {transform_indices = @transform_2, window_bounds = array<i64: 1, 128>}, {transform_indices = @transform_3, window_bounds = array<i64: 1, 64, 128>}]} {
    %c0 = arith.constant 0 : index
    %c0_0 = arith.constant 0 : index
    %c0_1 = arith.constant 0 : index
    %0 = vector.load %arg2[%c0, %c0_0, %c0_1] : memref<1x64x1024xbf16, #tpu.memory_space<vmem>>, vector<1x64x1024xbf16>
    %1 = vector.shape_cast %0 : vector<1x64x1024xbf16> to vector<64x1024xbf16>
    %c0_2 = arith.constant 0 : index
    %c0_3 = arith.constant 0 : index
    %2 = vector.load %arg3[%c0_2, %c0_3] : memref<1024x128xbf16, #tpu.memory_space<vmem>>, vector<1024x128xbf16>
    %cst = arith.constant dense<0.000000e+00> : vector<64x128xf32>
    %3 = tpu.matmul %1, %2, %cst {dimension_numbers = #tpu.dot_dimension_numbers<[1], [0], [0], [1], [0, 0, 1, 1], [], []>} : vector<64x1024xbf16>, vector<1024x128xbf16>, vector<64x128xf32> -> vector<64x128xf32>
    %c0_4 = arith.constant 0 : index
    %c0_5 = arith.constant 0 : index
    %4 = vector.load %arg4[%c0_4, %c0_5] : memref<1x128xf32, #tpu.memory_space<vmem>>, vector<1x128xf32>
    %5 = vector.broadcast %4 : vector<1x128xf32> to vector<64x128xf32>
    %6 = arith.addf %3, %5 : vector<64x128xf32>
    %cst_6 = arith.constant dense<0.000000e+00> : vector<128xf32>
    %7 = vector.multi_reduction <add>, %6, %cst_6 [0] : vector<64x128xf32> to vector<128xf32>
    %8 = vector.shape_cast %7 : vector<128xf32> to vector<1x128xf32>
    %cst_7 = arith.constant 6.400000e+01 : f32
    %9 = vector.broadcast %cst_7 : f32 to vector<1x128xf32>
    %10 = arith.divf %8, %9 : vector<1x128xf32>
    %11 = vector.broadcast %10 : vector<1x128xf32> to vector<64x128xf32>
    %12 = arith.subf %6, %11 : vector<64x128xf32>
    %13 = arith.mulf %12, %12 : vector<64x128xf32>
    %cst_8 = arith.constant dense<0.000000e+00> : vector<128xf32>
    %14 = vector.multi_reduction <add>, %13, %cst_8 [0] : vector<64x128xf32> to vector<128xf32>
    %15 = vector.shape_cast %14 : vector<128xf32> to vector<1x128xf32>
    %cst_9 = arith.constant 6.400000e+01 : f32
    %16 = vector.broadcast %cst_9 : f32 to vector<1x128xf32>
    %17 = arith.divf %15, %16 : vector<1x128xf32>
    %18 = vector.broadcast %10 : vector<1x128xf32> to vector<64x128xf32>
    %19 = arith.subf %6, %18 : vector<64x128xf32>
    %cst_10 = arith.constant 9.99999974E-6 : f32
    %20 = vector.broadcast %cst_10 : f32 to vector<1x128xf32>
    %21 = arith.addf %17, %20 : vector<1x128xf32>
    %22 = math.rsqrt %21 : vector<1x128xf32>
    %23 = vector.broadcast %22 : vector<1x128xf32> to vector<64x128xf32>
    %24 = arith.mulf %19, %23 : vector<64x128xf32>
    %cst_11 = arith.constant 0.000000e+00 : f32
    %25 = vector.broadcast %cst_11 : f32 to vector<64x128xf32>
    %26 = arith.cmpf oge, %24, %25 : vector<64x128xf32>
    %cst_12 = arith.constant 2.000000e-01 : f32
    %27 = vector.broadcast %cst_12 : f32 to vector<64x128xf32>
    %28 = arith.mulf %27, %24 : vector<64x128xf32>
    %29 = arith.select %26, %24, %28 : vector<64x128xi1>, vector<64x128xf32>
    %30 = arith.truncf %29 : vector<64x128xf32> to vector<64x128xbf16>
    %c0_13 = arith.constant 0 : index
    %c0_14 = arith.constant 0 : index
    %c0_15 = arith.constant 0 : index
    %31 = vector.load %arg5[%c0_13, %c0_14, %c0_15] : memref<1x64x128xbf16, #tpu.memory_space<vmem>>, vector<1x64x128xbf16>
    %32 = vector.shape_cast %31 : vector<1x64x128xbf16> to vector<64x128xbf16>
    %33 = vector.shape_cast %30 : vector<64x128xbf16> to vector<1x64x128xbf16>
    tpu.vector_store %arg5[%c0_13, %c0_14, %c0_15], %33 {strides = array<i32>} : memref<1x64x128xbf16, #tpu.memory_space<vmem>>, vector<1x64x128xbf16>,
    return
  }
  func.func @transform_0(%arg0: i32, %arg1: i32) -> (i32, i32, i32) {
    %c0_i32 = arith.constant 0 : i32
    %c0_i32_0 = arith.constant 0 : i32
    %c0_i32_1 = arith.constant 0 : i32
    return %arg1, %c0_i32, %c0_i32_0 : i32, i32, i32
  }
  func.func @transform_1(%arg0: i32, %arg1: i32) -> (i32, i32) {
    %c0_i32 = arith.constant 0 : i32
    %c0_i32_0 = arith.constant 0 : i32
    return %c0_i32, %arg0 : i32, i32
  }
  func.func @transform_2(%arg0: i32, %arg1: i32) -> (i32, i32) {
    %c0_i32 = arith.constant 0 : i32
    %c0_i32_0 = arith.constant 0 : i32
    return %c0_i32, %arg0 : i32, i32
  }
  func.func @transform_3(%arg0: i32, %arg1: i32) -> (i32, i32, i32) {
    %c0_i32 = arith.constant 0 : i32
    %c0_i32_0 = arith.constant 0 : i32
    return %arg1, %c0_i32, %arg0 : i32, i32, i32
  }
}

module attributes {stable_mosaic.version = 11 : i64} {
  func.func @_gemm_kernel(%arg0: i32, %arg1: i32, %arg2: memref<1x16x2048xbf16, #tpu.memory_space<vmem>>, %arg3: memref<2048x128xbf16, #tpu.memory_space<vmem>>, %arg4: memref<1x128xf32, #tpu.memory_space<vmem>>, %arg5: memref<1x16x128xbf16, #tpu.memory_space<vmem>>) attributes {dimension_semantics = [#tpu.dimension_semantics<parallel>, #tpu.dimension_semantics<parallel>], iteration_bounds = array<i64: 2, 2>, scalar_prefetch = 0 : i64, scratch_operands = 0 : i64, tpu.core_type = #tpu.core_type<tc>, window_params = [{transform_indices = @transform_0, window_bounds = array<i64: 1, 16, 2048>}, {transform_indices = @transform_1, window_bounds = array<i64: 2048, 128>}, {transform_indices = @transform_2, window_bounds = array<i64: 1, 128>}, {transform_indices = @transform_3, window_bounds = array<i64: 1, 16, 128>}]} {
    %c0 = arith.constant 0 : index
    %c0_0 = arith.constant 0 : index
    %c0_1 = arith.constant 0 : index
    %0 = vector.load %arg2[%c0, %c0_0, %c0_1] : memref<1x16x2048xbf16, #tpu.memory_space<vmem>>, vector<1x16x2048xbf16>
    %1 = vector.shape_cast %0 : vector<1x16x2048xbf16> to vector<16x2048xbf16>
    %c0_2 = arith.constant 0 : index
    %c0_3 = arith.constant 0 : index
    %2 = vector.load %arg3[%c0_2, %c0_3] : memref<2048x128xbf16, #tpu.memory_space<vmem>>, vector<2048x128xbf16>
    %cst = arith.constant dense<0.000000e+00> : vector<16x128xf32>
    %3 = tpu.matmul %1, %2, %cst {dimension_numbers = #tpu.dot_dimension_numbers<[1], [0], [0], [1], [0, 0, 1, 1], [], []>} : vector<16x2048xbf16>, vector<2048x128xbf16>, vector<16x128xf32> -> vector<16x128xf32>
    %c0_4 = arith.constant 0 : index
    %c0_5 = arith.constant 0 : index
    %4 = vector.load %arg4[%c0_4, %c0_5] : memref<1x128xf32, #tpu.memory_space<vmem>>, vector<1x128xf32>
    %5 = vector.broadcast %4 : vector<1x128xf32> to vector<16x128xf32>
    %6 = arith.addf %3, %5 : vector<16x128xf32>
    %cst_6 = arith.constant dense<0.000000e+00> : vector<128xf32>
    %7 = vector.multi_reduction <add>, %6, %cst_6 [0] : vector<16x128xf32> to vector<128xf32>
    %8 = vector.shape_cast %7 : vector<128xf32> to vector<1x128xf32>
    %cst_7 = arith.constant 1.600000e+01 : f32
    %9 = vector.broadcast %cst_7 : f32 to vector<1x128xf32>
    %10 = arith.divf %8, %9 : vector<1x128xf32>
    %11 = vector.broadcast %10 : vector<1x128xf32> to vector<16x128xf32>
    %12 = arith.subf %6, %11 : vector<16x128xf32>
    %13 = arith.mulf %12, %12 : vector<16x128xf32>
    %cst_8 = arith.constant dense<0.000000e+00> : vector<128xf32>
    %14 = vector.multi_reduction <add>, %13, %cst_8 [0] : vector<16x128xf32> to vector<128xf32>
    %15 = vector.shape_cast %14 : vector<128xf32> to vector<1x128xf32>
    %cst_9 = arith.constant 1.600000e+01 : f32
    %16 = vector.broadcast %cst_9 : f32 to vector<1x128xf32>
    %17 = arith.divf %15, %16 : vector<1x128xf32>
    %18 = vector.broadcast %10 : vector<1x128xf32> to vector<16x128xf32>
    %19 = arith.subf %6, %18 : vector<16x128xf32>
    %cst_10 = arith.constant 9.99999974E-6 : f32
    %20 = vector.broadcast %cst_10 : f32 to vector<1x128xf32>
    %21 = arith.addf %17, %20 : vector<1x128xf32>
    %22 = math.rsqrt %21 : vector<1x128xf32>
    %23 = vector.broadcast %22 : vector<1x128xf32> to vector<16x128xf32>
    %24 = arith.mulf %19, %23 : vector<16x128xf32>
    %cst_11 = arith.constant 0.000000e+00 : f32
    %25 = vector.broadcast %cst_11 : f32 to vector<16x128xf32>
    %26 = arith.cmpf oge, %24, %25 : vector<16x128xf32>
    %cst_12 = arith.constant 2.000000e-01 : f32
    %27 = vector.broadcast %cst_12 : f32 to vector<16x128xf32>
    %28 = arith.mulf %27, %24 : vector<16x128xf32>
    %29 = arith.select %26, %24, %28 : vector<16x128xi1>, vector<16x128xf32>
    %30 = arith.truncf %29 : vector<16x128xf32> to vector<16x128xbf16>
    %c0_13 = arith.constant 0 : index
    %c0_14 = arith.constant 0 : index
    %c0_15 = arith.constant 0 : index
    %31 = vector.load %arg5[%c0_13, %c0_14, %c0_15] : memref<1x16x128xbf16, #tpu.memory_space<vmem>>, vector<1x16x128xbf16>
    %32 = vector.shape_cast %31 : vector<1x16x128xbf16> to vector<16x128xbf16>
    %33 = vector.shape_cast %30 : vector<16x128xbf16> to vector<1x16x128xbf16>
    tpu.vector_store %arg5[%c0_13, %c0_14, %c0_15], %33 {strides = array<i32>} : memref<1x16x128xbf16, #tpu.memory_space<vmem>>, vector<1x16x128xbf16>,
    return
  }
  func.func @transform_0(%arg0: i32, %arg1: i32) -> (i32, i32, i32) {
    %c0_i32 = arith.constant 0 : i32
    %c0_i32_0 = arith.constant 0 : i32
    %c0_i32_1 = arith.constant 0 : i32
    return %arg1, %c0_i32, %c0_i32_0 : i32, i32, i32
  }
  func.func @transform_1(%arg0: i32, %arg1: i32) -> (i32, i32) {
    %c0_i32 = arith.constant 0 : i32
    %c0_i32_0 = arith.constant 0 : i32
    return %c0_i32, %arg0 : i32, i32
  }
  func.func @transform_2(%arg0: i32, %arg1: i32) -> (i32, i32) {
    %c0_i32 = arith.constant 0 : i32
    %c0_i32_0 = arith.constant 0 : i32
    return %c0_i32, %arg0 : i32, i32
  }
  func.func @transform_3(%arg0: i32, %arg1: i32) -> (i32, i32, i32) {
    %c0_i32 = arith.constant 0 : i32
    %c0_i32_0 = arith.constant 0 : i32
    return %arg1, %c0_i32, %arg0 : i32, i32, i32
  }
}

module attributes {stable_mosaic.version = 11 : i64} {
  func.func @_gemm_kernel(%arg0: i32, %arg1: i32, %arg2: memref<1x4x4096xbf16, #tpu.memory_space<vmem>>, %arg3: memref<4096x128xbf16, #tpu.memory_space<vmem>>, %arg4: memref<1x128xf32, #tpu.memory_space<vmem>>, %arg5: memref<1x4x128xbf16, #tpu.memory_space<vmem>>) attributes {dimension_semantics = [#tpu.dimension_semantics<parallel>, #tpu.dimension_semantics<parallel>], iteration_bounds = array<i64: 4, 2>, scalar_prefetch = 0 : i64, scratch_operands = 0 : i64, tpu.core_type = #tpu.core_type<tc>, window_params = [{transform_indices = @transform_0, window_bounds = array<i64: 1, 4, 4096>}, {transform_indices = @transform_1, window_bounds = array<i64: 4096, 128>}, {transform_indices = @transform_2, window_bounds = array<i64: 1, 128>}, {transform_indices = @transform_3, window_bounds = array<i64: 1, 4, 128>}]} {
    %c0 = arith.constant 0 : index
    %c0_0 = arith.constant 0 : index
    %c0_1 = arith.constant 0 : index
    %0 = vector.load %arg2[%c0, %c0_0, %c0_1] : memref<1x4x4096xbf16, #tpu.memory_space<vmem>>, vector<1x4x4096xbf16>
    %1 = vector.shape_cast %0 : vector<1x4x4096xbf16> to vector<4x4096xbf16>
    %c0_2 = arith.constant 0 : index
    %c0_3 = arith.constant 0 : index
    %2 = vector.load %arg3[%c0_2, %c0_3] : memref<4096x128xbf16, #tpu.memory_space<vmem>>, vector<4096x128xbf16>
    %cst = arith.constant dense<0.000000e+00> : vector<4x128xf32>
    %3 = tpu.matmul %1, %2, %cst {dimension_numbers = #tpu.dot_dimension_numbers<[1], [0], [0], [1], [0, 0, 1, 1], [], []>} : vector<4x4096xbf16>, vector<4096x128xbf16>, vector<4x128xf32> -> vector<4x128xf32>
    %c0_4 = arith.constant 0 : index
    %c0_5 = arith.constant 0 : index
    %4 = vector.load %arg4[%c0_4, %c0_5] : memref<1x128xf32, #tpu.memory_space<vmem>>, vector<1x128xf32>
    %5 = vector.broadcast %4 : vector<1x128xf32> to vector<4x128xf32>
    %6 = arith.addf %3, %5 : vector<4x128xf32>
    %cst_6 = arith.constant dense<0.000000e+00> : vector<128xf32>
    %7 = vector.multi_reduction <add>, %6, %cst_6 [0] : vector<4x128xf32> to vector<128xf32>
    %8 = vector.shape_cast %7 : vector<128xf32> to vector<1x128xf32>
    %cst_7 = arith.constant 4.000000e+00 : f32
    %9 = vector.broadcast %cst_7 : f32 to vector<1x128xf32>
    %10 = arith.divf %8, %9 : vector<1x128xf32>
    %11 = vector.broadcast %10 : vector<1x128xf32> to vector<4x128xf32>
    %12 = arith.subf %6, %11 : vector<4x128xf32>
    %13 = arith.mulf %12, %12 : vector<4x128xf32>
    %cst_8 = arith.constant dense<0.000000e+00> : vector<128xf32>
    %14 = vector.multi_reduction <add>, %13, %cst_8 [0] : vector<4x128xf32> to vector<128xf32>
    %15 = vector.shape_cast %14 : vector<128xf32> to vector<1x128xf32>
    %cst_9 = arith.constant 4.000000e+00 : f32
    %16 = vector.broadcast %cst_9 : f32 to vector<1x128xf32>
    %17 = arith.divf %15, %16 : vector<1x128xf32>
    %18 = vector.broadcast %10 : vector<1x128xf32> to vector<4x128xf32>
    %19 = arith.subf %6, %18 : vector<4x128xf32>
    %cst_10 = arith.constant 9.99999974E-6 : f32
    %20 = vector.broadcast %cst_10 : f32 to vector<1x128xf32>
    %21 = arith.addf %17, %20 : vector<1x128xf32>
    %22 = math.rsqrt %21 : vector<1x128xf32>
    %23 = vector.broadcast %22 : vector<1x128xf32> to vector<4x128xf32>
    %24 = arith.mulf %19, %23 : vector<4x128xf32>
    %cst_11 = arith.constant 0.000000e+00 : f32
    %25 = vector.broadcast %cst_11 : f32 to vector<4x128xf32>
    %26 = arith.cmpf oge, %24, %25 : vector<4x128xf32>
    %cst_12 = arith.constant 2.000000e-01 : f32
    %27 = vector.broadcast %cst_12 : f32 to vector<4x128xf32>
    %28 = arith.mulf %27, %24 : vector<4x128xf32>
    %29 = arith.select %26, %24, %28 : vector<4x128xi1>, vector<4x128xf32>
    %30 = arith.truncf %29 : vector<4x128xf32> to vector<4x128xbf16>
    %c0_13 = arith.constant 0 : index
    %c0_14 = arith.constant 0 : index
    %c0_15 = arith.constant 0 : index
    %31 = vector.load %arg5[%c0_13, %c0_14, %c0_15] : memref<1x4x128xbf16, #tpu.memory_space<vmem>>, vector<1x4x128xbf16>
    %32 = vector.shape_cast %31 : vector<1x4x128xbf16> to vector<4x128xbf16>
    %33 = vector.shape_cast %30 : vector<4x128xbf16> to vector<1x4x128xbf16>
    tpu.vector_store %arg5[%c0_13, %c0_14, %c0_15], %33 {strides = array<i32>} : memref<1x4x128xbf16, #tpu.memory_space<vmem>>, vector<1x4x128xbf16>,
    return
  }
  func.func @transform_0(%arg0: i32, %arg1: i32) -> (i32, i32, i32) {
    %c0_i32 = arith.constant 0 : i32
    %c0_i32_0 = arith.constant 0 : i32
    %c0_i32_1 = arith.constant 0 : i32
    return %arg1, %c0_i32, %c0_i32_0 : i32, i32, i32
  }
  func.func @transform_1(%arg0: i32, %arg1: i32) -> (i32, i32) {
    %c0_i32 = arith.constant 0 : i32
    %c0_i32_0 = arith.constant 0 : i32
    return %c0_i32, %arg0 : i32, i32
  }
  func.func @transform_2(%arg0: i32, %arg1: i32) -> (i32, i32) {
    %c0_i32 = arith.constant 0 : i32
    %c0_i32_0 = arith.constant 0 : i32
    return %c0_i32, %arg0 : i32, i32
  }
  func.func @transform_3(%arg0: i32, %arg1: i32) -> (i32, i32, i32) {
    %c0_i32 = arith.constant 0 : i32
    %c0_i32_0 = arith.constant 0 : i32
    return %arg1, %c0_i32, %arg0 : i32, i32, i32
  }
}

module attributes {stable_mosaic.version = 11 : i64} {
  func.func @_final_reduce_kernel(%arg0: i32, %arg1: memref<8x8192xbf16, #tpu.memory_space<vmem>>, %arg2: memref<1x8192xbf16, #tpu.memory_space<vmem>>, %arg3: memref<8x1xf32, #tpu.memory_space<vmem>>) attributes {dimension_semantics = [#tpu.dimension_semantics<arbitrary>], iteration_bounds = array<i64: 1>, scalar_prefetch = 0 : i64, scratch_operands = 0 : i64, tpu.core_type = #tpu.core_type<tc>, window_params = [{pipeline_mode = #tpu.pipeline_mode<synchronous>, transform_indices = @transform_0, window_bounds = array<i64: 8, 8192>}, {pipeline_mode = #tpu.pipeline_mode<synchronous>, transform_indices = @transform_1, window_bounds = array<i64: 1, 8192>}, {pipeline_mode = #tpu.pipeline_mode<synchronous>, transform_indices = @transform_2, window_bounds = array<i64: 8, 1>}]} {
    %c0 = arith.constant 0 : index
    %c0_0 = arith.constant 0 : index
    %0 = vector.load %arg1[%c0, %c0_0] : memref<8x8192xbf16, #tpu.memory_space<vmem>>, vector<8x8192xbf16>
    %1 = arith.extf %0 : vector<8x8192xbf16> to vector<8x8192xf32>
    %c0_1 = arith.constant 0 : index
    %c0_2 = arith.constant 0 : index
    %2 = vector.load %arg2[%c0_1, %c0_2] : memref<1x8192xbf16, #tpu.memory_space<vmem>>, vector<1x8192xbf16>
    %3 = arith.extf %2 : vector<1x8192xbf16> to vector<1x8192xf32>
    %4 = vector.broadcast %3 : vector<1x8192xf32> to vector<8x8192xf32>
    %5 = arith.mulf %1, %4 : vector<8x8192xf32>
    %cst = arith.constant dense<0.000000e+00> : vector<8xf32>
    %6 = vector.multi_reduction <add>, %5, %cst [1] : vector<8x8192xf32> to vector<8xf32>
    %7 = vector.shape_cast %6 : vector<8xf32> to vector<8x1xf32>
    %cst_3 = arith.constant 0.000000e+00 : f32
    %8 = vector.broadcast %cst_3 : f32 to vector<8x1xf32>
    %9 = arith.subf %8, %7 : vector<8x1xf32>
    %10 = math.exp %9 : vector<8x1xf32>
    %cst_4 = arith.constant 1.000000e+00 : f32
    %11 = vector.broadcast %cst_4 : f32 to vector<8x1xf32>
    %12 = arith.addf %11, %10 : vector<8x1xf32>
    %cst_5 = arith.constant 1.000000e+00 : f32
    %13 = vector.broadcast %cst_5 : f32 to vector<8x1xf32>
    %14 = arith.divf %13, %12 : vector<8x1xf32>
    %c0_6 = arith.constant 0 : index
    %c0_7 = arith.constant 0 : index
    %15 = vector.load %arg3[%c0_6, %c0_7] : memref<8x1xf32, #tpu.memory_space<vmem>>, vector<8x1xf32>
    tpu.vector_store %arg3[%c0_6, %c0_7], %14 {strides = array<i32>} : memref<8x1xf32, #tpu.memory_space<vmem>>, vector<8x1xf32>,
    return
  }
  func.func @transform_0(%arg0: i32) -> (i32, i32) {
    %c0_i32 = arith.constant 0 : i32
    %c0_i32_0 = arith.constant 0 : i32
    %c0_i32_1 = arith.constant 0 : i32
    return %c0_i32, %c0_i32_0 : i32, i32
  }
  func.func @transform_1(%arg0: i32) -> (i32, i32) {
    %c0_i32 = arith.constant 0 : i32
    %c0_i32_0 = arith.constant 0 : i32
    %c0_i32_1 = arith.constant 0 : i32
    return %c0_i32, %c0_i32_0 : i32, i32
  }
  func.func @transform_2(%arg0: i32) -> (i32, i32) {
    %c0_i32 = arith.constant 0 : i32
    %c0_i32_0 = arith.constant 0 : i32
    %c0_i32_1 = arith.constant 0 : i32
    return %c0_i32, %c0_i32_0 : i32, i32
  }
}

</mosaic_0001>

<bundles_post_ra>
// kernel: discriminator.5
= control target key start
LH: loop header
LB: loop body
LE: loop exit
PB: predicated region body
PF: predicated region fallthrough
CT: control target
= control target key end

     0   :  { %s821_s12 = smov 0   ;;  %s823_s13 = smov 0   ;;  %s919_s0 = inlined_call_operand.vmem [shape: bf16[512,128], index: 0, kind: input, shape index: {}]   ;;  %s920_s1 = inlined_call_operand.vmem [shape: bf16[128,128], index: 1, kind: input, shape index: {}]   ;;  %s921_s2 = inlined_call_operand.vmem [shape: f32[1,128], index: 2, kind: input, shape index: {}]   ;;  %s922_s3 = inlined_call_operand.vmem [shape: bf16[512,128], index: 3, kind: output, shape index: {}]  }
   0x1   :  { %s825_s14 = smov 0  }
   0x2 LB: > { %s25_s15 = sadd.s32 1, %s795_s13  ;;  %p594_p0 = scmp.ge.s32.totalorder %s799_s14, 1  ;;  %s799_s14 = sphi %s825_s14, %s13_s14   ;;  %s795_s13 = sphi %s823_s13, %s924_s13   ;;  %s791_s12 = sphi %s821_s12, %s923_s12  }
   0x3   : > { %p27_p1 = scmp.ge.s32.totalorder %s25_s15, 4  ;;  %p169_p2 = scmp.lt.s32.totalorder %s799_s14, 5 }
   0x5   : > { %s926_s15 = smov (%p27_p1, %s25_s15), 0  ;;  %p170_p3 = pnand %p594_p0, %p169_p2 }
   0x6   : > { %s595_s24 = sshll.u32 (!%p170_p3), %s791_s12, 4 }
   0x7   : > { %173 = sbr.rel (%p170_p3) target bundleno = 210 (0xd2), region = 32  ;;  %p204_p4 = scmp.lt.s32.totalorder (!%p170_p3), %s595_s24, 63 }
   0xc   : > { %v680_v0 = vld [vmem:[%s920_s1 + $0x38] sm:$0xff]  ;;  %v679_v1 = vld [vmem:[%s920_s1 + $0x30] sm:$0xff]  ;;  %v678_v2 = vld [vmem:[%s920_s1 + $0x28] sm:$0xff]  ;;  %s928_s24 = smov (!%p204_p4, %s595_s24), 63 }
   0xd   : > { %357 = vmatpush.bf16.msra.mxu0 %v680_v0  ;;  %728 = vmatpush.bf16.msra.mxu1 %v680_v0  ;;  %v677_v3 = vld [vmem:[%s920_s1 + $0x20] sm:$0xff]  ;;  %v676_v4 = vld [vmem:[%s920_s1 + $0x18] sm:$0xff]  ;;  %v675_v5 = vld [vmem:[%s920_s1 + $0x10] sm:$0xff]  ;;  %s596_s4 = sshll.u32 %s928_s24, 2 }
   0xe   : > { %729 = vmatpush.bf16.msra.mxu2 %v680_v0  ;;  %730 = vmatpush.bf16.msra.mxu3 %v680_v0  ;;  %v674_v6 = vld [vmem:[%s920_s1 + $0x8] sm:$0xff]  ;;  %v673_v7 = vld [vmem:[%s920_s1] sm:$0xff]  ;;  %s207_s9 = scalar_lea.vmem %s919_s0, %s596_s4  ;;  %s890_s17 = scalar_lea.vmem %s922_s3, %s596_s4 }
   0xf   : > { %v665_v8 = vld [vmem:[%s207_s9] sm:$0xff]  ;;  %v667_v9 = vld [vmem:[%s207_s9 + $0x10] sm:$0xff]  ;;  %v666_v12 = vld [vmem:[%s207_s9 + $0x8] sm:$0xff] }
  0x10   : > { %v669_v10 = vld [vmem:[%s207_s9 + $0x20] sm:$0xff]  ;;  %v671_v11 = vld [vmem:[%s207_s9 + $0x30] sm:$0xff]  ;;  %v668_v13 = vld [vmem:[%s207_s9 + $0x18] sm:$0xff] }
  0x11   : > { %358 = vmatpush.bf16.msra.mxu0 %v679_v1  ;;  %731 = vmatpush.bf16.msra.mxu1 %v679_v1  ;;  %v670_v14 = vld [vmem:[%s207_s9 + $0x28] sm:$0xff]  ;;  %v672_v15 = vld [vmem:[%s207_s9 + $0x38] sm:$0xff]  ;;  %v877_v18 = vld [vmem:[%s921_s2] ss:$0 sm:$0xff] }
  0x12   : > { %732 = vmatpush.bf16.msra.mxu2 %v679_v1  ;;  %733 = vmatpush.bf16.msra.mxu3 %v679_v1 }
  0x15   : > { %359 = vmatpush.bf16.msra.mxu0 %v678_v2  ;;  %734 = vmatpush.bf16.msra.mxu1 %v678_v2 }
  0x16   : > { %735 = vmatpush.bf16.msra.mxu2 %v678_v2  ;;  %736 = vmatpush.bf16.msra.mxu3 %v678_v2 }
  0x19   : > { %360 = vmatpush.bf16.msra.mxu0 %v677_v3  ;;  %737 = vmatpush.bf16.msra.mxu1 %v677_v3 }
  0x1a   : > { %738 = vmatpush.bf16.msra.mxu2 %v677_v3  ;;  %739 = vmatpush.bf16.msra.mxu3 %v677_v3 }
  0x1d   : > { %361 = vmatpush.bf16.msra.mxu0 %v676_v4  ;;  %740 = vmatpush.bf16.msra.mxu1 %v676_v4 }
  0x1e   : > { %741 = vmatpush.bf16.msra.mxu2 %v676_v4  ;;  %742 = vmatpush.bf16.msra.mxu3 %v676_v4 }
  0x21   : > { %362 = vmatpush.bf16.msra.mxu0 %v675_v5  ;;  %743 = vmatpush.bf16.msra.mxu1 %v675_v5 }
  0x22   : > { %744 = vmatpush.bf16.msra.mxu2 %v675_v5  ;;  %745 = vmatpush.bf16.msra.mxu3 %v675_v5 }
  0x25   : > { %363 = vmatpush.bf16.msra.mxu0 %v674_v6  ;;  %746 = vmatpush.bf16.msra.mxu1 %v674_v6 }
  0x26   : > { %747 = vmatpush.bf16.msra.mxu2 %v674_v6  ;;  %748 = vmatpush.bf16.msra.mxu3 %v674_v6 }
  0x29   : > { %364 = vmatpush.bf16.msra.mxu0 %v673_v7  ;;  %749 = vmatpush.bf16.msra.mxu1 %v673_v7 }
  0x2a   : > { %750 = vmatpush.bf16.msra.mxu2 %v673_v7  ;;  %751 = vmatpush.bf16.msra.mxu3 %v673_v7 }
  0x2c   : > { %365 = vmatmul.bf16.vlgmr.msra.gmra.mxu0 %v665_v8  ;;  %375 = vmatmul.bf16.vlgmr.msra.gmra.mxu1 %v667_v9 }
  0x2d   : > { %385 = vmatmul.bf16.vlgmr.msra.gmra.mxu2 %v669_v10  ;;  %395 = vmatmul.bf16.vlgmr.msra.gmra.mxu3 %v671_v11 }
  0x3c   : > { %370 = vmatmul.bf16.gmra.mxu0 %v666_v12  ;;  %380 = vmatmul.bf16.gmra.mxu1 %v668_v13 }
  0x3d   : > { %390 = vmatmul.bf16.gmra.mxu2 %v670_v14  ;;  %400 = vmatmul.bf16.gmra.mxu3 %v672_v15 }
  0xa9   : > { %v366_v16 = vpop.f32.mrf.mxu0  ;;  %v376_v17 = vpop.f32.mrf.mxu1 }
  0xaa   : > { %v367_v19 = vadd.f32 %v877_v18, %v366_v16  ;;  %v377_v20 = vadd.f32 %v877_v18, %v376_v17 }
  0xac   : > { %v422_v25 = vmul.f32 0.2, %v367_v19  ;;  %v426_v26 = vmul.f32 0.2, %v377_v20  ;;  %vm406_vm0 = vcmp.ge.f32.partialorder %v367_v19, 0.0  ;;  %vm410_vm1 = vcmp.ge.f32.partialorder %v377_v20, 0.0 }
  0xae   : > { %v438_v33 = vsel %vm406_vm0, %v367_v19, %v422_v25  ;;  %v442_v34 = vsel %vm410_vm1, %v377_v20, %v426_v26 }
  0xb0   : > { %v386_v21 = vpop.f32.mrf.mxu2  ;;  %v396_v22 = vpop.f32.mrf.mxu3 }
  0xb1   : > { %v368_v23 = vpop.f32.mrf.mxu0  ;;  %v378_v24 = vpop.f32.mrf.mxu1  ;;  %v387_v31 = vadd.f32 %v877_v18, %v386_v21  ;;  %v397_v32 = vadd.f32 %v877_v18, %v396_v22 }
  0xb2   : > { %v369_v27 = vadd.f32 %v877_v18, %v368_v23  ;;  %v379_v28 = vadd.f32 %v877_v18, %v378_v24 }
  0xb3   : > { %v430_v41 = vmul.f32 0.2, %v387_v31  ;;  %v434_v42 = vmul.f32 0.2, %v397_v32  ;;  %vm414_vm4 = vcmp.ge.f32.partialorder %v387_v31, 0.0  ;;  %vm418_vm5 = vcmp.ge.f32.partialorder %v397_v32, 0.0 }
  0xb4   : > { %vm407_vm2 = vcmp.ge.f32.partialorder %v369_v27, 0.0  ;;  %v423_v29 = vmul.f32 0.2, %v369_v27  ;;  %vm411_vm3 = vcmp.ge.f32.partialorder %v379_v28, 0.0  ;;  %v427_v30 = vmul.f32 0.2, %v379_v28 }
  0xb5   : > { %v446_v49 = vsel %vm414_vm4, %v387_v31, %v430_v41  ;;  %v450_v50 = vsel %vm418_vm5, %v397_v32, %v434_v42 }
  0xb6   : > { %v439_v35 = vsel %vm407_vm2, %v369_v27, %v423_v29  ;;  %v443_v36 = vsel %vm411_vm3, %v379_v28, %v427_v30 }
  0xb7   : > { %v684_v37 = vpack.c.bf16 %v439_v35, %v438_v33  ;;  %v694_v38 = vpack.c.bf16 %v443_v36, %v442_v34 }
  0xb8   : > { %v388_v39 = vpop.f32.mrf.mxu2  ;;  %v398_v40 = vpop.f32.mrf.mxu3 }
  0xb9   : > { %685 = vst [vmem:[%s890_s17] sm:$0xff] %v684_v37   ;;  %v389_v43 = vadd.f32 %v877_v18, %v388_v39  ;;  %v399_v44 = vadd.f32 %v877_v18, %v398_v40  ;;  %v371_v45 = vpop.f32.mrf.mxu0  ;;  %v381_v46 = vpop.f32.mrf.mxu1 }
  0xba   : > { %722 = vst [vmem:[%s890_s17 + $0x10] sm:$0xff] %v694_v38   ;;  %v372_v55 = vadd.f32 %v877_v18, %v371_v45  ;;  %v382_v56 = vadd.f32 %v877_v18, %v381_v46 }
  0xbb   : > { %vm415_vm6 = vcmp.ge.f32.partialorder %v389_v43, 0.0  ;;  %v431_v47 = vmul.f32 0.2, %v389_v43  ;;  %vm419_vm7 = vcmp.ge.f32.partialorder %v399_v44, 0.0  ;;  %v435_v48 = vmul.f32 0.2, %v399_v44 }
  0xbc   : > { %v424_v61 = vmul.f32 0.2, %v372_v55  ;;  %v428_v62 = vmul.f32 0.2, %v382_v56  ;;  %vm408_vm8 = vcmp.ge.f32.partialorder %v372_v55, 0.0  ;;  %vm412_vm9 = vcmp.ge.f32.partialorder %v382_v56, 0.0 }
  0xbd   : > { %v447_v51 = vsel %vm415_vm6, %v389_v43, %v431_v47  ;;  %v451_v52 = vsel %vm419_vm7, %v399_v44, %v435_v48 }
  0xbe   : > { %v704_v53 = vpack.c.bf16 %v447_v51, %v446_v49  ;;  %v714_v54 = vpack.c.bf16 %v451_v52, %v450_v50  ;;  %v440_v5 = vsel %vm408_vm8, %v372_v55, %v424_v61  ;;  %v444_v6 = vsel %vm412_vm9, %v382_v56, %v428_v62 }
  0xc0   : > { %724 = vst [vmem:[%s890_s17 + $0x20] sm:$0xff] %v704_v53   ;;  %v391_v57 = vpop.f32.mrf.mxu2  ;;  %v401_v58 = vpop.f32.mrf.mxu3 }
  0xc1   : > { %726 = vst [vmem:[%s890_s17 + $0x30] sm:$0xff] %v714_v54   ;;  %v373_v59 = vpop.f32.mrf.mxu0  ;;  %v383_v60 = vpop.f32.mrf.mxu1  ;;  %v392_v3 = vadd.f32 %v877_v18, %v391_v57  ;;  %v402_v4 = vadd.f32 %v877_v18, %v401_v58 }
  0xc2   : > { %v374_v63 = vadd.f32 %v877_v18, %v373_v59  ;;  %v384_v0 = vadd.f32 %v877_v18, %v383_v60 }
  0xc3   : > { %v432_v13 = vmul.f32 0.2, %v392_v3  ;;  %v436_v14 = vmul.f32 0.2, %v402_v4  ;;  %vm416_vm12 = vcmp.ge.f32.partialorder %v392_v3, 0.0  ;;  %vm420_vm13 = vcmp.ge.f32.partialorder %v402_v4, 0.0 }
  0xc4   : > { %vm409_vm10 = vcmp.ge.f32.partialorder %v374_v63, 0.0  ;;  %v425_v1 = vmul.f32 0.2, %v374_v63  ;;  %vm413_vm11 = vcmp.ge.f32.partialorder %v384_v0, 0.0  ;;  %v429_v2 = vmul.f32 0.2, %v384_v0 }
  0xc5   : > { %v448_v20 = vsel %vm416_vm12, %v392_v3, %v432_v13  ;;  %v452_v21 = vsel %vm420_vm13, %v402_v4, %v436_v14 }
  0xc6   : > { %v441_v7 = vsel %vm409_vm10, %v374_v63, %v425_v1  ;;  %v445_v8 = vsel %vm413_vm11, %v384_v0, %v429_v2 }
  0xc7   : > { %v689_v9 = vpack.c.bf16 %v441_v7, %v440_v5  ;;  %v699_v10 = vpack.c.bf16 %v445_v8, %v444_v6 }
  0xc8   : > { %v393_v11 = vpop.f32.mrf.mxu2  ;;  %v403_v12 = vpop.f32.mrf.mxu3 }
  0xc9   : > { %721 = vst [vmem:[%s890_s17 + $0x8] sm:$0xff] %v689_v9   ;;  %v394_v15 = vadd.f32 %v877_v18, %v393_v11  ;;  %v404_v16 = vadd.f32 %v877_v18, %v403_v12 }
  0xca   : > { %723 = vst [vmem:[%s890_s17 + $0x18] sm:$0xff] %v699_v10  }
  0xcb   : > { %vm417_vm14 = vcmp.ge.f32.partialorder %v394_v15, 0.0  ;;  %v433_v17 = vmul.f32 0.2, %v394_v15  ;;  %vm421_vm15 = vcmp.ge.f32.partialorder %v404_v16, 0.0  ;;  %v437_v19 = vmul.f32 0.2, %v404_v16 }
  0xcd   : > { %v449_v22 = vsel %vm417_vm14, %v394_v15, %v433_v17  ;;  %v453_v23 = vsel %vm421_vm15, %v404_v16, %v437_v19 }
  0xce   : > { %v709_v24 = vpack.c.bf16 %v449_v22, %v448_v20  ;;  %v719_v25 = vpack.c.bf16 %v453_v23, %v452_v21 }
  0xd0   : > { %725 = vst [vmem:[%s890_s17 + $0x28] sm:$0xff] %v709_v24  }
  0xd1   : > { %727 = vst [vmem:[%s890_s17 + $0x38] sm:$0xff] %v719_v25  }
  0xd2 PF: > { %s13_s14 = sadd.s32 1, %s799_s14   ;;  %s923_s12 = smov %s795_s13 }
  0xd3   : > { %p10_p5 = scmp.ge.s32.totalorder %s13_s14, 6   ;;  %s924_s13 = smov %s926_s15 }
  0xd5   :  { %12 = sbr.rel (!%p10_p5) target bundleno = 2 (0x2), region = 68 }

// kernel: discriminator.6
= control target key start
LH: loop header
LB: loop body
LE: loop exit
PB: predicated region body
PF: predicated region fallthrough
CT: control target
= control target key end

     0   :  { %s1970_s12 = smov 0   ;;  %s1972_s13 = smov 0   ;;  %s2309_s0 = inlined_call_operand.vmem [shape: bf16[2,64,1024], index: 0, kind: input, shape index: {}]   ;;  %s2310_s1 = inlined_call_operand.vmem [shape: bf16[1024,128], index: 1, kind: input, shape index: {}]   ;;  %s2311_s2 = inlined_call_operand.vmem [shape: f32[1,128], index: 2, kind: input, shape index: {}]   ;;  %s2312_s3 = inlined_call_operand.vmem [shape: bf16[2,64,128], index: 3, kind: output, shape index: {}]  }
   0x1   :  { %s1974_s14 = smov 0  }
   0x2 LB: > { %s22_s15 = sadd.s32 1, %s1943_s13  ;;  %p1383_p0 = scmp.ge.s32.totalorder %s1947_s14, 1  ;;  %s1947_s14 = sphi %s1974_s14, %s13_s14   ;;  %s1943_s13 = sphi %s1972_s13, %s2314_s13   ;;  %s1939_s12 = sphi %s1970_s12, %s2313_s12  }
   0x3   : > { %p23_p1 = scmp.ge.s32.totalorder %s22_s15, 2  ;;  %p168_p2 = scmp.lt.s32.totalorder %s1947_s14, 3 }
   0x5   : > { %s2316_s15 = smov (%p23_p1, %s22_s15), 0  ;;  %p169_p3 = pnand %p1383_p0, %p168_p2 }
   0x6   : > { %p202_p4 = scmp.lt.s32.totalorder (!%p169_p3), %s1939_s12, 1 }
   0x7   : > { %172 = sbr.rel (%p169_p3) target bundleno = 384 (0x180), region = 32 }
   0xc   : > { %v1815_v0 = vld [vmem:[%s2310_s1 + $0x38] sm:$0xff]  ;;  %v1814_v4 = vld [vmem:[%s2310_s1 + $0x30] sm:$0xff]  ;;  %v1813_v8 = vld [vmem:[%s2310_s1 + $0x28] sm:$0xff]  ;;  %s2318_s12 = smov (!%p202_p4, %s1939_s12), 1 }
   0xd   : > { %v1823_v1 = vld [vmem:[%s2310_s1 + $0x78] sm:$0xff]  ;;  %930 = vmatpush.bf16.msra.mxu0 %v1815_v0  ;;  %v1822_v5 = vld [vmem:[%s2310_s1 + $0x70] sm:$0xff]  ;;  %v1821_v9 = vld [vmem:[%s2310_s1 + $0x68] sm:$0xff]  ;;  %s1774_s18 = sshll.u32 %s2318_s12, 8 }
   0xe   : > { %v1831_v2 = vld [vmem:[%s2310_s1 + $0xb8] sm:$0xff]  ;;  %959 = vmatpush.bf16.msra.mxu1 %v1823_v1  ;;  %v1830_v6 = vld [vmem:[%s2310_s1 + $0xb0] sm:$0xff]  ;;  %v1829_v10 = vld [vmem:[%s2310_s1 + $0xa8] sm:$0xff]  ;;  %s2076_s25 = scalar_lea.vmem %s2309_s0, %s1774_s18 }
   0xf   : > { %v1839_v3 = vld [vmem:[%s2310_s1 + $0xf8] sm:$0xff]  ;;  %988 = vmatpush.bf16.msra.mxu2 %v1831_v2  ;;  %v1838_v7 = vld [vmem:[%s2310_s1 + $0xf0] sm:$0xff]  ;;  %v1837_v11 = vld [vmem:[%s2310_s1 + $0xe8] sm:$0xff] }
  0x10   : > { %1017 = vmatpush.bf16.msra.mxu3 %v1839_v3  ;;  %v1812_v12 = vld [vmem:[%s2310_s1 + $0x20] sm:$0xff]  ;;  %v1811_v16 = vld [vmem:[%s2310_s1 + $0x18] sm:$0xff]  ;;  %v1810_v20 = vld [vmem:[%s2310_s1 + $0x10] sm:$0xff] }
  0x11   : > { %931 = vmatpush.bf16.msra.mxu0 %v1814_v4  ;;  %v1820_v13 = vld [vmem:[%s2310_s1 + $0x60] sm:$0xff]  ;;  %v1819_v17 = vld [vmem:[%s2310_s1 + $0x58] sm:$0xff]  ;;  %v1818_v21 = vld [vmem:[%s2310_s1 + $0x50] sm:$0xff] }
  0x12   : > { %960 = vmatpush.bf16.msra.mxu1 %v1822_v5  ;;  %v1828_v14 = vld [vmem:[%s2310_s1 + $0xa0] sm:$0xff]  ;;  %v1827_v18 = vld [vmem:[%s2310_s1 + $0x98] sm:$0xff]  ;;  %v1826_v22 = vld [vmem:[%s2310_s1 + $0x90] sm:$0xff] }
  0x13   : > { %989 = vmatpush.bf16.msra.mxu2 %v1830_v6  ;;  %v1836_v15 = vld [vmem:[%s2310_s1 + $0xe0] sm:$0xff]  ;;  %v1835_v19 = vld [vmem:[%s2310_s1 + $0xd8] sm:$0xff]  ;;  %v1834_v23 = vld [vmem:[%s2310_s1 + $0xd0] sm:$0xff] }
  0x14   : > { %1018 = vmatpush.bf16.msra.mxu3 %v1838_v7  ;;  %v1809_v24 = vld [vmem:[%s2310_s1 + $0x8] sm:$0xff]  ;;  %v1808_v28 = vld [vmem:[%s2310_s1] sm:$0xff]  ;;  %v1863_v40 = vld [vmem:[%s2310_s1 + $0x1b8] sm:$0xff] }
  0x15   : > { %932 = vmatpush.bf16.msra.mxu0 %v1813_v8  ;;  %v1817_v25 = vld [vmem:[%s2310_s1 + $0x48] sm:$0xff]  ;;  %v1816_v29 = vld [vmem:[%s2310_s1 + $0x40] sm:$0xff]  ;;  %v1847_v41 = vld [vmem:[%s2310_s1 + $0x138] sm:$0xff] }
  0x16   : > { %961 = vmatpush.bf16.msra.mxu1 %v1821_v9  ;;  %v1825_v26 = vld [vmem:[%s2310_s1 + $0x88] sm:$0xff]  ;;  %v1824_v30 = vld [vmem:[%s2310_s1 + $0x80] sm:$0xff]  ;;  %v1871_v46 = vld [vmem:[%s2310_s1 + $0x1f8] sm:$0xff] }
  0x17   : > { %990 = vmatpush.bf16.msra.mxu2 %v1829_v10  ;;  %v1833_v27 = vld [vmem:[%s2310_s1 + $0xc8] sm:$0xff]  ;;  %v1832_v31 = vld [vmem:[%s2310_s1 + $0xc0] sm:$0xff]  ;;  %v1855_v47 = vld [vmem:[%s2310_s1 + $0x178] sm:$0xff] }
  0x18   : > { %1019 = vmatpush.bf16.msra.mxu3 %v1837_v11  ;;  %v1390_v32 = vld [vmem:[%s2076_s25] sm:$0xf]  ;;  %v1776_v34 = vld [vmem:[%s2076_s25 + $0x4] sm:$0xf]  ;;  %v1398_v36 = vld [vmem:[%s2076_s25 + $0x8] sm:$0xf] }
  0x19   : > { %933 = vmatpush.bf16.msra.mxu0 %v1812_v12  ;;  %v1780_v33 = vld [vmem:[%s2076_s25 + $0x1c] sm:$0xf0]  ;;  %v1392_v35 = vld [vmem:[%s2076_s25 + $0x20] sm:$0xf0]  ;;  %v1781_v37 = vld [vmem:[%s2076_s25 + $0x24] sm:$0xf0] }
  0x1a   : > { %962 = vmatpush.bf16.msra.mxu1 %v1820_v13  ;;  %v1777_v38 = vld [vmem:[%s2076_s25 + $0xc] sm:$0xf]  ;;  %v1391_v42 = vor.u32 %v1780_v33, %v1390_v32  ;;  %v1395_v43 = vor.u32 %v1776_v34, %v1392_v35  ;;  %v1399_v44 = vor.u32 %v1781_v37, %v1398_v36  ;;  %v1862_v48 = vld [vmem:[%s2310_s1 + $0x1b0] sm:$0xff]  ;;  %v1422_v56 = vld [vmem:[%s2076_s25 + $0x40] sm:$0xf] }
  0x1b   : > { %991 = vmatpush.bf16.msra.mxu2 %v1828_v14  ;;  %v1400_v39 = vld [vmem:[%s2076_s25 + $0x28] sm:$0xf0]  ;;  %v1846_v49 = vld [vmem:[%s2310_s1 + $0x130] sm:$0xff]  ;;  %v1860_v57 = vld [vmem:[%s2310_s1 + $0x1a0] sm:$0xff] }
  0x1c   : > { %1020 = vmatpush.bf16.msra.mxu3 %v1836_v15  ;;  %v1403_v45 = vor.u32 %v1777_v38, %v1400_v39  ;;  %v1870_v50 = vld [vmem:[%s2310_s1 + $0x1f0] sm:$0xff]  ;;  %v1861_v52 = vld [vmem:[%s2310_s1 + $0x1a8] sm:$0xff]  ;;  %v1844_v58 = vld [vmem:[%s2310_s1 + $0x120] sm:$0xff] }
  0x1d   : > { %934 = vmatpush.bf16.msra.mxu0 %v1811_v16  ;;  %v1854_v51 = vld [vmem:[%s2310_s1 + $0x170] sm:$0xff]  ;;  %v1845_v53 = vld [vmem:[%s2310_s1 + $0x128] sm:$0xff]  ;;  %v1788_v59 = vld [vmem:[%s2076_s25 + $0x5c] sm:$0xf0] }
  0x1e   : > { %963 = vmatpush.bf16.msra.mxu1 %v1819_v17  ;;  %v1869_v54 = vld [vmem:[%s2310_s1 + $0x1e8] sm:$0xff]  ;;  %v1784_v60 = vld [vmem:[%s2076_s25 + $0x44] sm:$0xf]  ;;  %v1859_v4 = vld [vmem:[%s2310_s1 + $0x198] sm:$0xff]  ;;  %v1423_v6 = vor.u32 %v1788_v59, %v1422_v56 }
  0x1f   : > { %992 = vmatpush.bf16.msra.mxu2 %v1827_v18  ;;  %v1853_v55 = vld [vmem:[%s2310_s1 + $0x168] sm:$0xff]  ;;  %v1424_v61 = vld [vmem:[%s2076_s25 + $0x60] sm:$0xf0]  ;;  %v1843_v5 = vld [vmem:[%s2310_s1 + $0x118] sm:$0xff] }
  0x20   : > { %1021 = vmatpush.bf16.msra.mxu3 %v1835_v19  ;;  %v1430_v62 = vld [vmem:[%s2076_s25 + $0x48] sm:$0xf]  ;;  %v1785_v0 = vld [vmem:[%s2076_s25 + $0x4c] sm:$0xf]  ;;  %v1868_v2 = vld [vmem:[%s2310_s1 + $0x1e0] sm:$0xff]  ;;  %v1427_v7 = vor.u32 %v1784_v60, %v1424_v61 }
  0x21   : > { %935 = vmatpush.bf16.msra.mxu0 %v1810_v20  ;;  %v1789_v63 = vld [vmem:[%s2076_s25 + $0x64] sm:$0xf0]  ;;  %v1432_v1 = vld [vmem:[%s2076_s25 + $0x68] sm:$0xf0]  ;;  %v1852_v3 = vld [vmem:[%s2310_s1 + $0x160] sm:$0xff] }
  0x22   : > { %964 = vmatpush.bf16.msra.mxu1 %v1818_v21  ;;  %v1431_v8 = vor.u32 %v1789_v63, %v1430_v62  ;;  %v1435_v9 = vor.u32 %v1785_v0, %v1432_v1  ;;  %v1867_v10 = vld [vmem:[%s2310_s1 + $0x1d8] sm:$0xff]  ;;  %v1858_v12 = vld [vmem:[%s2310_s1 + $0x190] sm:$0xff]  ;;  %v1857_v16 = vld [vmem:[%s2310_s1 + $0x188] sm:$0xff] }
  0x23   : > { %993 = vmatpush.bf16.msra.mxu2 %v1826_v22  ;;  %v1851_v11 = vld [vmem:[%s2310_s1 + $0x158] sm:$0xff]  ;;  %v1842_v13 = vld [vmem:[%s2310_s1 + $0x110] sm:$0xff]  ;;  %v1841_v17 = vld [vmem:[%s2310_s1 + $0x108] sm:$0xff] }
  0x24   : > { %1022 = vmatpush.bf16.msra.mxu3 %v1834_v23  ;;  %v1866_v14 = vld [vmem:[%s2310_s1 + $0x1d0] sm:$0xff]  ;;  %v1865_v18 = vld [vmem:[%s2310_s1 + $0x1c8] sm:$0xff]  ;;  %v1454_v20 = vld [vmem:[%s2076_s25 + $0x80] sm:$0xf] }
  0x25   : > { %936 = vmatpush.bf16.msra.mxu0 %v1809_v24  ;;  %v1850_v15 = vld [vmem:[%s2310_s1 + $0x150] sm:$0xff]  ;;  %v1849_v19 = vld [vmem:[%s2310_s1 + $0x148] sm:$0xff]  ;;  %v1856_v21 = vld [vmem:[%s2310_s1 + $0x180] sm:$0xff] }
  0x26   : > { %965 = vmatpush.bf16.msra.mxu1 %v1817_v25  ;;  %v1840_v22 = vld [vmem:[%s2310_s1 + $0x100] sm:$0xff]  ;;  %v1438_v60 = vld [vmem:[%s2076_s25 + $0x50] sm:$0xf]  ;;  %v1786_v62 = vld [vmem:[%s2076_s25 + $0x54] sm:$0xf] }
  0x27   : > { %994 = vmatpush.bf16.msra.mxu2 %v1825_v26  ;;  %v1796_v23 = vld [vmem:[%s2076_s25 + $0x9c] sm:$0xf0]  ;;  %v1792_v24 = vld [vmem:[%s2076_s25 + $0x84] sm:$0xf]  ;;  %v1462_v26 = vld [vmem:[%s2076_s25 + $0x88] sm:$0xf] }
  0x28   : > { %1023 = vmatpush.bf16.msra.mxu3 %v1833_v27  ;;  %v1456_v25 = vld [vmem:[%s2076_s25 + $0xa0] sm:$0xf0]  ;;  %v1797_v27 = vld [vmem:[%s2076_s25 + $0xa4] sm:$0xf0]  ;;  %v1455_v32 = vor.u32 %v1796_v23, %v1454_v20  ;;  %v1486_v36 = vld [vmem:[%s2076_s25 + $0xc0] sm:$0xf] }
  0x29   : > { %937 = vmatpush.bf16.msra.mxu0 %v1808_v28  ;;  %v1793_v28 = vld [vmem:[%s2076_s25 + $0x8c] sm:$0xf]  ;;  %v1459_v33 = vor.u32 %v1792_v24, %v1456_v25  ;;  %v1463_v34 = vor.u32 %v1797_v27, %v1462_v26  ;;  %v1804_v37 = vld [vmem:[%s2076_s25 + $0xdc] sm:$0xf0]  ;;  %v1800_v38 = vld [vmem:[%s2076_s25 + $0xc4] sm:$0xf] }
  0x2a   : > { %966 = vmatpush.bf16.msra.mxu1 %v1816_v29  ;;  %v1464_v29 = vld [vmem:[%s2076_s25 + $0xa8] sm:$0xf0]  ;;  %v1488_v39 = vld [vmem:[%s2076_s25 + $0xe0] sm:$0xf0]  ;;  %v1790_v61 = vld [vmem:[%s2076_s25 + $0x6c] sm:$0xf0] }
  0x2b   : > { %995 = vmatpush.bf16.msra.mxu2 %v1824_v30  ;;  %v1864_v30 = vld [vmem:[%s2310_s1 + $0x1c0] sm:$0xff]  ;;  %v1467_v35 = vor.u32 %v1793_v28, %v1464_v29  ;;  %v1440_v63 = vld [vmem:[%s2076_s25 + $0x70] sm:$0xf0]  ;;  %v1446_v0 = vld [vmem:[%s2076_s25 + $0x58] sm:$0xf] }
  0x2c   : > { %1024 = vmatpush.bf16.msra.mxu3 %v1832_v31  ;;  %938 = vmatmul.bf16.vlgmr.msra.gmra.mxu0 %v1391_v42  ;;  %v1848_v31 = vld [vmem:[%s2310_s1 + $0x140] sm:$0xff]  ;;  %v1801_v42 = vld [vmem:[%s2076_s25 + $0xcc] sm:$0xf]  ;;  %v1791_v1 = vld [vmem:[%s2076_s25 + $0x74] sm:$0xf0] }
  0x2d   : > { %1046 = vmatpush.bf16.msrb.mxu0 %v1847_v41  ;;  %967 = vmatmul.bf16.vlgmr.msra.gmra.mxu1 %v1395_v43  ;;  %v1805_v41 = vld [vmem:[%s2076_s25 + $0xe4] sm:$0xf0]  ;;  %v1496_v43 = vld [vmem:[%s2076_s25 + $0xe8] sm:$0xf0]  ;;  %v1502_v20 = vld [vmem:[%s2076_s25 + $0xd0] sm:$0xf] }
  0x2e   : > { %996 = vmatmul.bf16.vlgmr.msra.gmra.mxu2 %v1399_v44  ;;  %1075 = vmatpush.bf16.msrb.mxu1 %v1855_v47  ;;  %v1487_v44 = vor.u32 %v1804_v37, %v1486_v36  ;;  %v1499_v47 = vor.u32 %v1801_v42, %v1496_v43  ;;  %v1504_v23 = vld [vmem:[%s2076_s25 + $0xf0] sm:$0xf0]  ;;  %v1510_v24 = vld [vmem:[%s2076_s25 + $0xd8] sm:$0xf]  ;;  %v1803_v26 = vld [vmem:[%s2076_s25 + $0xdc] sm:$0xf] }
  0x2f   : > { %1104 = vmatpush.bf16.msrb.mxu2 %v1863_v40  ;;  %1025 = vmatmul.bf16.vlgmr.msra.gmra.mxu3 %v1403_v45  ;;  %v1494_v40 = vld [vmem:[%s2076_s25 + $0xc8] sm:$0xf]  ;;  %v1491_v45 = vor.u32 %v1800_v38, %v1488_v39  ;;  %v1807_v25 = vld [vmem:[%s2076_s25 + $0xf4] sm:$0xf0]  ;;  %v1512_v27 = vld [vmem:[%s2076_s25 + $0xf8] sm:$0xf0] }
  0x30   : > { %1133 = vmatpush.bf16.msrb.mxu3 %v1871_v46  ;;  %v1495_v46 = vor.u32 %v1805_v41, %v1494_v40 }
  0x31   : > { %1047 = vmatpush.bf16.msrb.mxu0 %v1846_v49  ;;  %v1782_v49 = vld [vmem:[%s2076_s25 + $0x2c] sm:$0xf0] }
  0x32   : > { %1076 = vmatpush.bf16.msrb.mxu1 %v1854_v51  ;;  %v1408_v51 = vld [vmem:[%s2076_s25 + $0x30] sm:$0xf0] }
  0x33   : > { %1105 = vmatpush.bf16.msrb.mxu2 %v1862_v48  ;;  %v1406_v48 = vld [vmem:[%s2076_s25 + $0x10] sm:$0xf] }
  0x34   : > { %1134 = vmatpush.bf16.msrb.mxu3 %v1870_v50  ;;  %v1778_v50 = vld [vmem:[%s2076_s25 + $0x14] sm:$0xf]  ;;  %v1407_v56 = vor.u32 %v1782_v49, %v1406_v48 }
  0x35   : > { %1048 = vmatpush.bf16.msrb.mxu0 %v1845_v53  ;;  %v1783_v53 = vld [vmem:[%s2076_s25 + $0x34] sm:$0xf0] }
  0x36   : > { %1077 = vmatpush.bf16.msrb.mxu1 %v1853_v55  ;;  %v1416_v55 = vld [vmem:[%s2076_s25 + $0x38] sm:$0xf0] }
  0x37   : > { %1106 = vmatpush.bf16.msrb.mxu2 %v1861_v52  ;;  %v1414_v52 = vld [vmem:[%s2076_s25 + $0x18] sm:$0xf] }
  0x38   : > { %1135 = vmatpush.bf16.msrb.mxu3 %v1869_v54  ;;  %v1779_v54 = vld [vmem:[%s2076_s25 + $0x1c] sm:$0xf] }
  0x39   : > { %1049 = vmatpush.bf16.msrb.mxu0 %v1844_v58  ;;  %v1415_v58 = vor.u32 %v1783_v53, %v1414_v52  ;;  %v1419_v59 = vor.u32 %v1779_v54, %v1416_v55 }
  0x3a   : > { %1078 = vmatpush.bf16.msrb.mxu1 %v1852_v3  ;;  %v1448_v3 = vld [vmem:[%s2076_s25 + $0x78] sm:$0xf0] }
  0x3b   : > { %1107 = vmatpush.bf16.msrb.mxu2 %v1860_v57  ;;  %v1411_v57 = vor.u32 %v1778_v50, %v1408_v51 }
  0x3c   : > { %1136 = vmatpush.bf16.msrb.mxu3 %v1868_v2  ;;  %943 = vmatmul.bf16.gmra.mxu0 %v1423_v6  ;;  %v1787_v2 = vld [vmem:[%s2076_s25 + $0x5c] sm:$0xf]  ;;  %v1447_v6 = vor.u32 %v1791_v1, %v1446_v0 }
  0x3d   : > { %1050 = vmatpush.bf16.msrb.mxu0 %v1843_v5  ;;  %972 = vmatmul.bf16.gmra.mxu1 %v1427_v7  ;;  %v1443_v5 = vor.u32 %v1786_v62, %v1440_v63  ;;  %v1451_v7 = vor.u32 %v1787_v2, %v1448_v3 }
  0x3e   : > { %1001 = vmatmul.bf16.gmra.mxu2 %v1431_v8  ;;  %1079 = vmatpush.bf16.msrb.mxu1 %v1851_v11  ;;  %v1470_v8 = vld [vmem:[%s2076_s25 + $0x90] sm:$0xf]  ;;  %v1472_v11 = vld [vmem:[%s2076_s25 + $0xb0] sm:$0xf0] }
  0x3f   : > { %1108 = vmatpush.bf16.msrb.mxu2 %v1859_v4  ;;  %1030 = vmatmul.bf16.gmra.mxu3 %v1435_v9  ;;  %v1439_v4 = vor.u32 %v1790_v61, %v1438_v60  ;;  %v1798_v9 = vld [vmem:[%s2076_s25 + $0xac] sm:$0xf0] }
  0x40   : > { %1137 = vmatpush.bf16.msrb.mxu3 %v1867_v10  ;;  %v1794_v10 = vld [vmem:[%s2076_s25 + $0x94] sm:$0xf] }
  0x41   : > { %1051 = vmatpush.bf16.msrb.mxu0 %v1842_v13  ;;  %v1799_v13 = vld [vmem:[%s2076_s25 + $0xb4] sm:$0xf0] }
  0x42   : > { %1080 = vmatpush.bf16.msrb.mxu1 %v1850_v15  ;;  %v1480_v15 = vld [vmem:[%s2076_s25 + $0xb8] sm:$0xf0] }
  0x43   : > { %1109 = vmatpush.bf16.msrb.mxu2 %v1858_v12  ;;  %v1478_v12 = vld [vmem:[%s2076_s25 + $0x98] sm:$0xf] }
  0x44   : > { %1138 = vmatpush.bf16.msrb.mxu3 %v1866_v14  ;;  %v1795_v14 = vld [vmem:[%s2076_s25 + $0x9c] sm:$0xf] }
  0x45   : > { %1052 = vmatpush.bf16.msrb.mxu0 %v1841_v17  ;;  %v1475_v17 = vor.u32 %v1794_v10, %v1472_v11 }
  0x46   : > { %1081 = vmatpush.bf16.msrb.mxu1 %v1849_v19  ;;  %v1483_v19 = vor.u32 %v1795_v14, %v1480_v15 }
  0x47   : > { %1110 = vmatpush.bf16.msrb.mxu2 %v1857_v16  ;;  %v1471_v16 = vor.u32 %v1798_v9, %v1470_v8 }
  0x48   : > { %1139 = vmatpush.bf16.msrb.mxu3 %v1865_v18  ;;  %v1479_v18 = vor.u32 %v1799_v13, %v1478_v12 }
  0x49   : > { %1053 = vmatpush.bf16.msrb.mxu0 %v1840_v22  ;;  %v1802_v22 = vld [vmem:[%s2076_s25 + $0xd4] sm:$0xf] }
  0x4a   : > { %1082 = vmatpush.bf16.msrb.mxu1 %v1848_v31  ;;  %v1507_v29 = vor.u32 %v1802_v22, %v1504_v23  ;;  %v1515_v31 = vor.u32 %v1803_v26, %v1512_v27 }
  0x4b   : > { %1111 = vmatpush.bf16.msrb.mxu2 %v1856_v21  ;;  %v1806_v21 = vld [vmem:[%s2076_s25 + $0xec] sm:$0xf0]  ;;  %s1775_s25 = sshll.u32 %s2318_s12, 5 }
  0x4c   : > { %1140 = vmatpush.bf16.msrb.mxu3 %v1864_v30  ;;  %948 = vmatmul.bf16.gmra.mxu0 %v1455_v32  ;;  %v1503_v28 = vor.u32 %v1806_v21, %v1502_v20  ;;  %v1511_v30 = vor.u32 %v1807_v25, %v1510_v24  ;;  %v2259_v32 = vld [vmem:[%s2311_s2] ss:$0 sm:$0xff]  ;;  %s221_s12 = scalar_lea.vmem %s2312_s3, %s1775_s25 }
  0x4d   : > { %977 = vmatmul.bf16.gmra.mxu1 %v1459_v33 }
  0x4e   : > { %1006 = vmatmul.bf16.gmra.mxu2 %v1463_v34 }
  0x4f   : > { %1035 = vmatmul.bf16.gmra.mxu3 %v1467_v35 }
  0x5c   : > { %953 = vmatmul.bf16.gmra.mxu0 %v1487_v44 }
  0x5d   : > { %982 = vmatmul.bf16.gmra.mxu1 %v1491_v45 }
  0x5e   : > { %1011 = vmatmul.bf16.gmra.mxu2 %v1495_v46 }
  0x5f   : > { %1040 = vmatmul.bf16.gmra.mxu3 %v1499_v47 }
  0x6c   : > { %1054 = vmatmul.bf16.vlgmr.msrb.gmra.mxu0 %v1407_v56 }
  0x6d   : > { %1083 = vmatmul.bf16.vlgmr.msrb.gmra.mxu1 %v1411_v57 }
  0x6e   : > { %1112 = vmatmul.bf16.vlgmr.msrb.gmra.mxu2 %v1415_v58 }
  0x6f   : > { %1141 = vmatmul.bf16.vlgmr.msrb.gmra.mxu3 %v1419_v59 }
  0x7c   : > { %1059 = vmatmul.bf16.gmra.mxu0 %v1439_v4 }
  0x7d   : > { %1088 = vmatmul.bf16.gmra.mxu1 %v1443_v5 }
  0x7e   : > { %1117 = vmatmul.bf16.gmra.mxu2 %v1447_v6 }
  0x7f   : > { %1146 = vmatmul.bf16.gmra.mxu3 %v1451_v7 }
  0x8c   : > { %1064 = vmatmul.bf16.gmra.mxu0 %v1471_v16 }
  0x8d   : > { %1093 = vmatmul.bf16.gmra.mxu1 %v1475_v17 }
  0x8e   : > { %1122 = vmatmul.bf16.gmra.mxu2 %v1479_v18 }
  0x8f   : > { %1151 = vmatmul.bf16.gmra.mxu3 %v1483_v19 }
  0x9c   : > { %1069 = vmatmul.bf16.gmra.mxu0 %v1503_v28 }
  0x9d   : > { %1098 = vmatmul.bf16.gmra.mxu1 %v1507_v29 }
  0x9e   : > { %1127 = vmatmul.bf16.gmra.mxu2 %v1511_v30 }
  0x9f   : > { %1156 = vmatmul.bf16.gmra.mxu3 %v1515_v31 }
  0xa9   : > { %v939_v33 = vpop.f32.mrf.mxu0 }
  0xaa   : > { %v968_v34 = vpop.f32.mrf.mxu1  ;;  %v940_v35 = vadd.f32 %v2259_v32, %v939_v33 }
  0xac   : > { %v969_v36 = vadd.f32 %v968_v34, %v940_v35 }
  0xb1   : > { %v997_v37 = vpop.f32.mrf.mxu2  ;;  %v941_v40 = vpop.f32.mrf.mxu0 }
  0xb2   : > { %v1026_v38 = vpop.f32.mrf.mxu3  ;;  %v998_v39 = vadd.f32 %v997_v37, %v969_v36  ;;  %v970_v41 = vpop.f32.mrf.mxu1  ;;  %v942_v42 = vadd.f32 %v2259_v32, %v941_v40 }
  0xb4   : > { %v1027_v43 = vadd.f32 %v1026_v38, %v998_v39  ;;  %v971_v44 = vadd.f32 %v970_v41, %v942_v42 }
  0xb9   : > { %v999_v45 = vpop.f32.mrf.mxu2  ;;  %v944_v48 = vpop.f32.mrf.mxu0 }
  0xba   : > { %v1028_v46 = vpop.f32.mrf.mxu3  ;;  %v1000_v47 = vadd.f32 %v999_v45, %v971_v44  ;;  %v973_v49 = vpop.f32.mrf.mxu1  ;;  %v945_v50 = vadd.f32 %v2259_v32, %v944_v48 }
  0xbc   : > { %v1029_v51 = vadd.f32 %v1028_v46, %v1000_v47  ;;  %v974_v52 = vadd.f32 %v973_v49, %v945_v50 }
  0xc1   : > { %v1002_v53 = vpop.f32.mrf.mxu2  ;;  %v946_v56 = vpop.f32.mrf.mxu0 }
  0xc2   : > { %v1031_v54 = vpop.f32.mrf.mxu3  ;;  %v1003_v55 = vadd.f32 %v1002_v53, %v974_v52  ;;  %v975_v57 = vpop.f32.mrf.mxu1  ;;  %v947_v58 = vadd.f32 %v2259_v32, %v946_v56 }
  0xc4   : > { %v1032_v59 = vadd.f32 %v1031_v54, %v1003_v55  ;;  %v976_v60 = vadd.f32 %v975_v57, %v947_v58 }
  0xc9   : > { %v1004_v61 = vpop.f32.mrf.mxu2  ;;  %v949_v0 = vpop.f32.mrf.mxu0 }
  0xca   : > { %v1033_v62 = vpop.f32.mrf.mxu3  ;;  %v1005_v63 = vadd.f32 %v1004_v61, %v976_v60  ;;  %v978_v1 = vpop.f32.mrf.mxu1  ;;  %v950_v2 = vadd.f32 %v2259_v32, %v949_v0 }
  0xcc   : > { %v1034_v3 = vadd.f32 %v1033_v62, %v1005_v63  ;;  %v979_v4 = vadd.f32 %v978_v1, %v950_v2 }
  0xd1   : > { %v1007_v5 = vpop.f32.mrf.mxu2  ;;  %v951_v8 = vpop.f32.mrf.mxu0 }
  0xd2   : > { %v1036_v6 = vpop.f32.mrf.mxu3  ;;  %v1008_v7 = vadd.f32 %v1007_v5, %v979_v4  ;;  %v980_v9 = vpop.f32.mrf.mxu1  ;;  %v952_v10 = vadd.f32 %v2259_v32, %v951_v8 }
  0xd4   : > { %v1037_v11 = vadd.f32 %v1036_v6, %v1008_v7  ;;  %v981_v12 = vadd.f32 %v980_v9, %v952_v10 }
  0xd9   : > { %v1009_v13 = vpop.f32.mrf.mxu2  ;;  %v954_v16 = vpop.f32.mrf.mxu0 }
  0xda   : > { %v1038_v14 = vpop.f32.mrf.mxu3  ;;  %v1010_v15 = vadd.f32 %v1009_v13, %v981_v12  ;;  %v983_v17 = vpop.f32.mrf.mxu1  ;;  %v955_v0 = vadd.f32 %v2259_v32, %v954_v16 }
  0xdc   : > { %v1039_v18 = vadd.f32 %v1038_v14, %v1010_v15  ;;  %v984_v7 = vadd.f32 %v983_v17, %v955_v0 }
  0xe1   : > { %v1012_v19 = vpop.f32.mrf.mxu2  ;;  %v956_v21 = vpop.f32.mrf.mxu0 }
  0xe2   : > { %v1041_v20 = vpop.f32.mrf.mxu3  ;;  %v985_v22 = vpop.f32.mrf.mxu1  ;;  %v1013_v12 = vadd.f32 %v1012_v19, %v984_v7  ;;  %v957_v13 = vadd.f32 %v2259_v32, %v956_v21 }
  0xe4   : > { %v986_v16 = vadd.f32 %v985_v22, %v957_v13 }
  0xe9   : > { %v1014_v23 = vpop.f32.mrf.mxu2  ;;  %v1055_v25 = vpop.f32.mrf.mxu0 }
  0xea   : > { %v2267_v24 = vpop.f32.mrf.mxu3  ;;  %v1084_v26 = vpop.f32.mrf.mxu1  ;;  %v1056_v29 = vadd.f32 %v1055_v25, %v1027_v43 }
  0xec   : > { %v1085_v34 = vadd.f32 %v1084_v26, %v1056_v29 }
  0xf1   : > { %v1113_v27 = vpop.f32.mrf.mxu2  ;;  %v1057_v30 = vpop.f32.mrf.mxu0 }
  0xf2   : > { %v1142_v28 = vpop.f32.mrf.mxu3  ;;  %v1086_v31 = vpop.f32.mrf.mxu1  ;;  %v1058_v33 = vadd.f32 %v1057_v30, %v1029_v51  ;;  %v1114_v35 = vadd.f32 %v1113_v27, %v1085_v34  ;;  %v1042_v27 = vadd.f32 %v1041_v20, %v1013_v12  ;;  %v1015_v30 = vadd.f32 %v1014_v23, %v986_v16 }
  0xf3   : > { %v1949_v34 = vmov 64.0  }
  0xf4   : > { %v1087_v36 = vadd.f32 %v1086_v31, %v1058_v33  ;;  %v2269_v42 = vadd.f32 %v1142_v28, %v1114_v35  ;;  %1921 = vrcp.f32 %v1949_v34  ;;  %v1044_v19 = vadd.f32 %v2267_v24, %v1015_v30 }
  0xf9   : > { %v1115_v37 = vpop.f32.mrf.mxu2  ;;  %v1060_v40 = vpop.f32.mrf.mxu0 }
  0xfa   : > { %v1144_v38 = vpop.f32.mrf.mxu3  ;;  %v1116_v39 = vadd.f32 %v1115_v37, %v1087_v36  ;;  %v1089_v41 = vpop.f32.mrf.mxu1  ;;  %v1061_v45 = vadd.f32 %v1060_v40, %v1032_v59 }
  0xfb   : > { %v1922_v37 = vpop.eup %1921 }
  0xfc   : > { %v2271_v44 = vadd.f32 %v1144_v38, %v1116_v39  ;;  %v1090_v43 = vadd.f32 %v1089_v41, %v1061_v45  ;;  %v1176_v40 = vmul.f32 64.0, %v1922_v37  ;;  %vm1180_vm0 = vweird.f32 %v1922_v37 }
  0xfe   : > { %v1162_v46 = vadd.f32 %v2271_v44, %v2269_v42 }
 0x101   : > { %v1118_v47 = vpop.f32.mrf.mxu2  ;;  %v1062_v50 = vpop.f32.mrf.mxu0 }
 0x102   : > { %v1147_v48 = vpop.f32.mrf.mxu3  ;;  %v1119_v49 = vadd.f32 %v1118_v47, %v1090_v43  ;;  %v1091_v51 = vpop.f32.mrf.mxu1  ;;  %v1063_v53 = vadd.f32 %v1062_v50, %v1034_v3  ;;  %v1177_v43 = vsub.f32 1.0, %v1176_v40 }
 0x104   : > { %v2275_v52 = vadd.f32 %v1147_v48, %v1119_v49  ;;  %v1092_v55 = vadd.f32 %v1091_v51, %v1063_v53  ;;  %v1178_v49 = vmul.f32 %v1922_v37, %v1177_v43 }
 0x106   : > { %v1163_v54 = vadd.f32 %v1162_v46, %v2275_v52  ;;  %v1179_v51 = vadd.f32 %v1922_v37, %v1178_v49 }
 0x109   : > { %v1120_v56 = vpop.f32.mrf.mxu2  ;;  %v1065_v60 = vpop.f32.mrf.mxu0 }
 0x10a   : > { %v1149_v57 = vpop.f32.mrf.mxu3  ;;  %v1121_v58 = vadd.f32 %v1120_v56, %v1092_v55  ;;  %v1094_v59 = vpop.f32.mrf.mxu1  ;;  %v1066_v62 = vadd.f32 %v1065_v60, %v1037_v11  ;;  %v1181_v55 = vsel %vm1180_vm0, %v1922_v37, %v1179_v51 }
 0x10c   : > { %v2278_v61 = vadd.f32 %v1149_v57, %v1121_v58  ;;  %v1095_v1 = vadd.f32 %v1094_v59, %v1066_v62 }
 0x10e   : > { %v1164_v63 = vadd.f32 %v1163_v54, %v2278_v61 }
 0x111   : > { %v1123_v2 = vpop.f32.mrf.mxu2  ;;  %v1067_v3 = vpop.f32.mrf.mxu0 }
 0x112   : > { %v1152_v4 = vpop.f32.mrf.mxu3  ;;  %v1124_v5 = vadd.f32 %v1123_v2, %v1095_v1  ;;  %v1096_v6 = vpop.f32.mrf.mxu1  ;;  %v1068_v9 = vadd.f32 %v1067_v3, %v1039_v18 }
 0x114   : > { %v1153_v8 = vadd.f32 %v1152_v4, %v1124_v5  ;;  %v1097_v14 = vadd.f32 %v1096_v6, %v1068_v9 }
 0x116   : > { %v1165_v10 = vadd.f32 %v1164_v63, %v1153_v8 }
 0x119   : > { %v1125_v15 = vpop.f32.mrf.mxu2  ;;  %v1070_v26 = vpop.f32.mrf.mxu0 }
 0x11a   : > { %v1154_v11 = vpop.f32.mrf.mxu3  ;;  %v1126_v25 = vadd.f32 %v1125_v15, %v1097_v14  ;;  %v1099_v29 = vpop.f32.mrf.mxu1  ;;  %v1071_v33 = vadd.f32 %v1070_v26, %v1042_v27 }
 0x11c   : > { %v1155_v28 = vadd.f32 %v1154_v11, %v1126_v25  ;;  %v1100_v35 = vadd.f32 %v1099_v29, %v1071_v33 }
 0x11e   : > { %v1166_v31 = vadd.f32 %v1165_v10, %v1155_v28 }
 0x121   : > { %v1128_v17 = vpop.f32.mrf.mxu2  ;;  %v1072_v32 = vpop.f32.mrf.mxu0 }
 0x122   : > { %v1157_v18 = vpop.f32.mrf.mxu3  ;;  %v1129_v21 = vadd.f32 %v1128_v17, %v1100_v35  ;;  %v1073_v36 = vadd.f32 %v1072_v32, %v1044_v19  ;;  %v1101_v38 = vpop.f32.mrf.mxu1 }
 0x124   : > { %v1158_v39 = vadd.f32 %v1157_v18, %v1129_v21  ;;  %v1102_v20 = vadd.f32 %v1101_v38, %v1073_v36 }
 0x126   : > { %v1167_v45 = vadd.f32 %v1166_v31, %v1158_v39 }
 0x129   : > { %v1130_v22 = vpop.f32.mrf.mxu2 }
 0x12a   : > { %v1131_v41 = vadd.f32 %v1130_v22, %v1102_v20  ;;  %v1159_v23 = vpop.f32.mrf.mxu3 }
 0x12c   : > { %v1160_v46 = vadd.f32 %v1159_v23, %v1131_v41 }
 0x12e   : > { %v1168_v47 = vadd.f32 %v1167_v45, %v1160_v46 }
 0x130   : > { %v1169_v48 = vrot.slane %v1168_v47, 4 }
 0x132   : > { %v1170_v50 = vadd.f32 %v1169_v48, %v1168_v47 }
 0x134   : > { %v1171_v24 = vrot.slane %v1170_v50, 2 }
 0x136   : > { %v1172_v53 = vadd.f32 %v1171_v24, %v1170_v50 }
 0x138   : > { %v1173_v54 = vrot.slane %v1172_v53, 1 }
 0x13a   : > { %v1174_v56 = vadd.f32 %v1173_v54, %v1172_v53 }
 0x13c   : > { %v1182_v57 = vmul.f32 %v1181_v55, %v1174_v56 }
 0x13e   : > { %v1183_v58 = vsub.f32 %v2269_v42, %v1182_v57  ;;  %v1184_v60 = vsub.f32 %v2271_v44, %v1182_v57  ;;  %v1185_v59 = vsub.f32 %v2275_v52, %v1182_v57  ;;  %v1186_v62 = vsub.f32 %v2278_v61, %v1182_v57 }
 0x13f   : > { %v1187_v63 = vsub.f32 %v1153_v8, %v1182_v57  ;;  %v1188_v0 = vsub.f32 %v1155_v28, %v1182_v57  ;;  %v1189_v7 = vsub.f32 %v1158_v39, %v1182_v57  ;;  %v1190_v12 = vsub.f32 %v1160_v46, %v1182_v57 }
 0x140   : > { %v1191_v1 = vmul.f32 %v1183_v58, %v1183_v58  ;;  %v1192_v2 = vmul.f32 %v1184_v60, %v1184_v60  ;;  %v1193_v4 = vmul.f32 %v1185_v59, %v1185_v59  ;;  %v1194_v3 = vmul.f32 %v1186_v62, %v1186_v62 }
 0x141   : > { %v1195_v9 = vmul.f32 %v1187_v63, %v1187_v63  ;;  %v1196_v13 = vmul.f32 %v1188_v0, %v1188_v0  ;;  %v1197_v14 = vmul.f32 %v1189_v7, %v1189_v7  ;;  %v1198_v15 = vmul.f32 %v1190_v12, %v1190_v12 }
 0x142   : > { %v1199_v5 = vadd.f32 %v1192_v2, %v1191_v1 }
 0x144   : > { %v1200_v6 = vadd.f32 %v1199_v5, %v1193_v4 }
 0x146   : > { %v1201_v10 = vadd.f32 %v1200_v6, %v1194_v3 }
 0x148   : > { %v1202_v42 = vadd.f32 %v1201_v10, %v1195_v9 }
 0x14a   : > { %v1203_v44 = vadd.f32 %v1202_v42, %v1196_v13 }
 0x14c   : > { %v1204_v52 = vadd.f32 %v1203_v44, %v1197_v14 }
 0x14e   : > { %v1205_v11 = vadd.f32 %v1204_v52, %v1198_v15 }
 0x150   : > { %v1206_v61 = vrot.slane %v1205_v11, 4 }
 0x152   : > { %v1207_v8 = vadd.f32 %v1206_v61, %v1205_v11 }
 0x154   : > { %v1208_v25 = vrot.slane %v1207_v8, 2 }
 0x156   : > { %v1209_v26 = vadd.f32 %v1208_v25, %v1207_v8 }
 0x158   : > { %v1210_v27 = vrot.slane %v1209_v26, 1 }
 0x15a   : > { %v1211_v16 = vadd.f32 %v1210_v27, %v1209_v26 }
 0x15c   : > { %v1212_v28 = vmul.f32 %v1211_v16, %v1181_v55 }
 0x15e   : > { %v1213_v29 = vadd.f32 1e-05, %v1212_v28 }
 0x160   : > { %1923 = vrsqrt.f32 %v1213_v29  ;;  %vm1220_vm2 = vweird.f32 %v1213_v29 }
 0x166   : > { %v1924_v30 = vpop.eup %1923 }
 0x167   : > { %v1215_v31 = vmul.f32 %v1924_v30, %v1213_v29  ;;  %vm1221_vm1 = vweird.f32 %v1924_v30 }
 0x168   : > { %vm1222_vm3 = vmor %vm1220_vm2, %vm1221_vm1 }
 0x169   : > { %v1216_v33 = vmul.f32 %v1924_v30, %v1215_v31 }
 0x16b   : > { %v1217_v34 = vmul.f32 0.5, %v1216_v33 }
 0x16d   : > { %v1218_v17 = vsub.f32 1.5, %v1217_v34 }
 0x16f   : > { %v1219_v18 = vmul.f32 %v1924_v30, %v1218_v17 }
 0x171   : > { %v1223_v19 = vsel %vm1222_vm3, %v1924_v30, %v1219_v18 }
 0x172   : > { %v1224_v35 = vmul.f32 %v1223_v19, %v1183_v58  ;;  %v1225_v32 = vmul.f32 %v1223_v19, %v1184_v60  ;;  %v1226_v21 = vmul.f32 %v1223_v19, %v1185_v59  ;;  %v1227_v36 = vmul.f32 %v1223_v19, %v1186_v62 }
 0x173   : > { %v1228_v37 = vmul.f32 %v1223_v19, %v1187_v63  ;;  %v1229_v38 = vmul.f32 %v1223_v19, %v1188_v0  ;;  %v1230_v39 = vmul.f32 %v1223_v19, %v1189_v7  ;;  %v1231_v20 = vmul.f32 %v1223_v19, %v1190_v12 }
 0x174   : > { %vm1232_vm4 = vcmp.ge.f32.partialorder %v1224_v35, 0.0  ;;  %vm1233_vm5 = vcmp.ge.f32.partialorder %v1225_v32, 0.0  ;;  %vm1234_vm6 = vcmp.ge.f32.partialorder %v1226_v21, 0.0  ;;  %vm1235_vm7 = vcmp.ge.f32.partialorder %v1227_v36, 0.0 }
 0x175   : > { %vm1236_vm8 = vcmp.ge.f32.partialorder %v1228_v37, 0.0  ;;  %vm1237_vm9 = vcmp.ge.f32.partialorder %v1229_v38, 0.0  ;;  %vm1238_vm10 = vcmp.ge.f32.partialorder %v1230_v39, 0.0  ;;  %vm1239_vm11 = vcmp.ge.f32.partialorder %v1231_v20, 0.0 }
 0x176   : > { %v1240_v22 = vmul.f32 0.2, %v1224_v35  ;;  %v1241_v40 = vmul.f32 0.2, %v1225_v32  ;;  %v1242_v41 = vmul.f32 0.2, %v1226_v21 }
 0x177   : > { %v1243_v23 = vmul.f32 0.2, %v1227_v36  ;;  %v1244_v45 = vmul.f32 0.2, %v1228_v37  ;;  %v1245_v46 = vmul.f32 0.2, %v1229_v38 }
 0x178   : > { %v1246_v43 = vmul.f32 0.2, %v1230_v39  ;;  %v1247_v47 = vmul.f32 0.2, %v1231_v20  ;;  %v1248_v48 = vsel %vm1232_vm4, %v1224_v35, %v1240_v22  ;;  %v1249_v49 = vsel %vm1233_vm5, %v1225_v32, %v1241_v40 }
 0x179   : > { %v1250_v50 = vsel %vm1234_vm6, %v1226_v21, %v1242_v41  ;;  %v1251_v24 = vsel %vm1235_vm7, %v1227_v36, %v1243_v23  ;;  %v1252_v51 = vsel %vm1236_vm8, %v1228_v37, %v1244_v45  ;;  %v1253_v53 = vsel %vm1237_vm9, %v1229_v38, %v1245_v46 }
 0x17a   : > { %v1254_v54 = vsel %vm1238_vm10, %v1230_v39, %v1246_v43  ;;  %v1255_v55 = vsel %vm1239_vm11, %v1231_v20, %v1247_v47  ;;  %v1875_v56 = vpack.c.bf16 %v1249_v49, %v1248_v48  ;;  %v1880_v57 = vpack.c.bf16 %v1251_v24, %v1250_v50 }
 0x17b   : > { %v1885_v58 = vpack.c.bf16 %v1253_v53, %v1252_v51  ;;  %v1890_v60 = vpack.c.bf16 %v1255_v55, %v1254_v54 }
 0x17c   : > { %1876 = vst [vmem:[%s221_s12] sm:$0xff] %v1875_v56  }
 0x17d   : > { %1892 = vst [vmem:[%s221_s12 + $0x8] sm:$0xff] %v1880_v57  }
 0x17e   : > { %1893 = vst [vmem:[%s221_s12 + $0x10] sm:$0xff] %v1885_v58  }
 0x17f   : > { %1894 = vst [vmem:[%s221_s12 + $0x18] sm:$0xff] %v1890_v60  }
 0x180 PF: > { %s13_s14 = sadd.s32 1, %s1947_s14   ;;  %s2313_s12 = smov %s1943_s13 }
 0x181   : > { %p10_p5 = scmp.ge.s32.totalorder %s13_s14, 4   ;;  %s2314_s13 = smov %s2316_s15 }
 0x183   :  { %12 = sbr.rel (!%p10_p5) target bundleno = 2 (0x2), region = 68 }

// kernel: discriminator.7
= control target key start
LH: loop header
LB: loop body
LE: loop exit
PB: predicated region body
PF: predicated region fallthrough
CT: control target
= control target key end

     0   :  { %s4792_s12 = smov 0   ;;  %s4794_s13 = smov 0   ;;  %s5614_s0 = inlined_call_operand.vmem [shape: bf16[2,16,2048], index: 0, kind: input, shape index: {}]   ;;  %s5615_s1 = inlined_call_operand.vmem [shape: bf16[2048,256], index: 1, kind: input, shape index: {}]   ;;  %s5616_s2 = inlined_call_operand.vmem [shape: f32[1,256], index: 2, kind: input, shape index: {}]   ;;  %s5617_s3 = inlined_call_operand.vmem [shape: bf16[2,16,256], index: 3, kind: output, shape index: {}]  }
   0x1   :  { %s4796_s14 = smov 0   ;;  %s4798_s15 = smov 0  }
   0x2   :  { %s4800_s16 = smov 0   ;;  %s4802_s17 = smov 0  }
   0x3   :  { %s4804_s18 = smov 0   ;;  %s4806_s19 = smov 0  }
   0x4   :  { %s4808_s20 = smov 0  }
   0x5 LB: > { %s22_s21 = sadd.s32 1, %s4761_s18  ;;  %s25_s22 = sadd.s32 1, %s4765_s19  ;;  %s4769_s20 = sphi %s4808_s20, %s13_s20   ;;  %s4765_s19 = sphi %s4806_s19, %s5627_s19   ;;  %s4761_s18 = sphi %s4804_s18, %s5626_s18   ;;  %s4757_s17 = sphi %s4802_s17, %s5625_s17   ;;  %s4753_s16 = sphi %s4800_s16, %s5624_s16   ;;  %s4749_s15 = sphi %s4798_s15, %s5623_s15   ;;  %s4745_s14 = sphi %s4796_s14, %s5622_s14   ;;  %s4741_s13 = sphi %s4794_s13, %s5621_s13   ;;  %s4737_s12 = sphi %s4792_s12, %s5620_s12  }
   0x6   : > { %p23_p0 = scmp.ge.s32.totalorder %s22_s21, 2  ;;  %p65_p1 = scmp.ne.s32.totalorder %s4749_s15, %s4745_s14 }
   0x7   : > { %s3879_s23 = sadd.s32 4294967295, %s4769_s20   ;;  %p66_p2 = scmp.eq.s32.totalorder %s4769_s20, 0 }
   0x8   : > { %s5629_s21 = smov (%p23_p0, %s22_s21), 0  ;;  %s5631_s22 = smov (!%p23_p0, %s25_s22), %s4765_s19 }
   0x9   : > { %p27_p3 = scmp.ge.s32.totalorder %s5631_s22, 2  ;;  %s107_s24 = ssub.s32 %s4761_s18, %s5629_s21 }
   0xa   : > { %p4848_p4 = por %p66_p2, %p65_p1  ;;  %p122_p5 = scmp.ne.s32.totalorder %s4741_s13, %s4737_s12 }
   0xb   : > { %s5633_s22 = smov (%p27_p3, %s5631_s22), 0  ;;  %s58_s26 = sadd.s32 1, %s4749_s15 }
   0xc   : > { %p123_p6 = scmp.eq.s32.totalorder %s3879_s23, 3  ;;  %s55_s27 = ssub.s32 %s4765_s19, %s5633_s22 }
   0xd   : > { %s112_s28 = sadd.s32 1, %s4741_s13  ;;  %p56_p7 = scmp.eq.s32.totalorder %s55_s27, 0 }
   0xe   : > { %s109_s29 = sor.u32 %s107_s24, %s55_s27  ;;  %p4860_p9 = por %p123_p6, %p122_p5 }
   0xf   : > { %p110_p8 = scmp.eq.s32.totalorder %s109_s29, 0  ;;  %p3882_p10 = scmp.ge.s32.totalorder %s4769_s20, 4 }
  0x10   : > { %s4865_s4 = scalar_select %p56_p7, %s4749_s15, %s58_s26  }
  0x11   : > { %s4868_s5 = scalar_select %p110_p8, %s4741_s13, %s112_s28  }
  0x12   : > { %145 = sbr.rel (%p3882_p10) target bundleno = 283 (0x11b), region = 16 }
  0x17   : > { %156 = sbr.rel (!%p4848_p4) target bundleno = 283 (0x11b), region = 24  ;;  %s158_s6 = sand.u32 (%p4848_p4), 1, %s4749_s15  }
  0x18   : > { %s3884_s7 = sshll.u32 (%p4848_p4), %s4765_s19, 2  ;;  %s3883_s8 = sshll.u32 (%p4848_p4), %s158_s6, 10 }
  0x19   : > { %s4878_s11 = scalar_lea.vmem (%p4848_p4), %s5615_s1, %s3884_s7  ;;  %s4882_s23 = scalar_lea.vmem (%p4848_p4), [#allocation2], %s3883_s8 }
  0x1a   : > { %v179_v0 = vld [vmem:[%s4878_s11] sm:$0xf] (%p4848_p4)  ;;  %v181_v1 = vld [vmem:[%s4878_s11 + $0x8] sm:$0xf] (%p4848_p4)  ;;  %v183_v2 = vld [vmem:[%s4878_s11 + $0x10] sm:$0xf] (%p4848_p4) }
  0x1b   : > { %180 = vst [vmem:[%s4882_s23] sm:$0xf] (%p4848_p4), %v179_v0  ;;  %v185_v3 = vld [vmem:[%s4878_s11 + $0x18] sm:$0xf] (%p4848_p4)  ;;  %v187_v4 = vld [vmem:[%s4878_s11 + $0x20] sm:$0xf] (%p4848_p4) }
  0x1c   : > { %182 = vst [vmem:[%s4882_s23 + $0x4] sm:$0xf] %v181_v1  ;;  %v189_v5 = vld [vmem:[%s4878_s11 + $0x28] sm:$0xf]  ;;  %v191_v6 = vld [vmem:[%s4878_s11 + $0x30] sm:$0xf] }
  0x1d   : > { %184 = vst [vmem:[%s4882_s23 + $0x8] sm:$0xf] %v183_v2  ;;  %v193_v7 = vld [vmem:[%s4878_s11 + $0x38] sm:$0xf]  ;;  %v195_v8 = vld [vmem:[%s4878_s11 + $0x40] sm:$0xf] }
  0x1e   : > { %186 = vst [vmem:[%s4882_s23 + $0xc] sm:$0xf] %v185_v3  ;;  %v197_v9 = vld [vmem:[%s4878_s11 + $0x48] sm:$0xf]  ;;  %v199_v10 = vld [vmem:[%s4878_s11 + $0x50] sm:$0xf] }
  0x1f   : > { %188 = vst [vmem:[%s4882_s23 + $0x10] sm:$0xf] %v187_v4  ;;  %v201_v11 = vld [vmem:[%s4878_s11 + $0x58] sm:$0xf]  ;;  %v203_v12 = vld [vmem:[%s4878_s11 + $0x60] sm:$0xf] }
  0x20   : > { %190 = vst [vmem:[%s4882_s23 + $0x14] sm:$0xf] %v189_v5  ;;  %v205_v13 = vld [vmem:[%s4878_s11 + $0x68] sm:$0xf]  ;;  %v207_v14 = vld [vmem:[%s4878_s11 + $0x70] sm:$0xf] }
  0x21   : > { %192 = vst [vmem:[%s4882_s23 + $0x18] sm:$0xf] %v191_v6  ;;  %v209_v15 = vld [vmem:[%s4878_s11 + $0x78] sm:$0xf]  ;;  %v211_v16 = vld [vmem:[%s4878_s11 + $0x80] sm:$0xf] }
  0x22   : > { %194 = vst [vmem:[%s4882_s23 + $0x1c] sm:$0xf] %v193_v7  ;;  %v213_v17 = vld [vmem:[%s4878_s11 + $0x88] sm:$0xf]  ;;  %v215_v18 = vld [vmem:[%s4878_s11 + $0x90] sm:$0xf] }
  0x23   : > { %196 = vst [vmem:[%s4882_s23 + $0x20] sm:$0xf] %v195_v8  ;;  %v217_v19 = vld [vmem:[%s4878_s11 + $0x98] sm:$0xf]  ;;  %v219_v20 = vld [vmem:[%s4878_s11 + $0xa0] sm:$0xf] }
  0x24   : > { %198 = vst [vmem:[%s4882_s23 + $0x24] sm:$0xf] %v197_v9  ;;  %v221_v21 = vld [vmem:[%s4878_s11 + $0xa8] sm:$0xf]  ;;  %v223_v22 = vld [vmem:[%s4878_s11 + $0xb0] sm:$0xf] }
  0x25   : > { %200 = vst [vmem:[%s4882_s23 + $0x28] sm:$0xf] %v199_v10  ;;  %v225_v23 = vld [vmem:[%s4878_s11 + $0xb8] sm:$0xf]  ;;  %v227_v24 = vld [vmem:[%s4878_s11 + $0xc0] sm:$0xf] }
  0x26   : > { %202 = vst [vmem:[%s4882_s23 + $0x2c] sm:$0xf] %v201_v11  ;;  %v229_v25 = vld [vmem:[%s4878_s11 + $0xc8] sm:$0xf]  ;;  %v231_v26 = vld [vmem:[%s4878_s11 + $0xd0] sm:$0xf] }
  0x27   : > { %204 = vst [vmem:[%s4882_s23 + $0x30] sm:$0xf] %v203_v12  ;;  %v233_v27 = vld [vmem:[%s4878_s11 + $0xd8] sm:$0xf]  ;;  %v235_v28 = vld [vmem:[%s4878_s11 + $0xe0] sm:$0xf] }
  0x28   : > { %206 = vst [vmem:[%s4882_s23 + $0x34] sm:$0xf] %v205_v13  ;;  %v237_v29 = vld [vmem:[%s4878_s11 + $0xe8] sm:$0xf]  ;;  %v239_v30 = vld [vmem:[%s4878_s11 + $0xf0] sm:$0xf] }
  0x29   : > { %208 = vst [vmem:[%s4882_s23 + $0x38] sm:$0xf] %v207_v14  ;;  %v241_v31 = vld [vmem:[%s4878_s11 + $0xf8] sm:$0xf]  ;;  %v243_v32 = vld [vmem:[%s4878_s11 + $0x100] sm:$0xf] }
  0x2a   : > { %210 = vst [vmem:[%s4882_s23 + $0x3c] sm:$0xf] %v209_v15  ;;  %v245_v33 = vld [vmem:[%s4878_s11 + $0x108] sm:$0xf]  ;;  %v247_v34 = vld [vmem:[%s4878_s11 + $0x110] sm:$0xf] }
  0x2b   : > { %212 = vst [vmem:[%s4882_s23 + $0x40] sm:$0xf] %v211_v16  ;;  %v249_v35 = vld [vmem:[%s4878_s11 + $0x118] sm:$0xf]  ;;  %v251_v36 = vld [vmem:[%s4878_s11 + $0x120] sm:$0xf] }
  0x2c   : > { %214 = vst [vmem:[%s4882_s23 + $0x44] sm:$0xf] %v213_v17  ;;  %v253_v37 = vld [vmem:[%s4878_s11 + $0x128] sm:$0xf]  ;;  %v255_v38 = vld [vmem:[%s4878_s11 + $0x130] sm:$0xf] }
  0x2d   : > { %216 = vst [vmem:[%s4882_s23 + $0x48] sm:$0xf] %v215_v18  ;;  %v257_v39 = vld [vmem:[%s4878_s11 + $0x138] sm:$0xf]  ;;  %v259_v40 = vld [vmem:[%s4878_s11 + $0x140] sm:$0xf] }
  0x2e   : > { %218 = vst [vmem:[%s4882_s23 + $0x4c] sm:$0xf] %v217_v19  ;;  %v261_v41 = vld [vmem:[%s4878_s11 + $0x148] sm:$0xf]  ;;  %v263_v42 = vld [vmem:[%s4878_s11 + $0x150] sm:$0xf] }
  0x2f   : > { %220 = vst [vmem:[%s4882_s23 + $0x50] sm:$0xf] %v219_v20  ;;  %v265_v43 = vld [vmem:[%s4878_s11 + $0x158] sm:$0xf]  ;;  %v267_v44 = vld [vmem:[%s4878_s11 + $0x160] sm:$0xf] }
  0x30   : > { %222 = vst [vmem:[%s4882_s23 + $0x54] sm:$0xf] %v221_v21  ;;  %v269_v45 = vld [vmem:[%s4878_s11 + $0x168] sm:$0xf]  ;;  %v271_v46 = vld [vmem:[%s4878_s11 + $0x170] sm:$0xf] }
  0x31   : > { %224 = vst [vmem:[%s4882_s23 + $0x58] sm:$0xf] %v223_v22  ;;  %v273_v47 = vld [vmem:[%s4878_s11 + $0x178] sm:$0xf]  ;;  %v275_v48 = vld [vmem:[%s4878_s11 + $0x180] sm:$0xf] }
  0x32   : > { %226 = vst [vmem:[%s4882_s23 + $0x5c] sm:$0xf] %v225_v23  ;;  %v277_v49 = vld [vmem:[%s4878_s11 + $0x188] sm:$0xf]  ;;  %v279_v50 = vld [vmem:[%s4878_s11 + $0x190] sm:$0xf] }
  0x33   : > { %228 = vst [vmem:[%s4882_s23 + $0x60] sm:$0xf] %v227_v24  ;;  %v281_v51 = vld [vmem:[%s4878_s11 + $0x198] sm:$0xf]  ;;  %v283_v52 = vld [vmem:[%s4878_s11 + $0x1a0] sm:$0xf] }
  0x34   : > { %230 = vst [vmem:[%s4882_s23 + $0x64] sm:$0xf] %v229_v25  ;;  %v285_v53 = vld [vmem:[%s4878_s11 + $0x1a8] sm:$0xf]  ;;  %v287_v54 = vld [vmem:[%s4878_s11 + $0x1b0] sm:$0xf] }
  0x35   : > { %232 = vst [vmem:[%s4882_s23 + $0x68] sm:$0xf] %v231_v26  ;;  %v289_v55 = vld [vmem:[%s4878_s11 + $0x1b8] sm:$0xf]  ;;  %v291_v56 = vld [vmem:[%s4878_s11 + $0x1c0] sm:$0xf] }
  0x36   : > { %234 = vst [vmem:[%s4882_s23 + $0x6c] sm:$0xf] %v233_v27  ;;  %v293_v57 = vld [vmem:[%s4878_s11 + $0x1c8] sm:$0xf]  ;;  %v295_v58 = vld [vmem:[%s4878_s11 + $0x1d0] sm:$0xf] }
  0x37   : > { %236 = vst [vmem:[%s4882_s23 + $0x70] sm:$0xf] %v235_v28  ;;  %v297_v59 = vld [vmem:[%s4878_s11 + $0x1d8] sm:$0xf]  ;;  %v299_v60 = vld [vmem:[%s4878_s11 + $0x1e0] sm:$0xf] }
  0x38   : > { %238 = vst [vmem:[%s4882_s23 + $0x74] sm:$0xf] %v237_v29  ;;  %v301_v61 = vld [vmem:[%s4878_s11 + $0x1e8] sm:$0xf]  ;;  %v303_v62 = vld [vmem:[%s4878_s11 + $0x1f0] sm:$0xf] }
  0x39   : > { %240 = vst [vmem:[%s4882_s23 + $0x78] sm:$0xf] %v239_v30  ;;  %v305_v63 = vld [vmem:[%s4878_s11 + $0x1f8] sm:$0xf]  ;;  %v307_v0 = vld [vmem:[%s4878_s11 + $0x200] sm:$0xf] }
  0x3a   : > { %242 = vst [vmem:[%s4882_s23 + $0x7c] sm:$0xf] %v241_v31  ;;  %v309_v1 = vld [vmem:[%s4878_s11 + $0x208] sm:$0xf]  ;;  %v311_v2 = vld [vmem:[%s4878_s11 + $0x210] sm:$0xf] }
  0x3b   : > { %244 = vst [vmem:[%s4882_s23 + $0x80] sm:$0xf] %v243_v32  ;;  %v313_v3 = vld [vmem:[%s4878_s11 + $0x218] sm:$0xf]  ;;  %v315_v4 = vld [vmem:[%s4878_s11 + $0x220] sm:$0xf] }
  0x3c   : > { %246 = vst [vmem:[%s4882_s23 + $0x84] sm:$0xf] %v245_v33  ;;  %v317_v5 = vld [vmem:[%s4878_s11 + $0x228] sm:$0xf]  ;;  %v319_v6 = vld [vmem:[%s4878_s11 + $0x230] sm:$0xf] }
  0x3d   : > { %248 = vst [vmem:[%s4882_s23 + $0x88] sm:$0xf] %v247_v34  ;;  %v321_v7 = vld [vmem:[%s4878_s11 + $0x238] sm:$0xf]  ;;  %v323_v8 = vld [vmem:[%s4878_s11 + $0x240] sm:$0xf] }
  0x3e   : > { %250 = vst [vmem:[%s4882_s23 + $0x8c] sm:$0xf] %v249_v35  ;;  %v325_v9 = vld [vmem:[%s4878_s11 + $0x248] sm:$0xf]  ;;  %v327_v10 = vld [vmem:[%s4878_s11 + $0x250] sm:$0xf] }
  0x3f   : > { %252 = vst [vmem:[%s4882_s23 + $0x90] sm:$0xf] %v251_v36  ;;  %v329_v11 = vld [vmem:[%s4878_s11 + $0x258] sm:$0xf]  ;;  %v331_v12 = vld [vmem:[%s4878_s11 + $0x260] sm:$0xf] }
  0x40   : > { %254 = vst [vmem:[%s4882_s23 + $0x94] sm:$0xf] %v253_v37  ;;  %v333_v13 = vld [vmem:[%s4878_s11 + $0x268] sm:$0xf]  ;;  %v335_v14 = vld [vmem:[%s4878_s11 + $0x270] sm:$0xf] }
  0x41   : > { %256 = vst [vmem:[%s4882_s23 + $0x98] sm:$0xf] %v255_v38  ;;  %v337_v15 = vld [vmem:[%s4878_s11 + $0x278] sm:$0xf]  ;;  %v339_v16 = vld [vmem:[%s4878_s11 + $0x280] sm:$0xf] }
  0x42   : > { %258 = vst [vmem:[%s4882_s23 + $0x9c] sm:$0xf] %v257_v39  ;;  %v341_v17 = vld [vmem:[%s4878_s11 + $0x288] sm:$0xf]  ;;  %v343_v18 = vld [vmem:[%s4878_s11 + $0x290] sm:$0xf] }
  0x43   : > { %260 = vst [vmem:[%s4882_s23 + $0xa0] sm:$0xf] %v259_v40  ;;  %v345_v19 = vld [vmem:[%s4878_s11 + $0x298] sm:$0xf]  ;;  %v347_v20 = vld [vmem:[%s4878_s11 + $0x2a0] sm:$0xf] }
  0x44   : > { %262 = vst [vmem:[%s4882_s23 + $0xa4] sm:$0xf] %v261_v41  ;;  %v349_v21 = vld [vmem:[%s4878_s11 + $0x2a8] sm:$0xf]  ;;  %v351_v22 = vld [vmem:[%s4878_s11 + $0x2b0] sm:$0xf] }
  0x45   : > { %264 = vst [vmem:[%s4882_s23 + $0xa8] sm:$0xf] %v263_v42  ;;  %v353_v23 = vld [vmem:[%s4878_s11 + $0x2b8] sm:$0xf]  ;;  %v355_v24 = vld [vmem:[%s4878_s11 + $0x2c0] sm:$0xf] }
  0x46   : > { %266 = vst [vmem:[%s4882_s23 + $0xac] sm:$0xf] %v265_v43  ;;  %v357_v25 = vld [vmem:[%s4878_s11 + $0x2c8] sm:$0xf]  ;;  %v359_v26 = vld [vmem:[%s4878_s11 + $0x2d0] sm:$0xf] }
  0x47   : > { %268 = vst [vmem:[%s4882_s23 + $0xb0] sm:$0xf] %v267_v44  ;;  %v361_v27 = vld [vmem:[%s4878_s11 + $0x2d8] sm:$0xf]  ;;  %v363_v28 = vld [vmem:[%s4878_s11 + $0x2e0] sm:$0xf] }
  0x48   : > { %270 = vst [vmem:[%s4882_s23 + $0xb4] sm:$0xf] %v269_v45  ;;  %v365_v29 = vld [vmem:[%s4878_s11 + $0x2e8] sm:$0xf]  ;;  %v367_v30 = vld [vmem:[%s4878_s11 + $0x2f0] sm:$0xf] }
  0x49   : > { %272 = vst [vmem:[%s4882_s23 + $0xb8] sm:$0xf] %v271_v46  ;;  %v369_v31 = vld [vmem:[%s4878_s11 + $0x2f8] sm:$0xf]  ;;  %v371_v32 = vld [vmem:[%s4878_s11 + $0x300] sm:$0xf] }
  0x4a   : > { %274 = vst [vmem:[%s4882_s23 + $0xbc] sm:$0xf] %v273_v47  ;;  %v373_v33 = vld [vmem:[%s4878_s11 + $0x308] sm:$0xf]  ;;  %v375_v34 = vld [vmem:[%s4878_s11 + $0x310] sm:$0xf] }
  0x4b   : > { %276 = vst [vmem:[%s4882_s23 + $0xc0] sm:$0xf] %v275_v48  ;;  %v377_v35 = vld [vmem:[%s4878_s11 + $0x318] sm:$0xf]  ;;  %v379_v36 = vld [vmem:[%s4878_s11 + $0x320] sm:$0xf] }
  0x4c   : > { %278 = vst [vmem:[%s4882_s23 + $0xc4] sm:$0xf] %v277_v49  ;;  %v381_v37 = vld [vmem:[%s4878_s11 + $0x328] sm:$0xf]  ;;  %v383_v38 = vld [vmem:[%s4878_s11 + $0x330] sm:$0xf] }
  0x4d   : > { %280 = vst [vmem:[%s4882_s23 + $0xc8] sm:$0xf] %v279_v50  ;;  %v385_v39 = vld [vmem:[%s4878_s11 + $0x338] sm:$0xf]  ;;  %v387_v40 = vld [vmem:[%s4878_s11 + $0x340] sm:$0xf] }
  0x4e   : > { %282 = vst [vmem:[%s4882_s23 + $0xcc] sm:$0xf] %v281_v51  ;;  %v389_v41 = vld [vmem:[%s4878_s11 + $0x348] sm:$0xf]  ;;  %v391_v42 = vld [vmem:[%s4878_s11 + $0x350] sm:$0xf] }
  0x4f   : > { %284 = vst [vmem:[%s4882_s23 + $0xd0] sm:$0xf] %v283_v52  ;;  %v393_v43 = vld [vmem:[%s4878_s11 + $0x358] sm:$0xf]  ;;  %v395_v44 = vld [vmem:[%s4878_s11 + $0x360] sm:$0xf] }
  0x50   : > { %286 = vst [vmem:[%s4882_s23 + $0xd4] sm:$0xf] %v285_v53  ;;  %v397_v45 = vld [vmem:[%s4878_s11 + $0x368] sm:$0xf]  ;;  %v399_v46 = vld [vmem:[%s4878_s11 + $0x370] sm:$0xf] }
  0x51   : > { %288 = vst [vmem:[%s4882_s23 + $0xd8] sm:$0xf] %v287_v54  ;;  %v401_v47 = vld [vmem:[%s4878_s11 + $0x378] sm:$0xf]  ;;  %v403_v48 = vld [vmem:[%s4878_s11 + $0x380] sm:$0xf] }
  0x52   : > { %290 = vst [vmem:[%s4882_s23 + $0xdc] sm:$0xf] %v289_v55  ;;  %v405_v49 = vld [vmem:[%s4878_s11 + $0x388] sm:$0xf]  ;;  %v407_v50 = vld [vmem:[%s4878_s11 + $0x390] sm:$0xf] }
  0x53   : > { %292 = vst [vmem:[%s4882_s23 + $0xe0] sm:$0xf] %v291_v56  ;;  %v409_v51 = vld [vmem:[%s4878_s11 + $0x398] sm:$0xf]  ;;  %v411_v52 = vld [vmem:[%s4878_s11 + $0x3a0] sm:$0xf] }
  0x54   : > { %294 = vst [vmem:[%s4882_s23 + $0xe4] sm:$0xf] %v293_v57  ;;  %v413_v53 = vld [vmem:[%s4878_s11 + $0x3a8] sm:$0xf]  ;;  %v415_v54 = vld [vmem:[%s4878_s11 + $0x3b0] sm:$0xf] }
  0x55   : > { %296 = vst [vmem:[%s4882_s23 + $0xe8] sm:$0xf] %v295_v58  ;;  %v417_v55 = vld [vmem:[%s4878_s11 + $0x3b8] sm:$0xf]  ;;  %v419_v56 = vld [vmem:[%s4878_s11 + $0x3c0] sm:$0xf] }
  0x56   : > { %298 = vst [vmem:[%s4882_s23 + $0xec] sm:$0xf] %v297_v59  ;;  %v421_v57 = vld [vmem:[%s4878_s11 + $0x3c8] sm:$0xf]  ;;  %v423_v58 = vld [vmem:[%s4878_s11 + $0x3d0] sm:$0xf] }
  0x57   : > { %300 = vst [vmem:[%s4882_s23 + $0xf0] sm:$0xf] %v299_v60  ;;  %v425_v59 = vld [vmem:[%s4878_s11 + $0x3d8] sm:$0xf]  ;;  %v427_v60 = vld [vmem:[%s4878_s11 + $0x3e0] sm:$0xf] }
  0x58   : > { %302 = vst [vmem:[%s4882_s23 + $0xf4] sm:$0xf] %v301_v61  ;;  %v429_v61 = vld [vmem:[%s4878_s11 + $0x3e8] sm:$0xf] }
  0x59   : > { %304 = vst [vmem:[%s4882_s23 + $0xf8] sm:$0xf] %v303_v62  ;;  %v431_v62 = vld [vmem:[%s4878_s11 + $0x3f0] sm:$0xf] }
  0x5a   : > { %306 = vst [vmem:[%s4882_s23 + $0xfc] sm:$0xf] %v305_v63  ;;  %v433_v63 = vld [vmem:[%s4878_s11 + $0x3f8] sm:$0xf] }
  0x5b   : > { %308 = vst [vmem:[%s4882_s23 + $0x100] sm:$0xf] %v307_v0  ;;  %v435_v0 = vld [vmem:[%s4878_s11 + $0x400] sm:$0xf] }
  0x5c   : > { %310 = vst [vmem:[%s4882_s23 + $0x104] sm:$0xf] %v309_v1  ;;  %v437_v1 = vld [vmem:[%s4878_s11 + $0x408] sm:$0xf] }
  0x5d   : > { %312 = vst [vmem:[%s4882_s23 + $0x108] sm:$0xf] %v311_v2  ;;  %v439_v2 = vld [vmem:[%s4878_s11 + $0x410] sm:$0xf] }
  0x5e   : > { %314 = vst [vmem:[%s4882_s23 + $0x10c] sm:$0xf] %v313_v3  ;;  %v441_v3 = vld [vmem:[%s4878_s11 + $0x418] sm:$0xf] }
  0x5f   : > { %316 = vst [vmem:[%s4882_s23 + $0x110] sm:$0xf] %v315_v4  ;;  %v443_v4 = vld [vmem:[%s4878_s11 + $0x420] sm:$0xf] }
  0x60   : > { %318 = vst [vmem:[%s4882_s23 + $0x114] sm:$0xf] %v317_v5  ;;  %v445_v5 = vld [vmem:[%s4878_s11 + $0x428] sm:$0xf] }
  0x61   : > { %320 = vst [vmem:[%s4882_s23 + $0x118] sm:$0xf] %v319_v6  ;;  %v447_v6 = vld [vmem:[%s4878_s11 + $0x430] sm:$0xf] }
  0x62   : > { %322 = vst [vmem:[%s4882_s23 + $0x11c] sm:$0xf] %v321_v7  ;;  %v449_v7 = vld [vmem:[%s4878_s11 + $0x438] sm:$0xf] }
  0x63   : > { %324 = vst [vmem:[%s4882_s23 + $0x120] sm:$0xf] %v323_v8  ;;  %v451_v8 = vld [vmem:[%s4878_s11 + $0x440] sm:$0xf] }
  0x64   : > { %326 = vst [vmem:[%s4882_s23 + $0x124] sm:$0xf] %v325_v9  ;;  %v453_v9 = vld [vmem:[%s4878_s11 + $0x448] sm:$0xf] }
  0x65   : > { %328 = vst [vmem:[%s4882_s23 + $0x128] sm:$0xf] %v327_v10  ;;  %v455_v10 = vld [vmem:[%s4878_s11 + $0x450] sm:$0xf] }
  0x66   : > { %330 = vst [vmem:[%s4882_s23 + $0x12c] sm:$0xf] %v329_v11  ;;  %v457_v11 = vld [vmem:[%s4878_s11 + $0x458] sm:$0xf] }
  0x67   : > { %332 = vst [vmem:[%s4882_s23 + $0x130] sm:$0xf] %v331_v12  ;;  %v459_v12 = vld [vmem:[%s4878_s11 + $0x460] sm:$0xf] }
  0x68   : > { %334 = vst [vmem:[%s4882_s23 + $0x134] sm:$0xf] %v333_v13  ;;  %v461_v13 = vld [vmem:[%s4878_s11 + $0x468] sm:$0xf] }
  0x69   : > { %336 = vst [vmem:[%s4882_s23 + $0x138] sm:$0xf] %v335_v14  ;;  %v463_v14 = vld [vmem:[%s4878_s11 + $0x470] sm:$0xf] }
  0x6a   : > { %338 = vst [vmem:[%s4882_s23 + $0x13c] sm:$0xf] %v337_v15  ;;  %v465_v15 = vld [vmem:[%s4878_s11 + $0x478] sm:$0xf] }
  0x6b   : > { %340 = vst [vmem:[%s4882_s23 + $0x140] sm:$0xf] %v339_v16  ;;  %v467_v16 = vld [vmem:[%s4878_s11 + $0x480] sm:$0xf] }
  0x6c   : > { %342 = vst [vmem:[%s4882_s23 + $0x144] sm:$0xf] %v341_v17  ;;  %v469_v17 = vld [vmem:[%s4878_s11 + $0x488] sm:$0xf] }
  0x6d   : > { %344 = vst [vmem:[%s4882_s23 + $0x148] sm:$0xf] %v343_v18  ;;  %v471_v18 = vld [vmem:[%s4878_s11 + $0x490] sm:$0xf] }
  0x6e   : > { %346 = vst [vmem:[%s4882_s23 + $0x14c] sm:$0xf] %v345_v19  ;;  %v473_v19 = vld [vmem:[%s4878_s11 + $0x498] sm:$0xf] }
  0x6f   : > { %348 = vst [vmem:[%s4882_s23 + $0x150] sm:$0xf] %v347_v20  ;;  %v475_v20 = vld [vmem:[%s4878_s11 + $0x4a0] sm:$0xf] }
  0x70   : > { %350 = vst [vmem:[%s4882_s23 + $0x154] sm:$0xf] %v349_v21  ;;  %v477_v21 = vld [vmem:[%s4878_s11 + $0x4a8] sm:$0xf] }
  0x71   : > { %352 = vst [vmem:[%s4882_s23 + $0x158] sm:$0xf] %v351_v22  ;;  %v479_v22 = vld [vmem:[%s4878_s11 + $0x4b0] sm:$0xf] }
  0x72   : > { %354 = vst [vmem:[%s4882_s23 + $0x15c] sm:$0xf] %v353_v23  ;;  %v481_v23 = vld [vmem:[%s4878_s11 + $0x4b8] sm:$0xf] }
  0x73   : > { %356 = vst [vmem:[%s4882_s23 + $0x160] sm:$0xf] %v355_v24  ;;  %v483_v24 = vld [vmem:[%s4878_s11 + $0x4c0] sm:$0xf] }
  0x74   : > { %358 = vst [vmem:[%s4882_s23 + $0x164] sm:$0xf] %v357_v25  ;;  %v485_v25 = vld [vmem:[%s4878_s11 + $0x4c8] sm:$0xf] }
  0x75   : > { %360 = vst [vmem:[%s4882_s23 + $0x168] sm:$0xf] %v359_v26  ;;  %v487_v26 = vld [vmem:[%s4878_s11 + $0x4d0] sm:$0xf] }
  0x76   : > { %362 = vst [vmem:[%s4882_s23 + $0x16c] sm:$0xf] %v361_v27  ;;  %v489_v27 = vld [vmem:[%s4878_s11 + $0x4d8] sm:$0xf] }
  0x77   : > { %364 = vst [vmem:[%s4882_s23 + $0x170] sm:$0xf] %v363_v28  ;;  %v491_v28 = vld [vmem:[%s4878_s11 + $0x4e0] sm:$0xf] }
  0x78   : > { %366 = vst [vmem:[%s4882_s23 + $0x174] sm:$0xf] %v365_v29  ;;  %v493_v29 = vld [vmem:[%s4878_s11 + $0x4e8] sm:$0xf] }
  0x79   : > { %368 = vst [vmem:[%s4882_s23 + $0x178] sm:$0xf] %v367_v30  ;;  %v495_v30 = vld [vmem:[%s4878_s11 + $0x4f0] sm:$0xf] }
  0x7a   : > { %370 = vst [vmem:[%s4882_s23 + $0x17c] sm:$0xf] %v369_v31  ;;  %v497_v31 = vld [vmem:[%s4878_s11 + $0x4f8] sm:$0xf] }
  0x7b   : > { %372 = vst [vmem:[%s4882_s23 + $0x180] sm:$0xf] %v371_v32  ;;  %v499_v32 = vld [vmem:[%s4878_s11 + $0x500] sm:$0xf] }
  0x7c   : > { %374 = vst [vmem:[%s4882_s23 + $0x184] sm:$0xf] %v373_v33  ;;  %v501_v33 = vld [vmem:[%s4878_s11 + $0x508] sm:$0xf] }
  0x7d   : > { %376 = vst [vmem:[%s4882_s23 + $0x188] sm:$0xf] %v375_v34  ;;  %v503_v34 = vld [vmem:[%s4878_s11 + $0x510] sm:$0xf] }
  0x7e   : > { %378 = vst [vmem:[%s4882_s23 + $0x18c] sm:$0xf] %v377_v35  ;;  %v505_v35 = vld [vmem:[%s4878_s11 + $0x518] sm:$0xf] }
  0x7f   : > { %380 = vst [vmem:[%s4882_s23 + $0x190] sm:$0xf] %v379_v36  ;;  %v507_v36 = vld [vmem:[%s4878_s11 + $0x520] sm:$0xf] }
  0x80   : > { %382 = vst [vmem:[%s4882_s23 + $0x194] sm:$0xf] %v381_v37  ;;  %v509_v37 = vld [vmem:[%s4878_s11 + $0x528] sm:$0xf] }
  0x81   : > { %384 = vst [vmem:[%s4882_s23 + $0x198] sm:$0xf] %v383_v38  ;;  %v511_v38 = vld [vmem:[%s4878_s11 + $0x530] sm:$0xf] }
  0x82   : > { %386 = vst [vmem:[%s4882_s23 + $0x19c] sm:$0xf] %v385_v39  ;;  %v513_v39 = vld [vmem:[%s4878_s11 + $0x538] sm:$0xf] }
  0x83   : > { %388 = vst [vmem:[%s4882_s23 + $0x1a0] sm:$0xf] %v387_v40  ;;  %v515_v40 = vld [vmem:[%s4878_s11 + $0x540] sm:$0xf] }
  0x84   : > { %390 = vst [vmem:[%s4882_s23 + $0x1a4] sm:$0xf] %v389_v41  ;;  %v517_v41 = vld [vmem:[%s4878_s11 + $0x548] sm:$0xf] }
  0x85   : > { %392 = vst [vmem:[%s4882_s23 + $0x1a8] sm:$0xf] %v391_v42  ;;  %v519_v42 = vld [vmem:[%s4878_s11 + $0x550] sm:$0xf] }
  0x86   : > { %394 = vst [vmem:[%s4882_s23 + $0x1ac] sm:$0xf] %v393_v43  ;;  %v521_v43 = vld [vmem:[%s4878_s11 + $0x558] sm:$0xf] }
  0x87   : > { %396 = vst [vmem:[%s4882_s23 + $0x1b0] sm:$0xf] %v395_v44  ;;  %v523_v44 = vld [vmem:[%s4878_s11 + $0x560] sm:$0xf] }
  0x88   : > { %398 = vst [vmem:[%s4882_s23 + $0x1b4] sm:$0xf] %v397_v45  ;;  %v525_v45 = vld [vmem:[%s4878_s11 + $0x568] sm:$0xf] }
  0x89   : > { %400 = vst [vmem:[%s4882_s23 + $0x1b8] sm:$0xf] %v399_v46  ;;  %v527_v46 = vld [vmem:[%s4878_s11 + $0x570] sm:$0xf] }
  0x8a   : > { %402 = vst [vmem:[%s4882_s23 + $0x1bc] sm:$0xf] %v401_v47  ;;  %v529_v47 = vld [vmem:[%s4878_s11 + $0x578] sm:$0xf] }
  0x8b   : > { %404 = vst [vmem:[%s4882_s23 + $0x1c0] sm:$0xf] %v403_v48  ;;  %v531_v48 = vld [vmem:[%s4878_s11 + $0x580] sm:$0xf] }
  0x8c   : > { %406 = vst [vmem:[%s4882_s23 + $0x1c4] sm:$0xf] %v405_v49  ;;  %v533_v49 = vld [vmem:[%s4878_s11 + $0x588] sm:$0xf] }
  0x8d   : > { %408 = vst [vmem:[%s4882_s23 + $0x1c8] sm:$0xf] %v407_v50  ;;  %v535_v50 = vld [vmem:[%s4878_s11 + $0x590] sm:$0xf] }
  0x8e   : > { %410 = vst [vmem:[%s4882_s23 + $0x1cc] sm:$0xf] %v409_v51  ;;  %v537_v51 = vld [vmem:[%s4878_s11 + $0x598] sm:$0xf] }
  0x8f   : > { %412 = vst [vmem:[%s4882_s23 + $0x1d0] sm:$0xf] %v411_v52  ;;  %v539_v52 = vld [vmem:[%s4878_s11 + $0x5a0] sm:$0xf] }
  0x90   : > { %414 = vst [vmem:[%s4882_s23 + $0x1d4] sm:$0xf] %v413_v53  ;;  %v541_v53 = vld [vmem:[%s4878_s11 + $0x5a8] sm:$0xf] }
  0x91   : > { %416 = vst [vmem:[%s4882_s23 + $0x1d8] sm:$0xf] %v415_v54  ;;  %v543_v54 = vld [vmem:[%s4878_s11 + $0x5b0] sm:$0xf] }
  0x92   : > { %418 = vst [vmem:[%s4882_s23 + $0x1dc] sm:$0xf] %v417_v55  ;;  %v545_v55 = vld [vmem:[%s4878_s11 + $0x5b8] sm:$0xf] }
  0x93   : > { %420 = vst [vmem:[%s4882_s23 + $0x1e0] sm:$0xf] %v419_v56  ;;  %v547_v56 = vld [vmem:[%s4878_s11 + $0x5c0] sm:$0xf] }
  0x94   : > { %422 = vst [vmem:[%s4882_s23 + $0x1e4] sm:$0xf] %v421_v57  ;;  %v549_v57 = vld [vmem:[%s4878_s11 + $0x5c8] sm:$0xf] }
  0x95   : > { %424 = vst [vmem:[%s4882_s23 + $0x1e8] sm:$0xf] %v423_v58  ;;  %v551_v58 = vld [vmem:[%s4878_s11 + $0x5d0] sm:$0xf] }
  0x96   : > { %426 = vst [vmem:[%s4882_s23 + $0x1ec] sm:$0xf] %v425_v59  ;;  %v553_v59 = vld [vmem:[%s4878_s11 + $0x5d8] sm:$0xf] }
  0x97   : > { %428 = vst [vmem:[%s4882_s23 + $0x1f0] sm:$0xf] %v427_v60  ;;  %v555_v60 = vld [vmem:[%s4878_s11 + $0x5e0] sm:$0xf] }
  0x98   : > { %430 = vst [vmem:[%s4882_s23 + $0x1f4] sm:$0xf] %v429_v61  ;;  %v557_v61 = vld [vmem:[%s4878_s11 + $0x5e8] sm:$0xf] }
  0x99   : > { %432 = vst [vmem:[%s4882_s23 + $0x1f8] sm:$0xf] %v431_v62  ;;  %v559_v62 = vld [vmem:[%s4878_s11 + $0x5f0] sm:$0xf] }
  0x9a   : > { %434 = vst [vmem:[%s4882_s23 + $0x1fc] sm:$0xf] %v433_v63  ;;  %v561_v63 = vld [vmem:[%s4878_s11 + $0x5f8] sm:$0xf] }
  0x9b   : > { %436 = vst [vmem:[%s4882_s23 + $0x200] sm:$0xf] %v435_v0  ;;  %v563_v0 = vld [vmem:[%s4878_s11 + $0x600] sm:$0xf] }
  0x9c   : > { %438 = vst [vmem:[%s4882_s23 + $0x204] sm:$0xf] %v437_v1  ;;  %v565_v1 = vld [vmem:[%s4878_s11 + $0x608] sm:$0xf] }
  0x9d   : > { %440 = vst [vmem:[%s4882_s23 + $0x208] sm:$0xf] %v439_v2  ;;  %v567_v2 = vld [vmem:[%s4878_s11 + $0x610] sm:$0xf] }
  0x9e   : > { %442 = vst [vmem:[%s4882_s23 + $0x20c] sm:$0xf] %v441_v3  ;;  %v569_v3 = vld [vmem:[%s4878_s11 + $0x618] sm:$0xf] }
  0x9f   : > { %444 = vst [vmem:[%s4882_s23 + $0x210] sm:$0xf] %v443_v4  ;;  %v571_v4 = vld [vmem:[%s4878_s11 + $0x620] sm:$0xf] }
  0xa0   : > { %446 = vst [vmem:[%s4882_s23 + $0x214] sm:$0xf] %v445_v5  ;;  %v573_v5 = vld [vmem:[%s4878_s11 + $0x628] sm:$0xf] }
  0xa1   : > { %448 = vst [vmem:[%s4882_s23 + $0x218] sm:$0xf] %v447_v6  ;;  %v575_v6 = vld [vmem:[%s4878_s11 + $0x630] sm:$0xf] }
  0xa2   : > { %450 = vst [vmem:[%s4882_s23 + $0x21c] sm:$0xf] %v449_v7  ;;  %v577_v7 = vld [vmem:[%s4878_s11 + $0x638] sm:$0xf] }
  0xa3   : > { %452 = vst [vmem:[%s4882_s23 + $0x220] sm:$0xf] %v451_v8  ;;  %v579_v8 = vld [vmem:[%s4878_s11 + $0x640] sm:$0xf] }
  0xa4   : > { %454 = vst [vmem:[%s4882_s23 + $0x224] sm:$0xf] %v453_v9  ;;  %v581_v9 = vld [vmem:[%s4878_s11 + $0x648] sm:$0xf] }
  0xa5   : > { %456 = vst [vmem:[%s4882_s23 + $0x228] sm:$0xf] %v455_v10  ;;  %v583_v10 = vld [vmem:[%s4878_s11 + $0x650] sm:$0xf] }
  0xa6   : > { %458 = vst [vmem:[%s4882_s23 + $0x22c] sm:$0xf] %v457_v11  ;;  %v585_v11 = vld [vmem:[%s4878_s11 + $0x658] sm:$0xf] }
  0xa7   : > { %460 = vst [vmem:[%s4882_s23 + $0x230] sm:$0xf] %v459_v12  ;;  %v587_v12 = vld [vmem:[%s4878_s11 + $0x660] sm:$0xf] }
  0xa8   : > { %462 = vst [vmem:[%s4882_s23 + $0x234] sm:$0xf] %v461_v13  ;;  %v589_v13 = vld [vmem:[%s4878_s11 + $0x668] sm:$0xf] }
  0xa9   : > { %464 = vst [vmem:[%s4882_s23 + $0x238] sm:$0xf] %v463_v14  ;;  %v591_v14 = vld [vmem:[%s4878_s11 + $0x670] sm:$0xf] }
  0xaa   : > { %466 = vst [vmem:[%s4882_s23 + $0x23c] sm:$0xf] %v465_v15  ;;  %v593_v15 = vld [vmem:[%s4878_s11 + $0x678] sm:$0xf] }
  0xab   : > { %468 = vst [vmem:[%s4882_s23 + $0x240] sm:$0xf] %v467_v16  ;;  %v595_v16 = vld [vmem:[%s4878_s11 + $0x680] sm:$0xf] }
  0xac   : > { %470 = vst [vmem:[%s4882_s23 + $0x244] sm:$0xf] %v469_v17  ;;  %v597_v17 = vld [vmem:[%s4878_s11 + $0x688] sm:$0xf] }
  0xad   : > { %472 = vst [vmem:[%s4882_s23 + $0x248] sm:$0xf] %v471_v18  ;;  %v599_v18 = vld [vmem:[%s4878_s11 + $0x690] sm:$0xf] }
  0xae   : > { %474 = vst [vmem:[%s4882_s23 + $0x24c] sm:$0xf] %v473_v19  ;;  %v601_v19 = vld [vmem:[%s4878_s11 + $0x698] sm:$0xf] }
  0xaf   : > { %476 = vst [vmem:[%s4882_s23 + $0x250] sm:$0xf] %v475_v20  ;;  %v603_v20 = vld [vmem:[%s4878_s11 + $0x6a0] sm:$0xf] }
  0xb0   : > { %478 = vst [vmem:[%s4882_s23 + $0x254] sm:$0xf] %v477_v21  ;;  %v605_v21 = vld [vmem:[%s4878_s11 + $0x6a8] sm:$0xf] }
  0xb1   : > { %480 = vst [vmem:[%s4882_s23 + $0x258] sm:$0xf] %v479_v22  ;;  %v607_v22 = vld [vmem:[%s4878_s11 + $0x6b0] sm:$0xf] }
  0xb2   : > { %482 = vst [vmem:[%s4882_s23 + $0x25c] sm:$0xf] %v481_v23  ;;  %v609_v23 = vld [vmem:[%s4878_s11 + $0x6b8] sm:$0xf] }
  0xb3   : > { %484 = vst [vmem:[%s4882_s23 + $0x260] sm:$0xf] %v483_v24  ;;  %v611_v24 = vld [vmem:[%s4878_s11 + $0x6c0] sm:$0xf] }
  0xb4   : > { %486 = vst [vmem:[%s4882_s23 + $0x264] sm:$0xf] %v485_v25  ;;  %v613_v25 = vld [vmem:[%s4878_s11 + $0x6c8] sm:$0xf] }
  0xb5   : > { %488 = vst [vmem:[%s4882_s23 + $0x268] sm:$0xf] %v487_v26  ;;  %v615_v26 = vld [vmem:[%s4878_s11 + $0x6d0] sm:$0xf] }
  0xb6   : > { %490 = vst [vmem:[%s4882_s23 + $0x26c] sm:$0xf] %v489_v27  ;;  %v617_v27 = vld [vmem:[%s4878_s11 + $0x6d8] sm:$0xf] }
  0xb7   : > { %492 = vst [vmem:[%s4882_s23 + $0x270] sm:$0xf] %v491_v28  ;;  %v619_v28 = vld [vmem:[%s4878_s11 + $0x6e0] sm:$0xf] }
  0xb8   : > { %494 = vst [vmem:[%s4882_s23 + $0x274] sm:$0xf] %v493_v29  ;;  %v621_v29 = vld [vmem:[%s4878_s11 + $0x6e8] sm:$0xf] }
  0xb9   : > { %496 = vst [vmem:[%s4882_s23 + $0x278] sm:$0xf] %v495_v30  ;;  %v623_v30 = vld [vmem:[%s4878_s11 + $0x6f0] sm:$0xf] }
  0xba   : > { %498 = vst [vmem:[%s4882_s23 + $0x27c] sm:$0xf] %v497_v31  ;;  %v625_v31 = vld [vmem:[%s4878_s11 + $0x6f8] sm:$0xf] }
  0xbb   : > { %500 = vst [vmem:[%s4882_s23 + $0x280] sm:$0xf] %v499_v32  ;;  %v627_v32 = vld [vmem:[%s4878_s11 + $0x700] sm:$0xf] }
  0xbc   : > { %502 = vst [vmem:[%s4882_s23 + $0x284] sm:$0xf] %v501_v33  ;;  %v629_v33 = vld [vmem:[%s4878_s11 + $0x708] sm:$0xf] }
  0xbd   : > { %504 = vst [vmem:[%s4882_s23 + $0x288] sm:$0xf] %v503_v34  ;;  %v631_v34 = vld [vmem:[%s4878_s11 + $0x710] sm:$0xf] }
  0xbe   : > { %506 = vst [vmem:[%s4882_s23 + $0x28c] sm:$0xf] %v505_v35  ;;  %v633_v35 = vld [vmem:[%s4878_s11 + $0x718] sm:$0xf] }
  0xbf   : > { %508 = vst [vmem:[%s4882_s23 + $0x290] sm:$0xf] %v507_v36  ;;  %v635_v36 = vld [vmem:[%s4878_s11 + $0x720] sm:$0xf] }
  0xc0   : > { %510 = vst [vmem:[%s4882_s23 + $0x294] sm:$0xf] %v509_v37  ;;  %v637_v37 = vld [vmem:[%s4878_s11 + $0x728] sm:$0xf] }
  0xc1   : > { %512 = vst [vmem:[%s4882_s23 + $0x298] sm:$0xf] %v511_v38  ;;  %v639_v38 = vld [vmem:[%s4878_s11 + $0x730] sm:$0xf] }
  0xc2   : > { %514 = vst [vmem:[%s4882_s23 + $0x29c] sm:$0xf] %v513_v39  ;;  %v641_v39 = vld [vmem:[%s4878_s11 + $0x738] sm:$0xf] }
  0xc3   : > { %516 = vst [vmem:[%s4882_s23 + $0x2a0] sm:$0xf] %v515_v40  ;;  %v643_v40 = vld [vmem:[%s4878_s11 + $0x740] sm:$0xf] }
  0xc4   : > { %518 = vst [vmem:[%s4882_s23 + $0x2a4] sm:$0xf] %v517_v41  ;;  %v645_v41 = vld [vmem:[%s4878_s11 + $0x748] sm:$0xf] }
  0xc5   : > { %520 = vst [vmem:[%s4882_s23 + $0x2a8] sm:$0xf] %v519_v42  ;;  %v647_v42 = vld [vmem:[%s4878_s11 + $0x750] sm:$0xf] }
  0xc6   : > { %522 = vst [vmem:[%s4882_s23 + $0x2ac] sm:$0xf] %v521_v43  ;;  %v649_v43 = vld [vmem:[%s4878_s11 + $0x758] sm:$0xf] }
  0xc7   : > { %524 = vst [vmem:[%s4882_s23 + $0x2b0] sm:$0xf] %v523_v44  ;;  %v651_v44 = vld [vmem:[%s4878_s11 + $0x760] sm:$0xf] }
  0xc8   : > { %526 = vst [vmem:[%s4882_s23 + $0x2b4] sm:$0xf] %v525_v45  ;;  %v653_v45 = vld [vmem:[%s4878_s11 + $0x768] sm:$0xf] }
  0xc9   : > { %528 = vst [vmem:[%s4882_s23 + $0x2b8] sm:$0xf] %v527_v46  ;;  %v655_v46 = vld [vmem:[%s4878_s11 + $0x770] sm:$0xf] }
  0xca   : > { %530 = vst [vmem:[%s4882_s23 + $0x2bc] sm:$0xf] %v529_v47  ;;  %v657_v47 = vld [vmem:[%s4878_s11 + $0x778] sm:$0xf] }
  0xcb   : > { %532 = vst [vmem:[%s4882_s23 + $0x2c0] sm:$0xf] %v531_v48  ;;  %v659_v48 = vld [vmem:[%s4878_s11 + $0x780] sm:$0xf] }
  0xcc   : > { %534 = vst [vmem:[%s4882_s23 + $0x2c4] sm:$0xf] %v533_v49  ;;  %v661_v49 = vld [vmem:[%s4878_s11 + $0x788] sm:$0xf] }
  0xcd   : > { %536 = vst [vmem:[%s4882_s23 + $0x2c8] sm:$0xf] %v535_v50  ;;  %v663_v50 = vld [vmem:[%s4878_s11 + $0x790] sm:$0xf] }
  0xce   : > { %538 = vst [vmem:[%s4882_s23 + $0x2cc] sm:$0xf] %v537_v51  ;;  %v665_v51 = vld [vmem:[%s4878_s11 + $0x798] sm:$0xf] }
  0xcf   : > { %540 = vst [vmem:[%s4882_s23 + $0x2d0] sm:$0xf] %v539_v52  ;;  %v667_v52 = vld [vmem:[%s4878_s11 + $0x7a0] sm:$0xf] }
  0xd0   : > { %542 = vst [vmem:[%s4882_s23 + $0x2d4] sm:$0xf] %v541_v53  ;;  %v669_v53 = vld [vmem:[%s4878_s11 + $0x7a8] sm:$0xf] }
  0xd1   : > { %544 = vst [vmem:[%s4882_s23 + $0x2d8] sm:$0xf] %v543_v54  ;;  %v671_v54 = vld [vmem:[%s4878_s11 + $0x7b0] sm:$0xf] }
  0xd2   : > { %546 = vst [vmem:[%s4882_s23 + $0x2dc] sm:$0xf] %v545_v55  ;;  %v673_v55 = vld [vmem:[%s4878_s11 + $0x7b8] sm:$0xf] }
  0xd3   : > { %548 = vst [vmem:[%s4882_s23 + $0x2e0] sm:$0xf] %v547_v56  ;;  %v675_v56 = vld [vmem:[%s4878_s11 + $0x7c0] sm:$0xf] }
  0xd4   : > { %550 = vst [vmem:[%s4882_s23 + $0x2e4] sm:$0xf] %v549_v57  ;;  %v677_v57 = vld [vmem:[%s4878_s11 + $0x7c8] sm:$0xf] }
  0xd5   : > { %552 = vst [vmem:[%s4882_s23 + $0x2e8] sm:$0xf] %v551_v58  ;;  %v679_v58 = vld [vmem:[%s4878_s11 + $0x7d0] sm:$0xf] }
  0xd6   : > { %554 = vst [vmem:[%s4882_s23 + $0x2ec] sm:$0xf] %v553_v59  ;;  %v681_v59 = vld [vmem:[%s4878_s11 + $0x7d8] sm:$0xf] }
  0xd7   : > { %556 = vst [vmem:[%s4882_s23 + $0x2f0] sm:$0xf] %v555_v60  ;;  %v683_v60 = vld [vmem:[%s4878_s11 + $0x7e0] sm:$0xf] }
  0xd8   : > { %558 = vst [vmem:[%s4882_s23 + $0x2f4] sm:$0xf] %v557_v61  ;;  %v685_v61 = vld [vmem:[%s4878_s11 + $0x7e8] sm:$0xf] }
  0xd9   : > { %560 = vst [vmem:[%s4882_s23 + $0x2f8] sm:$0xf] %v559_v62  ;;  %v687_v62 = vld [vmem:[%s4878_s11 + $0x7f0] sm:$0xf] }
  0xda   : > { %562 = vst [vmem:[%s4882_s23 + $0x2fc] sm:$0xf] %v561_v63  ;;  %v689_v63 = vld [vmem:[%s4878_s11 + $0x7f8] sm:$0xf] }
  0xdb   : > { %564 = vst [vmem:[%s4882_s23 + $0x300] sm:$0xf] %v563_v0 }
  0xdc   : > { %566 = vst [vmem:[%s4882_s23 + $0x304] sm:$0xf] %v565_v1 }
  0xdd   : > { %568 = vst [vmem:[%s4882_s23 + $0x308] sm:$0xf] %v567_v2 }
  0xde   : > { %570 = vst [vmem:[%s4882_s23 + $0x30c] sm:$0xf] %v569_v3 }
  0xdf   : > { %572 = vst [vmem:[%s4882_s23 + $0x310] sm:$0xf] %v571_v4 }
  0xe0   : > { %574 = vst [vmem:[%s4882_s23 + $0x314] sm:$0xf] %v573_v5 }
  0xe1   : > { %576 = vst [vmem:[%s4882_s23 + $0x318] sm:$0xf] %v575_v6 }
  0xe2   : > { %578 = vst [vmem:[%s4882_s23 + $0x31c] sm:$0xf] %v577_v7 }
  0xe3   : > { %580 = vst [vmem:[%s4882_s23 + $0x320] sm:$0xf] %v579_v8 }
  0xe4   : > { %582 = vst [vmem:[%s4882_s23 + $0x324] sm:$0xf] %v581_v9 }
  0xe5   : > { %584 = vst [vmem:[%s4882_s23 + $0x328] sm:$0xf] %v583_v10 }
  0xe6   : > { %586 = vst [vmem:[%s4882_s23 + $0x32c] sm:$0xf] %v585_v11 }
  0xe7   : > { %588 = vst [vmem:[%s4882_s23 + $0x330] sm:$0xf] %v587_v12 }
  0xe8   : > { %590 = vst [vmem:[%s4882_s23 + $0x334] sm:$0xf] %v589_v13 }
  0xe9   : > { %592 = vst [vmem:[%s4882_s23 + $0x338] sm:$0xf] %v591_v14 }
  0xea   : > { %594 = vst [vmem:[%s4882_s23 + $0x33c] sm:$0xf] %v593_v15 }
  0xeb   : > { %596 = vst [vmem:[%s4882_s23 + $0x340] sm:$0xf] %v595_v16 }
  0xec   : > { %598 = vst [vmem:[%s4882_s23 + $0x344] sm:$0xf] %v597_v17 }
  0xed   : > { %600 = vst [vmem:[%s4882_s23 + $0x348] sm:$0xf] %v599_v18 }
  0xee   : > { %602 = vst [vmem:[%s4882_s23 + $0x34c] sm:$0xf] %v601_v19 }
  0xef   : > { %604 = vst [vmem:[%s4882_s23 + $0x350] sm:$0xf] %v603_v20 }
  0xf0   : > { %606 = vst [vmem:[%s4882_s23 + $0x354] sm:$0xf] %v605_v21 }
  0xf1   : > { %608 = vst [vmem:[%s4882_s23 + $0x358] sm:$0xf] %v607_v22 }
  0xf2   : > { %610 = vst [vmem:[%s4882_s23 + $0x35c] sm:$0xf] %v609_v23 }
  0xf3   : > { %612 = vst [vmem:[%s4882_s23 + $0x360] sm:$0xf] %v611_v24 }
  0xf4   : > { %614 = vst [vmem:[%s4882_s23 + $0x364] sm:$0xf] %v613_v25 }
  0xf5   : > { %616 = vst [vmem:[%s4882_s23 + $0x368] sm:$0xf] %v615_v26 }
  0xf6   : > { %618 = vst [vmem:[%s4882_s23 + $0x36c] sm:$0xf] %v617_v27 }
  0xf7   : > { %620 = vst [vmem:[%s4882_s23 + $0x370] sm:$0xf] %v619_v28 }
  0xf8   : > { %622 = vst [vmem:[%s4882_s23 + $0x374] sm:$0xf] %v621_v29 }
  0xf9   : > { %624 = vst [vmem:[%s4882_s23 + $0x378] sm:$0xf] %v623_v30 }
  0xfa   : > { %626 = vst [vmem:[%s4882_s23 + $0x37c] sm:$0xf] %v625_v31 }
  0xfb   : > { %628 = vst [vmem:[%s4882_s23 + $0x380] sm:$0xf] %v627_v32 }
  0xfc   : > { %630 = vst [vmem:[%s4882_s23 + $0x384] sm:$0xf] %v629_v33 }
  0xfd   : > { %632 = vst [vmem:[%s4882_s23 + $0x388] sm:$0xf] %v631_v34 }
  0xfe   : > { %634 = vst [vmem:[%s4882_s23 + $0x38c] sm:$0xf] %v633_v35 }
  0xff   : > { %636 = vst [vmem:[%s4882_s23 + $0x390] sm:$0xf] %v635_v36 }
 0x100   : > { %638 = vst [vmem:[%s4882_s23 + $0x394] sm:$0xf] %v637_v37 }
 0x101   : > { %640 = vst [vmem:[%s4882_s23 + $0x398] sm:$0xf] %v639_v38 }
 0x102   : > { %642 = vst [vmem:[%s4882_s23 + $0x39c] sm:$0xf] %v641_v39 }
 0x103   : > { %644 = vst [vmem:[%s4882_s23 + $0x3a0] sm:$0xf] %v643_v40 }
 0x104   : > { %646 = vst [vmem:[%s4882_s23 + $0x3a4] sm:$0xf] %v645_v41 }
 0x105   : > { %648 = vst [vmem:[%s4882_s23 + $0x3a8] sm:$0xf] %v647_v42 }
 0x106   : > { %650 = vst [vmem:[%s4882_s23 + $0x3ac] sm:$0xf] %v649_v43 }
 0x107   : > { %652 = vst [vmem:[%s4882_s23 + $0x3b0] sm:$0xf] %v651_v44 }
 0x108   : > { %654 = vst [vmem:[%s4882_s23 + $0x3b4] sm:$0xf] %v653_v45 }
 0x109   : > { %656 = vst [vmem:[%s4882_s23 + $0x3b8] sm:$0xf] %v655_v46 }
 0x10a   : > { %658 = vst [vmem:[%s4882_s23 + $0x3bc] sm:$0xf] %v657_v47 }
 0x10b   : > { %660 = vst [vmem:[%s4882_s23 + $0x3c0] sm:$0xf] %v659_v48 }
 0x10c   : > { %662 = vst [vmem:[%s4882_s23 + $0x3c4] sm:$0xf] %v661_v49 }
 0x10d   : > { %664 = vst [vmem:[%s4882_s23 + $0x3c8] sm:$0xf] %v663_v50 }
 0x10e   : > { %666 = vst [vmem:[%s4882_s23 + $0x3cc] sm:$0xf] %v665_v51 }
 0x10f   : > { %668 = vst [vmem:[%s4882_s23 + $0x3d0] sm:$0xf] %v667_v52 }
 0x110   : > { %670 = vst [vmem:[%s4882_s23 + $0x3d4] sm:$0xf] %v669_v53 }
 0x111   : > { %672 = vst [vmem:[%s4882_s23 + $0x3d8] sm:$0xf] %v671_v54 }
 0x112   : > { %674 = vst [vmem:[%s4882_s23 + $0x3dc] sm:$0xf] %v673_v55 }
 0x113   : > { %676 = vst [vmem:[%s4882_s23 + $0x3e0] sm:$0xf] %v675_v56 }
 0x114   : > { %678 = vst [vmem:[%s4882_s23 + $0x3e4] sm:$0xf] %v677_v57 }
 0x115   : > { %680 = vst [vmem:[%s4882_s23 + $0x3e8] sm:$0xf] %v679_v58 }
 0x116   : > { %682 = vst [vmem:[%s4882_s23 + $0x3ec] sm:$0xf] %v681_v59 }
 0x117   : > { %684 = vst [vmem:[%s4882_s23 + $0x3f0] sm:$0xf] %v683_v60 }
 0x118   : > { %686 = vst [vmem:[%s4882_s23 + $0x3f4] sm:$0xf] %v685_v61 }
 0x119   : > { %688 = vst [vmem:[%s4882_s23 + $0x3f8] sm:$0xf] %v687_v62 }
 0x11a   : > { %690 = vst [vmem:[%s4882_s23 + $0x3fc] sm:$0xf] %v689_v63 }
 0x11b PF: > { %p3885_p11 = scmp.ge.s32.totalorder %s4769_s20, 1  ;;  %p2281_p12 = scmp.lt.s32.totalorder %s4769_s20, 5 }
 0x11d   : > { %p2282_p13 = pnand %p3885_p11, %p2281_p12 }
 0x11e   : > { %s2288_s24 = sand.u32 (!%p2282_p13), 1, %s4745_s14   ;;  %p2318_p0 = scmp.lt.s32.totalorder (!%p2282_p13), %s4753_s16, 1 }
 0x11f   : > { %2285 = sbr.rel (%p2282_p13) target bundleno = 639 (0x27f), region = 80  ;;  %s3886_s25 = sshll.u32 (!%p2282_p13), %s2288_s24, 10 }
 0x120   : > { %s5397_s26 = scalar_lea.vmem (!%p2282_p13), [#allocation2], %s3886_s25  ;;  %p2323_p1 = scmp.lt.s32.totalorder (!%p2282_p13), %s4757_s17, 1 }
 0x121   : > { %s2315_s24 = sand.u32 (!%p2282_p13), 1, %s4737_s12  }
 0x122   : > { %s3887_s25 = sshll.u32 (!%p2282_p13), %s2315_s24, 3 }
 0x124   : > { %v4495_v0 = vld [vmem:[%s5397_s26 + $0x38] sm:$0xff]  ;;  %v4494_v4 = vld [vmem:[%s5397_s26 + $0x30] sm:$0xff]  ;;  %v4493_v8 = vld [vmem:[%s5397_s26 + $0x28] sm:$0xff]  ;;  %s2319_s14 = scalar_select %p2318_p0, %s4753_s16, 1 }
 0x125   : > { %v4503_v1 = vld [vmem:[%s5397_s26 + $0x78] sm:$0xff]  ;;  %3450 = vmatpush.bf16.msra.mxu0 %v4495_v0  ;;  %v4502_v5 = vld [vmem:[%s5397_s26 + $0x70] sm:$0xff]  ;;  %v4501_v9 = vld [vmem:[%s5397_s26 + $0x68] sm:$0xff]  ;;  %s5423_s27 = scalar_select %p2323_p1, %s4757_s17, 1 }
 0x126   : > { %v4511_v2 = vld [vmem:[%s5397_s26 + $0xb8] sm:$0xff]  ;;  %3464 = vmatpush.bf16.msra.mxu1 %v4503_v1  ;;  %v4510_v6 = vld [vmem:[%s5397_s26 + $0xb0] sm:$0xff]  ;;  %v4509_v10 = vld [vmem:[%s5397_s26 + $0xa8] sm:$0xff]  ;;  %s4471_s28 = sshll.u32 %s2319_s14, 7  ;;  %s4467_s12 = sshll.u32 (%p4860_p9), %s4753_s16, 2 }
 0x127   : > { %v4519_v3 = vld [vmem:[%s5397_s26 + $0xf8] sm:$0xff]  ;;  %3478 = vmatpush.bf16.msra.mxu2 %v4511_v2  ;;  %v4518_v7 = vld [vmem:[%s5397_s26 + $0xf0] sm:$0xff]  ;;  %v4517_v11 = vld [vmem:[%s5397_s26 + $0xe8] sm:$0xff]  ;;  %s2325_s7 = scalar_lea.vmem %s5616_s2, %s5423_s27  ;;  %s5440_s10 = scalar_lea.vmem %s5614_s0, %s4471_s28 }
 0x128   : > { %3492 = vmatpush.bf16.msra.mxu3 %v4519_v3  ;;  %v4492_v12 = vld [vmem:[%s5397_s26 + $0x20] sm:$0xff]  ;;  %v4491_v16 = vld [vmem:[%s5397_s26 + $0x18] sm:$0xff]  ;;  %v4490_v20 = vld [vmem:[%s5397_s26 + $0x10] sm:$0xff]  ;;  %s3732_s14 = sadd.s32 (%p4860_p9), %s4757_s17, %s4467_s12 }
 0x129   : > { %3451 = vmatpush.bf16.msra.mxu0 %v4494_v4  ;;  %v4500_v13 = vld [vmem:[%s5397_s26 + $0x60] sm:$0xff]  ;;  %v4499_v17 = vld [vmem:[%s5397_s26 + $0x58] sm:$0xff]  ;;  %v4498_v21 = vld [vmem:[%s5397_s26 + $0x50] sm:$0xff]  ;;  %s4468_s27 = sshll.u32 (%p4860_p9), %s3732_s14, 2 }
 0x12a   : > { %3465 = vmatpush.bf16.msra.mxu1 %v4502_v5  ;;  %v4508_v14 = vld [vmem:[%s5397_s26 + $0xa0] sm:$0xff]  ;;  %v4507_v18 = vld [vmem:[%s5397_s26 + $0x98] sm:$0xff]  ;;  %v4506_v22 = vld [vmem:[%s5397_s26 + $0x90] sm:$0xff]  ;;  %s3734_s6 = scalar_lea.vmem (%p4860_p9), %s5617_s3, %s4468_s27 }
 0x12b   : > { %3479 = vmatpush.bf16.msra.mxu2 %v4510_v6  ;;  %v4516_v15 = vld [vmem:[%s5397_s26 + $0xe0] sm:$0xff]  ;;  %v4515_v19 = vld [vmem:[%s5397_s26 + $0xd8] sm:$0xff]  ;;  %v4514_v23 = vld [vmem:[%s5397_s26 + $0xd0] sm:$0xff] }
 0x12c   : > { %3493 = vmatpush.bf16.msra.mxu3 %v4518_v7  ;;  %v4489_v24 = vld [vmem:[%s5397_s26 + $0x8] sm:$0xff]  ;;  %v4488_v28 = vld [vmem:[%s5397_s26] sm:$0xff]  ;;  %v4527_v32 = vld [vmem:[%s5397_s26 + $0x138] sm:$0xff] }
 0x12d   : > { %3452 = vmatpush.bf16.msra.mxu0 %v4493_v8  ;;  %v4497_v25 = vld [vmem:[%s5397_s26 + $0x48] sm:$0xff]  ;;  %v4496_v29 = vld [vmem:[%s5397_s26 + $0x40] sm:$0xff]  ;;  %v4535_v33 = vld [vmem:[%s5397_s26 + $0x178] sm:$0xff] }
 0x12e   : > { %3466 = vmatpush.bf16.msra.mxu1 %v4501_v9  ;;  %v4505_v26 = vld [vmem:[%s5397_s26 + $0x88] sm:$0xff]  ;;  %v4504_v30 = vld [vmem:[%s5397_s26 + $0x80] sm:$0xff]  ;;  %v4543_v42 = vld [vmem:[%s5397_s26 + $0x1b8] sm:$0xff] }
 0x12f   : > { %3480 = vmatpush.bf16.msra.mxu2 %v4509_v10  ;;  %v4513_v27 = vld [vmem:[%s5397_s26 + $0xc8] sm:$0xff]  ;;  %v4512_v31 = vld [vmem:[%s5397_s26 + $0xc0] sm:$0xff]  ;;  %v4551_v43 = vld [vmem:[%s5397_s26 + $0x1f8] sm:$0xff] }
 0x130   : > { %3494 = vmatpush.bf16.msra.mxu3 %v4517_v11  ;;  %v3892_v34 = vld [vmem:[%s5440_s10] sm:$0xf]  ;;  %v3900_v36 = vld [vmem:[%s5440_s10 + $0x8] sm:$0xf]  ;;  %v4472_v38 = vld [vmem:[%s5440_s10 + $0x4] sm:$0xf] }
 0x131   : > { %3453 = vmatpush.bf16.msra.mxu0 %v4492_v12  ;;  %v4480_v35 = vld [vmem:[%s5440_s10 + $0x3c] sm:$0xf0]  ;;  %v4481_v37 = vld [vmem:[%s5440_s10 + $0x44] sm:$0xf0]  ;;  %v3894_v39 = vld [vmem:[%s5440_s10 + $0x40] sm:$0xf0] }
 0x132   : > { %3467 = vmatpush.bf16.msra.mxu1 %v4500_v13  ;;  %v4473_v40 = vld [vmem:[%s5440_s10 + $0xc] sm:$0xf]  ;;  %v3893_v44 = vor.u32 %v4480_v35, %v3892_v34  ;;  %v3901_v45 = vor.u32 %v4481_v37, %v3900_v36  ;;  %v3897_v46 = vor.u32 %v4472_v38, %v3894_v39  ;;  %v4526_v48 = vld [vmem:[%s5397_s26 + $0x130] sm:$0xff]  ;;  %v4524_v56 = vld [vmem:[%s5397_s26 + $0x120] sm:$0xff] }
 0x133   : > { %3481 = vmatpush.bf16.msra.mxu2 %v4508_v14  ;;  %v3902_v41 = vld [vmem:[%s5440_s10 + $0x48] sm:$0xf0]  ;;  %v4534_v49 = vld [vmem:[%s5397_s26 + $0x170] sm:$0xff]  ;;  %v4532_v57 = vld [vmem:[%s5397_s26 + $0x160] sm:$0xff] }
 0x134   : > { %3495 = vmatpush.bf16.msra.mxu3 %v4516_v15  ;;  %v3905_v47 = vor.u32 %v4473_v40, %v3902_v41  ;;  %v4542_v50 = vld [vmem:[%s5397_s26 + $0x1b0] sm:$0xff]  ;;  %v4525_v52 = vld [vmem:[%s5397_s26 + $0x128] sm:$0xff]  ;;  %v4540_v58 = vld [vmem:[%s5397_s26 + $0x1a0] sm:$0xff] }
 0x135   : > { %3454 = vmatpush.bf16.msra.mxu0 %v4491_v16  ;;  %v4550_v51 = vld [vmem:[%s5397_s26 + $0x1f0] sm:$0xff]  ;;  %v4533_v53 = vld [vmem:[%s5397_s26 + $0x168] sm:$0xff]  ;;  %v4548_v59 = vld [vmem:[%s5397_s26 + $0x1e0] sm:$0xff] }
 0x136   : > { %3468 = vmatpush.bf16.msra.mxu1 %v4499_v17  ;;  %v4541_v54 = vld [vmem:[%s5397_s26 + $0x1a8] sm:$0xff]  ;;  %v4523_v60 = vld [vmem:[%s5397_s26 + $0x118] sm:$0xff]  ;;  %v4522_v0 = vld [vmem:[%s5397_s26 + $0x110] sm:$0xff] }
 0x137   : > { %3482 = vmatpush.bf16.msra.mxu2 %v4507_v18  ;;  %v4549_v55 = vld [vmem:[%s5397_s26 + $0x1e8] sm:$0xff]  ;;  %v4531_v61 = vld [vmem:[%s5397_s26 + $0x158] sm:$0xff]  ;;  %v4530_v1 = vld [vmem:[%s5397_s26 + $0x150] sm:$0xff] }
 0x138   : > { %3496 = vmatpush.bf16.msra.mxu3 %v4515_v19  ;;  %v4539_v62 = vld [vmem:[%s5397_s26 + $0x198] sm:$0xff]  ;;  %v4538_v2 = vld [vmem:[%s5397_s26 + $0x190] sm:$0xff]  ;;  %v4521_v4 = vld [vmem:[%s5397_s26 + $0x108] sm:$0xff] }
 0x139   : > { %3455 = vmatpush.bf16.msra.mxu0 %v4490_v20  ;;  %v4547_v63 = vld [vmem:[%s5397_s26 + $0x1d8] sm:$0xff]  ;;  %v4546_v3 = vld [vmem:[%s5397_s26 + $0x1d0] sm:$0xff]  ;;  %v4529_v5 = vld [vmem:[%s5397_s26 + $0x148] sm:$0xff] }
 0x13a   : > { %3469 = vmatpush.bf16.msra.mxu1 %v4498_v21  ;;  %v4537_v6 = vld [vmem:[%s5397_s26 + $0x188] sm:$0xff]  ;;  %v4520_v8 = vld [vmem:[%s5397_s26 + $0x100] sm:$0xff]  ;;  %v4559_v12 = vld [vmem:[%s5397_s26 + $0x238] sm:$0xff] }
 0x13b   : > { %3483 = vmatpush.bf16.msra.mxu2 %v4506_v22  ;;  %v4545_v7 = vld [vmem:[%s5397_s26 + $0x1c8] sm:$0xff]  ;;  %v4528_v9 = vld [vmem:[%s5397_s26 + $0x140] sm:$0xff]  ;;  %v4567_v13 = vld [vmem:[%s5397_s26 + $0x278] sm:$0xff] }
 0x13c   : > { %3497 = vmatpush.bf16.msra.mxu3 %v4514_v23  ;;  %v4536_v10 = vld [vmem:[%s5397_s26 + $0x180] sm:$0xff]  ;;  %v3908_v14 = vld [vmem:[%s5440_s10 + $0x10] sm:$0xf]  ;;  %v3916_v16 = vld [vmem:[%s5440_s10 + $0x18] sm:$0xf] }
 0x13d   : > { %3456 = vmatpush.bf16.msra.mxu0 %v4489_v24  ;;  %v4544_v11 = vld [vmem:[%s5397_s26 + $0x1c0] sm:$0xff]  ;;  %v4482_v15 = vld [vmem:[%s5440_s10 + $0x4c] sm:$0xf0]  ;;  %v4483_v17 = vld [vmem:[%s5440_s10 + $0x54] sm:$0xf0] }
 0x13e   : > { %3470 = vmatpush.bf16.msra.mxu1 %v4497_v25  ;;  %v4474_v18 = vld [vmem:[%s5440_s10 + $0x14] sm:$0xf]  ;;  %v4475_v20 = vld [vmem:[%s5440_s10 + $0x1c] sm:$0xf]  ;;  %v3909_v24 = vor.u32 %v4482_v15, %v3908_v14  ;;  %v3917_v25 = vor.u32 %v4483_v17, %v3916_v16  ;;  %v4573_v34 = vld [vmem:[%s5397_s26 + $0x2a8] sm:$0xff] }
 0x13f   : > { %3484 = vmatpush.bf16.msra.mxu2 %v4505_v26  ;;  %v3910_v19 = vld [vmem:[%s5440_s10 + $0x50] sm:$0xf0]  ;;  %v3918_v21 = vld [vmem:[%s5440_s10 + $0x58] sm:$0xf0]  ;;  %v4581_v35 = vld [vmem:[%s5397_s26 + $0x2e8] sm:$0xff] }
 0x140   : > { %3498 = vmatpush.bf16.msra.mxu3 %v4513_v27  ;;  %v4575_v22 = vld [vmem:[%s5397_s26 + $0x2b8] sm:$0xff]  ;;  %v3913_v26 = vor.u32 %v4474_v18, %v3910_v19  ;;  %v3921_v27 = vor.u32 %v4475_v20, %v3918_v21  ;;  %v4556_v36 = vld [vmem:[%s5397_s26 + $0x220] sm:$0xff]  ;;  %v4605_v14 = vld [vmem:[%s5397_s26 + $0x3a8] sm:$0xff] }
 0x141   : > { %3457 = vmatpush.bf16.msra.mxu0 %v4488_v28  ;;  %v4583_v23 = vld [vmem:[%s5397_s26 + $0x2f8] sm:$0xff]  ;;  %v4558_v28 = vld [vmem:[%s5397_s26 + $0x230] sm:$0xff]  ;;  %v4564_v37 = vld [vmem:[%s5397_s26 + $0x260] sm:$0xff] }
 0x142   : > { %3471 = vmatpush.bf16.msra.mxu1 %v4496_v29  ;;  %v4566_v29 = vld [vmem:[%s5397_s26 + $0x270] sm:$0xff]  ;;  %v4572_v38 = vld [vmem:[%s5397_s26 + $0x2a0] sm:$0xff]  ;;  %v4555_v40 = vld [vmem:[%s5397_s26 + $0x218] sm:$0xff] }
 0x143   : > { %3485 = vmatpush.bf16.msra.mxu2 %v4504_v30  ;;  %v4574_v30 = vld [vmem:[%s5397_s26 + $0x2b0] sm:$0xff]  ;;  %v4580_v39 = vld [vmem:[%s5397_s26 + $0x2e0] sm:$0xff]  ;;  %v4563_v41 = vld [vmem:[%s5397_s26 + $0x258] sm:$0xff] }
 0x144   : > { %3499 = vmatpush.bf16.msra.mxu3 %v4512_v31  ;;  %3458 = vmatmul.bf16.vlgmr.msra.gmra.mxu0 %v3893_v44  ;;  %v4582_v31 = vld [vmem:[%s5397_s26 + $0x2f0] sm:$0xff]  ;;  %v4613_v15 = vld [vmem:[%s5397_s26 + $0x3e8] sm:$0xff]  ;;  %v4588_v16 = vld [vmem:[%s5397_s26 + $0x320] sm:$0xff] }
 0x145   : > { %3506 = vmatpush.bf16.msrb.mxu0 %v4527_v32  ;;  %3472 = vmatmul.bf16.vlgmr.msra.gmra.mxu1 %v3897_v46  ;;  %v4557_v32 = vld [vmem:[%s5397_s26 + $0x228] sm:$0xff]  ;;  %v4554_v44 = vld [vmem:[%s5397_s26 + $0x210] sm:$0xff]  ;;  %v4596_v17 = vld [vmem:[%s5397_s26 + $0x360] sm:$0xff] }
 0x146   : > { %3520 = vmatpush.bf16.msrb.mxu1 %v4535_v33  ;;  %3486 = vmatmul.bf16.vlgmr.msra.gmra.mxu2 %v3901_v45  ;;  %v4565_v33 = vld [vmem:[%s5397_s26 + $0x268] sm:$0xff]  ;;  %v4562_v45 = vld [vmem:[%s5397_s26 + $0x250] sm:$0xff]  ;;  %v4604_v18 = vld [vmem:[%s5397_s26 + $0x3a0] sm:$0xff] }
 0x147   : > { %3534 = vmatpush.bf16.msrb.mxu2 %v4543_v42  ;;  %3500 = vmatmul.bf16.vlgmr.msra.gmra.mxu3 %v3905_v47  ;;  %v4571_v42 = vld [vmem:[%s5397_s26 + $0x298] sm:$0xff]  ;;  %v4570_v46 = vld [vmem:[%s5397_s26 + $0x290] sm:$0xff]  ;;  %v4612_v19 = vld [vmem:[%s5397_s26 + $0x3e0] sm:$0xff] }
 0x148   : > { %3548 = vmatpush.bf16.msrb.mxu3 %v4551_v43  ;;  %v4579_v43 = vld [vmem:[%s5397_s26 + $0x2d8] sm:$0xff]  ;;  %v4578_v47 = vld [vmem:[%s5397_s26 + $0x2d0] sm:$0xff] }
 0x149   : > { %3507 = vmatpush.bf16.msrb.mxu0 %v4526_v48  ;;  %v4553_v48 = vld [vmem:[%s5397_s26 + $0x208] sm:$0xff]  ;;  %v4587_v20 = vld [vmem:[%s5397_s26 + $0x318] sm:$0xff] }
 0x14a   : > { %3521 = vmatpush.bf16.msrb.mxu1 %v4534_v49  ;;  %v4561_v49 = vld [vmem:[%s5397_s26 + $0x248] sm:$0xff]  ;;  %v4595_v21 = vld [vmem:[%s5397_s26 + $0x358] sm:$0xff] }
 0x14b   : > { %3535 = vmatpush.bf16.msrb.mxu2 %v4542_v50  ;;  %v4569_v50 = vld [vmem:[%s5397_s26 + $0x288] sm:$0xff] }
 0x14c   : > { %3549 = vmatpush.bf16.msrb.mxu3 %v4550_v51  ;;  %v4577_v51 = vld [vmem:[%s5397_s26 + $0x2c8] sm:$0xff] }
 0x14d   : > { %3508 = vmatpush.bf16.msrb.mxu0 %v4525_v52  ;;  %v4552_v52 = vld [vmem:[%s5397_s26 + $0x200] sm:$0xff] }
 0x14e   : > { %3522 = vmatpush.bf16.msrb.mxu1 %v4533_v53  ;;  %v4560_v53 = vld [vmem:[%s5397_s26 + $0x240] sm:$0xff] }
 0x14f   : > { %3536 = vmatpush.bf16.msrb.mxu2 %v4541_v54  ;;  %v4568_v54 = vld [vmem:[%s5397_s26 + $0x280] sm:$0xff] }
 0x150   : > { %3550 = vmatpush.bf16.msrb.mxu3 %v4549_v55  ;;  %v4576_v55 = vld [vmem:[%s5397_s26 + $0x2c0] sm:$0xff] }
 0x151   : > { %3509 = vmatpush.bf16.msrb.mxu0 %v4524_v56  ;;  %v4591_v56 = vld [vmem:[%s5397_s26 + $0x338] sm:$0xff] }
 0x152   : > { %3523 = vmatpush.bf16.msrb.mxu1 %v4532_v57  ;;  %v4599_v57 = vld [vmem:[%s5397_s26 + $0x378] sm:$0xff] }
 0x153   : > { %3537 = vmatpush.bf16.msrb.mxu2 %v4540_v58  ;;  %v3924_v58 = vld [vmem:[%s5440_s10 + $0x20] sm:$0xf] }
 0x154   : > { %3551 = vmatpush.bf16.msrb.mxu3 %v4548_v59  ;;  %v4484_v59 = vld [vmem:[%s5440_s10 + $0x5c] sm:$0xf0] }
 0x155   : > { %3510 = vmatpush.bf16.msrb.mxu0 %v4523_v60  ;;  %v3932_v60 = vld [vmem:[%s5440_s10 + $0x28] sm:$0xf] }
 0x156   : > { %3524 = vmatpush.bf16.msrb.mxu1 %v4531_v61  ;;  %v4485_v61 = vld [vmem:[%s5440_s10 + $0x64] sm:$0xf0] }
 0x157   : > { %3538 = vmatpush.bf16.msrb.mxu2 %v4539_v62  ;;  %v4476_v62 = vld [vmem:[%s5440_s10 + $0x24] sm:$0xf] }
 0x158   : > { %3552 = vmatpush.bf16.msrb.mxu3 %v4547_v63  ;;  %v3926_v63 = vld [vmem:[%s5440_s10 + $0x60] sm:$0xf0] }
 0x159   : > { %3511 = vmatpush.bf16.msrb.mxu0 %v4522_v0  ;;  %v4477_v0 = vld [vmem:[%s5440_s10 + $0x2c] sm:$0xf] }
 0x15a   : > { %3525 = vmatpush.bf16.msrb.mxu1 %v4530_v1  ;;  %v3934_v1 = vld [vmem:[%s5440_s10 + $0x68] sm:$0xf0] }
 0x15b   : > { %3539 = vmatpush.bf16.msrb.mxu2 %v4538_v2  ;;  %v4607_v2 = vld [vmem:[%s5397_s26 + $0x3b8] sm:$0xff] }
 0x15c   : > { %3553 = vmatpush.bf16.msrb.mxu3 %v4546_v3  ;;  %v4615_v3 = vld [vmem:[%s5397_s26 + $0x3f8] sm:$0xff] }
 0x15d   : > { %3512 = vmatpush.bf16.msrb.mxu0 %v4521_v4  ;;  %v3925_v4 = vor.u32 %v4484_v59, %v3924_v58 }
 0x15e   : > { %3526 = vmatpush.bf16.msrb.mxu1 %v4529_v5  ;;  %v3933_v5 = vor.u32 %v4485_v61, %v3932_v60 }
 0x15f   : > { %3540 = vmatpush.bf16.msrb.mxu2 %v4537_v6  ;;  %v3929_v6 = vor.u32 %v4476_v62, %v3926_v63 }
 0x160   : > { %3554 = vmatpush.bf16.msrb.mxu3 %v4545_v7  ;;  %v3937_v7 = vor.u32 %v4477_v0, %v3934_v1 }
 0x161   : > { %3513 = vmatpush.bf16.msrb.mxu0 %v4520_v8  ;;  %v4590_v8 = vld [vmem:[%s5397_s26 + $0x330] sm:$0xff] }
 0x162   : > { %3527 = vmatpush.bf16.msrb.mxu1 %v4528_v9  ;;  %v4598_v9 = vld [vmem:[%s5397_s26 + $0x370] sm:$0xff] }
 0x163   : > { %3541 = vmatpush.bf16.msrb.mxu2 %v4536_v10  ;;  %v4606_v10 = vld [vmem:[%s5397_s26 + $0x3b0] sm:$0xff] }
 0x164   : > { %3555 = vmatpush.bf16.msrb.mxu3 %v4544_v11  ;;  %3514 = vmatmul.bf16.vlgmr.msrb.gmra.mxu0 %v3909_v24  ;;  %v4614_v11 = vld [vmem:[%s5397_s26 + $0x3f0] sm:$0xff] }
 0x165   : > { %3562 = vmatpush.bf16.msra.mxu0 %v4559_v12  ;;  %3528 = vmatmul.bf16.vlgmr.msrb.gmra.mxu1 %v3913_v26  ;;  %v4589_v12 = vld [vmem:[%s5397_s26 + $0x328] sm:$0xff]  ;;  %v4586_v24 = vld [vmem:[%s5397_s26 + $0x310] sm:$0xff] }
 0x166   : > { %3576 = vmatpush.bf16.msra.mxu1 %v4567_v13  ;;  %3542 = vmatmul.bf16.vlgmr.msrb.gmra.mxu2 %v3917_v25  ;;  %v4597_v13 = vld [vmem:[%s5397_s26 + $0x368] sm:$0xff]  ;;  %v4594_v25 = vld [vmem:[%s5397_s26 + $0x350] sm:$0xff] }
 0x167   : > { %3590 = vmatpush.bf16.msra.mxu2 %v4575_v22  ;;  %3556 = vmatmul.bf16.vlgmr.msrb.gmra.mxu3 %v3921_v27  ;;  %v4603_v22 = vld [vmem:[%s5397_s26 + $0x398] sm:$0xff]  ;;  %v4602_v26 = vld [vmem:[%s5397_s26 + $0x390] sm:$0xff] }
 0x168   : > { %3604 = vmatpush.bf16.msra.mxu3 %v4583_v23  ;;  %v4611_v23 = vld [vmem:[%s5397_s26 + $0x3d8] sm:$0xff]  ;;  %v4610_v27 = vld [vmem:[%s5397_s26 + $0x3d0] sm:$0xff] }
 0x169   : > { %3563 = vmatpush.bf16.msra.mxu0 %v4558_v28  ;;  %v4585_v28 = vld [vmem:[%s5397_s26 + $0x308] sm:$0xff] }
 0x16a   : > { %3577 = vmatpush.bf16.msra.mxu1 %v4566_v29  ;;  %v4593_v29 = vld [vmem:[%s5397_s26 + $0x348] sm:$0xff] }
 0x16b   : > { %3591 = vmatpush.bf16.msra.mxu2 %v4574_v30  ;;  %v4601_v30 = vld [vmem:[%s5397_s26 + $0x388] sm:$0xff] }
 0x16c   : > { %3605 = vmatpush.bf16.msra.mxu3 %v4582_v31  ;;  %v4609_v31 = vld [vmem:[%s5397_s26 + $0x3c8] sm:$0xff] }
 0x16d   : > { %3564 = vmatpush.bf16.msra.mxu0 %v4557_v32  ;;  %v4584_v32 = vld [vmem:[%s5397_s26 + $0x300] sm:$0xff] }
 0x16e   : > { %3578 = vmatpush.bf16.msra.mxu1 %v4565_v33  ;;  %v4592_v33 = vld [vmem:[%s5397_s26 + $0x340] sm:$0xff] }
 0x16f   : > { %3592 = vmatpush.bf16.msra.mxu2 %v4573_v34  ;;  %v4600_v34 = vld [vmem:[%s5397_s26 + $0x380] sm:$0xff] }
 0x170   : > { %3606 = vmatpush.bf16.msra.mxu3 %v4581_v35  ;;  %v4608_v35 = vld [vmem:[%s5397_s26 + $0x3c0] sm:$0xff]  ;;  %s2317_s26 = scalar_lea.vmem [#allocation3], %s3887_s25 }
 0x171   : > { %3565 = vmatpush.bf16.msra.mxu0 %v4556_v36  ;;  %v3940_v36 = vld [vmem:[%s5440_s10 + $0x30] sm:$0xf] }
 0x172   : > { %3579 = vmatpush.bf16.msra.mxu1 %v4564_v37  ;;  %v4486_v37 = vld [vmem:[%s5440_s10 + $0x6c] sm:$0xf0] }
 0x173   : > { %3593 = vmatpush.bf16.msra.mxu2 %v4572_v38  ;;  %v4478_v38 = vld [vmem:[%s5440_s10 + $0x34] sm:$0xf] }
 0x174   : > { %3607 = vmatpush.bf16.msra.mxu3 %v4580_v39  ;;  %v3942_v39 = vld [vmem:[%s5440_s10 + $0x70] sm:$0xf0] }
 0x175   : > { %3566 = vmatpush.bf16.msra.mxu0 %v4555_v40  ;;  %v3948_v40 = vld [vmem:[%s5440_s10 + $0x38] sm:$0xf] }
 0x176   : > { %3580 = vmatpush.bf16.msra.mxu1 %v4563_v41  ;;  %v4487_v41 = vld [vmem:[%s5440_s10 + $0x74] sm:$0xf0] }
 0x177   : > { %3594 = vmatpush.bf16.msra.mxu2 %v4571_v42  ;;  %v4479_v42 = vld [vmem:[%s5440_s10 + $0x3c] sm:$0xf] }
 0x178   : > { %3608 = vmatpush.bf16.msra.mxu3 %v4579_v43  ;;  %v3950_v43 = vld [vmem:[%s5440_s10 + $0x78] sm:$0xf0] }
 0x179   : > { %3567 = vmatpush.bf16.msra.mxu0 %v4554_v44  ;;  %v3941_v44 = vor.u32 %v4486_v37, %v3940_v36 }
 0x17a   : > { %3581 = vmatpush.bf16.msra.mxu1 %v4562_v45  ;;  %v3945_v45 = vor.u32 %v4478_v38, %v3942_v39 }
 0x17b   : > { %3595 = vmatpush.bf16.msra.mxu2 %v4570_v46  ;;  %v3949_v46 = vor.u32 %v4487_v41, %v3948_v40 }
 0x17c   : > { %3609 = vmatpush.bf16.msra.mxu3 %v4578_v47  ;;  %v3953_v47 = vor.u32 %v4479_v42, %v3950_v43 }
 0x17d   : > { %3568 = vmatpush.bf16.msra.mxu0 %v4553_v48 }
 0x17e   : > { %3582 = vmatpush.bf16.msra.mxu1 %v4561_v49 }
 0x17f   : > { %3596 = vmatpush.bf16.msra.mxu2 %v4569_v50 }
 0x180   : > { %3610 = vmatpush.bf16.msra.mxu3 %v4577_v51 }
 0x181   : > { %3569 = vmatpush.bf16.msra.mxu0 %v4552_v52 }
 0x182   : > { %3583 = vmatpush.bf16.msra.mxu1 %v4560_v53 }
 0x183   : > { %3597 = vmatpush.bf16.msra.mxu2 %v4568_v54 }
 0x184   : > { %3611 = vmatpush.bf16.msra.mxu3 %v4576_v55  ;;  %3570 = vmatmul.bf16.vlgmr.msra.gmra.mxu0 %v3925_v4 }
 0x185   : > { %3618 = vmatpush.bf16.msrb.mxu0 %v4591_v56  ;;  %3584 = vmatmul.bf16.vlgmr.msra.gmra.mxu1 %v3929_v6  ;;  %v4694_v56 = vld [vmem:[%s2325_s7] ss:$0 sm:$0xff] }
 0x186   : > { %3632 = vmatpush.bf16.msrb.mxu1 %v4599_v57  ;;  %3598 = vmatmul.bf16.vlgmr.msra.gmra.mxu2 %v3933_v5 }
 0x187   : > { %3646 = vmatpush.bf16.msrb.mxu2 %v4607_v2  ;;  %3612 = vmatmul.bf16.vlgmr.msra.gmra.mxu3 %v3937_v7 }
 0x188   : > { %3660 = vmatpush.bf16.msrb.mxu3 %v4615_v3 }
 0x189   : > { %3619 = vmatpush.bf16.msrb.mxu0 %v4590_v8 }
 0x18a   : > { %3633 = vmatpush.bf16.msrb.mxu1 %v4598_v9 }
 0x18b   : > { %3647 = vmatpush.bf16.msrb.mxu2 %v4606_v10 }
 0x18c   : > { %3661 = vmatpush.bf16.msrb.mxu3 %v4614_v11 }
 0x18d   : > { %3620 = vmatpush.bf16.msrb.mxu0 %v4589_v12 }
 0x18e   : > { %3634 = vmatpush.bf16.msrb.mxu1 %v4597_v13 }
 0x18f   : > { %3648 = vmatpush.bf16.msrb.mxu2 %v4605_v14 }
 0x190   : > { %3662 = vmatpush.bf16.msrb.mxu3 %v4613_v15 }
 0x191   : > { %3621 = vmatpush.bf16.msrb.mxu0 %v4588_v16 }
 0x192   : > { %3635 = vmatpush.bf16.msrb.mxu1 %v4596_v17 }
 0x193   : > { %3649 = vmatpush.bf16.msrb.mxu2 %v4604_v18 }
 0x194   : > { %3663 = vmatpush.bf16.msrb.mxu3 %v4612_v19 }
 0x195   : > { %3622 = vmatpush.bf16.msrb.mxu0 %v4587_v20 }
 0x196   : > { %3636 = vmatpush.bf16.msrb.mxu1 %v4595_v21 }
 0x197   : > { %3650 = vmatpush.bf16.msrb.mxu2 %v4603_v22 }
 0x198   : > { %3664 = vmatpush.bf16.msrb.mxu3 %v4611_v23 }
 0x199   : > { %3623 = vmatpush.bf16.msrb.mxu0 %v4586_v24 }
 0x19a   : > { %3637 = vmatpush.bf16.msrb.mxu1 %v4594_v25 }
 0x19b   : > { %3651 = vmatpush.bf16.msrb.mxu2 %v4602_v26 }
 0x19c   : > { %3665 = vmatpush.bf16.msrb.mxu3 %v4610_v27 }
 0x19d   : > { %3624 = vmatpush.bf16.msrb.mxu0 %v4585_v28 }
 0x19e   : > { %3638 = vmatpush.bf16.msrb.mxu1 %v4593_v29 }
 0x19f   : > { %3652 = vmatpush.bf16.msrb.mxu2 %v4601_v30 }
 0x1a0   : > { %3666 = vmatpush.bf16.msrb.mxu3 %v4609_v31 }
 0x1a1   : > { %3625 = vmatpush.bf16.msrb.mxu0 %v4584_v32 }
 0x1a2   : > { %3639 = vmatpush.bf16.msrb.mxu1 %v4592_v33 }
 0x1a3   : > { %3653 = vmatpush.bf16.msrb.mxu2 %v4600_v34  ;;  %v4771_v34 = vmov 16.0  }
 0x1a4   : > { %3667 = vmatpush.bf16.msrb.mxu3 %v4608_v35  ;;  %3626 = vmatmul.bf16.vlgmr.msrb.gmra.mxu0 %v3941_v44  ;;  %4695 = vrcp.f32 %v4771_v34 }
 0x1a5   : > { %3640 = vmatmul.bf16.vlgmr.msrb.gmra.mxu1 %v3945_v45 }
 0x1a6   : > { %3654 = vmatmul.bf16.vlgmr.msrb.gmra.mxu2 %v3949_v46 }
 0x1a7   : > { %3668 = vmatmul.bf16.vlgmr.msrb.gmra.mxu3 %v3953_v47 }
 0x1aa   : > { %v4696_v41 = vpop.eup %4695 }
 0x1ab   : > { %v3682_v47 = vmul.f32 16.0, %v4696_v41  ;;  %vm3686_vm0 = vweird.f32 %v4696_v41 }
 0x1c1   : > { %v3459_v48 = vpop.f32.mrf.mxu0 }
 0x1c2   : > { %v3473_v49 = vpop.f32.mrf.mxu1  ;;  %v3460_v58 = vadd.f32 %v4694_v56, %v3459_v48 }
 0x1c4   : > { %v3474_v60 = vadd.f32 %v3473_v49, %v3460_v58 }
 0x1c9   : > { %v3487_v50 = vpop.f32.mrf.mxu2  ;;  %v3461_v52 = vpop.f32.mrf.mxu0 }
 0x1ca   : > { %v3501_v51 = vpop.f32.mrf.mxu3  ;;  %v3475_v53 = vpop.f32.mrf.mxu1  ;;  %v3462_v61 = vadd.f32 %v4694_v56, %v3461_v52  ;;  %v3488_v0 = vadd.f32 %v3487_v50, %v3474_v60  ;;  %v3683_v52 = vsub.f32 1.0, %v3682_v47 }
 0x1cc   : > { %v3476_v1 = vadd.f32 %v3475_v53, %v3462_v61  ;;  %v3502_v4 = vadd.f32 %v3501_v51, %v3488_v0 }
 0x1d1   : > { %v3489_v54 = vpop.f32.mrf.mxu2 }
 0x1d2   : > { %v3503_v55 = vpop.f32.mrf.mxu3  ;;  %v3490_v5 = vadd.f32 %v3489_v54, %v3476_v1 }
 0x1d4   : > { %v3504_v8 = vadd.f32 %v3503_v55, %v3490_v5  ;;  %v3684_v55 = vmul.f32 %v4696_v41, %v3683_v52 }
 0x1d6   : > { %v3685_v58 = vadd.f32 %v4696_v41, %v3684_v55 }
 0x1d8   : > { %v3687_v61 = vsel %vm3686_vm0, %v4696_v41, %v3685_v58 }
 0x1e1   : > { %v3515_v57 = vpop.f32.mrf.mxu0 }
 0x1e2   : > { %v3529_v59 = vpop.f32.mrf.mxu1  ;;  %v3516_v9 = vadd.f32 %v3515_v57, %v3502_v4 }
 0x1e4   : > { %v3530_v12 = vadd.f32 %v3529_v59, %v3516_v9 }
 0x1e9   : > { %v3543_v62 = vpop.f32.mrf.mxu2  ;;  %v3517_v2 = vpop.f32.mrf.mxu0 }
 0x1ea   : > { %v3557_v63 = vpop.f32.mrf.mxu3  ;;  %v3531_v3 = vpop.f32.mrf.mxu1  ;;  %v3518_v13 = vadd.f32 %v3517_v2, %v3504_v8  ;;  %v3544_v16 = vadd.f32 %v3543_v62, %v3530_v12 }
 0x1ec   : > { %v3532_v17 = vadd.f32 %v3531_v3, %v3518_v13  ;;  %v3558_v20 = vadd.f32 %v3557_v63, %v3544_v16 }
 0x1f1   : > { %v3545_v6 = vpop.f32.mrf.mxu2 }
 0x1f2   : > { %v3559_v7 = vpop.f32.mrf.mxu3  ;;  %v3546_v18 = vadd.f32 %v3545_v6, %v3532_v17 }
 0x1f4   : > { %v3560_v22 = vadd.f32 %v3559_v7, %v3546_v18 }
 0x201   : > { %v3571_v10 = vpop.f32.mrf.mxu0 }
 0x202   : > { %v3585_v11 = vpop.f32.mrf.mxu1  ;;  %v3572_v23 = vadd.f32 %v3571_v10, %v3558_v20 }
 0x204   : > { %v3586_v27 = vadd.f32 %v3585_v11, %v3572_v23 }
 0x209   : > { %v3599_v14 = vpop.f32.mrf.mxu2  ;;  %v3573_v19 = vpop.f32.mrf.mxu0 }
 0x20a   : > { %v3613_v15 = vpop.f32.mrf.mxu3  ;;  %v3587_v21 = vpop.f32.mrf.mxu1  ;;  %v3574_v24 = vadd.f32 %v3573_v19, %v3560_v22  ;;  %v3600_v29 = vadd.f32 %v3599_v14, %v3586_v27 }
 0x20c   : > { %v3588_v30 = vadd.f32 %v3587_v21, %v3574_v24  ;;  %v3614_v33 = vadd.f32 %v3613_v15, %v3600_v29 }
 0x211   : > { %v3601_v25 = vpop.f32.mrf.mxu2 }
 0x212   : > { %v3615_v26 = vpop.f32.mrf.mxu3  ;;  %v3602_v32 = vadd.f32 %v3601_v25, %v3588_v30 }
 0x214   : > { %v3616_v37 = vadd.f32 %v3615_v26, %v3602_v32 }
 0x221   : > { %v3627_v28 = vpop.f32.mrf.mxu0 }
 0x222   : > { %v3641_v31 = vpop.f32.mrf.mxu1  ;;  %v3628_v38 = vadd.f32 %v3627_v28, %v3614_v33 }
 0x224   : > { %v3642_v42 = vadd.f32 %v3641_v31, %v3628_v38 }
 0x229   : > { %v3655_v35 = vpop.f32.mrf.mxu2  ;;  %v3629_v39 = vpop.f32.mrf.mxu0 }
 0x22a   : > { %v3669_v36 = vpop.f32.mrf.mxu3  ;;  %v3630_v40 = vadd.f32 %v3629_v39, %v3616_v37  ;;  %v3643_v43 = vpop.f32.mrf.mxu1  ;;  %v3656_v44 = vadd.f32 %v3655_v35, %v3642_v42 }
 0x22c   : > { %v3644_v45 = vadd.f32 %v3643_v43, %v3630_v40  ;;  %v3670_v50 = vadd.f32 %v3669_v36, %v3656_v44 }
 0x231   : > { %v3657_v46 = vpop.f32.mrf.mxu2 }
 0x232   : > { %v3658_v48 = vadd.f32 %v3657_v46, %v3644_v45  ;;  %v3671_v49 = vpop.f32.mrf.mxu3 }
 0x234   : > { %v3672_v51 = vadd.f32 %v3671_v49, %v3658_v48 }
 0x236   : > { %v3674_v53 = vadd.f32 %v3672_v51, %v3670_v50 }
 0x238   : > { %v3675_v54 = vrot.slane %v3674_v53, 4 }
 0x23a   : > { %v3676_v56 = vadd.f32 %v3675_v54, %v3674_v53 }
 0x23c   : > { %v3677_v57 = vrot.slane %v3676_v56, 2 }
 0x23e   : > { %v3678_v59 = vadd.f32 %v3677_v57, %v3676_v56 }
 0x240   : > { %v3679_v60 = vrot.slane %v3678_v59, 1 }
 0x242   : > { %v3680_v62 = vadd.f32 %v3679_v60, %v3678_v59 }
 0x244   : > { %v3688_v63 = vmul.f32 %v3687_v61, %v3680_v62 }
 0x246   : > { %v3689_v0 = vsub.f32 %v3670_v50, %v3688_v63  ;;  %v3690_v1 = vsub.f32 %v3672_v51, %v3688_v63 }
 0x248   : > { %v3691_v2 = vmul.f32 %v3689_v0, %v3689_v0  ;;  %v3692_v3 = vmul.f32 %v3690_v1, %v3690_v1 }
 0x24a   : > { %v3693_v4 = vadd.f32 %v3692_v3, %v3691_v2 }
 0x24c   : > { %v3694_v5 = vrot.slane %v3693_v4, 4 }
 0x24e   : > { %v3695_v6 = vadd.f32 %v3694_v5, %v3693_v4 }
 0x250   : > { %v3696_v7 = vrot.slane %v3695_v6, 2 }
 0x252   : > { %v3697_v8 = vadd.f32 %v3696_v7, %v3695_v6 }
 0x254   : > { %v3698_v9 = vrot.slane %v3697_v8, 1 }
 0x256   : > { %v3699_v10 = vadd.f32 %v3698_v9, %v3697_v8 }
 0x258   : > { %v3700_v11 = vmul.f32 %v3699_v10, %v3687_v61 }
 0x25a   : > { %v3701_v12 = vadd.f32 1e-05, %v3700_v11 }
 0x25c   : > { %4697 = vrsqrt.f32 %v3701_v12  ;;  %vm3708_vm2 = vweird.f32 %v3701_v12 }
 0x262   : > { %v4698_v13 = vpop.eup %4697 }
 0x263   : > { %v3703_v14 = vmul.f32 %v4698_v13, %v3701_v12  ;;  %vm3709_vm1 = vweird.f32 %v4698_v13 }
 0x264   : > { %vm3710_vm3 = vmor %vm3708_vm2, %vm3709_vm1 }
 0x265   : > { %v3704_v15 = vmul.f32 %v4698_v13, %v3703_v14 }
 0x267   : > { %v3705_v16 = vmul.f32 0.5, %v3704_v15 }
 0x269   : > { %v3706_v17 = vsub.f32 1.5, %v3705_v16 }
 0x26b   : > { %v3707_v18 = vmul.f32 %v4698_v13, %v3706_v17 }
 0x26d   : > { %v3711_v19 = vsel %vm3710_vm3, %v4698_v13, %v3707_v18 }
 0x26e   : > { %v3712_v20 = vmul.f32 %v3711_v19, %v3689_v0  ;;  %v3713_v21 = vmul.f32 %v3711_v19, %v3690_v1 }
 0x270   : > { %vm3714_vm4 = vcmp.ge.f32.partialorder %v3712_v20, 0.0  ;;  %vm3715_vm5 = vcmp.ge.f32.partialorder %v3713_v21, 0.0  ;;  %v3716_v22 = vmul.f32 0.2, %v3712_v20  ;;  %v3717_v23 = vmul.f32 0.2, %v3713_v21 }
 0x271   : > { %3730 = sbr.rel (!%p4860_p9) target bundleno = 639 (0x27f), region = 88 }
 0x272   : > { %v3718_v24 = vsel %vm3714_vm4, %v3712_v20, %v3716_v22  ;;  %v3719_v25 = vsel %vm3715_vm5, %v3713_v21, %v3717_v23 }
 0x273   : > { %v4619_v26 = vpack.c.bf16 %v3719_v25, %v3718_v24 }
 0x275   : > { %4620 = vst [vmem:[%s2317_s26] sm:$0xff] %v4619_v26  }
 0x27c   : > { %v3751_v27 = vld [vmem:[%s2317_s26] sm:$0xf]  ;;  %v3753_v28 = vld [vmem:[%s2317_s26 + $0x4] sm:$0xf] }
 0x27d   : > { %3752 = vst [vmem:[%s3734_s6] sm:$0xf] %v3751_v27 }
 0x27e   : > { %3754 = vst [vmem:[%s3734_s6 + $0x8] sm:$0xf] %v3753_v28 }
 0x27f PF: > { %s13_s20 = sadd.s32 1, %s4769_s20   ;;  %s5620_s12 = smov %s4741_s13 }
 0x280   : > { %p10_p2 = scmp.ge.s32.totalorder %s13_s20, 6   ;;  %s5621_s13 = smov %s4868_s5 }
 0x281   : > { %s5622_s14 = smov %s4749_s15  ;;  %s5623_s15 = smov %s4865_s4 }
 0x282   : > { %s5624_s16 = smov %s4761_s18  ;;  %s5625_s17 = smov %s4765_s19 }
 0x283   : > { %s5626_s18 = smov %s5629_s21  ;;  %s5627_s19 = smov %s5633_s22 }
 0x284   :  { %12 = sbr.rel (!%p10_p2) target bundleno = 5 (0x5), region = 170 }

// kernel: discriminator.9
= control target key start
LH: loop header
LB: loop body
LE: loop exit
PB: predicated region body
PF: predicated region fallthrough
CT: control target
= control target key end

     0   :  { %vm487_vm3 = vcmask 7168   ;;  %s847_s0 = inlined_call_operand.vmem [shape: bf16[8,8192], index: 0, kind: input, shape index: {}]   ;;  %s848_s1 = inlined_call_operand.vmem [shape: bf16[1,8192], index: 1, kind: input, shape index: {}]   ;;  %s849_s2 = inlined_call_operand.vmem [shape: f32[8,1], index: 2, kind: output, shape index: {}]  }
   0x1   :  { %v515_v0 = vld [vmem:[%s847_s0] sm:$0xff]  ;;  %v520_v1 = vld [vmem:[%s847_s0 + $0x8] sm:$0xff]  ;;  %v525_v2 = vld [vmem:[%s847_s0 + $0x10] sm:$0xff] }
   0x2   :  { %854 = vst [vmem:[#allocation2_spill] sm:$0xff] %v525_v2  ;;  %v530_v3 = vld [vmem:[%s847_s0 + $0xa0] sm:$0xff]  ;;  %v535_v4 = vld [vmem:[%s847_s0 + $0xa8] sm:$0xff]  ;;  %v540_v5 = vld [vmem:[%s847_s0 + $0xb0] sm:$0xff] }
   0x3   :  { %v545_v6 = vld [vmem:[%s847_s0 + $0xb8] sm:$0xff]  ;;  %v552_v9 = vld [vmem:[%s847_s0 + $0xc0] sm:$0xff]  ;;  %v557_v10 = vld [vmem:[%s847_s0 + $0xc8] sm:$0xff] }
   0x4   :  { %v566_v15 = vld [vmem:[%s847_s0 + $0xd0] sm:$0xff]  ;;  %v571_v16 = vld [vmem:[%s847_s0 + $0xd8] sm:$0xff]  ;;  %v580_v21 = vld [vmem:[%s847_s0 + $0xe0] sm:$0xff] }
   0x5   :  { %v585_v22 = vld [vmem:[%s847_s0 + $0xe8] sm:$0xff]  ;;  %v107_v27 = vld [vmem:[%s848_s1] sm:$0xff]  ;;  %v597_v28 = vld [vmem:[%s847_s0 + $0xf0] sm:$0xff] }
   0x6   :  { %v606_v33 = vld [vmem:[%s847_s0 + $0xf8] sm:$0xff]  ;;  %v615_v38 = vld [vmem:[%s848_s1 + $0x8] sm:$0xff]  ;;  %v113_v43 = vld [vmem:[%s848_s1 + $0x30] sm:$0xff]  ;;  %v115_v45 = vunpack.c.l.bf16 %v107_v27  ;;  %v632_v49 = vunpack.c.h.bf16 %v107_v27 }
   0x7   :  { %855 = vst [vmem:[#allocation3_spill] sm:$0xff] %v615_v38  ;;  %v112_v39 = vld [vmem:[%s848_s1 + $0x28] sm:$0xff]  ;;  %v114_v44 = vld [vmem:[%s848_s1 + $0x38] sm:$0xff]  ;;  %v637_v52 = vunpack.c.l.bf16 %v615_v38  ;;  %v127_v55 = vunpack.c.l.bf16 %v113_v43  ;;  %v128_v56 = vunpack.c.h.bf16 %v113_v43 }
   0x8   :  { %v125_v53 = vunpack.c.l.bf16 %v112_v39  ;;  %v126_v54 = vunpack.c.h.bf16 %v112_v39  ;;  %v129_v57 = vunpack.c.l.bf16 %v114_v44  ;;  %v130_v58 = vunpack.c.h.bf16 %v114_v44 }
   0x9   :  { %856 = vst [vmem:[#allocation4_spill] sm:$0xff] %v637_v52  ;;  %v147_v59 = vperm.slane %v115_v45, 0  ;;  %v148_v60 = vperm.slane %v115_v45, 2  ;;  %v149_v61 = vperm.slane %v115_v45, 4  ;;  %v150_v62 = vperm.slane %v115_v45, 6 }
   0xa   :  { %v151_v63 = vperm.slane %v632_v49, 0  ;;  %v187_v13 = vperm.slane %v125_v53, 0  ;;  %v188_v12 = vperm.slane %v125_v53, 2  ;;  %v189_v51 = vperm.slane %v125_v53, 4 }
   0xb   :  { %v190_v50 = vperm.slane %v125_v53, 6  ;;  %v191_v48 = vperm.slane %v126_v54, 0  ;;  %v192_v39 = vperm.slane %v126_v54, 2  ;;  %v193_v47 = vperm.slane %v126_v54, 4 }
   0xc   :  { %v194_v43 = vperm.slane %v126_v54, 6  ;;  %v195_v46 = vperm.slane %v127_v55, 0  ;;  %v196_v44 = vperm.slane %v127_v55, 2  ;;  %v197_v42 = vperm.slane %v127_v55, 4 }
   0xd   :  { %v198_v41 = vperm.slane %v127_v55, 6  ;;  %v199_v40 = vperm.slane %v128_v56, 0  ;;  %v200_v45 = vperm.slane %v128_v56, 2  ;;  %v201_v37 = vperm.slane %v128_v56, 4 }
   0xe   :  { %v202_v36 = vperm.slane %v128_v56, 6  ;;  %v203_v35 = vperm.slane %v129_v57, 0  ;;  %v204_v27 = vperm.slane %v129_v57, 2  ;;  %v205_v34 = vperm.slane %v129_v57, 4 }
   0xf   :  { %v206_v14 = vperm.slane %v129_v57, 6  ;;  %v207_v32 = vperm.slane %v130_v58, 0  ;;  %v208_v31 = vperm.slane %v130_v58, 2  ;;  %v209_v30 = vperm.slane %v130_v58, 4 }
  0x10   :  { %v210_v53 = vperm.slane %v130_v58, 6  ;;  %v275_v29 = vperm.slane %v147_v59, 0  ;;  %v276_v26 = vperm.slane %v148_v60, 0  ;;  %v277_v25 = vperm.slane %v149_v61, 0 }
  0x11   :  { %v278_v54 = vperm.slane %v150_v62, 0  ;;  %v279_v24 = vperm.slane %v151_v63, 0  ;;  %v315_v23 = vperm.slane %v187_v13, 0  ;;  %v316_v20 = vperm.slane %v188_v12, 0 }
  0x12   :  { %v317_v55 = vperm.slane %v189_v51, 0  ;;  %v318_v19 = vperm.slane %v190_v50, 0  ;;  %v319_v18 = vperm.slane %v191_v48, 0  ;;  %v320_v17 = vperm.slane %v192_v39, 0 }
  0x13   :  { %v321_v56 = vperm.slane %v193_v47, 0  ;;  %v322_v11 = vperm.slane %v194_v43, 0  ;;  %v323_v8 = vperm.slane %v195_v46, 0  ;;  %v324_v7 = vperm.slane %v196_v44, 0 }
  0x14   :  { %v325_v57 = vperm.slane %v197_v42, 0  ;;  %v326_v38 = vperm.slane %v198_v41, 0  ;;  %v327_v2 = vperm.slane %v199_v40, 0  ;;  %v328_v52 = vperm.slane %v200_v45, 0 }
  0x15   :  { %v329_v58 = vperm.slane %v201_v37, 0  ;;  %v330_v59 = vperm.slane %v202_v36, 0  ;;  %v331_v60 = vperm.slane %v203_v35, 0  ;;  %v332_v61 = vperm.slane %v204_v27, 0 }
  0x16   :  { %v333_v62 = vperm.slane %v205_v34, 0  ;;  %v334_v63 = vperm.slane %v206_v14, 0  ;;  %v335_v13 = vperm.slane %v207_v32, 0  ;;  %v336_v12 = vperm.slane %v208_v31, 0 }
  0x17   :  { %v337_v51 = vperm.slane %v209_v30, 0  ;;  %v338_v50 = vperm.slane %v210_v53, 0  ;;  %v857_v48 = vunpack.c.l.bf16 %v515_v0  ;;  %v858_v46 = vunpack.c.h.bf16 %v515_v0 }
  0x18   :  { %v859_v41 = vunpack.c.l.bf16 %v520_v1  ;;  %v860_v37 = vunpack.c.l.bf16 %v530_v3  ;;  %v861_v34 = vunpack.c.h.bf16 %v530_v3  ;;  %v862_v30 = vunpack.c.l.bf16 %v535_v4 }
  0x19   :  { %v339_v47 = vmul.f32 %v275_v29, %v857_v48  ;;  %v340_v39 = vmul.f32 %v276_v26, %v858_v46  ;;  %v863_v29 = vunpack.c.h.bf16 %v535_v4  ;;  %v864_v0 = vunpack.c.l.bf16 %v540_v5 }
  0x1a   :  { %v341_v40 = vmul.f32 %v277_v25, %v859_v41  ;;  %v650_v36 = vmul.f32 %v315_v23, %v860_v37  ;;  %v654_v14 = vmul.f32 %v316_v20, %v861_v34  ;;  %v658_v31 = vmul.f32 %v317_v55, %v862_v30 }
  0x1b   :  { %v662_v32 = vmul.f32 %v318_v19, %v863_v29  ;;  %v666_v26 = vmul.f32 %v319_v18, %v864_v0  ;;  %v865_v25 = vunpack.c.h.bf16 %v540_v5  ;;  %v866_v3 = vunpack.c.l.bf16 %v545_v6  ;;  %v888_v0 = vld [vmem:[#allocation2_spill] sm:$0xff] }
  0x1c   :  { %v867_v35 = vunpack.c.h.bf16 %v545_v6  ;;  %v868_v4 = vunpack.c.l.bf16 %v552_v9  ;;  %v869_v27 = vunpack.c.h.bf16 %v552_v9  ;;  %v870_v5 = vunpack.c.l.bf16 %v557_v10 }
  0x1d   :  { %v670_v23 = vmul.f32 %v320_v17, %v865_v25  ;;  %v674_v20 = vmul.f32 %v321_v56, %v866_v3  ;;  %v871_v43 = vunpack.c.h.bf16 %v557_v10  ;;  %v872_v6 = vunpack.c.l.bf16 %v566_v15  ;;  %v14_v10 = vld [vmem:[%s847_s0 + $0x18] sm:$0xff] }
  0x1e   :  { %v678_v42 = vmul.f32 %v322_v11, %v867_v35  ;;  %v682_v19 = vmul.f32 %v323_v8, %v868_v4  ;;  %v686_v18 = vmul.f32 %v324_v7, %v869_v27  ;;  %v690_v17 = vmul.f32 %v325_v57, %v870_v5 }
  0x1f   :  { %v694_v44 = vmul.f32 %v326_v38, %v871_v43  ;;  %v698_v11 = vmul.f32 %v327_v2, %v872_v6  ;;  %v873_v45 = vunpack.c.h.bf16 %v566_v15  ;;  %v874_v9 = vunpack.c.l.bf16 %v571_v16  ;;  %v891_v43 = vld [vmem:[#allocation3_spill] sm:$0xff] }
  0x20   :  { %v875_v53 = vunpack.c.h.bf16 %v571_v16  ;;  %v876_v38 = vunpack.c.l.bf16 %v580_v21  ;;  %v877_v15 = vunpack.c.h.bf16 %v580_v21  ;;  %v878_v56 = vunpack.c.l.bf16 %v585_v22 }
  0x21   :  { %v702_v8 = vmul.f32 %v328_v52, %v873_v45  ;;  %v706_v7 = vmul.f32 %v329_v58, %v874_v9  ;;  %v879_v16 = vunpack.c.h.bf16 %v585_v22  ;;  %v881_v46 = vunpack.c.h.bf16 %v597_v28 }
  0x22   :  { %v710_v55 = vmul.f32 %v330_v59, %v875_v53  ;;  %v717_v2 = vmul.f32 %v331_v60, %v876_v38  ;;  %v721_v52 = vmul.f32 %v332_v61, %v877_v15  ;;  %v725_v57 = vmul.f32 %v333_v62, %v878_v56 }
  0x23   :  { %v729_v58 = vmul.f32 %v334_v63, %v879_v16  ;;  %v880_v59 = vunpack.c.l.bf16 %v597_v28  ;;  %v737_v60 = vmul.f32 %v336_v12, %v881_v46  ;;  %v882_v21 = vunpack.c.l.bf16 %v606_v33  ;;  %v15_v12 = vld [vmem:[%s847_s0 + $0x20] sm:$0xff]  ;;  %v109_v46 = vld [vmem:[%s848_s1 + $0x10] sm:$0xff] }
  0x24   :  { %v883_v41 = vunpack.c.h.bf16 %v606_v33  ;;  %v154_v22 = vperm.slane %v632_v49, 6  ;;  %v884_v63 = vperm.slane %v632_v49, 2  ;;  %v403_v30 = vadd.f32 %v340_v39, %v339_v47 }
  0x25   :  { %v733_v48 = vmul.f32 %v335_v13, %v880_v59  ;;  %v741_v61 = vmul.f32 %v337_v51, %v882_v21  ;;  %v885_v13 = vunpack.c.h.bf16 %v520_v1  ;;  %v49_v28 = vunpack.c.l.bf16 %v14_v10  ;;  %v886_v51 = vld [vmem:[#allocation4_spill] sm:$0xff] }
  0x26   :  { %v745_v62 = vmul.f32 %v338_v50, %v883_v41  ;;  %v280_v37 = vperm.slane %v884_v63, 0  ;;  %v155_v29 = vperm.slane %v886_v51, 0  ;;  %v887_v33 = vperm.slane %v632_v49, 4  ;;  %v16_v49 = vld [vmem:[%s847_s0 + $0x28] sm:$0xff]  ;;  %v17_v59 = vld [vmem:[%s847_s0 + $0x30] sm:$0xff] }
  0x27   :  { %v342_v34 = vmul.f32 %v278_v54, %v885_v13  ;;  %v889_v25 = vunpack.c.l.bf16 %v888_v0  ;;  %v404_v35 = vadd.f32 %v403_v30, %v341_v40  ;;  %v50_v4 = vunpack.c.h.bf16 %v14_v10 }
  0x28   :  { %v281_v50 = vperm.slane %v887_v33, 0  ;;  %v156_v27 = vperm.slane %v886_v51, 2  ;;  %v282_v1 = vperm.slane %v154_v22, 0  ;;  %v890_v54 = vunpack.c.h.bf16 %v888_v0 }
  0x29   :  { %v343_v3 = vmul.f32 %v279_v24, %v889_v25  ;;  %v405_v39 = vadd.f32 %v404_v35, %v342_v34  ;;  %v51_v5 = vunpack.c.l.bf16 %v15_v12  ;;  %v118_v6 = vunpack.c.h.bf16 %v891_v43 }
  0x2a   :  { %v344_v47 = vmul.f32 %v280_v37, %v890_v54  ;;  %v157_v45 = vperm.slane %v886_v51, 4  ;;  %v283_v9 = vperm.slane %v155_v29, 0  ;;  %v345_v24 = vmul.f32 %v281_v50, %v49_v28  ;;  %v18_v29 = vld [vmem:[%s847_s0 + $0x38] sm:$0xff] }
  0x2b   :  { %v406_v40 = vadd.f32 %v405_v39, %v343_v3  ;;  %v52_v53 = vunpack.c.h.bf16 %v15_v12  ;;  %v158_v10 = vperm.slane %v886_v51, 6  ;;  %v284_v38 = vperm.slane %v156_v27, 0 }
  0x2c   :  { %v346_v15 = vmul.f32 %v282_v1, %v50_v4  ;;  %v53_v16 = vunpack.c.l.bf16 %v16_v49  ;;  %v159_v21 = vperm.slane %v118_v6, 0  ;;  %v285_v41 = vperm.slane %v157_v45, 0 }
  0x2d   :  { %v407_v56 = vadd.f32 %v406_v40, %v344_v47  ;;  %v347_v22 = vmul.f32 %v283_v9, %v51_v5  ;;  %v54_v37 = vunpack.c.h.bf16 %v16_v49  ;;  %v160_v13 = vperm.slane %v118_v6, 2  ;;  %v19_v47 = vld [vmem:[%s847_s0 + $0x40] sm:$0xff] }
  0x2e   :  { %v286_v34 = vperm.slane %v158_v10, 0  ;;  %v348_v30 = vmul.f32 %v284_v38, %v52_v53  ;;  %v55_v12 = vunpack.c.l.bf16 %v17_v59  ;;  %v119_v51 = vunpack.c.l.bf16 %v109_v46 }
  0x2f   :  { %v408_v63 = vadd.f32 %v407_v56, %v345_v24  ;;  %v161_v33 = vperm.slane %v118_v6, 4  ;;  %v287_v50 = vperm.slane %v159_v21, 0  ;;  %v349_v0 = vmul.f32 %v285_v41, %v53_v16 }
  0x30   :  { %v56_v3 = vunpack.c.h.bf16 %v17_v59  ;;  %v162_v35 = vperm.slane %v118_v6, 6  ;;  %v288_v4 = vperm.slane %v160_v13, 0  ;;  %v350_v27 = vmul.f32 %v286_v34, %v54_v37  ;;  %v20_v6 = vld [vmem:[%s847_s0 + $0x48] sm:$0xff]  ;;  %v21_v34 = vld [vmem:[%s847_s0 + $0x50] sm:$0xff] }
  0x31   :  { %v409_v28 = vadd.f32 %v408_v63, %v346_v15  ;;  %v57_v54 = vunpack.c.l.bf16 %v18_v29  ;;  %v163_v39 = vperm.slane %v119_v51, 0  ;;  %v289_v5 = vperm.slane %v161_v33, 0 }
  0x32   :  { %v351_v43 = vmul.f32 %v287_v50, %v55_v12  ;;  %v58_v45 = vunpack.c.h.bf16 %v18_v29  ;;  %v164_v9 = vperm.slane %v119_v51, 2  ;;  %v290_v24 = vperm.slane %v162_v35, 0 }
  0x33   :  { %v410_v25 = vadd.f32 %v409_v28, %v347_v22  ;;  %v352_v40 = vmul.f32 %v288_v4, %v56_v3  ;;  %v59_v10 = vunpack.c.l.bf16 %v19_v47  ;;  %v120_v38 = vunpack.c.h.bf16 %v109_v46  ;;  %v110_v46 = vld [vmem:[%s848_s1 + $0x18] sm:$0xff] }
  0x34   :  { %v165_v15 = vperm.slane %v119_v51, 4  ;;  %v291_v56 = vperm.slane %v163_v39, 0  ;;  %v353_v16 = vmul.f32 %v289_v5, %v57_v54  ;;  %v60_v21 = vunpack.c.h.bf16 %v19_v47  ;;  %v22_v4 = vld [vmem:[%s847_s0 + $0x58] sm:$0xff] }
  0x35   :  { %v411_v1 = vadd.f32 %v410_v25, %v348_v30  ;;  %v166_v41 = vperm.slane %v119_v51, 6  ;;  %v292_v22 = vperm.slane %v164_v9, 0  ;;  %v354_v63 = vmul.f32 %v290_v24, %v58_v45  ;;  %v23_v24 = vld [vmem:[%s847_s0 + $0x60] sm:$0xff] }
  0x36   :  { %v61_v13 = vunpack.c.l.bf16 %v20_v6  ;;  %v167_v30 = vperm.slane %v120_v38, 0  ;;  %v293_v28 = vperm.slane %v165_v15, 0  ;;  %v355_v12 = vmul.f32 %v291_v56, %v59_v10 }
  0x37   :  { %v412_v49 = vadd.f32 %v411_v1, %v349_v0  ;;  %v62_v33 = vunpack.c.h.bf16 %v20_v6  ;;  %v168_v50 = vperm.slane %v120_v38, 2  ;;  %v294_v0 = vperm.slane %v166_v41, 0 }
  0x38   :  { %v356_v51 = vmul.f32 %v292_v22, %v60_v21  ;;  %v63_v3 = vunpack.c.l.bf16 %v21_v34  ;;  %v121_v35 = vunpack.c.l.bf16 %v110_v46  ;;  %v295_v1 = vperm.slane %v167_v30, 0 }
  0x39   :  { %v413_v53 = vadd.f32 %v412_v49, %v350_v27  ;;  %v169_v27 = vperm.slane %v120_v38, 4  ;;  %v357_v54 = vmul.f32 %v293_v28, %v61_v13  ;;  %v64_v39 = vunpack.c.h.bf16 %v21_v34 }
  0x3a   :  { %v170_v5 = vperm.slane %v120_v38, 6  ;;  %v358_v49 = vmul.f32 %v294_v0, %v62_v33  ;;  %v65_v9 = vunpack.c.l.bf16 %v22_v4  ;;  %v359_v10 = vmul.f32 %v295_v1, %v63_v3  ;;  %v24_v38 = vld [vmem:[%s847_s0 + $0x68] sm:$0xff]  ;;  %v25_v0 = vld [vmem:[%s847_s0 + $0x70] sm:$0xff] }
  0x3b   :  { %v414_v59 = vadd.f32 %v413_v53, %v351_v43  ;;  %v296_v43 = vperm.slane %v168_v50, 0  ;;  %v297_v53 = vperm.slane %v169_v27, 0  ;;  %v66_v15 = vunpack.c.h.bf16 %v22_v4 }
  0x3c   :  { %v172_v56 = vperm.slane %v121_v35, 2  ;;  %v67_v41 = vunpack.c.l.bf16 %v23_v24  ;;  %v122_v22 = vunpack.c.h.bf16 %v110_v46  ;;  %v68_v30 = vunpack.c.h.bf16 %v23_v24  ;;  %v111_v46 = vld [vmem:[%s848_s1 + $0x20] sm:$0xff] }
  0x3d   :  { %v415_v37 = vadd.f32 %v414_v59, %v352_v40  ;;  %v171_v40 = vperm.slane %v121_v35, 0  ;;  %v360_v59 = vmul.f32 %v296_v43, %v64_v39  ;;  %v361_v13 = vmul.f32 %v297_v53, %v65_v9  ;;  %v26_v43 = vld [vmem:[%s847_s0 + $0x78] sm:$0xff] }
  0x3e   :  { %v174_v28 = vperm.slane %v121_v35, 6  ;;  %v69_v50 = vunpack.c.l.bf16 %v24_v38  ;;  %v70_v27 = vunpack.c.h.bf16 %v24_v38  ;;  %v176_v1 = vperm.slane %v122_v22, 2 }
  0x3f   :  { %v416_v29 = vadd.f32 %v415_v37, %v353_v16  ;;  %v298_v16 = vperm.slane %v170_v5, 0  ;;  %v299_v37 = vperm.slane %v171_v40, 0  ;;  %v71_v39 = vunpack.c.l.bf16 %v25_v0 }
  0x40   :  { %v123_v5 = vunpack.c.l.bf16 %v111_v46  ;;  %v72_v40 = vunpack.c.h.bf16 %v25_v0  ;;  %v178_v53 = vperm.slane %v122_v22, 6 }
  0x41   :  { %v417_v25 = vadd.f32 %v416_v29, %v354_v63  ;;  %v173_v63 = vperm.slane %v121_v35, 4  ;;  %v362_v29 = vmul.f32 %v298_v16, %v66_v15  ;;  %v363_v3 = vmul.f32 %v299_v37, %v67_v41  ;;  %v27_v16 = vld [vmem:[%s847_s0 + $0x80] sm:$0xff] }
  0x42   :  { %v180_v37 = vperm.slane %v123_v5, 2 }
  0x43   :  { %v418_v47 = vadd.f32 %v417_v25, %v355_v12  ;;  %v300_v12 = vperm.slane %v172_v56, 0  ;;  %v301_v25 = vperm.slane %v173_v63, 0  ;;  %v73_v56 = vunpack.c.l.bf16 %v26_v43 }
  0x44   :  { %v74_v63 = vunpack.c.h.bf16 %v26_v43 }
  0x45   :  { %v419_v45 = vadd.f32 %v418_v47, %v356_v51  ;;  %v175_v51 = vperm.slane %v122_v22, 0  ;;  %v364_v35 = vmul.f32 %v300_v12, %v68_v30  ;;  %v365_v9 = vmul.f32 %v301_v25, %v69_v50 }
  0x46   :  { %v124_v12 = vunpack.c.h.bf16 %v111_v46  ;;  %v182_v25 = vperm.slane %v123_v5, 6 }
  0x47   :  { %v420_v6 = vadd.f32 %v419_v45, %v357_v54  ;;  %v302_v54 = vperm.slane %v174_v28, 0  ;;  %v303_v45 = vperm.slane %v175_v51, 0  ;;  %v75_v28 = vunpack.c.l.bf16 %v27_v16 }
  0x48   :  { %v76_v51 = vunpack.c.h.bf16 %v27_v16  ;;  %v186_v16 = vperm.slane %v124_v12, 6 }
  0x49   :  { %v421_v21 = vadd.f32 %v420_v6, %v358_v49  ;;  %v177_v49 = vperm.slane %v122_v22, 4  ;;  %v366_v6 = vmul.f32 %v302_v54, %v70_v27  ;;  %v367_v41 = vmul.f32 %v303_v45, %v71_v39  ;;  %v28_v22 = vld [vmem:[%s847_s0 + $0x88] sm:$0xff]  ;;  %v29_v54 = vld [vmem:[%s847_s0 + $0x90] sm:$0xff] }
  0x4a   :  { %v78_v43 = vunpack.c.h.bf16 %v28_v22  ;;  %v310_v45 = vperm.slane %v182_v25, 0 }
  0x4b   :  { %v422_v34 = vadd.f32 %v421_v21, %v359_v10  ;;  %v304_v10 = vperm.slane %v176_v1, 0  ;;  %v305_v21 = vperm.slane %v177_v49, 0  ;;  %v77_v1 = vunpack.c.l.bf16 %v28_v22 }
  0x4c   :  { %v184_v49 = vperm.slane %v124_v12, 2 }
  0x4d   :  { %v423_v33 = vadd.f32 %v422_v34, %v360_v59  ;;  %v179_v59 = vperm.slane %v123_v5, 0  ;;  %v368_v34 = vmul.f32 %v304_v10, %v72_v40  ;;  %v369_v50 = vmul.f32 %v305_v21, %v73_v56 }
  0x4e   :  { %v79_v40 = vunpack.c.l.bf16 %v29_v54  ;;  %v80_v56 = vunpack.c.h.bf16 %v29_v54  ;;  %v374_v21 = vmul.f32 %v310_v45, %v78_v43 }
  0x4f   :  { %v424_v4 = vadd.f32 %v423_v33, %v361_v13  ;;  %v306_v13 = vperm.slane %v178_v53, 0  ;;  %v307_v33 = vperm.slane %v179_v59, 0  ;;  %v185_v53 = vperm.slane %v124_v12, 4 }
  0x50   :  { %v312_v59 = vperm.slane %v184_v49, 0 }
  0x51   :  { %v425_v47 = vadd.f32 %v424_v4, %v362_v29  ;;  %v181_v29 = vperm.slane %v123_v5, 4  ;;  %v370_v4 = vmul.f32 %v306_v13, %v74_v63  ;;  %v313_v63 = vperm.slane %v185_v53, 0 }
  0x53   :  { %v426_v24 = vadd.f32 %v425_v47, %v363_v3  ;;  %v308_v3 = vperm.slane %v180_v37, 0  ;;  %v309_v46 = vperm.slane %v181_v29, 0  ;;  %v371_v47 = vmul.f32 %v307_v33, %v75_v28 }
  0x54   :  { %v376_v28 = vmul.f32 %v312_v59, %v80_v56 }
  0x55   :  { %v427_v15 = vadd.f32 %v426_v24, %v364_v35  ;;  %v183_v35 = vperm.slane %v124_v12, 0  ;;  %v373_v10 = vmul.f32 %v309_v46, %v77_v1 }
  0x57   :  { %v428_v38 = vadd.f32 %v427_v15, %v365_v9  ;;  %v372_v9 = vmul.f32 %v308_v3, %v76_v51  ;;  %v311_v5 = vperm.slane %v183_v35, 0  ;;  %v30_v15 = vld [vmem:[%s847_s0 + $0x98] sm:$0xff] }
  0x59   :  { %v429_v30 = vadd.f32 %v428_v38, %v366_v6  ;;  %v81_v38 = vunpack.c.l.bf16 %v30_v15  ;;  %v375_v37 = vmul.f32 %v311_v5, %v79_v40 }
  0x5b   :  { %v430_v0 = vadd.f32 %v429_v30, %v367_v41  ;;  %v314_v30 = vperm.slane %v186_v16, 0  ;;  %v377_v29 = vmul.f32 %v313_v63, %v81_v38 }
  0x5d   :  { %v431_v27 = vadd.f32 %v430_v0, %v368_v34  ;;  %v82_v34 = vunpack.c.h.bf16 %v30_v15 }
  0x5f   :  { %v432_v39 = vadd.f32 %v431_v27, %v369_v50  ;;  %v378_v50 = vmul.f32 %v314_v30, %v82_v34 }
  0x61   :  { %v433_v24 = vadd.f32 %v432_v39, %v370_v4 }
  0x63   :  { %v434_v6 = vadd.f32 %v433_v24, %v371_v47 }
  0x65   :  { %v435_v41 = vadd.f32 %v434_v6, %v372_v9 }
  0x67   :  { %v436_v13 = vadd.f32 %v435_v41, %v373_v10 }
  0x69   :  { %v437_v22 = vadd.f32 %v436_v13, %v374_v21 }
  0x6b   :  { %v438_v33 = vadd.f32 %v437_v22, %v375_v37 }
  0x6d   :  { %v439_v0 = vadd.f32 %v438_v33, %v376_v28 }
  0x6f   :  { %v440_v51 = vadd.f32 %v439_v0, %v377_v29 }
  0x71   :  { %v441_v25 = vadd.f32 %v440_v51, %v378_v50 }
  0x73   :  { %v442_v3 = vadd.f32 %v441_v25, %v650_v36 }
  0x75   :  { %v443_v12 = vadd.f32 %v442_v3, %v654_v14 }
  0x77   :  { %v444_v4 = vadd.f32 %v443_v12, %v658_v31 }
  0x79   :  { %v445_v27 = vadd.f32 %v444_v4, %v662_v32 }
  0x7b   :  { %v446_v1 = vadd.f32 %v445_v27, %v666_v26 }
  0x7d   :  { %v447_v54 = vadd.f32 %v446_v1, %v670_v23 }
  0x7f   :  { %v448_v35 = vadd.f32 %v447_v54, %v674_v20 }
  0x81   :  { %v449_v46 = vadd.f32 %v448_v35, %v678_v42 }
  0x83   :  { %v450_v47 = vadd.f32 %v449_v46, %v682_v19 }
  0x85   :  { %v451_v39 = vadd.f32 %v450_v47, %v686_v18 }
  0x87   :  { %v452_v36 = vadd.f32 %v451_v39, %v690_v17 }
  0x89   :  { %v453_v14 = vadd.f32 %v452_v36, %v694_v44 }
  0x8b   :  { %v454_v31 = vadd.f32 %v453_v14, %v698_v11 }
  0x8d   :  { %v455_v32 = vadd.f32 %v454_v31, %v702_v8 }
  0x8f   :  { %v456_v26 = vadd.f32 %v455_v32, %v706_v7 }
  0x91   :  { %v457_v23 = vadd.f32 %v456_v26, %v710_v55 }
  0x93   :  { %v458_v20 = vadd.f32 %v457_v23, %v717_v2 }
  0x95   :  { %v459_v42 = vadd.f32 %v458_v20, %v721_v52 }
  0x97   :  { %v460_v19 = vadd.f32 %v459_v42, %v725_v57 }
  0x99   :  { %v461_v18 = vadd.f32 %v460_v19, %v729_v58 }
  0x9b   :  { %v462_v17 = vadd.f32 %v461_v18, %v733_v48 }
  0x9d   :  { %v463_v44 = vadd.f32 %v462_v17, %v737_v60 }
  0x9f   :  { %v464_v11 = vadd.f32 %v463_v44, %v741_v61 }
  0xa1   :  { %v465_v8 = vadd.f32 %v464_v11, %v745_v62 }
  0xa3   :  { %466 = vadd.xlane.f32.xlu0 %v465_v8 }
 0x116   :  { %v467_v7 = vpop.xlane.xlu0 %466 }
 0x117   :  { %v468_v43 = vsub.f32 0.0, %v467_v7 }
 0x119   :  { %v469_v55 = vmul.f32 1.442695, %v468_v43 }
 0x11b   :  { %493 = vpow2.f32 %v469_v55 }
 0x121   :  { %v494_v2 = vpop.eup %493 }
 0x122   :  { %v471_v49 = vadd.f32 1.0, %v494_v2 }
 0x124   :  { %495 = vrcp.f32 %v471_v49  ;;  %v483_v58 = vand.u32 2147483648, %v471_v49  ;;  %v481_v48 = vand.u32 2147483647, %v471_v49  ;;  %vm477_vm1 = vweird.f32 %v471_v49 }
 0x126   :  { %v484_v61 = vor.u32 1.1754944e-38, %v483_v58  ;;  %vm482_vm4 = vcmp.eq.f32.partialorder %v481_v48, 8.507059e+37 }
 0x12a   :  { %v496_v52 = vpop.eup %495 }
 0x12b   :  { %v473_v57 = vmul.f32 %v496_v52, %v471_v49  ;;  %vm478_vm0 = vweird.f32 %v496_v52 }
 0x12c   :  { %vm479_vm2 = vmor %vm477_vm1, %vm478_vm0 }
 0x12d   :  { %v474_v45 = vsub.f32 1.0, %v473_v57 }
 0x12f   :  { %v475_v9 = vmul.f32 %v496_v52, %v474_v45 }
 0x131   :  { %v476_v60 = vadd.f32 %v496_v52, %v475_v9 }
 0x133   :  { %v480_v62 = vsel %vm479_vm2, %v496_v52, %v476_v60 }
 0x134   :  { %v485_v24 = vsel %vm482_vm4, %v484_v61, %v480_v62 }
 0x135   :  { %488 = vst.msk [vmem:[%s849_s2] sm:$0xff] %vm487_vm3, %v485_v24 }

// kernel: discriminator.8
= control target key start
LH: loop header
LB: loop body
LE: loop exit
PB: predicated region body
PF: predicated region fallthrough
CT: control target
= control target key end

     0   :  { %s8535_s12 = smov 0   ;;  %s8537_s13 = smov 0   ;;  %s10000_s0 = inlined_call_operand.vmem [shape: bf16[2,4,4096], index: 0, kind: input, shape index: {}]   ;;  %s10001_s1 = inlined_call_operand.vmem [shape: bf16[4096,512], index: 1, kind: input, shape index: {}]   ;;  %s10002_s2 = inlined_call_operand.vmem [shape: f32[1,512], index: 2, kind: input, shape index: {}]   ;;  %s10003_s3 = inlined_call_operand.vmem [shape: bf16[2,4,512], index: 3, kind: output, shape index: {}]  }
   0x1   :  { %s8539_s14 = smov 0   ;;  %s8541_s15 = smov 0  }
   0x2   :  { %s8543_s16 = smov 0   ;;  %s8545_s17 = smov 0  }
   0x3   :  { %s8547_s18 = smov 0  }
   0x4 LB: > { %s22_s19 = sadd.s32 1, %s8504_s16  ;;  %s25_s20 = sadd.s32 1, %s8508_s17  ;;  %s8512_s18 = sphi %s8547_s18, %s13_s18   ;;  %s8508_s17 = sphi %s8545_s17, %s10009_s17   ;;  %s8504_s16 = sphi %s8543_s16, %s10008_s16   ;;  %s8500_s15 = sphi %s8541_s15, %s10007_s15   ;;  %s8496_s14 = sphi %s8539_s14, %s10006_s14   ;;  %s8492_s13 = sphi %s8537_s13, %s10005_s13   ;;  %s8488_s12 = sphi %s8535_s12, %s10004_s12  }
   0x5   : > { %p23_p0 = scmp.ge.s32.totalorder %s22_s19, 2  ;;  %p65_p1 = scmp.ne.s32.totalorder %s8492_s13, %s8488_s12 }
   0x6   : > { %p66_p2 = scmp.eq.s32.totalorder %s8512_s18, 0  ;;  %s58_s22 = sadd.s32 1, %s8492_s13 }
   0x7   : > { %s10011_s19 = smov (%p23_p0, %s22_s19), 0  ;;  %s10013_s20 = smov (!%p23_p0, %s25_s20), %s8508_s17 }
   0x8   : > { %p67_p3 = por %p66_p2, %p65_p1  ;;  %p27_p4 = scmp.ge.s32.totalorder %s10013_s20, 4 }
   0x9   : > { %p7104_p6 = scmp.ge.s32.totalorder %s8512_s18, 8 }
   0xa   : > { %s10015_s20 = smov (%p27_p4, %s10013_s20), 0 }
   0xb   : > { %s55_s21 = ssub.s32 %s8508_s17, %s10015_s20  ;;  %145 = sbr.rel (%p7104_p6) target bundleno = 532 (0x214), region = 16 }
   0xc   : > { %p56_p5 = scmp.eq.s32.totalorder %s55_s21, 0 }
   0xe   : > { %s8584_s23 = scalar_select %p56_p5, %s8492_s13, %s58_s22  }
  0x10   : > { %156 = sbr.rel (!%p67_p3) target bundleno = 532 (0x214), region = 24  ;;  %s158_s24 = sand.u32 (%p67_p3), 1, %s8492_s13  }
  0x11   : > { %s7106_s25 = sshll.u32 (%p67_p3), %s8508_s17, 2  ;;  %s7105_s26 = sshll.u32 (%p67_p3), %s158_s24, 11 }
  0x12   : > { %s8592_s29 = scalar_lea.vmem (%p67_p3), %s10001_s1, %s7106_s25  ;;  %s8596_s30 = scalar_lea.vmem (%p67_p3), [#allocation2], %s7105_s26 }
  0x13   : > { %v179_v0 = vld [vmem:[%s8592_s29] sm:$0xf] (%p67_p3)  ;;  %v181_v1 = vld [vmem:[%s8592_s29 + $0x10] sm:$0xf] (%p67_p3) }
  0x14   : > { %180 = vst [vmem:[%s8596_s30] sm:$0xf] (%p67_p3), %v179_v0  ;;  %v183_v2 = vld [vmem:[%s8592_s29 + $0x20] sm:$0xf] (%p67_p3)  ;;  %v185_v3 = vld [vmem:[%s8592_s29 + $0x30] sm:$0xf] (%p67_p3) }
  0x15   : > { %182 = vst [vmem:[%s8596_s30 + $0x4] sm:$0xf] %v181_v1  ;;  %v187_v4 = vld [vmem:[%s8592_s29 + $0x40] sm:$0xf]  ;;  %v189_v5 = vld [vmem:[%s8592_s29 + $0x50] sm:$0xf] }
  0x16   : > { %184 = vst [vmem:[%s8596_s30 + $0x8] sm:$0xf] %v183_v2  ;;  %v191_v6 = vld [vmem:[%s8592_s29 + $0x60] sm:$0xf]  ;;  %v193_v7 = vld [vmem:[%s8592_s29 + $0x70] sm:$0xf] }
  0x17   : > { %186 = vst [vmem:[%s8596_s30 + $0xc] sm:$0xf] %v185_v3  ;;  %v195_v8 = vld [vmem:[%s8592_s29 + $0x80] sm:$0xf]  ;;  %v197_v9 = vld [vmem:[%s8592_s29 + $0x90] sm:$0xf] }
  0x18   : > { %188 = vst [vmem:[%s8596_s30 + $0x10] sm:$0xf] %v187_v4  ;;  %v199_v10 = vld [vmem:[%s8592_s29 + $0xa0] sm:$0xf]  ;;  %v201_v11 = vld [vmem:[%s8592_s29 + $0xb0] sm:$0xf] }
  0x19   : > { %190 = vst [vmem:[%s8596_s30 + $0x14] sm:$0xf] %v189_v5  ;;  %v203_v12 = vld [vmem:[%s8592_s29 + $0xc0] sm:$0xf]  ;;  %v205_v13 = vld [vmem:[%s8592_s29 + $0xd0] sm:$0xf] }
  0x1a   : > { %192 = vst [vmem:[%s8596_s30 + $0x18] sm:$0xf] %v191_v6  ;;  %v207_v14 = vld [vmem:[%s8592_s29 + $0xe0] sm:$0xf]  ;;  %v209_v15 = vld [vmem:[%s8592_s29 + $0xf0] sm:$0xf] }
  0x1b   : > { %194 = vst [vmem:[%s8596_s30 + $0x1c] sm:$0xf] %v193_v7  ;;  %v211_v16 = vld [vmem:[%s8592_s29 + $0x100] sm:$0xf]  ;;  %v213_v17 = vld [vmem:[%s8592_s29 + $0x110] sm:$0xf] }
  0x1c   : > { %196 = vst [vmem:[%s8596_s30 + $0x20] sm:$0xf] %v195_v8  ;;  %v215_v18 = vld [vmem:[%s8592_s29 + $0x120] sm:$0xf]  ;;  %v217_v19 = vld [vmem:[%s8592_s29 + $0x130] sm:$0xf] }
  0x1d   : > { %198 = vst [vmem:[%s8596_s30 + $0x24] sm:$0xf] %v197_v9  ;;  %v219_v20 = vld [vmem:[%s8592_s29 + $0x140] sm:$0xf]  ;;  %v221_v21 = vld [vmem:[%s8592_s29 + $0x150] sm:$0xf] }
  0x1e   : > { %200 = vst [vmem:[%s8596_s30 + $0x28] sm:$0xf] %v199_v10  ;;  %v223_v22 = vld [vmem:[%s8592_s29 + $0x160] sm:$0xf]  ;;  %v225_v23 = vld [vmem:[%s8592_s29 + $0x170] sm:$0xf] }
  0x1f   : > { %202 = vst [vmem:[%s8596_s30 + $0x2c] sm:$0xf] %v201_v11  ;;  %v227_v24 = vld [vmem:[%s8592_s29 + $0x180] sm:$0xf]  ;;  %v229_v25 = vld [vmem:[%s8592_s29 + $0x190] sm:$0xf] }
  0x20   : > { %204 = vst [vmem:[%s8596_s30 + $0x30] sm:$0xf] %v203_v12  ;;  %v231_v26 = vld [vmem:[%s8592_s29 + $0x1a0] sm:$0xf]  ;;  %v233_v27 = vld [vmem:[%s8592_s29 + $0x1b0] sm:$0xf] }
  0x21   : > { %206 = vst [vmem:[%s8596_s30 + $0x34] sm:$0xf] %v205_v13  ;;  %v235_v28 = vld [vmem:[%s8592_s29 + $0x1c0] sm:$0xf]  ;;  %v237_v29 = vld [vmem:[%s8592_s29 + $0x1d0] sm:$0xf] }
  0x22   : > { %208 = vst [vmem:[%s8596_s30 + $0x38] sm:$0xf] %v207_v14  ;;  %v239_v30 = vld [vmem:[%s8592_s29 + $0x1e0] sm:$0xf]  ;;  %v241_v31 = vld [vmem:[%s8592_s29 + $0x1f0] sm:$0xf] }
  0x23   : > { %210 = vst [vmem:[%s8596_s30 + $0x3c] sm:$0xf] %v209_v15  ;;  %v243_v32 = vld [vmem:[%s8592_s29 + $0x200] sm:$0xf]  ;;  %v245_v33 = vld [vmem:[%s8592_s29 + $0x210] sm:$0xf] }
  0x24   : > { %212 = vst [vmem:[%s8596_s30 + $0x40] sm:$0xf] %v211_v16  ;;  %v247_v34 = vld [vmem:[%s8592_s29 + $0x220] sm:$0xf]  ;;  %v249_v35 = vld [vmem:[%s8592_s29 + $0x230] sm:$0xf] }
  0x25   : > { %214 = vst [vmem:[%s8596_s30 + $0x44] sm:$0xf] %v213_v17  ;;  %v251_v36 = vld [vmem:[%s8592_s29 + $0x240] sm:$0xf]  ;;  %v253_v37 = vld [vmem:[%s8592_s29 + $0x250] sm:$0xf] }
  0x26   : > { %216 = vst [vmem:[%s8596_s30 + $0x48] sm:$0xf] %v215_v18  ;;  %v255_v38 = vld [vmem:[%s8592_s29 + $0x260] sm:$0xf]  ;;  %v257_v39 = vld [vmem:[%s8592_s29 + $0x270] sm:$0xf] }
  0x27   : > { %218 = vst [vmem:[%s8596_s30 + $0x4c] sm:$0xf] %v217_v19  ;;  %v259_v40 = vld [vmem:[%s8592_s29 + $0x280] sm:$0xf]  ;;  %v261_v41 = vld [vmem:[%s8592_s29 + $0x290] sm:$0xf] }
  0x28   : > { %220 = vst [vmem:[%s8596_s30 + $0x50] sm:$0xf] %v219_v20  ;;  %v263_v42 = vld [vmem:[%s8592_s29 + $0x2a0] sm:$0xf]  ;;  %v265_v43 = vld [vmem:[%s8592_s29 + $0x2b0] sm:$0xf] }
  0x29   : > { %222 = vst [vmem:[%s8596_s30 + $0x54] sm:$0xf] %v221_v21  ;;  %v267_v44 = vld [vmem:[%s8592_s29 + $0x2c0] sm:$0xf]  ;;  %v269_v45 = vld [vmem:[%s8592_s29 + $0x2d0] sm:$0xf] }
  0x2a   : > { %224 = vst [vmem:[%s8596_s30 + $0x58] sm:$0xf] %v223_v22  ;;  %v271_v46 = vld [vmem:[%s8592_s29 + $0x2e0] sm:$0xf]  ;;  %v273_v47 = vld [vmem:[%s8592_s29 + $0x2f0] sm:$0xf] }
  0x2b   : > { %226 = vst [vmem:[%s8596_s30 + $0x5c] sm:$0xf] %v225_v23  ;;  %v275_v48 = vld [vmem:[%s8592_s29 + $0x300] sm:$0xf]  ;;  %v277_v49 = vld [vmem:[%s8592_s29 + $0x310] sm:$0xf] }
  0x2c   : > { %228 = vst [vmem:[%s8596_s30 + $0x60] sm:$0xf] %v227_v24  ;;  %v279_v50 = vld [vmem:[%s8592_s29 + $0x320] sm:$0xf]  ;;  %v281_v51 = vld [vmem:[%s8592_s29 + $0x330] sm:$0xf] }
  0x2d   : > { %230 = vst [vmem:[%s8596_s30 + $0x64] sm:$0xf] %v229_v25  ;;  %v283_v52 = vld [vmem:[%s8592_s29 + $0x340] sm:$0xf]  ;;  %v285_v53 = vld [vmem:[%s8592_s29 + $0x350] sm:$0xf] }
  0x2e   : > { %232 = vst [vmem:[%s8596_s30 + $0x68] sm:$0xf] %v231_v26  ;;  %v287_v54 = vld [vmem:[%s8592_s29 + $0x360] sm:$0xf]  ;;  %v289_v55 = vld [vmem:[%s8592_s29 + $0x370] sm:$0xf] }
  0x2f   : > { %234 = vst [vmem:[%s8596_s30 + $0x6c] sm:$0xf] %v233_v27  ;;  %v291_v56 = vld [vmem:[%s8592_s29 + $0x380] sm:$0xf]  ;;  %v293_v57 = vld [vmem:[%s8592_s29 + $0x390] sm:$0xf] }
  0x30   : > { %236 = vst [vmem:[%s8596_s30 + $0x70] sm:$0xf] %v235_v28  ;;  %v295_v58 = vld [vmem:[%s8592_s29 + $0x3a0] sm:$0xf]  ;;  %v297_v59 = vld [vmem:[%s8592_s29 + $0x3b0] sm:$0xf] }
  0x31   : > { %238 = vst [vmem:[%s8596_s30 + $0x74] sm:$0xf] %v237_v29  ;;  %v299_v60 = vld [vmem:[%s8592_s29 + $0x3c0] sm:$0xf]  ;;  %v301_v61 = vld [vmem:[%s8592_s29 + $0x3d0] sm:$0xf] }
  0x32   : > { %240 = vst [vmem:[%s8596_s30 + $0x78] sm:$0xf] %v239_v30  ;;  %v303_v62 = vld [vmem:[%s8592_s29 + $0x3e0] sm:$0xf]  ;;  %v305_v63 = vld [vmem:[%s8592_s29 + $0x3f0] sm:$0xf] }
  0x33   : > { %242 = vst [vmem:[%s8596_s30 + $0x7c] sm:$0xf] %v241_v31  ;;  %v307_v0 = vld [vmem:[%s8592_s29 + $0x400] sm:$0xf]  ;;  %v309_v1 = vld [vmem:[%s8592_s29 + $0x410] sm:$0xf] }
  0x34   : > { %244 = vst [vmem:[%s8596_s30 + $0x80] sm:$0xf] %v243_v32  ;;  %v311_v2 = vld [vmem:[%s8592_s29 + $0x420] sm:$0xf]  ;;  %v313_v3 = vld [vmem:[%s8592_s29 + $0x430] sm:$0xf] }
  0x35   : > { %246 = vst [vmem:[%s8596_s30 + $0x84] sm:$0xf] %v245_v33  ;;  %v315_v4 = vld [vmem:[%s8592_s29 + $0x440] sm:$0xf]  ;;  %v317_v5 = vld [vmem:[%s8592_s29 + $0x450] sm:$0xf] }
  0x36   : > { %248 = vst [vmem:[%s8596_s30 + $0x88] sm:$0xf] %v247_v34  ;;  %v319_v6 = vld [vmem:[%s8592_s29 + $0x460] sm:$0xf]  ;;  %v321_v7 = vld [vmem:[%s8592_s29 + $0x470] sm:$0xf] }
  0x37   : > { %250 = vst [vmem:[%s8596_s30 + $0x8c] sm:$0xf] %v249_v35  ;;  %v323_v8 = vld [vmem:[%s8592_s29 + $0x480] sm:$0xf]  ;;  %v325_v9 = vld [vmem:[%s8592_s29 + $0x490] sm:$0xf] }
  0x38   : > { %252 = vst [vmem:[%s8596_s30 + $0x90] sm:$0xf] %v251_v36  ;;  %v327_v10 = vld [vmem:[%s8592_s29 + $0x4a0] sm:$0xf]  ;;  %v329_v11 = vld [vmem:[%s8592_s29 + $0x4b0] sm:$0xf] }
  0x39   : > { %254 = vst [vmem:[%s8596_s30 + $0x94] sm:$0xf] %v253_v37  ;;  %v331_v12 = vld [vmem:[%s8592_s29 + $0x4c0] sm:$0xf]  ;;  %v333_v13 = vld [vmem:[%s8592_s29 + $0x4d0] sm:$0xf] }
  0x3a   : > { %256 = vst [vmem:[%s8596_s30 + $0x98] sm:$0xf] %v255_v38  ;;  %v335_v14 = vld [vmem:[%s8592_s29 + $0x4e0] sm:$0xf]  ;;  %v337_v15 = vld [vmem:[%s8592_s29 + $0x4f0] sm:$0xf] }
  0x3b   : > { %258 = vst [vmem:[%s8596_s30 + $0x9c] sm:$0xf] %v257_v39  ;;  %v339_v16 = vld [vmem:[%s8592_s29 + $0x500] sm:$0xf]  ;;  %v341_v17 = vld [vmem:[%s8592_s29 + $0x510] sm:$0xf] }
  0x3c   : > { %260 = vst [vmem:[%s8596_s30 + $0xa0] sm:$0xf] %v259_v40  ;;  %v343_v18 = vld [vmem:[%s8592_s29 + $0x520] sm:$0xf]  ;;  %v345_v19 = vld [vmem:[%s8592_s29 + $0x530] sm:$0xf] }
  0x3d   : > { %262 = vst [vmem:[%s8596_s30 + $0xa4] sm:$0xf] %v261_v41  ;;  %v347_v20 = vld [vmem:[%s8592_s29 + $0x540] sm:$0xf]  ;;  %v349_v21 = vld [vmem:[%s8592_s29 + $0x550] sm:$0xf] }
  0x3e   : > { %264 = vst [vmem:[%s8596_s30 + $0xa8] sm:$0xf] %v263_v42  ;;  %v351_v22 = vld [vmem:[%s8592_s29 + $0x560] sm:$0xf]  ;;  %v353_v23 = vld [vmem:[%s8592_s29 + $0x570] sm:$0xf] }
  0x3f   : > { %266 = vst [vmem:[%s8596_s30 + $0xac] sm:$0xf] %v265_v43  ;;  %v355_v24 = vld [vmem:[%s8592_s29 + $0x580] sm:$0xf]  ;;  %v357_v25 = vld [vmem:[%s8592_s29 + $0x590] sm:$0xf] }
  0x40   : > { %268 = vst [vmem:[%s8596_s30 + $0xb0] sm:$0xf] %v267_v44  ;;  %v359_v26 = vld [vmem:[%s8592_s29 + $0x5a0] sm:$0xf]  ;;  %v361_v27 = vld [vmem:[%s8592_s29 + $0x5b0] sm:$0xf] }
  0x41   : > { %270 = vst [vmem:[%s8596_s30 + $0xb4] sm:$0xf] %v269_v45  ;;  %v363_v28 = vld [vmem:[%s8592_s29 + $0x5c0] sm:$0xf]  ;;  %v365_v29 = vld [vmem:[%s8592_s29 + $0x5d0] sm:$0xf] }
  0x42   : > { %272 = vst [vmem:[%s8596_s30 + $0xb8] sm:$0xf] %v271_v46  ;;  %v367_v30 = vld [vmem:[%s8592_s29 + $0x5e0] sm:$0xf]  ;;  %v369_v31 = vld [vmem:[%s8592_s29 + $0x5f0] sm:$0xf] }
  0x43   : > { %274 = vst [vmem:[%s8596_s30 + $0xbc] sm:$0xf] %v273_v47  ;;  %v371_v32 = vld [vmem:[%s8592_s29 + $0x600] sm:$0xf]  ;;  %v373_v33 = vld [vmem:[%s8592_s29 + $0x610] sm:$0xf] }
  0x44   : > { %276 = vst [vmem:[%s8596_s30 + $0xc0] sm:$0xf] %v275_v48  ;;  %v375_v34 = vld [vmem:[%s8592_s29 + $0x620] sm:$0xf]  ;;  %v377_v35 = vld [vmem:[%s8592_s29 + $0x630] sm:$0xf] }
  0x45   : > { %278 = vst [vmem:[%s8596_s30 + $0xc4] sm:$0xf] %v277_v49  ;;  %v379_v36 = vld [vmem:[%s8592_s29 + $0x640] sm:$0xf]  ;;  %v381_v37 = vld [vmem:[%s8592_s29 + $0x650] sm:$0xf] }
  0x46   : > { %280 = vst [vmem:[%s8596_s30 + $0xc8] sm:$0xf] %v279_v50  ;;  %v383_v38 = vld [vmem:[%s8592_s29 + $0x660] sm:$0xf]  ;;  %v385_v39 = vld [vmem:[%s8592_s29 + $0x670] sm:$0xf] }
  0x47   : > { %282 = vst [vmem:[%s8596_s30 + $0xcc] sm:$0xf] %v281_v51  ;;  %v387_v40 = vld [vmem:[%s8592_s29 + $0x680] sm:$0xf]  ;;  %v389_v41 = vld [vmem:[%s8592_s29 + $0x690] sm:$0xf] }
  0x48   : > { %284 = vst [vmem:[%s8596_s30 + $0xd0] sm:$0xf] %v283_v52  ;;  %v391_v42 = vld [vmem:[%s8592_s29 + $0x6a0] sm:$0xf]  ;;  %v393_v43 = vld [vmem:[%s8592_s29 + $0x6b0] sm:$0xf] }
  0x49   : > { %286 = vst [vmem:[%s8596_s30 + $0xd4] sm:$0xf] %v285_v53  ;;  %v395_v44 = vld [vmem:[%s8592_s29 + $0x6c0] sm:$0xf]  ;;  %v397_v45 = vld [vmem:[%s8592_s29 + $0x6d0] sm:$0xf] }
  0x4a   : > { %288 = vst [vmem:[%s8596_s30 + $0xd8] sm:$0xf] %v287_v54  ;;  %v399_v46 = vld [vmem:[%s8592_s29 + $0x6e0] sm:$0xf]  ;;  %v401_v47 = vld [vmem:[%s8592_s29 + $0x6f0] sm:$0xf] }
  0x4b   : > { %290 = vst [vmem:[%s8596_s30 + $0xdc] sm:$0xf] %v289_v55  ;;  %v403_v48 = vld [vmem:[%s8592_s29 + $0x700] sm:$0xf]  ;;  %v405_v49 = vld [vmem:[%s8592_s29 + $0x710] sm:$0xf] }
  0x4c   : > { %292 = vst [vmem:[%s8596_s30 + $0xe0] sm:$0xf] %v291_v56  ;;  %v407_v50 = vld [vmem:[%s8592_s29 + $0x720] sm:$0xf]  ;;  %v409_v51 = vld [vmem:[%s8592_s29 + $0x730] sm:$0xf] }
  0x4d   : > { %294 = vst [vmem:[%s8596_s30 + $0xe4] sm:$0xf] %v293_v57  ;;  %v411_v52 = vld [vmem:[%s8592_s29 + $0x740] sm:$0xf]  ;;  %v413_v53 = vld [vmem:[%s8592_s29 + $0x750] sm:$0xf] }
  0x4e   : > { %296 = vst [vmem:[%s8596_s30 + $0xe8] sm:$0xf] %v295_v58  ;;  %v415_v54 = vld [vmem:[%s8592_s29 + $0x760] sm:$0xf]  ;;  %v417_v55 = vld [vmem:[%s8592_s29 + $0x770] sm:$0xf] }
  0x4f   : > { %298 = vst [vmem:[%s8596_s30 + $0xec] sm:$0xf] %v297_v59  ;;  %v419_v56 = vld [vmem:[%s8592_s29 + $0x780] sm:$0xf]  ;;  %v421_v57 = vld [vmem:[%s8592_s29 + $0x790] sm:$0xf] }
  0x50   : > { %300 = vst [vmem:[%s8596_s30 + $0xf0] sm:$0xf] %v299_v60  ;;  %v423_v58 = vld [vmem:[%s8592_s29 + $0x7a0] sm:$0xf]  ;;  %v425_v59 = vld [vmem:[%s8592_s29 + $0x7b0] sm:$0xf] }
  0x51   : > { %302 = vst [vmem:[%s8596_s30 + $0xf4] sm:$0xf] %v301_v61  ;;  %v427_v60 = vld [vmem:[%s8592_s29 + $0x7c0] sm:$0xf]  ;;  %v429_v61 = vld [vmem:[%s8592_s29 + $0x7d0] sm:$0xf] }
  0x52   : > { %304 = vst [vmem:[%s8596_s30 + $0xf8] sm:$0xf] %v303_v62  ;;  %v431_v62 = vld [vmem:[%s8592_s29 + $0x7e0] sm:$0xf] }
  0x53   : > { %306 = vst [vmem:[%s8596_s30 + $0xfc] sm:$0xf] %v305_v63  ;;  %v433_v63 = vld [vmem:[%s8592_s29 + $0x7f0] sm:$0xf] }
  0x54   : > { %308 = vst [vmem:[%s8596_s30 + $0x100] sm:$0xf] %v307_v0  ;;  %v435_v0 = vld [vmem:[%s8592_s29 + $0x800] sm:$0xf] }
  0x55   : > { %310 = vst [vmem:[%s8596_s30 + $0x104] sm:$0xf] %v309_v1  ;;  %v437_v1 = vld [vmem:[%s8592_s29 + $0x810] sm:$0xf] }
  0x56   : > { %312 = vst [vmem:[%s8596_s30 + $0x108] sm:$0xf] %v311_v2  ;;  %v439_v2 = vld [vmem:[%s8592_s29 + $0x820] sm:$0xf] }
  0x57   : > { %314 = vst [vmem:[%s8596_s30 + $0x10c] sm:$0xf] %v313_v3  ;;  %v441_v3 = vld [vmem:[%s8592_s29 + $0x830] sm:$0xf] }
  0x58   : > { %316 = vst [vmem:[%s8596_s30 + $0x110] sm:$0xf] %v315_v4  ;;  %v443_v4 = vld [vmem:[%s8592_s29 + $0x840] sm:$0xf] }
  0x59   : > { %318 = vst [vmem:[%s8596_s30 + $0x114] sm:$0xf] %v317_v5  ;;  %v445_v5 = vld [vmem:[%s8592_s29 + $0x850] sm:$0xf] }
  0x5a   : > { %320 = vst [vmem:[%s8596_s30 + $0x118] sm:$0xf] %v319_v6  ;;  %v447_v6 = vld [vmem:[%s8592_s29 + $0x860] sm:$0xf] }
  0x5b   : > { %322 = vst [vmem:[%s8596_s30 + $0x11c] sm:$0xf] %v321_v7  ;;  %v449_v7 = vld [vmem:[%s8592_s29 + $0x870] sm:$0xf] }
  0x5c   : > { %324 = vst [vmem:[%s8596_s30 + $0x120] sm:$0xf] %v323_v8  ;;  %v451_v8 = vld [vmem:[%s8592_s29 + $0x880] sm:$0xf] }
  0x5d   : > { %326 = vst [vmem:[%s8596_s30 + $0x124] sm:$0xf] %v325_v9  ;;  %v453_v9 = vld [vmem:[%s8592_s29 + $0x890] sm:$0xf] }
  0x5e   : > { %328 = vst [vmem:[%s8596_s30 + $0x128] sm:$0xf] %v327_v10  ;;  %v455_v10 = vld [vmem:[%s8592_s29 + $0x8a0] sm:$0xf] }
  0x5f   : > { %330 = vst [vmem:[%s8596_s30 + $0x12c] sm:$0xf] %v329_v11  ;;  %v457_v11 = vld [vmem:[%s8592_s29 + $0x8b0] sm:$0xf] }
  0x60   : > { %332 = vst [vmem:[%s8596_s30 + $0x130] sm:$0xf] %v331_v12  ;;  %v459_v12 = vld [vmem:[%s8592_s29 + $0x8c0] sm:$0xf] }
  0x61   : > { %334 = vst [vmem:[%s8596_s30 + $0x134] sm:$0xf] %v333_v13  ;;  %v461_v13 = vld [vmem:[%s8592_s29 + $0x8d0] sm:$0xf] }
  0x62   : > { %336 = vst [vmem:[%s8596_s30 + $0x138] sm:$0xf] %v335_v14  ;;  %v463_v14 = vld [vmem:[%s8592_s29 + $0x8e0] sm:$0xf] }
  0x63   : > { %338 = vst [vmem:[%s8596_s30 + $0x13c] sm:$0xf] %v337_v15  ;;  %v465_v15 = vld [vmem:[%s8592_s29 + $0x8f0] sm:$0xf] }
  0x64   : > { %340 = vst [vmem:[%s8596_s30 + $0x140] sm:$0xf] %v339_v16  ;;  %v467_v16 = vld [vmem:[%s8592_s29 + $0x900] sm:$0xf] }
  0x65   : > { %342 = vst [vmem:[%s8596_s30 + $0x144] sm:$0xf] %v341_v17  ;;  %v469_v17 = vld [vmem:[%s8592_s29 + $0x910] sm:$0xf] }
  0x66   : > { %344 = vst [vmem:[%s8596_s30 + $0x148] sm:$0xf] %v343_v18  ;;  %v471_v18 = vld [vmem:[%s8592_s29 + $0x920] sm:$0xf] }
  0x67   : > { %346 = vst [vmem:[%s8596_s30 + $0x14c] sm:$0xf] %v345_v19  ;;  %v473_v19 = vld [vmem:[%s8592_s29 + $0x930] sm:$0xf] }
  0x68   : > { %348 = vst [vmem:[%s8596_s30 + $0x150] sm:$0xf] %v347_v20  ;;  %v475_v20 = vld [vmem:[%s8592_s29 + $0x940] sm:$0xf] }
  0x69   : > { %350 = vst [vmem:[%s8596_s30 + $0x154] sm:$0xf] %v349_v21  ;;  %v477_v21 = vld [vmem:[%s8592_s29 + $0x950] sm:$0xf] }
  0x6a   : > { %352 = vst [vmem:[%s8596_s30 + $0x158] sm:$0xf] %v351_v22  ;;  %v479_v22 = vld [vmem:[%s8592_s29 + $0x960] sm:$0xf] }
  0x6b   : > { %354 = vst [vmem:[%s8596_s30 + $0x15c] sm:$0xf] %v353_v23  ;;  %v481_v23 = vld [vmem:[%s8592_s29 + $0x970] sm:$0xf] }
  0x6c   : > { %356 = vst [vmem:[%s8596_s30 + $0x160] sm:$0xf] %v355_v24  ;;  %v483_v24 = vld [vmem:[%s8592_s29 + $0x980] sm:$0xf] }
  0x6d   : > { %358 = vst [vmem:[%s8596_s30 + $0x164] sm:$0xf] %v357_v25  ;;  %v485_v25 = vld [vmem:[%s8592_s29 + $0x990] sm:$0xf] }
  0x6e   : > { %360 = vst [vmem:[%s8596_s30 + $0x168] sm:$0xf] %v359_v26  ;;  %v487_v26 = vld [vmem:[%s8592_s29 + $0x9a0] sm:$0xf] }
  0x6f   : > { %362 = vst [vmem:[%s8596_s30 + $0x16c] sm:$0xf] %v361_v27  ;;  %v489_v27 = vld [vmem:[%s8592_s29 + $0x9b0] sm:$0xf] }
  0x70   : > { %364 = vst [vmem:[%s8596_s30 + $0x170] sm:$0xf] %v363_v28  ;;  %v491_v28 = vld [vmem:[%s8592_s29 + $0x9c0] sm:$0xf] }
  0x71   : > { %366 = vst [vmem:[%s8596_s30 + $0x174] sm:$0xf] %v365_v29  ;;  %v493_v29 = vld [vmem:[%s8592_s29 + $0x9d0] sm:$0xf] }
  0x72   : > { %368 = vst [vmem:[%s8596_s30 + $0x178] sm:$0xf] %v367_v30  ;;  %v495_v30 = vld [vmem:[%s8592_s29 + $0x9e0] sm:$0xf] }
  0x73   : > { %370 = vst [vmem:[%s8596_s30 + $0x17c] sm:$0xf] %v369_v31  ;;  %v497_v31 = vld [vmem:[%s8592_s29 + $0x9f0] sm:$0xf] }
  0x74   : > { %372 = vst [vmem:[%s8596_s30 + $0x180] sm:$0xf] %v371_v32  ;;  %v499_v32 = vld [vmem:[%s8592_s29 + $0xa00] sm:$0xf] }
  0x75   : > { %374 = vst [vmem:[%s8596_s30 + $0x184] sm:$0xf] %v373_v33  ;;  %v501_v33 = vld [vmem:[%s8592_s29 + $0xa10] sm:$0xf] }
  0x76   : > { %376 = vst [vmem:[%s8596_s30 + $0x188] sm:$0xf] %v375_v34  ;;  %v503_v34 = vld [vmem:[%s8592_s29 + $0xa20] sm:$0xf] }
  0x77   : > { %378 = vst [vmem:[%s8596_s30 + $0x18c] sm:$0xf] %v377_v35  ;;  %v505_v35 = vld [vmem:[%s8592_s29 + $0xa30] sm:$0xf] }
  0x78   : > { %380 = vst [vmem:[%s8596_s30 + $0x190] sm:$0xf] %v379_v36  ;;  %v507_v36 = vld [vmem:[%s8592_s29 + $0xa40] sm:$0xf] }
  0x79   : > { %382 = vst [vmem:[%s8596_s30 + $0x194] sm:$0xf] %v381_v37  ;;  %v509_v37 = vld [vmem:[%s8592_s29 + $0xa50] sm:$0xf] }
  0x7a   : > { %384 = vst [vmem:[%s8596_s30 + $0x198] sm:$0xf] %v383_v38  ;;  %v511_v38 = vld [vmem:[%s8592_s29 + $0xa60] sm:$0xf] }
  0x7b   : > { %386 = vst [vmem:[%s8596_s30 + $0x19c] sm:$0xf] %v385_v39  ;;  %v513_v39 = vld [vmem:[%s8592_s29 + $0xa70] sm:$0xf] }
  0x7c   : > { %388 = vst [vmem:[%s8596_s30 + $0x1a0] sm:$0xf] %v387_v40  ;;  %v515_v40 = vld [vmem:[%s8592_s29 + $0xa80] sm:$0xf] }
  0x7d   : > { %390 = vst [vmem:[%s8596_s30 + $0x1a4] sm:$0xf] %v389_v41  ;;  %v517_v41 = vld [vmem:[%s8592_s29 + $0xa90] sm:$0xf] }
  0x7e   : > { %392 = vst [vmem:[%s8596_s30 + $0x1a8] sm:$0xf] %v391_v42  ;;  %v519_v42 = vld [vmem:[%s8592_s29 + $0xaa0] sm:$0xf] }
  0x7f   : > { %394 = vst [vmem:[%s8596_s30 + $0x1ac] sm:$0xf] %v393_v43  ;;  %v521_v43 = vld [vmem:[%s8592_s29 + $0xab0] sm:$0xf] }
  0x80   : > { %396 = vst [vmem:[%s8596_s30 + $0x1b0] sm:$0xf] %v395_v44  ;;  %v523_v44 = vld [vmem:[%s8592_s29 + $0xac0] sm:$0xf] }
  0x81   : > { %398 = vst [vmem:[%s8596_s30 + $0x1b4] sm:$0xf] %v397_v45  ;;  %v525_v45 = vld [vmem:[%s8592_s29 + $0xad0] sm:$0xf] }
  0x82   : > { %400 = vst [vmem:[%s8596_s30 + $0x1b8] sm:$0xf] %v399_v46  ;;  %v527_v46 = vld [vmem:[%s8592_s29 + $0xae0] sm:$0xf] }
  0x83   : > { %402 = vst [vmem:[%s8596_s30 + $0x1bc] sm:$0xf] %v401_v47  ;;  %v529_v47 = vld [vmem:[%s8592_s29 + $0xaf0] sm:$0xf] }
  0x84   : > { %404 = vst [vmem:[%s8596_s30 + $0x1c0] sm:$0xf] %v403_v48  ;;  %v531_v48 = vld [vmem:[%s8592_s29 + $0xb00] sm:$0xf] }
  0x85   : > { %406 = vst [vmem:[%s8596_s30 + $0x1c4] sm:$0xf] %v405_v49  ;;  %v533_v49 = vld [vmem:[%s8592_s29 + $0xb10] sm:$0xf] }
  0x86   : > { %408 = vst [vmem:[%s8596_s30 + $0x1c8] sm:$0xf] %v407_v50  ;;  %v535_v50 = vld [vmem:[%s8592_s29 + $0xb20] sm:$0xf] }
  0x87   : > { %410 = vst [vmem:[%s8596_s30 + $0x1cc] sm:$0xf] %v409_v51  ;;  %v537_v51 = vld [vmem:[%s8592_s29 + $0xb30] sm:$0xf] }
  0x88   : > { %412 = vst [vmem:[%s8596_s30 + $0x1d0] sm:$0xf] %v411_v52  ;;  %v539_v52 = vld [vmem:[%s8592_s29 + $0xb40] sm:$0xf] }
  0x89   : > { %414 = vst [vmem:[%s8596_s30 + $0x1d4] sm:$0xf] %v413_v53  ;;  %v541_v53 = vld [vmem:[%s8592_s29 + $0xb50] sm:$0xf] }
  0x8a   : > { %416 = vst [vmem:[%s8596_s30 + $0x1d8] sm:$0xf] %v415_v54  ;;  %v543_v54 = vld [vmem:[%s8592_s29 + $0xb60] sm:$0xf] }
  0x8b   : > { %418 = vst [vmem:[%s8596_s30 + $0x1dc] sm:$0xf] %v417_v55  ;;  %v545_v55 = vld [vmem:[%s8592_s29 + $0xb70] sm:$0xf] }
  0x8c   : > { %420 = vst [vmem:[%s8596_s30 + $0x1e0] sm:$0xf] %v419_v56  ;;  %v547_v56 = vld [vmem:[%s8592_s29 + $0xb80] sm:$0xf] }
  0x8d   : > { %422 = vst [vmem:[%s8596_s30 + $0x1e4] sm:$0xf] %v421_v57  ;;  %v549_v57 = vld [vmem:[%s8592_s29 + $0xb90] sm:$0xf] }
  0x8e   : > { %424 = vst [vmem:[%s8596_s30 + $0x1e8] sm:$0xf] %v423_v58  ;;  %v551_v58 = vld [vmem:[%s8592_s29 + $0xba0] sm:$0xf] }
  0x8f   : > { %426 = vst [vmem:[%s8596_s30 + $0x1ec] sm:$0xf] %v425_v59  ;;  %v553_v59 = vld [vmem:[%s8592_s29 + $0xbb0] sm:$0xf] }
  0x90   : > { %428 = vst [vmem:[%s8596_s30 + $0x1f0] sm:$0xf] %v427_v60  ;;  %v555_v60 = vld [vmem:[%s8592_s29 + $0xbc0] sm:$0xf] }
  0x91   : > { %430 = vst [vmem:[%s8596_s30 + $0x1f4] sm:$0xf] %v429_v61  ;;  %v557_v61 = vld [vmem:[%s8592_s29 + $0xbd0] sm:$0xf] }
  0x92   : > { %432 = vst [vmem:[%s8596_s30 + $0x1f8] sm:$0xf] %v431_v62  ;;  %v559_v62 = vld [vmem:[%s8592_s29 + $0xbe0] sm:$0xf] }
  0x93   : > { %434 = vst [vmem:[%s8596_s30 + $0x1fc] sm:$0xf] %v433_v63  ;;  %v561_v63 = vld [vmem:[%s8592_s29 + $0xbf0] sm:$0xf] }
  0x94   : > { %436 = vst [vmem:[%s8596_s30 + $0x200] sm:$0xf] %v435_v0  ;;  %v563_v0 = vld [vmem:[%s8592_s29 + $0xc00] sm:$0xf] }
  0x95   : > { %438 = vst [vmem:[%s8596_s30 + $0x204] sm:$0xf] %v437_v1  ;;  %v565_v1 = vld [vmem:[%s8592_s29 + $0xc10] sm:$0xf] }
  0x96   : > { %440 = vst [vmem:[%s8596_s30 + $0x208] sm:$0xf] %v439_v2  ;;  %v567_v2 = vld [vmem:[%s8592_s29 + $0xc20] sm:$0xf] }
  0x97   : > { %442 = vst [vmem:[%s8596_s30 + $0x20c] sm:$0xf] %v441_v3  ;;  %v569_v3 = vld [vmem:[%s8592_s29 + $0xc30] sm:$0xf] }
  0x98   : > { %444 = vst [vmem:[%s8596_s30 + $0x210] sm:$0xf] %v443_v4  ;;  %v571_v4 = vld [vmem:[%s8592_s29 + $0xc40] sm:$0xf] }
  0x99   : > { %446 = vst [vmem:[%s8596_s30 + $0x214] sm:$0xf] %v445_v5  ;;  %v573_v5 = vld [vmem:[%s8592_s29 + $0xc50] sm:$0xf] }
  0x9a   : > { %448 = vst [vmem:[%s8596_s30 + $0x218] sm:$0xf] %v447_v6  ;;  %v575_v6 = vld [vmem:[%s8592_s29 + $0xc60] sm:$0xf] }
  0x9b   : > { %450 = vst [vmem:[%s8596_s30 + $0x21c] sm:$0xf] %v449_v7  ;;  %v577_v7 = vld [vmem:[%s8592_s29 + $0xc70] sm:$0xf] }
  0x9c   : > { %452 = vst [vmem:[%s8596_s30 + $0x220] sm:$0xf] %v451_v8  ;;  %v579_v8 = vld [vmem:[%s8592_s29 + $0xc80] sm:$0xf] }
  0x9d   : > { %454 = vst [vmem:[%s8596_s30 + $0x224] sm:$0xf] %v453_v9  ;;  %v581_v9 = vld [vmem:[%s8592_s29 + $0xc90] sm:$0xf] }
  0x9e   : > { %456 = vst [vmem:[%s8596_s30 + $0x228] sm:$0xf] %v455_v10  ;;  %v583_v10 = vld [vmem:[%s8592_s29 + $0xca0] sm:$0xf] }
  0x9f   : > { %458 = vst [vmem:[%s8596_s30 + $0x22c] sm:$0xf] %v457_v11  ;;  %v585_v11 = vld [vmem:[%s8592_s29 + $0xcb0] sm:$0xf] }
  0xa0   : > { %460 = vst [vmem:[%s8596_s30 + $0x230] sm:$0xf] %v459_v12  ;;  %v587_v12 = vld [vmem:[%s8592_s29 + $0xcc0] sm:$0xf] }
  0xa1   : > { %462 = vst [vmem:[%s8596_s30 + $0x234] sm:$0xf] %v461_v13  ;;  %v589_v13 = vld [vmem:[%s8592_s29 + $0xcd0] sm:$0xf] }
  0xa2   : > { %464 = vst [vmem:[%s8596_s30 + $0x238] sm:$0xf] %v463_v14  ;;  %v591_v14 = vld [vmem:[%s8592_s29 + $0xce0] sm:$0xf] }
  0xa3   : > { %466 = vst [vmem:[%s8596_s30 + $0x23c] sm:$0xf] %v465_v15  ;;  %v593_v15 = vld [vmem:[%s8592_s29 + $0xcf0] sm:$0xf] }
  0xa4   : > { %468 = vst [vmem:[%s8596_s30 + $0x240] sm:$0xf] %v467_v16  ;;  %v595_v16 = vld [vmem:[%s8592_s29 + $0xd00] sm:$0xf] }
  0xa5   : > { %470 = vst [vmem:[%s8596_s30 + $0x244] sm:$0xf] %v469_v17  ;;  %v597_v17 = vld [vmem:[%s8592_s29 + $0xd10] sm:$0xf] }
  0xa6   : > { %472 = vst [vmem:[%s8596_s30 + $0x248] sm:$0xf] %v471_v18  ;;  %v599_v18 = vld [vmem:[%s8592_s29 + $0xd20] sm:$0xf] }
  0xa7   : > { %474 = vst [vmem:[%s8596_s30 + $0x24c] sm:$0xf] %v473_v19  ;;  %v601_v19 = vld [vmem:[%s8592_s29 + $0xd30] sm:$0xf] }
  0xa8   : > { %476 = vst [vmem:[%s8596_s30 + $0x250] sm:$0xf] %v475_v20  ;;  %v603_v20 = vld [vmem:[%s8592_s29 + $0xd40] sm:$0xf] }
  0xa9   : > { %478 = vst [vmem:[%s8596_s30 + $0x254] sm:$0xf] %v477_v21  ;;  %v605_v21 = vld [vmem:[%s8592_s29 + $0xd50] sm:$0xf] }
  0xaa   : > { %480 = vst [vmem:[%s8596_s30 + $0x258] sm:$0xf] %v479_v22  ;;  %v607_v22 = vld [vmem:[%s8592_s29 + $0xd60] sm:$0xf] }
  0xab   : > { %482 = vst [vmem:[%s8596_s30 + $0x25c] sm:$0xf] %v481_v23  ;;  %v609_v23 = vld [vmem:[%s8592_s29 + $0xd70] sm:$0xf] }
  0xac   : > { %484 = vst [vmem:[%s8596_s30 + $0x260] sm:$0xf] %v483_v24  ;;  %v611_v24 = vld [vmem:[%s8592_s29 + $0xd80] sm:$0xf] }
  0xad   : > { %486 = vst [vmem:[%s8596_s30 + $0x264] sm:$0xf] %v485_v25  ;;  %v613_v25 = vld [vmem:[%s8592_s29 + $0xd90] sm:$0xf] }
  0xae   : > { %488 = vst [vmem:[%s8596_s30 + $0x268] sm:$0xf] %v487_v26  ;;  %v615_v26 = vld [vmem:[%s8592_s29 + $0xda0] sm:$0xf] }
  0xaf   : > { %490 = vst [vmem:[%s8596_s30 + $0x26c] sm:$0xf] %v489_v27  ;;  %v617_v27 = vld [vmem:[%s8592_s29 + $0xdb0] sm:$0xf] }
  0xb0   : > { %492 = vst [vmem:[%s8596_s30 + $0x270] sm:$0xf] %v491_v28  ;;  %v619_v28 = vld [vmem:[%s8592_s29 + $0xdc0] sm:$0xf] }
  0xb1   : > { %494 = vst [vmem:[%s8596_s30 + $0x274] sm:$0xf] %v493_v29  ;;  %v621_v29 = vld [vmem:[%s8592_s29 + $0xdd0] sm:$0xf] }
  0xb2   : > { %496 = vst [vmem:[%s8596_s30 + $0x278] sm:$0xf] %v495_v30  ;;  %v623_v30 = vld [vmem:[%s8592_s29 + $0xde0] sm:$0xf] }
  0xb3   : > { %498 = vst [vmem:[%s8596_s30 + $0x27c] sm:$0xf] %v497_v31  ;;  %v625_v31 = vld [vmem:[%s8592_s29 + $0xdf0] sm:$0xf] }
  0xb4   : > { %500 = vst [vmem:[%s8596_s30 + $0x280] sm:$0xf] %v499_v32  ;;  %v627_v32 = vld [vmem:[%s8592_s29 + $0xe00] sm:$0xf] }
  0xb5   : > { %502 = vst [vmem:[%s8596_s30 + $0x284] sm:$0xf] %v501_v33  ;;  %v629_v33 = vld [vmem:[%s8592_s29 + $0xe10] sm:$0xf] }
  0xb6   : > { %504 = vst [vmem:[%s8596_s30 + $0x288] sm:$0xf] %v503_v34  ;;  %v631_v34 = vld [vmem:[%s8592_s29 + $0xe20] sm:$0xf] }
  0xb7   : > { %506 = vst [vmem:[%s8596_s30 + $0x28c] sm:$0xf] %v505_v35  ;;  %v633_v35 = vld [vmem:[%s8592_s29 + $0xe30] sm:$0xf] }
  0xb8   : > { %508 = vst [vmem:[%s8596_s30 + $0x290] sm:$0xf] %v507_v36  ;;  %v635_v36 = vld [vmem:[%s8592_s29 + $0xe40] sm:$0xf] }
  0xb9   : > { %510 = vst [vmem:[%s8596_s30 + $0x294] sm:$0xf] %v509_v37  ;;  %v637_v37 = vld [vmem:[%s8592_s29 + $0xe50] sm:$0xf] }
  0xba   : > { %512 = vst [vmem:[%s8596_s30 + $0x298] sm:$0xf] %v511_v38  ;;  %v639_v38 = vld [vmem:[%s8592_s29 + $0xe60] sm:$0xf] }
  0xbb   : > { %514 = vst [vmem:[%s8596_s30 + $0x29c] sm:$0xf] %v513_v39  ;;  %v641_v39 = vld [vmem:[%s8592_s29 + $0xe70] sm:$0xf] }
  0xbc   : > { %516 = vst [vmem:[%s8596_s30 + $0x2a0] sm:$0xf] %v515_v40  ;;  %v643_v40 = vld [vmem:[%s8592_s29 + $0xe80] sm:$0xf] }
  0xbd   : > { %518 = vst [vmem:[%s8596_s30 + $0x2a4] sm:$0xf] %v517_v41  ;;  %v645_v41 = vld [vmem:[%s8592_s29 + $0xe90] sm:$0xf] }
  0xbe   : > { %520 = vst [vmem:[%s8596_s30 + $0x2a8] sm:$0xf] %v519_v42  ;;  %v647_v42 = vld [vmem:[%s8592_s29 + $0xea0] sm:$0xf] }
  0xbf   : > { %522 = vst [vmem:[%s8596_s30 + $0x2ac] sm:$0xf] %v521_v43  ;;  %v649_v43 = vld [vmem:[%s8592_s29 + $0xeb0] sm:$0xf] }
  0xc0   : > { %524 = vst [vmem:[%s8596_s30 + $0x2b0] sm:$0xf] %v523_v44  ;;  %v651_v44 = vld [vmem:[%s8592_s29 + $0xec0] sm:$0xf] }
  0xc1   : > { %526 = vst [vmem:[%s8596_s30 + $0x2b4] sm:$0xf] %v525_v45  ;;  %v653_v45 = vld [vmem:[%s8592_s29 + $0xed0] sm:$0xf] }
  0xc2   : > { %528 = vst [vmem:[%s8596_s30 + $0x2b8] sm:$0xf] %v527_v46  ;;  %v655_v46 = vld [vmem:[%s8592_s29 + $0xee0] sm:$0xf] }
  0xc3   : > { %530 = vst [vmem:[%s8596_s30 + $0x2bc] sm:$0xf] %v529_v47  ;;  %v657_v47 = vld [vmem:[%s8592_s29 + $0xef0] sm:$0xf] }
  0xc4   : > { %532 = vst [vmem:[%s8596_s30 + $0x2c0] sm:$0xf] %v531_v48  ;;  %v659_v48 = vld [vmem:[%s8592_s29 + $0xf00] sm:$0xf] }
  0xc5   : > { %534 = vst [vmem:[%s8596_s30 + $0x2c4] sm:$0xf] %v533_v49  ;;  %v661_v49 = vld [vmem:[%s8592_s29 + $0xf10] sm:$0xf] }
  0xc6   : > { %536 = vst [vmem:[%s8596_s30 + $0x2c8] sm:$0xf] %v535_v50  ;;  %v663_v50 = vld [vmem:[%s8592_s29 + $0xf20] sm:$0xf] }
  0xc7   : > { %538 = vst [vmem:[%s8596_s30 + $0x2cc] sm:$0xf] %v537_v51  ;;  %v665_v51 = vld [vmem:[%s8592_s29 + $0xf30] sm:$0xf] }
  0xc8   : > { %540 = vst [vmem:[%s8596_s30 + $0x2d0] sm:$0xf] %v539_v52  ;;  %v667_v52 = vld [vmem:[%s8592_s29 + $0xf40] sm:$0xf] }
  0xc9   : > { %542 = vst [vmem:[%s8596_s30 + $0x2d4] sm:$0xf] %v541_v53  ;;  %v669_v53 = vld [vmem:[%s8592_s29 + $0xf50] sm:$0xf] }
  0xca   : > { %544 = vst [vmem:[%s8596_s30 + $0x2d8] sm:$0xf] %v543_v54  ;;  %v671_v54 = vld [vmem:[%s8592_s29 + $0xf60] sm:$0xf] }
  0xcb   : > { %546 = vst [vmem:[%s8596_s30 + $0x2dc] sm:$0xf] %v545_v55  ;;  %v673_v55 = vld [vmem:[%s8592_s29 + $0xf70] sm:$0xf] }
  0xcc   : > { %548 = vst [vmem:[%s8596_s30 + $0x2e0] sm:$0xf] %v547_v56  ;;  %v675_v56 = vld [vmem:[%s8592_s29 + $0xf80] sm:$0xf] }
  0xcd   : > { %550 = vst [vmem:[%s8596_s30 + $0x2e4] sm:$0xf] %v549_v57  ;;  %v677_v57 = vld [vmem:[%s8592_s29 + $0xf90] sm:$0xf] }
  0xce   : > { %552 = vst [vmem:[%s8596_s30 + $0x2e8] sm:$0xf] %v551_v58  ;;  %v679_v58 = vld [vmem:[%s8592_s29 + $0xfa0] sm:$0xf] }
  0xcf   : > { %554 = vst [vmem:[%s8596_s30 + $0x2ec] sm:$0xf] %v553_v59  ;;  %v681_v59 = vld [vmem:[%s8592_s29 + $0xfb0] sm:$0xf] }
  0xd0   : > { %556 = vst [vmem:[%s8596_s30 + $0x2f0] sm:$0xf] %v555_v60  ;;  %v683_v60 = vld [vmem:[%s8592_s29 + $0xfc0] sm:$0xf] }
  0xd1   : > { %558 = vst [vmem:[%s8596_s30 + $0x2f4] sm:$0xf] %v557_v61  ;;  %v685_v61 = vld [vmem:[%s8592_s29 + $0xfd0] sm:$0xf] }
  0xd2   : > { %560 = vst [vmem:[%s8596_s30 + $0x2f8] sm:$0xf] %v559_v62  ;;  %v687_v62 = vld [vmem:[%s8592_s29 + $0xfe0] sm:$0xf] }
  0xd3   : > { %562 = vst [vmem:[%s8596_s30 + $0x2fc] sm:$0xf] %v561_v63  ;;  %v689_v63 = vld [vmem:[%s8592_s29 + $0xff0] sm:$0xf] }
  0xd4   : > { %564 = vst [vmem:[%s8596_s30 + $0x300] sm:$0xf] %v563_v0  ;;  %v691_v0 = vld [vmem:[%s8592_s29 + $0x1000] sm:$0xf] }
  0xd5   : > { %566 = vst [vmem:[%s8596_s30 + $0x304] sm:$0xf] %v565_v1  ;;  %v693_v1 = vld [vmem:[%s8592_s29 + $0x1010] sm:$0xf] }
  0xd6   : > { %568 = vst [vmem:[%s8596_s30 + $0x308] sm:$0xf] %v567_v2  ;;  %v695_v2 = vld [vmem:[%s8592_s29 + $0x1020] sm:$0xf] }
  0xd7   : > { %570 = vst [vmem:[%s8596_s30 + $0x30c] sm:$0xf] %v569_v3  ;;  %v697_v3 = vld [vmem:[%s8592_s29 + $0x1030] sm:$0xf] }
  0xd8   : > { %572 = vst [vmem:[%s8596_s30 + $0x310] sm:$0xf] %v571_v4  ;;  %v699_v4 = vld [vmem:[%s8592_s29 + $0x1040] sm:$0xf] }
  0xd9   : > { %574 = vst [vmem:[%s8596_s30 + $0x314] sm:$0xf] %v573_v5  ;;  %v701_v5 = vld [vmem:[%s8592_s29 + $0x1050] sm:$0xf] }
  0xda   : > { %576 = vst [vmem:[%s8596_s30 + $0x318] sm:$0xf] %v575_v6  ;;  %v703_v6 = vld [vmem:[%s8592_s29 + $0x1060] sm:$0xf] }
  0xdb   : > { %578 = vst [vmem:[%s8596_s30 + $0x31c] sm:$0xf] %v577_v7  ;;  %v705_v7 = vld [vmem:[%s8592_s29 + $0x1070] sm:$0xf] }
  0xdc   : > { %580 = vst [vmem:[%s8596_s30 + $0x320] sm:$0xf] %v579_v8  ;;  %v707_v8 = vld [vmem:[%s8592_s29 + $0x1080] sm:$0xf] }
  0xdd   : > { %582 = vst [vmem:[%s8596_s30 + $0x324] sm:$0xf] %v581_v9  ;;  %v709_v9 = vld [vmem:[%s8592_s29 + $0x1090] sm:$0xf] }
  0xde   : > { %584 = vst [vmem:[%s8596_s30 + $0x328] sm:$0xf] %v583_v10  ;;  %v711_v10 = vld [vmem:[%s8592_s29 + $0x10a0] sm:$0xf] }
  0xdf   : > { %586 = vst [vmem:[%s8596_s30 + $0x32c] sm:$0xf] %v585_v11  ;;  %v713_v11 = vld [vmem:[%s8592_s29 + $0x10b0] sm:$0xf] }
  0xe0   : > { %588 = vst [vmem:[%s8596_s30 + $0x330] sm:$0xf] %v587_v12  ;;  %v715_v12 = vld [vmem:[%s8592_s29 + $0x10c0] sm:$0xf] }
  0xe1   : > { %590 = vst [vmem:[%s8596_s30 + $0x334] sm:$0xf] %v589_v13  ;;  %v717_v13 = vld [vmem:[%s8592_s29 + $0x10d0] sm:$0xf] }
  0xe2   : > { %592 = vst [vmem:[%s8596_s30 + $0x338] sm:$0xf] %v591_v14  ;;  %v719_v14 = vld [vmem:[%s8592_s29 + $0x10e0] sm:$0xf] }
  0xe3   : > { %594 = vst [vmem:[%s8596_s30 + $0x33c] sm:$0xf] %v593_v15  ;;  %v721_v15 = vld [vmem:[%s8592_s29 + $0x10f0] sm:$0xf] }
  0xe4   : > { %596 = vst [vmem:[%s8596_s30 + $0x340] sm:$0xf] %v595_v16  ;;  %v723_v16 = vld [vmem:[%s8592_s29 + $0x1100] sm:$0xf] }
  0xe5   : > { %598 = vst [vmem:[%s8596_s30 + $0x344] sm:$0xf] %v597_v17  ;;  %v725_v17 = vld [vmem:[%s8592_s29 + $0x1110] sm:$0xf] }
  0xe6   : > { %600 = vst [vmem:[%s8596_s30 + $0x348] sm:$0xf] %v599_v18  ;;  %v727_v18 = vld [vmem:[%s8592_s29 + $0x1120] sm:$0xf] }
  0xe7   : > { %602 = vst [vmem:[%s8596_s30 + $0x34c] sm:$0xf] %v601_v19  ;;  %v729_v19 = vld [vmem:[%s8592_s29 + $0x1130] sm:$0xf] }
  0xe8   : > { %604 = vst [vmem:[%s8596_s30 + $0x350] sm:$0xf] %v603_v20  ;;  %v731_v20 = vld [vmem:[%s8592_s29 + $0x1140] sm:$0xf] }
  0xe9   : > { %606 = vst [vmem:[%s8596_s30 + $0x354] sm:$0xf] %v605_v21  ;;  %v733_v21 = vld [vmem:[%s8592_s29 + $0x1150] sm:$0xf] }
  0xea   : > { %608 = vst [vmem:[%s8596_s30 + $0x358] sm:$0xf] %v607_v22  ;;  %v735_v22 = vld [vmem:[%s8592_s29 + $0x1160] sm:$0xf] }
  0xeb   : > { %610 = vst [vmem:[%s8596_s30 + $0x35c] sm:$0xf] %v609_v23  ;;  %v737_v23 = vld [vmem:[%s8592_s29 + $0x1170] sm:$0xf] }
  0xec   : > { %612 = vst [vmem:[%s8596_s30 + $0x360] sm:$0xf] %v611_v24  ;;  %v739_v24 = vld [vmem:[%s8592_s29 + $0x1180] sm:$0xf] }
  0xed   : > { %614 = vst [vmem:[%s8596_s30 + $0x364] sm:$0xf] %v613_v25  ;;  %v741_v25 = vld [vmem:[%s8592_s29 + $0x1190] sm:$0xf] }
  0xee   : > { %616 = vst [vmem:[%s8596_s30 + $0x368] sm:$0xf] %v615_v26  ;;  %v743_v26 = vld [vmem:[%s8592_s29 + $0x11a0] sm:$0xf] }
  0xef   : > { %618 = vst [vmem:[%s8596_s30 + $0x36c] sm:$0xf] %v617_v27  ;;  %v745_v27 = vld [vmem:[%s8592_s29 + $0x11b0] sm:$0xf] }
  0xf0   : > { %620 = vst [vmem:[%s8596_s30 + $0x370] sm:$0xf] %v619_v28  ;;  %v747_v28 = vld [vmem:[%s8592_s29 + $0x11c0] sm:$0xf] }
  0xf1   : > { %622 = vst [vmem:[%s8596_s30 + $0x374] sm:$0xf] %v621_v29  ;;  %v749_v29 = vld [vmem:[%s8592_s29 + $0x11d0] sm:$0xf] }
  0xf2   : > { %624 = vst [vmem:[%s8596_s30 + $0x378] sm:$0xf] %v623_v30  ;;  %v751_v30 = vld [vmem:[%s8592_s29 + $0x11e0] sm:$0xf] }
  0xf3   : > { %626 = vst [vmem:[%s8596_s30 + $0x37c] sm:$0xf] %v625_v31  ;;  %v753_v31 = vld [vmem:[%s8592_s29 + $0x11f0] sm:$0xf] }
  0xf4   : > { %628 = vst [vmem:[%s8596_s30 + $0x380] sm:$0xf] %v627_v32  ;;  %v755_v32 = vld [vmem:[%s8592_s29 + $0x1200] sm:$0xf] }
  0xf5   : > { %630 = vst [vmem:[%s8596_s30 + $0x384] sm:$0xf] %v629_v33  ;;  %v757_v33 = vld [vmem:[%s8592_s29 + $0x1210] sm:$0xf] }
  0xf6   : > { %632 = vst [vmem:[%s8596_s30 + $0x388] sm:$0xf] %v631_v34  ;;  %v759_v34 = vld [vmem:[%s8592_s29 + $0x1220] sm:$0xf] }
  0xf7   : > { %634 = vst [vmem:[%s8596_s30 + $0x38c] sm:$0xf] %v633_v35  ;;  %v761_v35 = vld [vmem:[%s8592_s29 + $0x1230] sm:$0xf] }
  0xf8   : > { %636 = vst [vmem:[%s8596_s30 + $0x390] sm:$0xf] %v635_v36  ;;  %v763_v36 = vld [vmem:[%s8592_s29 + $0x1240] sm:$0xf] }
  0xf9   : > { %638 = vst [vmem:[%s8596_s30 + $0x394] sm:$0xf] %v637_v37  ;;  %v765_v37 = vld [vmem:[%s8592_s29 + $0x1250] sm:$0xf] }
  0xfa   : > { %640 = vst [vmem:[%s8596_s30 + $0x398] sm:$0xf] %v639_v38  ;;  %v767_v38 = vld [vmem:[%s8592_s29 + $0x1260] sm:$0xf] }
  0xfb   : > { %642 = vst [vmem:[%s8596_s30 + $0x39c] sm:$0xf] %v641_v39  ;;  %v769_v39 = vld [vmem:[%s8592_s29 + $0x1270] sm:$0xf] }
  0xfc   : > { %644 = vst [vmem:[%s8596_s30 + $0x3a0] sm:$0xf] %v643_v40  ;;  %v771_v40 = vld [vmem:[%s8592_s29 + $0x1280] sm:$0xf] }
  0xfd   : > { %646 = vst [vmem:[%s8596_s30 + $0x3a4] sm:$0xf] %v645_v41  ;;  %v773_v41 = vld [vmem:[%s8592_s29 + $0x1290] sm:$0xf] }
  0xfe   : > { %648 = vst [vmem:[%s8596_s30 + $0x3a8] sm:$0xf] %v647_v42  ;;  %v775_v42 = vld [vmem:[%s8592_s29 + $0x12a0] sm:$0xf] }
  0xff   : > { %650 = vst [vmem:[%s8596_s30 + $0x3ac] sm:$0xf] %v649_v43  ;;  %v777_v43 = vld [vmem:[%s8592_s29 + $0x12b0] sm:$0xf] }
 0x100   : > { %652 = vst [vmem:[%s8596_s30 + $0x3b0] sm:$0xf] %v651_v44  ;;  %v779_v44 = vld [vmem:[%s8592_s29 + $0x12c0] sm:$0xf] }
 0x101   : > { %654 = vst [vmem:[%s8596_s30 + $0x3b4] sm:$0xf] %v653_v45  ;;  %v781_v45 = vld [vmem:[%s8592_s29 + $0x12d0] sm:$0xf] }
 0x102   : > { %656 = vst [vmem:[%s8596_s30 + $0x3b8] sm:$0xf] %v655_v46  ;;  %v783_v46 = vld [vmem:[%s8592_s29 + $0x12e0] sm:$0xf] }
 0x103   : > { %658 = vst [vmem:[%s8596_s30 + $0x3bc] sm:$0xf] %v657_v47  ;;  %v785_v47 = vld [vmem:[%s8592_s29 + $0x12f0] sm:$0xf] }
 0x104   : > { %660 = vst [vmem:[%s8596_s30 + $0x3c0] sm:$0xf] %v659_v48  ;;  %v787_v48 = vld [vmem:[%s8592_s29 + $0x1300] sm:$0xf] }
 0x105   : > { %662 = vst [vmem:[%s8596_s30 + $0x3c4] sm:$0xf] %v661_v49  ;;  %v789_v49 = vld [vmem:[%s8592_s29 + $0x1310] sm:$0xf] }
 0x106   : > { %664 = vst [vmem:[%s8596_s30 + $0x3c8] sm:$0xf] %v663_v50  ;;  %v791_v50 = vld [vmem:[%s8592_s29 + $0x1320] sm:$0xf] }
 0x107   : > { %666 = vst [vmem:[%s8596_s30 + $0x3cc] sm:$0xf] %v665_v51  ;;  %v793_v51 = vld [vmem:[%s8592_s29 + $0x1330] sm:$0xf] }
 0x108   : > { %668 = vst [vmem:[%s8596_s30 + $0x3d0] sm:$0xf] %v667_v52  ;;  %v795_v52 = vld [vmem:[%s8592_s29 + $0x1340] sm:$0xf] }
 0x109   : > { %670 = vst [vmem:[%s8596_s30 + $0x3d4] sm:$0xf] %v669_v53  ;;  %v797_v53 = vld [vmem:[%s8592_s29 + $0x1350] sm:$0xf] }
 0x10a   : > { %672 = vst [vmem:[%s8596_s30 + $0x3d8] sm:$0xf] %v671_v54  ;;  %v799_v54 = vld [vmem:[%s8592_s29 + $0x1360] sm:$0xf] }
 0x10b   : > { %674 = vst [vmem:[%s8596_s30 + $0x3dc] sm:$0xf] %v673_v55  ;;  %v801_v55 = vld [vmem:[%s8592_s29 + $0x1370] sm:$0xf] }
 0x10c   : > { %676 = vst [vmem:[%s8596_s30 + $0x3e0] sm:$0xf] %v675_v56  ;;  %v803_v56 = vld [vmem:[%s8592_s29 + $0x1380] sm:$0xf] }
 0x10d   : > { %678 = vst [vmem:[%s8596_s30 + $0x3e4] sm:$0xf] %v677_v57  ;;  %v805_v57 = vld [vmem:[%s8592_s29 + $0x1390] sm:$0xf] }
 0x10e   : > { %680 = vst [vmem:[%s8596_s30 + $0x3e8] sm:$0xf] %v679_v58  ;;  %v807_v58 = vld [vmem:[%s8592_s29 + $0x13a0] sm:$0xf] }
 0x10f   : > { %682 = vst [vmem:[%s8596_s30 + $0x3ec] sm:$0xf] %v681_v59  ;;  %v809_v59 = vld [vmem:[%s8592_s29 + $0x13b0] sm:$0xf] }
 0x110   : > { %684 = vst [vmem:[%s8596_s30 + $0x3f0] sm:$0xf] %v683_v60  ;;  %v811_v60 = vld [vmem:[%s8592_s29 + $0x13c0] sm:$0xf] }
 0x111   : > { %686 = vst [vmem:[%s8596_s30 + $0x3f4] sm:$0xf] %v685_v61  ;;  %v813_v61 = vld [vmem:[%s8592_s29 + $0x13d0] sm:$0xf] }
 0x112   : > { %688 = vst [vmem:[%s8596_s30 + $0x3f8] sm:$0xf] %v687_v62  ;;  %v815_v62 = vld [vmem:[%s8592_s29 + $0x13e0] sm:$0xf] }
 0x113   : > { %690 = vst [vmem:[%s8596_s30 + $0x3fc] sm:$0xf] %v689_v63  ;;  %v817_v63 = vld [vmem:[%s8592_s29 + $0x13f0] sm:$0xf] }
 0x114   : > { %692 = vst [vmem:[%s8596_s30 + $0x400] sm:$0xf] %v691_v0  ;;  %v819_v0 = vld [vmem:[%s8592_s29 + $0x1400] sm:$0xf] }
 0x115   : > { %694 = vst [vmem:[%s8596_s30 + $0x404] sm:$0xf] %v693_v1  ;;  %v821_v1 = vld [vmem:[%s8592_s29 + $0x1410] sm:$0xf] }
 0x116   : > { %696 = vst [vmem:[%s8596_s30 + $0x408] sm:$0xf] %v695_v2  ;;  %v823_v2 = vld [vmem:[%s8592_s29 + $0x1420] sm:$0xf] }
 0x117   : > { %698 = vst [vmem:[%s8596_s30 + $0x40c] sm:$0xf] %v697_v3  ;;  %v825_v3 = vld [vmem:[%s8592_s29 + $0x1430] sm:$0xf] }
 0x118   : > { %700 = vst [vmem:[%s8596_s30 + $0x410] sm:$0xf] %v699_v4  ;;  %v827_v4 = vld [vmem:[%s8592_s29 + $0x1440] sm:$0xf] }
 0x119   : > { %702 = vst [vmem:[%s8596_s30 + $0x414] sm:$0xf] %v701_v5  ;;  %v829_v5 = vld [vmem:[%s8592_s29 + $0x1450] sm:$0xf] }
 0x11a   : > { %704 = vst [vmem:[%s8596_s30 + $0x418] sm:$0xf] %v703_v6  ;;  %v831_v6 = vld [vmem:[%s8592_s29 + $0x1460] sm:$0xf] }
 0x11b   : > { %706 = vst [vmem:[%s8596_s30 + $0x41c] sm:$0xf] %v705_v7  ;;  %v833_v7 = vld [vmem:[%s8592_s29 + $0x1470] sm:$0xf] }
 0x11c   : > { %708 = vst [vmem:[%s8596_s30 + $0x420] sm:$0xf] %v707_v8  ;;  %v835_v8 = vld [vmem:[%s8592_s29 + $0x1480] sm:$0xf] }
 0x11d   : > { %710 = vst [vmem:[%s8596_s30 + $0x424] sm:$0xf] %v709_v9  ;;  %v837_v9 = vld [vmem:[%s8592_s29 + $0x1490] sm:$0xf] }
 0x11e   : > { %712 = vst [vmem:[%s8596_s30 + $0x428] sm:$0xf] %v711_v10  ;;  %v839_v10 = vld [vmem:[%s8592_s29 + $0x14a0] sm:$0xf] }
 0x11f   : > { %714 = vst [vmem:[%s8596_s30 + $0x42c] sm:$0xf] %v713_v11  ;;  %v841_v11 = vld [vmem:[%s8592_s29 + $0x14b0] sm:$0xf] }
 0x120   : > { %716 = vst [vmem:[%s8596_s30 + $0x430] sm:$0xf] %v715_v12  ;;  %v843_v12 = vld [vmem:[%s8592_s29 + $0x14c0] sm:$0xf] }
 0x121   : > { %718 = vst [vmem:[%s8596_s30 + $0x434] sm:$0xf] %v717_v13  ;;  %v845_v13 = vld [vmem:[%s8592_s29 + $0x14d0] sm:$0xf] }
 0x122   : > { %720 = vst [vmem:[%s8596_s30 + $0x438] sm:$0xf] %v719_v14  ;;  %v847_v14 = vld [vmem:[%s8592_s29 + $0x14e0] sm:$0xf] }
 0x123   : > { %722 = vst [vmem:[%s8596_s30 + $0x43c] sm:$0xf] %v721_v15  ;;  %v849_v15 = vld [vmem:[%s8592_s29 + $0x14f0] sm:$0xf] }
 0x124   : > { %724 = vst [vmem:[%s8596_s30 + $0x440] sm:$0xf] %v723_v16  ;;  %v851_v16 = vld [vmem:[%s8592_s29 + $0x1500] sm:$0xf] }
 0x125   : > { %726 = vst [vmem:[%s8596_s30 + $0x444] sm:$0xf] %v725_v17  ;;  %v853_v17 = vld [vmem:[%s8592_s29 + $0x1510] sm:$0xf] }
 0x126   : > { %728 = vst [vmem:[%s8596_s30 + $0x448] sm:$0xf] %v727_v18  ;;  %v855_v18 = vld [vmem:[%s8592_s29 + $0x1520] sm:$0xf] }
 0x127   : > { %730 = vst [vmem:[%s8596_s30 + $0x44c] sm:$0xf] %v729_v19  ;;  %v857_v19 = vld [vmem:[%s8592_s29 + $0x1530] sm:$0xf] }
 0x128   : > { %732 = vst [vmem:[%s8596_s30 + $0x450] sm:$0xf] %v731_v20  ;;  %v859_v20 = vld [vmem:[%s8592_s29 + $0x1540] sm:$0xf] }
 0x129   : > { %734 = vst [vmem:[%s8596_s30 + $0x454] sm:$0xf] %v733_v21  ;;  %v861_v21 = vld [vmem:[%s8592_s29 + $0x1550] sm:$0xf] }
 0x12a   : > { %736 = vst [vmem:[%s8596_s30 + $0x458] sm:$0xf] %v735_v22  ;;  %v863_v22 = vld [vmem:[%s8592_s29 + $0x1560] sm:$0xf] }
 0x12b   : > { %738 = vst [vmem:[%s8596_s30 + $0x45c] sm:$0xf] %v737_v23  ;;  %v865_v23 = vld [vmem:[%s8592_s29 + $0x1570] sm:$0xf] }
 0x12c   : > { %740 = vst [vmem:[%s8596_s30 + $0x460] sm:$0xf] %v739_v24  ;;  %v867_v24 = vld [vmem:[%s8592_s29 + $0x1580] sm:$0xf] }
 0x12d   : > { %742 = vst [vmem:[%s8596_s30 + $0x464] sm:$0xf] %v741_v25  ;;  %v869_v25 = vld [vmem:[%s8592_s29 + $0x1590] sm:$0xf] }
 0x12e   : > { %744 = vst [vmem:[%s8596_s30 + $0x468] sm:$0xf] %v743_v26  ;;  %v871_v26 = vld [vmem:[%s8592_s29 + $0x15a0] sm:$0xf] }
 0x12f   : > { %746 = vst [vmem:[%s8596_s30 + $0x46c] sm:$0xf] %v745_v27  ;;  %v873_v27 = vld [vmem:[%s8592_s29 + $0x15b0] sm:$0xf] }
 0x130   : > { %748 = vst [vmem:[%s8596_s30 + $0x470] sm:$0xf] %v747_v28  ;;  %v875_v28 = vld [vmem:[%s8592_s29 + $0x15c0] sm:$0xf] }
 0x131   : > { %750 = vst [vmem:[%s8596_s30 + $0x474] sm:$0xf] %v749_v29  ;;  %v877_v29 = vld [vmem:[%s8592_s29 + $0x15d0] sm:$0xf] }
 0x132   : > { %752 = vst [vmem:[%s8596_s30 + $0x478] sm:$0xf] %v751_v30  ;;  %v879_v30 = vld [vmem:[%s8592_s29 + $0x15e0] sm:$0xf] }
 0x133   : > { %754 = vst [vmem:[%s8596_s30 + $0x47c] sm:$0xf] %v753_v31  ;;  %v881_v31 = vld [vmem:[%s8592_s29 + $0x15f0] sm:$0xf] }
 0x134   : > { %756 = vst [vmem:[%s8596_s30 + $0x480] sm:$0xf] %v755_v32  ;;  %v883_v32 = vld [vmem:[%s8592_s29 + $0x1600] sm:$0xf] }
 0x135   : > { %758 = vst [vmem:[%s8596_s30 + $0x484] sm:$0xf] %v757_v33  ;;  %v885_v33 = vld [vmem:[%s8592_s29 + $0x1610] sm:$0xf] }
 0x136   : > { %760 = vst [vmem:[%s8596_s30 + $0x488] sm:$0xf] %v759_v34  ;;  %v887_v34 = vld [vmem:[%s8592_s29 + $0x1620] sm:$0xf] }
 0x137   : > { %762 = vst [vmem:[%s8596_s30 + $0x48c] sm:$0xf] %v761_v35  ;;  %v889_v35 = vld [vmem:[%s8592_s29 + $0x1630] sm:$0xf] }
 0x138   : > { %764 = vst [vmem:[%s8596_s30 + $0x490] sm:$0xf] %v763_v36  ;;  %v891_v36 = vld [vmem:[%s8592_s29 + $0x1640] sm:$0xf] }
 0x139   : > { %766 = vst [vmem:[%s8596_s30 + $0x494] sm:$0xf] %v765_v37  ;;  %v893_v37 = vld [vmem:[%s8592_s29 + $0x1650] sm:$0xf] }
 0x13a   : > { %768 = vst [vmem:[%s8596_s30 + $0x498] sm:$0xf] %v767_v38  ;;  %v895_v38 = vld [vmem:[%s8592_s29 + $0x1660] sm:$0xf] }
 0x13b   : > { %770 = vst [vmem:[%s8596_s30 + $0x49c] sm:$0xf] %v769_v39  ;;  %v897_v39 = vld [vmem:[%s8592_s29 + $0x1670] sm:$0xf] }
 0x13c   : > { %772 = vst [vmem:[%s8596_s30 + $0x4a0] sm:$0xf] %v771_v40  ;;  %v899_v40 = vld [vmem:[%s8592_s29 + $0x1680] sm:$0xf] }
 0x13d   : > { %774 = vst [vmem:[%s8596_s30 + $0x4a4] sm:$0xf] %v773_v41  ;;  %v901_v41 = vld [vmem:[%s8592_s29 + $0x1690] sm:$0xf] }
 0x13e   : > { %776 = vst [vmem:[%s8596_s30 + $0x4a8] sm:$0xf] %v775_v42  ;;  %v903_v42 = vld [vmem:[%s8592_s29 + $0x16a0] sm:$0xf] }
 0x13f   : > { %778 = vst [vmem:[%s8596_s30 + $0x4ac] sm:$0xf] %v777_v43  ;;  %v905_v43 = vld [vmem:[%s8592_s29 + $0x16b0] sm:$0xf] }
 0x140   : > { %780 = vst [vmem:[%s8596_s30 + $0x4b0] sm:$0xf] %v779_v44  ;;  %v907_v44 = vld [vmem:[%s8592_s29 + $0x16c0] sm:$0xf] }
 0x141   : > { %782 = vst [vmem:[%s8596_s30 + $0x4b4] sm:$0xf] %v781_v45  ;;  %v909_v45 = vld [vmem:[%s8592_s29 + $0x16d0] sm:$0xf] }
 0x142   : > { %784 = vst [vmem:[%s8596_s30 + $0x4b8] sm:$0xf] %v783_v46  ;;  %v911_v46 = vld [vmem:[%s8592_s29 + $0x16e0] sm:$0xf] }
 0x143   : > { %786 = vst [vmem:[%s8596_s30 + $0x4bc] sm:$0xf] %v785_v47  ;;  %v913_v47 = vld [vmem:[%s8592_s29 + $0x16f0] sm:$0xf] }
 0x144   : > { %788 = vst [vmem:[%s8596_s30 + $0x4c0] sm:$0xf] %v787_v48  ;;  %v915_v48 = vld [vmem:[%s8592_s29 + $0x1700] sm:$0xf] }
 0x145   : > { %790 = vst [vmem:[%s8596_s30 + $0x4c4] sm:$0xf] %v789_v49  ;;  %v917_v49 = vld [vmem:[%s8592_s29 + $0x1710] sm:$0xf] }
 0x146   : > { %792 = vst [vmem:[%s8596_s30 + $0x4c8] sm:$0xf] %v791_v50  ;;  %v919_v50 = vld [vmem:[%s8592_s29 + $0x1720] sm:$0xf] }
 0x147   : > { %794 = vst [vmem:[%s8596_s30 + $0x4cc] sm:$0xf] %v793_v51  ;;  %v921_v51 = vld [vmem:[%s8592_s29 + $0x1730] sm:$0xf] }
 0x148   : > { %796 = vst [vmem:[%s8596_s30 + $0x4d0] sm:$0xf] %v795_v52  ;;  %v923_v52 = vld [vmem:[%s8592_s29 + $0x1740] sm:$0xf] }
 0x149   : > { %798 = vst [vmem:[%s8596_s30 + $0x4d4] sm:$0xf] %v797_v53  ;;  %v925_v53 = vld [vmem:[%s8592_s29 + $0x1750] sm:$0xf] }
 0x14a   : > { %800 = vst [vmem:[%s8596_s30 + $0x4d8] sm:$0xf] %v799_v54  ;;  %v927_v54 = vld [vmem:[%s8592_s29 + $0x1760] sm:$0xf] }
 0x14b   : > { %802 = vst [vmem:[%s8596_s30 + $0x4dc] sm:$0xf] %v801_v55  ;;  %v929_v55 = vld [vmem:[%s8592_s29 + $0x1770] sm:$0xf] }
 0x14c   : > { %804 = vst [vmem:[%s8596_s30 + $0x4e0] sm:$0xf] %v803_v56  ;;  %v931_v56 = vld [vmem:[%s8592_s29 + $0x1780] sm:$0xf] }
 0x14d   : > { %806 = vst [vmem:[%s8596_s30 + $0x4e4] sm:$0xf] %v805_v57  ;;  %v933_v57 = vld [vmem:[%s8592_s29 + $0x1790] sm:$0xf] }
 0x14e   : > { %808 = vst [vmem:[%s8596_s30 + $0x4e8] sm:$0xf] %v807_v58  ;;  %v935_v58 = vld [vmem:[%s8592_s29 + $0x17a0] sm:$0xf] }
 0x14f   : > { %810 = vst [vmem:[%s8596_s30 + $0x4ec] sm:$0xf] %v809_v59  ;;  %v937_v59 = vld [vmem:[%s8592_s29 + $0x17b0] sm:$0xf] }
 0x150   : > { %812 = vst [vmem:[%s8596_s30 + $0x4f0] sm:$0xf] %v811_v60  ;;  %v939_v60 = vld [vmem:[%s8592_s29 + $0x17c0] sm:$0xf] }
 0x151   : > { %814 = vst [vmem:[%s8596_s30 + $0x4f4] sm:$0xf] %v813_v61  ;;  %v941_v61 = vld [vmem:[%s8592_s29 + $0x17d0] sm:$0xf] }
 0x152   : > { %816 = vst [vmem:[%s8596_s30 + $0x4f8] sm:$0xf] %v815_v62  ;;  %v943_v62 = vld [vmem:[%s8592_s29 + $0x17e0] sm:$0xf] }
 0x153   : > { %818 = vst [vmem:[%s8596_s30 + $0x4fc] sm:$0xf] %v817_v63  ;;  %v945_v63 = vld [vmem:[%s8592_s29 + $0x17f0] sm:$0xf] }
 0x154   : > { %820 = vst [vmem:[%s8596_s30 + $0x500] sm:$0xf] %v819_v0  ;;  %v947_v0 = vld [vmem:[%s8592_s29 + $0x1800] sm:$0xf] }
 0x155   : > { %822 = vst [vmem:[%s8596_s30 + $0x504] sm:$0xf] %v821_v1  ;;  %v949_v1 = vld [vmem:[%s8592_s29 + $0x1810] sm:$0xf] }
 0x156   : > { %824 = vst [vmem:[%s8596_s30 + $0x508] sm:$0xf] %v823_v2  ;;  %v951_v2 = vld [vmem:[%s8592_s29 + $0x1820] sm:$0xf] }
 0x157   : > { %826 = vst [vmem:[%s8596_s30 + $0x50c] sm:$0xf] %v825_v3  ;;  %v953_v3 = vld [vmem:[%s8592_s29 + $0x1830] sm:$0xf] }
 0x158   : > { %828 = vst [vmem:[%s8596_s30 + $0x510] sm:$0xf] %v827_v4  ;;  %v955_v4 = vld [vmem:[%s8592_s29 + $0x1840] sm:$0xf] }
 0x159   : > { %830 = vst [vmem:[%s8596_s30 + $0x514] sm:$0xf] %v829_v5  ;;  %v957_v5 = vld [vmem:[%s8592_s29 + $0x1850] sm:$0xf] }
 0x15a   : > { %832 = vst [vmem:[%s8596_s30 + $0x518] sm:$0xf] %v831_v6  ;;  %v959_v6 = vld [vmem:[%s8592_s29 + $0x1860] sm:$0xf] }
 0x15b   : > { %834 = vst [vmem:[%s8596_s30 + $0x51c] sm:$0xf] %v833_v7  ;;  %v961_v7 = vld [vmem:[%s8592_s29 + $0x1870] sm:$0xf] }
 0x15c   : > { %836 = vst [vmem:[%s8596_s30 + $0x520] sm:$0xf] %v835_v8  ;;  %v963_v8 = vld [vmem:[%s8592_s29 + $0x1880] sm:$0xf] }
 0x15d   : > { %838 = vst [vmem:[%s8596_s30 + $0x524] sm:$0xf] %v837_v9  ;;  %v965_v9 = vld [vmem:[%s8592_s29 + $0x1890] sm:$0xf] }
 0x15e   : > { %840 = vst [vmem:[%s8596_s30 + $0x528] sm:$0xf] %v839_v10  ;;  %v967_v10 = vld [vmem:[%s8592_s29 + $0x18a0] sm:$0xf] }
 0x15f   : > { %842 = vst [vmem:[%s8596_s30 + $0x52c] sm:$0xf] %v841_v11  ;;  %v969_v11 = vld [vmem:[%s8592_s29 + $0x18b0] sm:$0xf] }
 0x160   : > { %844 = vst [vmem:[%s8596_s30 + $0x530] sm:$0xf] %v843_v12  ;;  %v971_v12 = vld [vmem:[%s8592_s29 + $0x18c0] sm:$0xf] }
 0x161   : > { %846 = vst [vmem:[%s8596_s30 + $0x534] sm:$0xf] %v845_v13  ;;  %v973_v13 = vld [vmem:[%s8592_s29 + $0x18d0] sm:$0xf] }
 0x162   : > { %848 = vst [vmem:[%s8596_s30 + $0x538] sm:$0xf] %v847_v14  ;;  %v975_v14 = vld [vmem:[%s8592_s29 + $0x18e0] sm:$0xf] }
 0x163   : > { %850 = vst [vmem:[%s8596_s30 + $0x53c] sm:$0xf] %v849_v15  ;;  %v977_v15 = vld [vmem:[%s8592_s29 + $0x18f0] sm:$0xf] }
 0x164   : > { %852 = vst [vmem:[%s8596_s30 + $0x540] sm:$0xf] %v851_v16  ;;  %v979_v16 = vld [vmem:[%s8592_s29 + $0x1900] sm:$0xf] }
 0x165   : > { %854 = vst [vmem:[%s8596_s30 + $0x544] sm:$0xf] %v853_v17  ;;  %v981_v17 = vld [vmem:[%s8592_s29 + $0x1910] sm:$0xf] }
 0x166   : > { %856 = vst [vmem:[%s8596_s30 + $0x548] sm:$0xf] %v855_v18  ;;  %v983_v18 = vld [vmem:[%s8592_s29 + $0x1920] sm:$0xf] }
 0x167   : > { %858 = vst [vmem:[%s8596_s30 + $0x54c] sm:$0xf] %v857_v19  ;;  %v985_v19 = vld [vmem:[%s8592_s29 + $0x1930] sm:$0xf] }
 0x168   : > { %860 = vst [vmem:[%s8596_s30 + $0x550] sm:$0xf] %v859_v20  ;;  %v987_v20 = vld [vmem:[%s8592_s29 + $0x1940] sm:$0xf] }
 0x169   : > { %862 = vst [vmem:[%s8596_s30 + $0x554] sm:$0xf] %v861_v21  ;;  %v989_v21 = vld [vmem:[%s8592_s29 + $0x1950] sm:$0xf] }
 0x16a   : > { %864 = vst [vmem:[%s8596_s30 + $0x558] sm:$0xf] %v863_v22  ;;  %v991_v22 = vld [vmem:[%s8592_s29 + $0x1960] sm:$0xf] }
 0x16b   : > { %866 = vst [vmem:[%s8596_s30 + $0x55c] sm:$0xf] %v865_v23  ;;  %v993_v23 = vld [vmem:[%s8592_s29 + $0x1970] sm:$0xf] }
 0x16c   : > { %868 = vst [vmem:[%s8596_s30 + $0x560] sm:$0xf] %v867_v24  ;;  %v995_v24 = vld [vmem:[%s8592_s29 + $0x1980] sm:$0xf] }
 0x16d   : > { %870 = vst [vmem:[%s8596_s30 + $0x564] sm:$0xf] %v869_v25  ;;  %v997_v25 = vld [vmem:[%s8592_s29 + $0x1990] sm:$0xf] }
 0x16e   : > { %872 = vst [vmem:[%s8596_s30 + $0x568] sm:$0xf] %v871_v26  ;;  %v999_v26 = vld [vmem:[%s8592_s29 + $0x19a0] sm:$0xf] }
 0x16f   : > { %874 = vst [vmem:[%s8596_s30 + $0x56c] sm:$0xf] %v873_v27  ;;  %v1001_v27 = vld [vmem:[%s8592_s29 + $0x19b0] sm:$0xf] }
 0x170   : > { %876 = vst [vmem:[%s8596_s30 + $0x570] sm:$0xf] %v875_v28  ;;  %v1003_v28 = vld [vmem:[%s8592_s29 + $0x19c0] sm:$0xf] }
 0x171   : > { %878 = vst [vmem:[%s8596_s30 + $0x574] sm:$0xf] %v877_v29  ;;  %v1005_v29 = vld [vmem:[%s8592_s29 + $0x19d0] sm:$0xf] }
 0x172   : > { %880 = vst [vmem:[%s8596_s30 + $0x578] sm:$0xf] %v879_v30  ;;  %v1007_v30 = vld [vmem:[%s8592_s29 + $0x19e0] sm:$0xf] }
 0x173   : > { %882 = vst [vmem:[%s8596_s30 + $0x57c] sm:$0xf] %v881_v31  ;;  %v1009_v31 = vld [vmem:[%s8592_s29 + $0x19f0] sm:$0xf] }
 0x174   : > { %884 = vst [vmem:[%s8596_s30 + $0x580] sm:$0xf] %v883_v32  ;;  %v1011_v32 = vld [vmem:[%s8592_s29 + $0x1a00] sm:$0xf] }
 0x175   : > { %886 = vst [vmem:[%s8596_s30 + $0x584] sm:$0xf] %v885_v33  ;;  %v1013_v33 = vld [vmem:[%s8592_s29 + $0x1a10] sm:$0xf] }
 0x176   : > { %888 = vst [vmem:[%s8596_s30 + $0x588] sm:$0xf] %v887_v34  ;;  %v1015_v34 = vld [vmem:[%s8592_s29 + $0x1a20] sm:$0xf] }
 0x177   : > { %890 = vst [vmem:[%s8596_s30 + $0x58c] sm:$0xf] %v889_v35  ;;  %v1017_v35 = vld [vmem:[%s8592_s29 + $0x1a30] sm:$0xf] }
 0x178   : > { %892 = vst [vmem:[%s8596_s30 + $0x590] sm:$0xf] %v891_v36  ;;  %v1019_v36 = vld [vmem:[%s8592_s29 + $0x1a40] sm:$0xf] }
 0x179   : > { %894 = vst [vmem:[%s8596_s30 + $0x594] sm:$0xf] %v893_v37  ;;  %v1021_v37 = vld [vmem:[%s8592_s29 + $0x1a50] sm:$0xf] }
 0x17a   : > { %896 = vst [vmem:[%s8596_s30 + $0x598] sm:$0xf] %v895_v38  ;;  %v1023_v38 = vld [vmem:[%s8592_s29 + $0x1a60] sm:$0xf] }
 0x17b   : > { %898 = vst [vmem:[%s8596_s30 + $0x59c] sm:$0xf] %v897_v39  ;;  %v1025_v39 = vld [vmem:[%s8592_s29 + $0x1a70] sm:$0xf] }
 0x17c   : > { %900 = vst [vmem:[%s8596_s30 + $0x5a0] sm:$0xf] %v899_v40  ;;  %v1027_v40 = vld [vmem:[%s8592_s29 + $0x1a80] sm:$0xf] }
 0x17d   : > { %902 = vst [vmem:[%s8596_s30 + $0x5a4] sm:$0xf] %v901_v41  ;;  %v1029_v41 = vld [vmem:[%s8592_s29 + $0x1a90] sm:$0xf] }
 0x17e   : > { %904 = vst [vmem:[%s8596_s30 + $0x5a8] sm:$0xf] %v903_v42  ;;  %v1031_v42 = vld [vmem:[%s8592_s29 + $0x1aa0] sm:$0xf] }
 0x17f   : > { %906 = vst [vmem:[%s8596_s30 + $0x5ac] sm:$0xf] %v905_v43  ;;  %v1033_v43 = vld [vmem:[%s8592_s29 + $0x1ab0] sm:$0xf] }
 0x180   : > { %908 = vst [vmem:[%s8596_s30 + $0x5b0] sm:$0xf] %v907_v44  ;;  %v1035_v44 = vld [vmem:[%s8592_s29 + $0x1ac0] sm:$0xf] }
 0x181   : > { %910 = vst [vmem:[%s8596_s30 + $0x5b4] sm:$0xf] %v909_v45  ;;  %v1037_v45 = vld [vmem:[%s8592_s29 + $0x1ad0] sm:$0xf] }
 0x182   : > { %912 = vst [vmem:[%s8596_s30 + $0x5b8] sm:$0xf] %v911_v46  ;;  %v1039_v46 = vld [vmem:[%s8592_s29 + $0x1ae0] sm:$0xf] }
 0x183   : > { %914 = vst [vmem:[%s8596_s30 + $0x5bc] sm:$0xf] %v913_v47  ;;  %v1041_v47 = vld [vmem:[%s8592_s29 + $0x1af0] sm:$0xf] }
 0x184   : > { %916 = vst [vmem:[%s8596_s30 + $0x5c0] sm:$0xf] %v915_v48  ;;  %v1043_v48 = vld [vmem:[%s8592_s29 + $0x1b00] sm:$0xf] }
 0x185   : > { %918 = vst [vmem:[%s8596_s30 + $0x5c4] sm:$0xf] %v917_v49  ;;  %v1045_v49 = vld [vmem:[%s8592_s29 + $0x1b10] sm:$0xf] }
 0x186   : > { %920 = vst [vmem:[%s8596_s30 + $0x5c8] sm:$0xf] %v919_v50  ;;  %v1047_v50 = vld [vmem:[%s8592_s29 + $0x1b20] sm:$0xf] }
 0x187   : > { %922 = vst [vmem:[%s8596_s30 + $0x5cc] sm:$0xf] %v921_v51  ;;  %v1049_v51 = vld [vmem:[%s8592_s29 + $0x1b30] sm:$0xf] }
 0x188   : > { %924 = vst [vmem:[%s8596_s30 + $0x5d0] sm:$0xf] %v923_v52  ;;  %v1051_v52 = vld [vmem:[%s8592_s29 + $0x1b40] sm:$0xf] }
 0x189   : > { %926 = vst [vmem:[%s8596_s30 + $0x5d4] sm:$0xf] %v925_v53  ;;  %v1053_v53 = vld [vmem:[%s8592_s29 + $0x1b50] sm:$0xf] }
 0x18a   : > { %928 = vst [vmem:[%s8596_s30 + $0x5d8] sm:$0xf] %v927_v54  ;;  %v1055_v54 = vld [vmem:[%s8592_s29 + $0x1b60] sm:$0xf] }
 0x18b   : > { %930 = vst [vmem:[%s8596_s30 + $0x5dc] sm:$0xf] %v929_v55  ;;  %v1057_v55 = vld [vmem:[%s8592_s29 + $0x1b70] sm:$0xf] }
 0x18c   : > { %932 = vst [vmem:[%s8596_s30 + $0x5e0] sm:$0xf] %v931_v56  ;;  %v1059_v56 = vld [vmem:[%s8592_s29 + $0x1b80] sm:$0xf] }
 0x18d   : > { %934 = vst [vmem:[%s8596_s30 + $0x5e4] sm:$0xf] %v933_v57  ;;  %v1061_v57 = vld [vmem:[%s8592_s29 + $0x1b90] sm:$0xf] }
 0x18e   : > { %936 = vst [vmem:[%s8596_s30 + $0x5e8] sm:$0xf] %v935_v58  ;;  %v1063_v58 = vld [vmem:[%s8592_s29 + $0x1ba0] sm:$0xf] }
 0x18f   : > { %938 = vst [vmem:[%s8596_s30 + $0x5ec] sm:$0xf] %v937_v59  ;;  %v1065_v59 = vld [vmem:[%s8592_s29 + $0x1bb0] sm:$0xf] }
 0x190   : > { %940 = vst [vmem:[%s8596_s30 + $0x5f0] sm:$0xf] %v939_v60  ;;  %v1067_v60 = vld [vmem:[%s8592_s29 + $0x1bc0] sm:$0xf] }
 0x191   : > { %942 = vst [vmem:[%s8596_s30 + $0x5f4] sm:$0xf] %v941_v61  ;;  %v1069_v61 = vld [vmem:[%s8592_s29 + $0x1bd0] sm:$0xf] }
 0x192   : > { %944 = vst [vmem:[%s8596_s30 + $0x5f8] sm:$0xf] %v943_v62  ;;  %v1071_v62 = vld [vmem:[%s8592_s29 + $0x1be0] sm:$0xf] }
 0x193   : > { %946 = vst [vmem:[%s8596_s30 + $0x5fc] sm:$0xf] %v945_v63  ;;  %v1073_v63 = vld [vmem:[%s8592_s29 + $0x1bf0] sm:$0xf] }
 0x194   : > { %948 = vst [vmem:[%s8596_s30 + $0x600] sm:$0xf] %v947_v0  ;;  %v1075_v0 = vld [vmem:[%s8592_s29 + $0x1c00] sm:$0xf] }
 0x195   : > { %950 = vst [vmem:[%s8596_s30 + $0x604] sm:$0xf] %v949_v1  ;;  %v1077_v1 = vld [vmem:[%s8592_s29 + $0x1c10] sm:$0xf] }
 0x196   : > { %952 = vst [vmem:[%s8596_s30 + $0x608] sm:$0xf] %v951_v2  ;;  %v1079_v2 = vld [vmem:[%s8592_s29 + $0x1c20] sm:$0xf] }
 0x197   : > { %954 = vst [vmem:[%s8596_s30 + $0x60c] sm:$0xf] %v953_v3  ;;  %v1081_v3 = vld [vmem:[%s8592_s29 + $0x1c30] sm:$0xf] }
 0x198   : > { %956 = vst [vmem:[%s8596_s30 + $0x610] sm:$0xf] %v955_v4  ;;  %v1083_v4 = vld [vmem:[%s8592_s29 + $0x1c40] sm:$0xf] }
 0x199   : > { %958 = vst [vmem:[%s8596_s30 + $0x614] sm:$0xf] %v957_v5  ;;  %v1085_v5 = vld [vmem:[%s8592_s29 + $0x1c50] sm:$0xf] }
 0x19a   : > { %960 = vst [vmem:[%s8596_s30 + $0x618] sm:$0xf] %v959_v6  ;;  %v1087_v6 = vld [vmem:[%s8592_s29 + $0x1c60] sm:$0xf] }
 0x19b   : > { %962 = vst [vmem:[%s8596_s30 + $0x61c] sm:$0xf] %v961_v7  ;;  %v1089_v7 = vld [vmem:[%s8592_s29 + $0x1c70] sm:$0xf] }
 0x19c   : > { %964 = vst [vmem:[%s8596_s30 + $0x620] sm:$0xf] %v963_v8  ;;  %v1091_v8 = vld [vmem:[%s8592_s29 + $0x1c80] sm:$0xf] }
 0x19d   : > { %966 = vst [vmem:[%s8596_s30 + $0x624] sm:$0xf] %v965_v9  ;;  %v1093_v9 = vld [vmem:[%s8592_s29 + $0x1c90] sm:$0xf] }
 0x19e   : > { %968 = vst [vmem:[%s8596_s30 + $0x628] sm:$0xf] %v967_v10  ;;  %v1095_v10 = vld [vmem:[%s8592_s29 + $0x1ca0] sm:$0xf] }
 0x19f   : > { %970 = vst [vmem:[%s8596_s30 + $0x62c] sm:$0xf] %v969_v11  ;;  %v1097_v11 = vld [vmem:[%s8592_s29 + $0x1cb0] sm:$0xf] }
 0x1a0   : > { %972 = vst [vmem:[%s8596_s30 + $0x630] sm:$0xf] %v971_v12  ;;  %v1099_v12 = vld [vmem:[%s8592_s29 + $0x1cc0] sm:$0xf] }
 0x1a1   : > { %974 = vst [vmem:[%s8596_s30 + $0x634] sm:$0xf] %v973_v13  ;;  %v1101_v13 = vld [vmem:[%s8592_s29 + $0x1cd0] sm:$0xf] }
 0x1a2   : > { %976 = vst [vmem:[%s8596_s30 + $0x638] sm:$0xf] %v975_v14  ;;  %v1103_v14 = vld [vmem:[%s8592_s29 + $0x1ce0] sm:$0xf] }
 0x1a3   : > { %978 = vst [vmem:[%s8596_s30 + $0x63c] sm:$0xf] %v977_v15  ;;  %v1105_v15 = vld [vmem:[%s8592_s29 + $0x1cf0] sm:$0xf] }
 0x1a4   : > { %980 = vst [vmem:[%s8596_s30 + $0x640] sm:$0xf] %v979_v16  ;;  %v1107_v16 = vld [vmem:[%s8592_s29 + $0x1d00] sm:$0xf] }
 0x1a5   : > { %982 = vst [vmem:[%s8596_s30 + $0x644] sm:$0xf] %v981_v17  ;;  %v1109_v17 = vld [vmem:[%s8592_s29 + $0x1d10] sm:$0xf] }
 0x1a6   : > { %984 = vst [vmem:[%s8596_s30 + $0x648] sm:$0xf] %v983_v18  ;;  %v1111_v18 = vld [vmem:[%s8592_s29 + $0x1d20] sm:$0xf] }
 0x1a7   : > { %986 = vst [vmem:[%s8596_s30 + $0x64c] sm:$0xf] %v985_v19  ;;  %v1113_v19 = vld [vmem:[%s8592_s29 + $0x1d30] sm:$0xf] }
 0x1a8   : > { %988 = vst [vmem:[%s8596_s30 + $0x650] sm:$0xf] %v987_v20  ;;  %v1115_v20 = vld [vmem:[%s8592_s29 + $0x1d40] sm:$0xf] }
 0x1a9   : > { %990 = vst [vmem:[%s8596_s30 + $0x654] sm:$0xf] %v989_v21  ;;  %v1117_v21 = vld [vmem:[%s8592_s29 + $0x1d50] sm:$0xf] }
 0x1aa   : > { %992 = vst [vmem:[%s8596_s30 + $0x658] sm:$0xf] %v991_v22  ;;  %v1119_v22 = vld [vmem:[%s8592_s29 + $0x1d60] sm:$0xf] }
 0x1ab   : > { %994 = vst [vmem:[%s8596_s30 + $0x65c] sm:$0xf] %v993_v23  ;;  %v1121_v23 = vld [vmem:[%s8592_s29 + $0x1d70] sm:$0xf] }
 0x1ac   : > { %996 = vst [vmem:[%s8596_s30 + $0x660] sm:$0xf] %v995_v24  ;;  %v1123_v24 = vld [vmem:[%s8592_s29 + $0x1d80] sm:$0xf] }
 0x1ad   : > { %998 = vst [vmem:[%s8596_s30 + $0x664] sm:$0xf] %v997_v25  ;;  %v1125_v25 = vld [vmem:[%s8592_s29 + $0x1d90] sm:$0xf] }
 0x1ae   : > { %1000 = vst [vmem:[%s8596_s30 + $0x668] sm:$0xf] %v999_v26  ;;  %v1127_v26 = vld [vmem:[%s8592_s29 + $0x1da0] sm:$0xf] }
 0x1af   : > { %1002 = vst [vmem:[%s8596_s30 + $0x66c] sm:$0xf] %v1001_v27  ;;  %v1129_v27 = vld [vmem:[%s8592_s29 + $0x1db0] sm:$0xf] }
 0x1b0   : > { %1004 = vst [vmem:[%s8596_s30 + $0x670] sm:$0xf] %v1003_v28  ;;  %v1131_v28 = vld [vmem:[%s8592_s29 + $0x1dc0] sm:$0xf] }
 0x1b1   : > { %1006 = vst [vmem:[%s8596_s30 + $0x674] sm:$0xf] %v1005_v29  ;;  %v1133_v29 = vld [vmem:[%s8592_s29 + $0x1dd0] sm:$0xf] }
 0x1b2   : > { %1008 = vst [vmem:[%s8596_s30 + $0x678] sm:$0xf] %v1007_v30  ;;  %v1135_v30 = vld [vmem:[%s8592_s29 + $0x1de0] sm:$0xf] }
 0x1b3   : > { %1010 = vst [vmem:[%s8596_s30 + $0x67c] sm:$0xf] %v1009_v31  ;;  %v1137_v31 = vld [vmem:[%s8592_s29 + $0x1df0] sm:$0xf] }
 0x1b4   : > { %1012 = vst [vmem:[%s8596_s30 + $0x680] sm:$0xf] %v1011_v32  ;;  %v1139_v32 = vld [vmem:[%s8592_s29 + $0x1e00] sm:$0xf] }
 0x1b5   : > { %1014 = vst [vmem:[%s8596_s30 + $0x684] sm:$0xf] %v1013_v33  ;;  %v1141_v33 = vld [vmem:[%s8592_s29 + $0x1e10] sm:$0xf] }
 0x1b6   : > { %1016 = vst [vmem:[%s8596_s30 + $0x688] sm:$0xf] %v1015_v34  ;;  %v1143_v34 = vld [vmem:[%s8592_s29 + $0x1e20] sm:$0xf] }
 0x1b7   : > { %1018 = vst [vmem:[%s8596_s30 + $0x68c] sm:$0xf] %v1017_v35  ;;  %v1145_v35 = vld [vmem:[%s8592_s29 + $0x1e30] sm:$0xf] }
 0x1b8   : > { %1020 = vst [vmem:[%s8596_s30 + $0x690] sm:$0xf] %v1019_v36  ;;  %v1147_v36 = vld [vmem:[%s8592_s29 + $0x1e40] sm:$0xf] }
 0x1b9   : > { %1022 = vst [vmem:[%s8596_s30 + $0x694] sm:$0xf] %v1021_v37  ;;  %v1149_v37 = vld [vmem:[%s8592_s29 + $0x1e50] sm:$0xf] }
 0x1ba   : > { %1024 = vst [vmem:[%s8596_s30 + $0x698] sm:$0xf] %v1023_v38  ;;  %v1151_v38 = vld [vmem:[%s8592_s29 + $0x1e60] sm:$0xf] }
 0x1bb   : > { %1026 = vst [vmem:[%s8596_s30 + $0x69c] sm:$0xf] %v1025_v39  ;;  %v1153_v39 = vld [vmem:[%s8592_s29 + $0x1e70] sm:$0xf] }
 0x1bc   : > { %1028 = vst [vmem:[%s8596_s30 + $0x6a0] sm:$0xf] %v1027_v40  ;;  %v1155_v40 = vld [vmem:[%s8592_s29 + $0x1e80] sm:$0xf] }
 0x1bd   : > { %1030 = vst [vmem:[%s8596_s30 + $0x6a4] sm:$0xf] %v1029_v41  ;;  %v1157_v41 = vld [vmem:[%s8592_s29 + $0x1e90] sm:$0xf] }
 0x1be   : > { %1032 = vst [vmem:[%s8596_s30 + $0x6a8] sm:$0xf] %v1031_v42  ;;  %v1159_v42 = vld [vmem:[%s8592_s29 + $0x1ea0] sm:$0xf] }
 0x1bf   : > { %1034 = vst [vmem:[%s8596_s30 + $0x6ac] sm:$0xf] %v1033_v43  ;;  %v1161_v43 = vld [vmem:[%s8592_s29 + $0x1eb0] sm:$0xf] }
 0x1c0   : > { %1036 = vst [vmem:[%s8596_s30 + $0x6b0] sm:$0xf] %v1035_v44  ;;  %v1163_v44 = vld [vmem:[%s8592_s29 + $0x1ec0] sm:$0xf] }
 0x1c1   : > { %1038 = vst [vmem:[%s8596_s30 + $0x6b4] sm:$0xf] %v1037_v45  ;;  %v1165_v45 = vld [vmem:[%s8592_s29 + $0x1ed0] sm:$0xf] }
 0x1c2   : > { %1040 = vst [vmem:[%s8596_s30 + $0x6b8] sm:$0xf] %v1039_v46  ;;  %v1167_v46 = vld [vmem:[%s8592_s29 + $0x1ee0] sm:$0xf] }
 0x1c3   : > { %1042 = vst [vmem:[%s8596_s30 + $0x6bc] sm:$0xf] %v1041_v47  ;;  %v1169_v47 = vld [vmem:[%s8592_s29 + $0x1ef0] sm:$0xf] }
 0x1c4   : > { %1044 = vst [vmem:[%s8596_s30 + $0x6c0] sm:$0xf] %v1043_v48  ;;  %v1171_v48 = vld [vmem:[%s8592_s29 + $0x1f00] sm:$0xf] }
 0x1c5   : > { %1046 = vst [vmem:[%s8596_s30 + $0x6c4] sm:$0xf] %v1045_v49  ;;  %v1173_v49 = vld [vmem:[%s8592_s29 + $0x1f10] sm:$0xf] }
 0x1c6   : > { %1048 = vst [vmem:[%s8596_s30 + $0x6c8] sm:$0xf] %v1047_v50  ;;  %v1175_v50 = vld [vmem:[%s8592_s29 + $0x1f20] sm:$0xf] }
 0x1c7   : > { %1050 = vst [vmem:[%s8596_s30 + $0x6cc] sm:$0xf] %v1049_v51  ;;  %v1177_v51 = vld [vmem:[%s8592_s29 + $0x1f30] sm:$0xf] }
 0x1c8   : > { %1052 = vst [vmem:[%s8596_s30 + $0x6d0] sm:$0xf] %v1051_v52  ;;  %v1179_v52 = vld [vmem:[%s8592_s29 + $0x1f40] sm:$0xf] }
 0x1c9   : > { %1054 = vst [vmem:[%s8596_s30 + $0x6d4] sm:$0xf] %v1053_v53  ;;  %v1181_v53 = vld [vmem:[%s8592_s29 + $0x1f50] sm:$0xf] }
 0x1ca   : > { %1056 = vst [vmem:[%s8596_s30 + $0x6d8] sm:$0xf] %v1055_v54  ;;  %v1183_v54 = vld [vmem:[%s8592_s29 + $0x1f60] sm:$0xf] }
 0x1cb   : > { %1058 = vst [vmem:[%s8596_s30 + $0x6dc] sm:$0xf] %v1057_v55  ;;  %v1185_v55 = vld [vmem:[%s8592_s29 + $0x1f70] sm:$0xf] }
 0x1cc   : > { %1060 = vst [vmem:[%s8596_s30 + $0x6e0] sm:$0xf] %v1059_v56  ;;  %v1187_v56 = vld [vmem:[%s8592_s29 + $0x1f80] sm:$0xf] }
 0x1cd   : > { %1062 = vst [vmem:[%s8596_s30 + $0x6e4] sm:$0xf] %v1061_v57  ;;  %v1189_v57 = vld [vmem:[%s8592_s29 + $0x1f90] sm:$0xf] }
 0x1ce   : > { %1064 = vst [vmem:[%s8596_s30 + $0x6e8] sm:$0xf] %v1063_v58  ;;  %v1191_v58 = vld [vmem:[%s8592_s29 + $0x1fa0] sm:$0xf] }
 0x1cf   : > { %1066 = vst [vmem:[%s8596_s30 + $0x6ec] sm:$0xf] %v1065_v59  ;;  %v1193_v59 = vld [vmem:[%s8592_s29 + $0x1fb0] sm:$0xf] }
 0x1d0   : > { %1068 = vst [vmem:[%s8596_s30 + $0x6f0] sm:$0xf] %v1067_v60  ;;  %v1195_v60 = vld [vmem:[%s8592_s29 + $0x1fc0] sm:$0xf] }
 0x1d1   : > { %1070 = vst [vmem:[%s8596_s30 + $0x6f4] sm:$0xf] %v1069_v61  ;;  %v1197_v61 = vld [vmem:[%s8592_s29 + $0x1fd0] sm:$0xf] }
 0x1d2   : > { %1072 = vst [vmem:[%s8596_s30 + $0x6f8] sm:$0xf] %v1071_v62  ;;  %v1199_v62 = vld [vmem:[%s8592_s29 + $0x1fe0] sm:$0xf] }
 0x1d3   : > { %1074 = vst [vmem:[%s8596_s30 + $0x6fc] sm:$0xf] %v1073_v63  ;;  %v1201_v63 = vld [vmem:[%s8592_s29 + $0x1ff0] sm:$0xf] }
 0x1d4   : > { %1076 = vst [vmem:[%s8596_s30 + $0x700] sm:$0xf] %v1075_v0 }
 0x1d5   : > { %1078 = vst [vmem:[%s8596_s30 + $0x704] sm:$0xf] %v1077_v1 }
 0x1d6   : > { %1080 = vst [vmem:[%s8596_s30 + $0x708] sm:$0xf] %v1079_v2 }
 0x1d7   : > { %1082 = vst [vmem:[%s8596_s30 + $0x70c] sm:$0xf] %v1081_v3 }
 0x1d8   : > { %1084 = vst [vmem:[%s8596_s30 + $0x710] sm:$0xf] %v1083_v4 }
 0x1d9   : > { %1086 = vst [vmem:[%s8596_s30 + $0x714] sm:$0xf] %v1085_v5 }
 0x1da   : > { %1088 = vst [vmem:[%s8596_s30 + $0x718] sm:$0xf] %v1087_v6 }
 0x1db   : > { %1090 = vst [vmem:[%s8596_s30 + $0x71c] sm:$0xf] %v1089_v7 }
 0x1dc   : > { %1092 = vst [vmem:[%s8596_s30 + $0x720] sm:$0xf] %v1091_v8 }
 0x1dd   : > { %1094 = vst [vmem:[%s8596_s30 + $0x724] sm:$0xf] %v1093_v9 }
 0x1de   : > { %1096 = vst [vmem:[%s8596_s30 + $0x728] sm:$0xf] %v1095_v10 }
 0x1df   : > { %1098 = vst [vmem:[%s8596_s30 + $0x72c] sm:$0xf] %v1097_v11 }
 0x1e0   : > { %1100 = vst [vmem:[%s8596_s30 + $0x730] sm:$0xf] %v1099_v12 }
 0x1e1   : > { %1102 = vst [vmem:[%s8596_s30 + $0x734] sm:$0xf] %v1101_v13 }
 0x1e2   : > { %1104 = vst [vmem:[%s8596_s30 + $0x738] sm:$0xf] %v1103_v14 }
 0x1e3   : > { %1106 = vst [vmem:[%s8596_s30 + $0x73c] sm:$0xf] %v1105_v15 }
 0x1e4   : > { %1108 = vst [vmem:[%s8596_s30 + $0x740] sm:$0xf] %v1107_v16 }
 0x1e5   : > { %1110 = vst [vmem:[%s8596_s30 + $0x744] sm:$0xf] %v1109_v17 }
 0x1e6   : > { %1112 = vst [vmem:[%s8596_s30 + $0x748] sm:$0xf] %v1111_v18 }
 0x1e7   : > { %1114 = vst [vmem:[%s8596_s30 + $0x74c] sm:$0xf] %v1113_v19 }
 0x1e8   : > { %1116 = vst [vmem:[%s8596_s30 + $0x750] sm:$0xf] %v1115_v20 }
 0x1e9   : > { %1118 = vst [vmem:[%s8596_s30 + $0x754] sm:$0xf] %v1117_v21 }
 0x1ea   : > { %1120 = vst [vmem:[%s8596_s30 + $0x758] sm:$0xf] %v1119_v22 }
 0x1eb   : > { %1122 = vst [vmem:[%s8596_s30 + $0x75c] sm:$0xf] %v1121_v23 }
 0x1ec   : > { %1124 = vst [vmem:[%s8596_s30 + $0x760] sm:$0xf] %v1123_v24 }
 0x1ed   : > { %1126 = vst [vmem:[%s8596_s30 + $0x764] sm:$0xf] %v1125_v25 }
 0x1ee   : > { %1128 = vst [vmem:[%s8596_s30 + $0x768] sm:$0xf] %v1127_v26 }
 0x1ef   : > { %1130 = vst [vmem:[%s8596_s30 + $0x76c] sm:$0xf] %v1129_v27 }
 0x1f0   : > { %1132 = vst [vmem:[%s8596_s30 + $0x770] sm:$0xf] %v1131_v28 }
 0x1f1   : > { %1134 = vst [vmem:[%s8596_s30 + $0x774] sm:$0xf] %v1133_v29 }
 0x1f2   : > { %1136 = vst [vmem:[%s8596_s30 + $0x778] sm:$0xf] %v1135_v30 }
 0x1f3   : > { %1138 = vst [vmem:[%s8596_s30 + $0x77c] sm:$0xf] %v1137_v31 }
 0x1f4   : > { %1140 = vst [vmem:[%s8596_s30 + $0x780] sm:$0xf] %v1139_v32 }
 0x1f5   : > { %1142 = vst [vmem:[%s8596_s30 + $0x784] sm:$0xf] %v1141_v33 }
 0x1f6   : > { %1144 = vst [vmem:[%s8596_s30 + $0x788] sm:$0xf] %v1143_v34 }
 0x1f7   : > { %1146 = vst [vmem:[%s8596_s30 + $0x78c] sm:$0xf] %v1145_v35 }
 0x1f8   : > { %1148 = vst [vmem:[%s8596_s30 + $0x790] sm:$0xf] %v1147_v36 }
 0x1f9   : > { %1150 = vst [vmem:[%s8596_s30 + $0x794] sm:$0xf] %v1149_v37 }
 0x1fa   : > { %1152 = vst [vmem:[%s8596_s30 + $0x798] sm:$0xf] %v1151_v38 }
 0x1fb   : > { %1154 = vst [vmem:[%s8596_s30 + $0x79c] sm:$0xf] %v1153_v39 }
 0x1fc   : > { %1156 = vst [vmem:[%s8596_s30 + $0x7a0] sm:$0xf] %v1155_v40 }
 0x1fd   : > { %1158 = vst [vmem:[%s8596_s30 + $0x7a4] sm:$0xf] %v1157_v41 }
 0x1fe   : > { %1160 = vst [vmem:[%s8596_s30 + $0x7a8] sm:$0xf] %v1159_v42 }
 0x1ff   : > { %1162 = vst [vmem:[%s8596_s30 + $0x7ac] sm:$0xf] %v1161_v43 }
 0x200   : > { %1164 = vst [vmem:[%s8596_s30 + $0x7b0] sm:$0xf] %v1163_v44 }
 0x201   : > { %1166 = vst [vmem:[%s8596_s30 + $0x7b4] sm:$0xf] %v1165_v45 }
 0x202   : > { %1168 = vst [vmem:[%s8596_s30 + $0x7b8] sm:$0xf] %v1167_v46 }
 0x203   : > { %1170 = vst [vmem:[%s8596_s30 + $0x7bc] sm:$0xf] %v1169_v47 }
 0x204   : > { %1172 = vst [vmem:[%s8596_s30 + $0x7c0] sm:$0xf] %v1171_v48 }
 0x205   : > { %1174 = vst [vmem:[%s8596_s30 + $0x7c4] sm:$0xf] %v1173_v49 }
 0x206   : > { %1176 = vst [vmem:[%s8596_s30 + $0x7c8] sm:$0xf] %v1175_v50 }
 0x207   : > { %1178 = vst [vmem:[%s8596_s30 + $0x7cc] sm:$0xf] %v1177_v51 }
 0x208   : > { %1180 = vst [vmem:[%s8596_s30 + $0x7d0] sm:$0xf] %v1179_v52 }
 0x209   : > { %1182 = vst [vmem:[%s8596_s30 + $0x7d4] sm:$0xf] %v1181_v53 }
 0x20a   : > { %1184 = vst [vmem:[%s8596_s30 + $0x7d8] sm:$0xf] %v1183_v54 }
 0x20b   : > { %1186 = vst [vmem:[%s8596_s30 + $0x7dc] sm:$0xf] %v1185_v55 }
 0x20c   : > { %1188 = vst [vmem:[%s8596_s30 + $0x7e0] sm:$0xf] %v1187_v56 }
 0x20d   : > { %1190 = vst [vmem:[%s8596_s30 + $0x7e4] sm:$0xf] %v1189_v57 }
 0x20e   : > { %1192 = vst [vmem:[%s8596_s30 + $0x7e8] sm:$0xf] %v1191_v58 }
 0x20f   : > { %1194 = vst [vmem:[%s8596_s30 + $0x7ec] sm:$0xf] %v1193_v59 }
 0x210   : > { %1196 = vst [vmem:[%s8596_s30 + $0x7f0] sm:$0xf] %v1195_v60 }
 0x211   : > { %1198 = vst [vmem:[%s8596_s30 + $0x7f4] sm:$0xf] %v1197_v61 }
 0x212   : > { %1200 = vst [vmem:[%s8596_s30 + $0x7f8] sm:$0xf] %v1199_v62 }
 0x213   : > { %1202 = vst [vmem:[%s8596_s30 + $0x7fc] sm:$0xf] %v1201_v63 }
 0x214 PF: > { %p7107_p7 = scmp.ge.s32.totalorder %s8512_s18, 1  ;;  %p4329_p8 = scmp.lt.s32.totalorder %s8512_s18, 9 }
 0x216   : > { %p4330_p9 = pnand %p7107_p7, %p4329_p8 }
 0x217   : > { %s4336_s4 = sand.u32 (!%p4330_p9), 1, %s8488_s12   ;;  %p4370_p10 = scmp.lt.s32.totalorder (!%p4330_p9), %s8496_s14, 1 }
 0x218   : > { %4333 = sbr.rel (%p4330_p9) target bundleno = 997 (0x3e5), region = 80  ;;  %s7108_s5 = sshll.u32 (!%p4330_p9), %s4336_s4, 11 }
 0x219   : > { %s9623_s6 = scalar_lea.vmem (!%p4330_p9), [#allocation2], %s7108_s5  ;;  %p4375_p11 = scmp.lt.s32.totalorder (!%p4330_p9), %s8500_s15, 3 }
 0x21d   : > { %v8147_v0 = vld [vmem:[%s9623_s6 + $0x38] sm:$0xff]  ;;  %v8146_v4 = vld [vmem:[%s9623_s6 + $0x30] sm:$0xff]  ;;  %v8145_v8 = vld [vmem:[%s9623_s6 + $0x28] sm:$0xff]  ;;  %s10017_s14 = smov (!%p4370_p10, %s8496_s14), 1  ;;  %s10019_s15 = smov (!%p4375_p11, %s8500_s15), 3  ;;  %vm6943_vm0 = vcmask 1043456  }
 0x21e   : > { %v8155_v1 = vld [vmem:[%s9623_s6 + $0x78] sm:$0xff]  ;;  %6527 = vmatpush.bf16.msra.mxu0 %v8147_v0  ;;  %v8154_v5 = vld [vmem:[%s9623_s6 + $0x70] sm:$0xff]  ;;  %v8153_v9 = vld [vmem:[%s9623_s6 + $0x68] sm:$0xff]  ;;  %s8139_s7 = sshll.u32 %s10017_s14, 6  ;;  %s4377_s21 = scalar_lea.vmem %s10002_s2, %s10019_s15 }
 0x21f   : > { %v8163_v2 = vld [vmem:[%s9623_s6 + $0xb8] sm:$0xff]  ;;  %6540 = vmatpush.bf16.msra.mxu1 %v8155_v1  ;;  %v8162_v6 = vld [vmem:[%s9623_s6 + $0xb0] sm:$0xff]  ;;  %v8161_v10 = vld [vmem:[%s9623_s6 + $0xa8] sm:$0xff]  ;;  %s9651_s10 = scalar_lea.vmem %s10000_s0, %s8139_s7  ;;  %s7111_s25 = sshll.u32 %s10017_s14, 2 }
 0x220   : > { %v8171_v3 = vld [vmem:[%s9623_s6 + $0xf8] sm:$0xff]  ;;  %6553 = vmatpush.bf16.msra.mxu2 %v8163_v2  ;;  %v8170_v7 = vld [vmem:[%s9623_s6 + $0xf0] sm:$0xff]  ;;  %v8169_v11 = vld [vmem:[%s9623_s6 + $0xe8] sm:$0xff]  ;;  %s4383_s26 = sadd.s32 %s7111_s25, %s10019_s15 }
 0x221   : > { %6566 = vmatpush.bf16.msra.mxu3 %v8171_v3  ;;  %v8144_v12 = vld [vmem:[%s9623_s6 + $0x20] sm:$0xff]  ;;  %v8143_v16 = vld [vmem:[%s9623_s6 + $0x18] sm:$0xff]  ;;  %v8142_v21 = vld [vmem:[%s9623_s6 + $0x10] sm:$0xff]  ;;  %s7112_s27 = sshll.u32 %s4383_s26, 1 }
 0x222   : > { %6528 = vmatpush.bf16.msra.mxu0 %v8146_v4  ;;  %v8152_v13 = vld [vmem:[%s9623_s6 + $0x60] sm:$0xff]  ;;  %v8151_v17 = vld [vmem:[%s9623_s6 + $0x58] sm:$0xff]  ;;  %v8150_v22 = vld [vmem:[%s9623_s6 + $0x50] sm:$0xff]  ;;  %s4385_s30 = scalar_lea.vmem %s10003_s3, %s7112_s27 }
 0x223   : > { %6541 = vmatpush.bf16.msra.mxu1 %v8154_v5  ;;  %v8160_v14 = vld [vmem:[%s9623_s6 + $0xa0] sm:$0xff]  ;;  %v8159_v18 = vld [vmem:[%s9623_s6 + $0x98] sm:$0xff]  ;;  %v8158_v23 = vld [vmem:[%s9623_s6 + $0x90] sm:$0xff] }
 0x224   : > { %6554 = vmatpush.bf16.msra.mxu2 %v8162_v6  ;;  %v8168_v15 = vld [vmem:[%s9623_s6 + $0xe0] sm:$0xff]  ;;  %v8167_v19 = vld [vmem:[%s9623_s6 + $0xd8] sm:$0xff]  ;;  %v8166_v24 = vld [vmem:[%s9623_s6 + $0xd0] sm:$0xff] }
 0x225   : > { %6567 = vmatpush.bf16.msra.mxu3 %v8170_v7  ;;  %v4386_v20 = vld [vmem:[%s9651_s10] sm:$0xff]  ;;  %v8141_v25 = vld [vmem:[%s9623_s6 + $0x8] sm:$0xff]  ;;  %v8140_v29 = vld [vmem:[%s9623_s6] sm:$0xff] }
 0x226   : > { %6529 = vmatpush.bf16.msra.mxu0 %v8145_v8  ;;  %4911 = vst [vmem:[#allocation1] ss:$4 sm:$0xff] %v4386_v20  ;;  %v8149_v26 = vld [vmem:[%s9623_s6 + $0x48] sm:$0xff]  ;;  %v8148_v30 = vld [vmem:[%s9623_s6 + $0x40] sm:$0xff]  ;;  %v8179_v38 = vld [vmem:[%s9623_s6 + $0x138] sm:$0xff] }
 0x227   : > { %6542 = vmatpush.bf16.msra.mxu1 %v8153_v9  ;;  %v8157_v27 = vld [vmem:[%s9623_s6 + $0x88] sm:$0xff]  ;;  %v8156_v31 = vld [vmem:[%s9623_s6 + $0x80] sm:$0xff]  ;;  %v8187_v39 = vld [vmem:[%s9623_s6 + $0x178] sm:$0xff] }
 0x228   : > { %6555 = vmatpush.bf16.msra.mxu2 %v8161_v10  ;;  %v8165_v28 = vld [vmem:[%s9623_s6 + $0xc8] sm:$0xff]  ;;  %v8164_v33 = vld [vmem:[%s9623_s6 + $0xc0] sm:$0xff]  ;;  %v8195_v40 = vld [vmem:[%s9623_s6 + $0x1b8] sm:$0xff] }
 0x229   : > { %6568 = vmatpush.bf16.msra.mxu3 %v8169_v11  ;;  %v4388_v35 = vld [vmem:[%s9651_s10 + $0x10] sm:$0xff]  ;;  %v8203_v41 = vld [vmem:[%s9623_s6 + $0x1f8] sm:$0xff]  ;;  %v4387_v42 = vld [vmem:[%s9651_s10 + $0x8] sm:$0xff] }
 0x22a   : > { %6530 = vmatpush.bf16.msra.mxu0 %v8144_v12  ;;  %4914 = vst [vmem:[#allocation1 + $0x20] ss:$4 sm:$0xff] %v4387_v42  ;;  %v8178_v43 = vld [vmem:[%s9623_s6 + $0x130] sm:$0xff]  ;;  %v8177_v47 = vld [vmem:[%s9623_s6 + $0x128] sm:$0xff]  ;;  %v8176_v51 = vld [vmem:[%s9623_s6 + $0x120] sm:$0xff] }
 0x22b   : > { %6543 = vmatpush.bf16.msra.mxu1 %v8152_v13  ;;  %v8186_v44 = vld [vmem:[%s9623_s6 + $0x170] sm:$0xff]  ;;  %v8185_v48 = vld [vmem:[%s9623_s6 + $0x168] sm:$0xff]  ;;  %v8184_v55 = vld [vmem:[%s9623_s6 + $0x160] sm:$0xff] }
 0x22c   : > { %6556 = vmatpush.bf16.msra.mxu2 %v8160_v14  ;;  %v8194_v45 = vld [vmem:[%s9623_s6 + $0x1b0] sm:$0xff]  ;;  %v8193_v49 = vld [vmem:[%s9623_s6 + $0x1a8] sm:$0xff]  ;;  %v8192_v58 = vld [vmem:[%s9623_s6 + $0x1a0] sm:$0xff] }
 0x22d   : > { %6569 = vmatpush.bf16.msra.mxu3 %v8168_v15  ;;  %v4917_v32 = vld.sshfl [vmem:[#allocation1 + $0x10] sm:$0xff pattern:$0x73625140]  ;;  %v4915_v34 = vld.sshfl [vmem:[#allocation1] sm:$0xff pattern:$0x73625140] }
 0x22e   : > { %6531 = vmatpush.bf16.msra.mxu0 %v8143_v16  ;;  %v4918_v36 = vld.sshfl [vmem:[#allocation1 + $0x18] sm:$0xff pattern:$0x73625140]  ;;  %v4916_v37 = vld.sshfl [vmem:[#allocation1 + $0x8] sm:$0xff pattern:$0x73625140] }
 0x22f   : > { %6544 = vmatpush.bf16.msra.mxu1 %v8151_v17  ;;  %4924 = vst [vmem:[#allocation1] ss:$4 sm:$0xff] %v4388_v35  ;;  %v8202_v46 = vld [vmem:[%s9623_s6 + $0x1f0] sm:$0xff]  ;;  %v8201_v50 = vld [vmem:[%s9623_s6 + $0x1e8] sm:$0xff]  ;;  %v8200_v59 = vld [vmem:[%s9623_s6 + $0x1e0] sm:$0xff] }
 0x230   : > { %6557 = vmatpush.bf16.msra.mxu2 %v8159_v18  ;;  %v4389_v56 = vld [vmem:[%s9651_s10 + $0x18] sm:$0xff]  ;;  %v8175_v60 = vld [vmem:[%s9623_s6 + $0x118] sm:$0xff]  ;;  %v8173_v4 = vld [vmem:[%s9623_s6 + $0x108] sm:$0xff] }
 0x231   : > { %6570 = vmatpush.bf16.msra.mxu3 %v8167_v19  ;;  %v9683_v52 = vld.sshfl [vmem:[#allocation1 + $0x30] sm:$0xff pattern:$0x73625140]  ;;  %v9685_v53 = vld.sshfl [vmem:[#allocation1 + $0x20] sm:$0xff pattern:$0x73625140] }
 0x232   : > { %6532 = vmatpush.bf16.msra.mxu0 %v8142_v21  ;;  %v9687_v54 = vld.sshfl [vmem:[#allocation1 + $0x38] sm:$0xff pattern:$0x73625140]  ;;  %v9691_v57 = vld.sshfl [vmem:[#allocation1 + $0x28] sm:$0xff pattern:$0x73625140] }
 0x233   : > { %6545 = vmatpush.bf16.msra.mxu1 %v8150_v22  ;;  %4926 = vst [vmem:[#allocation1 + $0x20] ss:$4 sm:$0xff] %v4389_v56  ;;  %v8183_v61 = vld [vmem:[%s9623_s6 + $0x158] sm:$0xff]  ;;  %v8174_v0 = vld [vmem:[%s9623_s6 + $0x110] sm:$0xff]  ;;  %v8181_v5 = vld [vmem:[%s9623_s6 + $0x148] sm:$0xff] }
 0x234   : > { %6558 = vmatpush.bf16.msra.mxu2 %v8158_v23  ;;  %v8191_v62 = vld [vmem:[%s9623_s6 + $0x198] sm:$0xff]  ;;  %v8182_v1 = vld [vmem:[%s9623_s6 + $0x150] sm:$0xff]  ;;  %v8189_v6 = vld [vmem:[%s9623_s6 + $0x188] sm:$0xff] }
 0x235   : > { %6571 = vmatpush.bf16.msra.mxu3 %v8166_v24  ;;  %v8199_v63 = vld [vmem:[%s9623_s6 + $0x1d8] sm:$0xff]  ;;  %v8190_v2 = vld [vmem:[%s9623_s6 + $0x190] sm:$0xff]  ;;  %v8197_v7 = vld [vmem:[%s9623_s6 + $0x1c8] sm:$0xff] }
 0x236   : > { %6533 = vmatpush.bf16.msra.mxu0 %v8141_v25  ;;  %v8198_v3 = vld [vmem:[%s9623_s6 + $0x1d0] sm:$0xff]  ;;  %v8172_v8 = vld [vmem:[%s9623_s6 + $0x100] sm:$0xff]  ;;  %v8211_v12 = vld [vmem:[%s9623_s6 + $0x238] sm:$0xff] }
 0x237   : > { %6546 = vmatpush.bf16.msra.mxu1 %v8149_v26  ;;  %v8180_v9 = vld [vmem:[%s9623_s6 + $0x140] sm:$0xff]  ;;  %v8219_v13 = vld [vmem:[%s9623_s6 + $0x278] sm:$0xff]  ;;  %v8210_v16 = vld [vmem:[%s9623_s6 + $0x230] sm:$0xff] }
 0x238   : > { %6559 = vmatpush.bf16.msra.mxu2 %v8157_v27  ;;  %v8188_v10 = vld [vmem:[%s9623_s6 + $0x180] sm:$0xff]  ;;  %v8227_v14 = vld [vmem:[%s9623_s6 + $0x2b8] sm:$0xff]  ;;  %v8218_v17 = vld [vmem:[%s9623_s6 + $0x270] sm:$0xff] }
 0x239   : > { %6572 = vmatpush.bf16.msra.mxu3 %v8165_v28  ;;  %v8196_v11 = vld [vmem:[%s9623_s6 + $0x1c0] sm:$0xff]  ;;  %v8235_v15 = vld [vmem:[%s9623_s6 + $0x2f8] sm:$0xff]  ;;  %v8226_v18 = vld [vmem:[%s9623_s6 + $0x2b0] sm:$0xff] }
 0x23a   : > { %6534 = vmatpush.bf16.msra.mxu0 %v8140_v29  ;;  %v9726_v19 = vld.sshfl [vmem:[#allocation1] sm:$0xff pattern:$0x73625140]  ;;  %v9728_v20 = vld.sshfl [vmem:[#allocation1 + $0x10] sm:$0xff pattern:$0x73625140] }
 0x23b   : > { %6547 = vmatpush.bf16.msra.mxu1 %v8148_v30  ;;  %v9730_v21 = vld.sshfl [vmem:[#allocation1 + $0x8] sm:$0xff pattern:$0x73625140]  ;;  %v8234_v22 = vld [vmem:[%s9623_s6 + $0x2f0] sm:$0xff]  ;;  %v4390_v23 = vld [vmem:[%s9651_s10 + $0x20] sm:$0xff] }
 0x23c   : > { %6560 = vmatpush.bf16.msra.mxu2 %v8156_v31  ;;  %v9734_v24 = vld.sshfl [vmem:[#allocation1 + $0x18] sm:$0xff pattern:$0x73625140]  ;;  %v8209_v25 = vld [vmem:[%s9623_s6 + $0x228] sm:$0xff]  ;;  %v8208_v29 = vld [vmem:[%s9623_s6 + $0x220] sm:$0xff] }
 0x23d   : > { %6573 = vmatpush.bf16.msra.mxu3 %v8164_v33  ;;  %6535 = vmatmul.bf16.vlgmr.msra.gmra.mxu0 %v4915_v34  ;;  %4936 = vst [vmem:[#allocation1] ss:$4 sm:$0xff] %v4390_v23  ;;  %v8217_v26 = vld [vmem:[%s9623_s6 + $0x268] sm:$0xff]  ;;  %v8216_v30 = vld [vmem:[%s9623_s6 + $0x260] sm:$0xff]  ;;  %v8207_v33 = vld [vmem:[%s9623_s6 + $0x218] sm:$0xff] }
 0x23e   : > { %6579 = vmatpush.bf16.msrb.mxu0 %v8179_v38  ;;  %6548 = vmatmul.bf16.vlgmr.msra.gmra.mxu1 %v4916_v37  ;;  %v8225_v27 = vld [vmem:[%s9623_s6 + $0x2a8] sm:$0xff]  ;;  %v8224_v31 = vld [vmem:[%s9623_s6 + $0x2a0] sm:$0xff]  ;;  %v8215_v34 = vld [vmem:[%s9623_s6 + $0x258] sm:$0xff] }
 0x23f   : > { %6592 = vmatpush.bf16.msrb.mxu1 %v8187_v39  ;;  %6561 = vmatmul.bf16.vlgmr.msra.gmra.mxu2 %v4917_v32  ;;  %v8233_v28 = vld [vmem:[%s9623_s6 + $0x2e8] sm:$0xff]  ;;  %v8232_v32 = vld [vmem:[%s9623_s6 + $0x2e0] sm:$0xff]  ;;  %v8223_v35 = vld [vmem:[%s9623_s6 + $0x298] sm:$0xff] }
 0x240   : > { %6605 = vmatpush.bf16.msrb.mxu2 %v8195_v40  ;;  %6574 = vmatmul.bf16.vlgmr.msra.gmra.mxu3 %v4918_v36  ;;  %v8231_v36 = vld [vmem:[%s9623_s6 + $0x2d8] sm:$0xff]  ;;  %v8206_v37 = vld [vmem:[%s9623_s6 + $0x210] sm:$0xff]  ;;  %v8213_v42 = vld [vmem:[%s9623_s6 + $0x248] sm:$0xff] }
 0x241   : > { %6618 = vmatpush.bf16.msrb.mxu3 %v8203_v41  ;;  %v8214_v38 = vld [vmem:[%s9623_s6 + $0x250] sm:$0xff]  ;;  %v8205_v41 = vld [vmem:[%s9623_s6 + $0x208] sm:$0xff]  ;;  %v9771_v56 = vld.sshfl [vmem:[#allocation1 + $0x20] sm:$0xff pattern:$0x73625140] }
 0x242   : > { %6580 = vmatpush.bf16.msrb.mxu0 %v8178_v43  ;;  %v8222_v39 = vld [vmem:[%s9623_s6 + $0x290] sm:$0xff]  ;;  %v8221_v43 = vld [vmem:[%s9623_s6 + $0x288] sm:$0xff]  ;;  %v8283_v23 = vld [vmem:[%s9623_s6 + $0x478] sm:$0xff] }
 0x243   : > { %6593 = vmatpush.bf16.msrb.mxu1 %v8186_v44  ;;  %v8230_v40 = vld [vmem:[%s9623_s6 + $0x2d0] sm:$0xff]  ;;  %v8229_v44 = vld [vmem:[%s9623_s6 + $0x2c8] sm:$0xff] }
 0x244   : > { %6606 = vmatpush.bf16.msrb.mxu2 %v8194_v45  ;;  %v8204_v45 = vld [vmem:[%s9623_s6 + $0x200] sm:$0xff] }
 0x245   : > { %6619 = vmatpush.bf16.msrb.mxu3 %v8202_v46  ;;  %v8212_v46 = vld [vmem:[%s9623_s6 + $0x240] sm:$0xff] }
 0x246   : > { %6581 = vmatpush.bf16.msrb.mxu0 %v8177_v47  ;;  %v8220_v47 = vld [vmem:[%s9623_s6 + $0x280] sm:$0xff] }
 0x247   : > { %6594 = vmatpush.bf16.msrb.mxu1 %v8185_v48  ;;  %v8228_v48 = vld [vmem:[%s9623_s6 + $0x2c0] sm:$0xff] }
 0x248   : > { %6607 = vmatpush.bf16.msrb.mxu2 %v8193_v49  ;;  %v8243_v49 = vld [vmem:[%s9623_s6 + $0x338] sm:$0xff] }
 0x249   : > { %6620 = vmatpush.bf16.msrb.mxu3 %v8201_v50  ;;  %v8251_v50 = vld [vmem:[%s9623_s6 + $0x378] sm:$0xff] }
 0x24a   : > { %6582 = vmatpush.bf16.msrb.mxu0 %v8176_v51  ;;  %v8259_v51 = vld [vmem:[%s9623_s6 + $0x3b8] sm:$0xff] }
 0x24b   : > { %6595 = vmatpush.bf16.msrb.mxu1 %v8184_v55  ;;  %v8258_v55 = vld [vmem:[%s9623_s6 + $0x3b0] sm:$0xff] }
 0x24c   : > { %6608 = vmatpush.bf16.msrb.mxu2 %v8192_v58  ;;  %v9775_v58 = vld.sshfl [vmem:[#allocation1 + $0x28] sm:$0xff pattern:$0x73625140] }
 0x24d   : > { %6621 = vmatpush.bf16.msrb.mxu3 %v8200_v59  ;;  %v8266_v59 = vld [vmem:[%s9623_s6 + $0x3f0] sm:$0xff] }
 0x24e   : > { %6583 = vmatpush.bf16.msrb.mxu0 %v8175_v60  ;;  %v4391_v60 = vld [vmem:[%s9651_s10 + $0x28] sm:$0xff] }
 0x24f   : > { %6596 = vmatpush.bf16.msrb.mxu1 %v8183_v61  ;;  %v9779_v61 = vld.sshfl [vmem:[#allocation1 + $0x38] sm:$0xff pattern:$0x73625140] }
 0x250   : > { %6609 = vmatpush.bf16.msrb.mxu2 %v8191_v62  ;;  %v8241_v62 = vld [vmem:[%s9623_s6 + $0x328] sm:$0xff] }
 0x251   : > { %6622 = vmatpush.bf16.msrb.mxu3 %v8199_v63  ;;  %v8249_v63 = vld [vmem:[%s9623_s6 + $0x368] sm:$0xff] }
 0x252   : > { %6584 = vmatpush.bf16.msrb.mxu0 %v8174_v0  ;;  %v8257_v0 = vld [vmem:[%s9623_s6 + $0x3a8] sm:$0xff] }
 0x253   : > { %6597 = vmatpush.bf16.msrb.mxu1 %v8182_v1  ;;  %v8265_v1 = vld [vmem:[%s9623_s6 + $0x3e8] sm:$0xff] }
 0x254   : > { %6610 = vmatpush.bf16.msrb.mxu2 %v8190_v2  ;;  %v8240_v2 = vld [vmem:[%s9623_s6 + $0x320] sm:$0xff] }
 0x255   : > { %6623 = vmatpush.bf16.msrb.mxu3 %v8198_v3  ;;  %v8248_v3 = vld [vmem:[%s9623_s6 + $0x360] sm:$0xff] }
 0x256   : > { %6585 = vmatpush.bf16.msrb.mxu0 %v8173_v4  ;;  %v8256_v4 = vld [vmem:[%s9623_s6 + $0x3a0] sm:$0xff] }
 0x257   : > { %6598 = vmatpush.bf16.msrb.mxu1 %v8181_v5  ;;  %v8264_v5 = vld [vmem:[%s9623_s6 + $0x3e0] sm:$0xff] }
 0x258   : > { %6611 = vmatpush.bf16.msrb.mxu2 %v8189_v6  ;;  %v8239_v6 = vld [vmem:[%s9623_s6 + $0x318] sm:$0xff] }
 0x259   : > { %6624 = vmatpush.bf16.msrb.mxu3 %v8197_v7  ;;  %v8247_v7 = vld [vmem:[%s9623_s6 + $0x358] sm:$0xff] }
 0x25a   : > { %6586 = vmatpush.bf16.msrb.mxu0 %v8172_v8  ;;  %v8255_v8 = vld [vmem:[%s9623_s6 + $0x398] sm:$0xff] }
 0x25b   : > { %6599 = vmatpush.bf16.msrb.mxu1 %v8180_v9  ;;  %v8263_v9 = vld [vmem:[%s9623_s6 + $0x3d8] sm:$0xff] }
 0x25c   : > { %6612 = vmatpush.bf16.msrb.mxu2 %v8188_v10  ;;  %v8238_v10 = vld [vmem:[%s9623_s6 + $0x310] sm:$0xff] }
 0x25d   : > { %6625 = vmatpush.bf16.msrb.mxu3 %v8196_v11  ;;  %6587 = vmatmul.bf16.vlgmr.msrb.gmra.mxu0 %v9685_v53  ;;  %v8242_v53 = vld [vmem:[%s9623_s6 + $0x330] sm:$0xff] }
 0x25e   : > { %6631 = vmatpush.bf16.msra.mxu0 %v8211_v12  ;;  %6600 = vmatmul.bf16.vlgmr.msrb.gmra.mxu1 %v9691_v57  ;;  %v9773_v57 = vld.sshfl [vmem:[#allocation1 + $0x30] sm:$0xff pattern:$0x73625140]  ;;  %v8246_v11 = vld [vmem:[%s9623_s6 + $0x350] sm:$0xff] }
 0x25f   : > { %6644 = vmatpush.bf16.msra.mxu1 %v8219_v13  ;;  %6613 = vmatmul.bf16.vlgmr.msrb.gmra.mxu2 %v9683_v52  ;;  %v8267_v52 = vld [vmem:[%s9623_s6 + $0x3f8] sm:$0xff]  ;;  %4938 = vst [vmem:[#allocation1 + $0x20] ss:$4 sm:$0xff] %v4391_v60  ;;  %v8254_v12 = vld [vmem:[%s9623_s6 + $0x390] sm:$0xff] }
 0x260   : > { %6657 = vmatpush.bf16.msra.mxu2 %v8227_v14  ;;  %6626 = vmatmul.bf16.vlgmr.msrb.gmra.mxu3 %v9687_v54  ;;  %v8250_v54 = vld [vmem:[%s9623_s6 + $0x370] sm:$0xff]  ;;  %v8237_v14 = vld [vmem:[%s9623_s6 + $0x308] sm:$0xff]  ;;  %v8315_v60 = vld [vmem:[%s9623_s6 + $0x578] sm:$0xff] }
 0x261   : > { %6670 = vmatpush.bf16.msra.mxu3 %v8235_v15  ;;  %v8262_v13 = vld [vmem:[%s9623_s6 + $0x3d0] sm:$0xff]  ;;  %v8245_v15 = vld [vmem:[%s9623_s6 + $0x348] sm:$0xff] }
 0x262   : > { %6632 = vmatpush.bf16.msra.mxu0 %v8210_v16  ;;  %v8253_v16 = vld [vmem:[%s9623_s6 + $0x388] sm:$0xff] }
 0x263   : > { %6645 = vmatpush.bf16.msra.mxu1 %v8218_v17  ;;  %v8261_v17 = vld [vmem:[%s9623_s6 + $0x3c8] sm:$0xff] }
 0x264   : > { %6658 = vmatpush.bf16.msra.mxu2 %v8226_v18  ;;  %v8236_v18 = vld [vmem:[%s9623_s6 + $0x300] sm:$0xff] }
 0x265   : > { %6671 = vmatpush.bf16.msra.mxu3 %v8234_v22  ;;  %v8275_v22 = vld [vmem:[%s9623_s6 + $0x438] sm:$0xff] }
 0x266   : > { %6633 = vmatpush.bf16.msra.mxu0 %v8209_v25  ;;  %v8299_v25 = vld [vmem:[%s9623_s6 + $0x4f8] sm:$0xff] }
 0x267   : > { %6646 = vmatpush.bf16.msra.mxu1 %v8217_v26  ;;  %v4392_v26 = vld [vmem:[%s9651_s10 + $0x30] sm:$0xff] }
 0x268   : > { %6659 = vmatpush.bf16.msra.mxu2 %v8225_v27  ;;  %v8274_v27 = vld [vmem:[%s9623_s6 + $0x430] sm:$0xff] }
 0x269   : > { %6672 = vmatpush.bf16.msra.mxu3 %v8233_v28  ;;  %v8282_v28 = vld [vmem:[%s9623_s6 + $0x470] sm:$0xff] }
 0x26a   : > { %6634 = vmatpush.bf16.msra.mxu0 %v8208_v29  ;;  %v8290_v29 = vld [vmem:[%s9623_s6 + $0x4b0] sm:$0xff] }
 0x26b   : > { %6647 = vmatpush.bf16.msra.mxu1 %v8216_v30  ;;  %v8298_v30 = vld [vmem:[%s9623_s6 + $0x4f0] sm:$0xff] }
 0x26c   : > { %6660 = vmatpush.bf16.msra.mxu2 %v8224_v31  ;;  %v9818_v31 = vld.sshfl [vmem:[#allocation1] sm:$0xff pattern:$0x73625140] }
 0x26d   : > { %6673 = vmatpush.bf16.msra.mxu3 %v8232_v32  ;;  %v9820_v32 = vld.sshfl [vmem:[#allocation1 + $0x10] sm:$0xff pattern:$0x73625140] }
 0x26e   : > { %6635 = vmatpush.bf16.msra.mxu0 %v8207_v33  ;;  %v9822_v33 = vld.sshfl [vmem:[#allocation1 + $0x8] sm:$0xff pattern:$0x73625140] }
 0x26f   : > { %6648 = vmatpush.bf16.msra.mxu1 %v8215_v34  ;;  %v9824_v34 = vld.sshfl [vmem:[#allocation1 + $0x18] sm:$0xff pattern:$0x73625140] }
 0x270   : > { %6661 = vmatpush.bf16.msra.mxu2 %v8223_v35  ;;  %4948 = vst [vmem:[#allocation1] ss:$4 sm:$0xff] %v4392_v26  ;;  %v8273_v35 = vld [vmem:[%s9623_s6 + $0x428] sm:$0xff] }
 0x271   : > { %6674 = vmatpush.bf16.msra.mxu3 %v8231_v36  ;;  %v8281_v36 = vld [vmem:[%s9623_s6 + $0x468] sm:$0xff] }
 0x272   : > { %6636 = vmatpush.bf16.msra.mxu0 %v8206_v37  ;;  %v8289_v37 = vld [vmem:[%s9623_s6 + $0x4a8] sm:$0xff] }
 0x273   : > { %6649 = vmatpush.bf16.msra.mxu1 %v8214_v38  ;;  %v8297_v38 = vld [vmem:[%s9623_s6 + $0x4e8] sm:$0xff] }
 0x274   : > { %6662 = vmatpush.bf16.msra.mxu2 %v8222_v39  ;;  %v8272_v39 = vld [vmem:[%s9623_s6 + $0x420] sm:$0xff] }
 0x275   : > { %6675 = vmatpush.bf16.msra.mxu3 %v8230_v40  ;;  %v8280_v40 = vld [vmem:[%s9623_s6 + $0x460] sm:$0xff] }
 0x276   : > { %6637 = vmatpush.bf16.msra.mxu0 %v8205_v41  ;;  %v8288_v41 = vld [vmem:[%s9623_s6 + $0x4a0] sm:$0xff] }
 0x277   : > { %6650 = vmatpush.bf16.msra.mxu1 %v8213_v42  ;;  %v8296_v42 = vld [vmem:[%s9623_s6 + $0x4e0] sm:$0xff] }
 0x278   : > { %6663 = vmatpush.bf16.msra.mxu2 %v8221_v43  ;;  %v8271_v43 = vld [vmem:[%s9623_s6 + $0x418] sm:$0xff] }
 0x279   : > { %6676 = vmatpush.bf16.msra.mxu3 %v8229_v44  ;;  %v8279_v44 = vld [vmem:[%s9623_s6 + $0x458] sm:$0xff] }
 0x27a   : > { %6638 = vmatpush.bf16.msra.mxu0 %v8204_v45  ;;  %v8287_v45 = vld [vmem:[%s9623_s6 + $0x498] sm:$0xff] }
 0x27b   : > { %6651 = vmatpush.bf16.msra.mxu1 %v8212_v46  ;;  %v8295_v46 = vld [vmem:[%s9623_s6 + $0x4d8] sm:$0xff] }
 0x27c   : > { %6664 = vmatpush.bf16.msra.mxu2 %v8220_v47  ;;  %v8270_v47 = vld [vmem:[%s9623_s6 + $0x410] sm:$0xff] }
 0x27d   : > { %6677 = vmatpush.bf16.msra.mxu3 %v8228_v48  ;;  %6639 = vmatmul.bf16.vlgmr.msra.gmra.mxu0 %v9726_v19  ;;  %v8244_v19 = vld [vmem:[%s9623_s6 + $0x340] sm:$0xff]  ;;  %v8278_v48 = vld [vmem:[%s9623_s6 + $0x450] sm:$0xff] }
 0x27e   : > { %6683 = vmatpush.bf16.msrb.mxu0 %v8243_v49  ;;  %6652 = vmatmul.bf16.vlgmr.msra.gmra.mxu1 %v9730_v21  ;;  %v8260_v21 = vld [vmem:[%s9623_s6 + $0x3c0] sm:$0xff]  ;;  %v8286_v49 = vld [vmem:[%s9623_s6 + $0x490] sm:$0xff] }
 0x27f   : > { %6696 = vmatpush.bf16.msrb.mxu1 %v8251_v50  ;;  %6665 = vmatmul.bf16.vlgmr.msra.gmra.mxu2 %v9728_v20  ;;  %v8252_v20 = vld [vmem:[%s9623_s6 + $0x380] sm:$0xff]  ;;  %v8294_v50 = vld [vmem:[%s9623_s6 + $0x4d0] sm:$0xff] }
 0x280   : > { %6709 = vmatpush.bf16.msrb.mxu2 %v8259_v51  ;;  %6678 = vmatmul.bf16.vlgmr.msra.gmra.mxu3 %v9734_v24  ;;  %v8291_v24 = vld [vmem:[%s9623_s6 + $0x4b8] sm:$0xff]  ;;  %v8269_v51 = vld [vmem:[%s9623_s6 + $0x408] sm:$0xff] }
 0x281   : > { %6722 = vmatpush.bf16.msrb.mxu3 %v8267_v52  ;;  %v8277_v52 = vld [vmem:[%s9623_s6 + $0x448] sm:$0xff] }
 0x282   : > { %6684 = vmatpush.bf16.msrb.mxu0 %v8242_v53  ;;  %v8285_v53 = vld [vmem:[%s9623_s6 + $0x488] sm:$0xff] }
 0x283   : > { %6697 = vmatpush.bf16.msrb.mxu1 %v8250_v54  ;;  %v8293_v54 = vld [vmem:[%s9623_s6 + $0x4c8] sm:$0xff] }
 0x284   : > { %6710 = vmatpush.bf16.msrb.mxu2 %v8258_v55  ;;  %v8268_v55 = vld [vmem:[%s9623_s6 + $0x400] sm:$0xff] }
 0x285   : > { %6723 = vmatpush.bf16.msrb.mxu3 %v8266_v59  ;;  %v8307_v59 = vld [vmem:[%s9623_s6 + $0x538] sm:$0xff] }
 0x286   : > { %6685 = vmatpush.bf16.msrb.mxu0 %v8241_v62  ;;  %v8331_v62 = vld [vmem:[%s9623_s6 + $0x5f8] sm:$0xff] }
 0x287   : > { %6698 = vmatpush.bf16.msrb.mxu1 %v8249_v63  ;;  %v4393_v63 = vld [vmem:[%s9651_s10 + $0x38] sm:$0xff] }
 0x288   : > { %6711 = vmatpush.bf16.msrb.mxu2 %v8257_v0  ;;  %v8306_v0 = vld [vmem:[%s9623_s6 + $0x530] sm:$0xff] }
 0x289   : > { %6724 = vmatpush.bf16.msrb.mxu3 %v8265_v1  ;;  %v8314_v1 = vld [vmem:[%s9623_s6 + $0x570] sm:$0xff] }
 0x28a   : > { %6686 = vmatpush.bf16.msrb.mxu0 %v8240_v2  ;;  %v8322_v2 = vld [vmem:[%s9623_s6 + $0x5b0] sm:$0xff] }
 0x28b   : > { %6699 = vmatpush.bf16.msrb.mxu1 %v8248_v3  ;;  %v8330_v3 = vld [vmem:[%s9623_s6 + $0x5f0] sm:$0xff] }
 0x28c   : > { %6712 = vmatpush.bf16.msrb.mxu2 %v8256_v4  ;;  %v9863_v4 = vld.sshfl [vmem:[#allocation1 + $0x20] sm:$0xff pattern:$0x73625140] }
 0x28d   : > { %6725 = vmatpush.bf16.msrb.mxu3 %v8264_v5  ;;  %v9865_v5 = vld.sshfl [vmem:[#allocation1 + $0x30] sm:$0xff pattern:$0x73625140] }
 0x28e   : > { %6687 = vmatpush.bf16.msrb.mxu0 %v8239_v6  ;;  %v9867_v6 = vld.sshfl [vmem:[#allocation1 + $0x28] sm:$0xff pattern:$0x73625140] }
 0x28f   : > { %6700 = vmatpush.bf16.msrb.mxu1 %v8247_v7  ;;  %v9869_v7 = vld.sshfl [vmem:[#allocation1 + $0x38] sm:$0xff pattern:$0x73625140] }
 0x290   : > { %6713 = vmatpush.bf16.msrb.mxu2 %v8255_v8  ;;  %4950 = vst [vmem:[#allocation1 + $0x20] ss:$4 sm:$0xff] %v4393_v63  ;;  %v8305_v8 = vld [vmem:[%s9623_s6 + $0x528] sm:$0xff]  ;;  %v8360_v63 = vld [vmem:[%s9623_s6 + $0x6e0] sm:$0xff] }
 0x291   : > { %6726 = vmatpush.bf16.msrb.mxu3 %v8263_v9  ;;  %v8313_v9 = vld [vmem:[%s9623_s6 + $0x568] sm:$0xff] }
 0x292   : > { %6688 = vmatpush.bf16.msrb.mxu0 %v8238_v10  ;;  %v8453_v10 = vld [vmem:[%s4377_s21] ss:$0 sm:$0xff] }
 0x293   : > { %6701 = vmatpush.bf16.msrb.mxu1 %v8246_v11  ;;  %v8321_v11 = vld [vmem:[%s9623_s6 + $0x5a8] sm:$0xff] }
 0x294   : > { %6714 = vmatpush.bf16.msrb.mxu2 %v8254_v12  ;;  %v8329_v12 = vld [vmem:[%s9623_s6 + $0x5e8] sm:$0xff] }
 0x295   : > { %6727 = vmatpush.bf16.msrb.mxu3 %v8262_v13 }
 0x296   : > { %6689 = vmatpush.bf16.msrb.mxu0 %v8237_v14  ;;  %v8304_v14 = vld [vmem:[%s9623_s6 + $0x520] sm:$0xff] }
 0x297   : > { %6702 = vmatpush.bf16.msrb.mxu1 %v8245_v15  ;;  %v8312_v15 = vld [vmem:[%s9623_s6 + $0x560] sm:$0xff] }
 0x298   : > { %6715 = vmatpush.bf16.msrb.mxu2 %v8253_v16 }
 0x299   : > { %6728 = vmatpush.bf16.msrb.mxu3 %v8261_v17 }
 0x29a   : > { %6690 = vmatpush.bf16.msrb.mxu0 %v8236_v18  ;;  %v8320_v18 = vld [vmem:[%s9623_s6 + $0x5a0] sm:$0xff] }
 0x29b   : > { %6703 = vmatpush.bf16.msrb.mxu1 %v8244_v19  ;;  %v8328_v19 = vld [vmem:[%s9623_s6 + $0x5e0] sm:$0xff] }
 0x29c   : > { %6716 = vmatpush.bf16.msrb.mxu2 %v8252_v20 }
 0x29d   : > { %6729 = vmatpush.bf16.msrb.mxu3 %v8260_v21  ;;  %6691 = vmatmul.bf16.vlgmr.msrb.gmra.mxu0 %v9771_v56  ;;  %v8276_v56 = vld [vmem:[%s9623_s6 + $0x440] sm:$0xff]  ;;  %v8303_v21 = vld [vmem:[%s9623_s6 + $0x518] sm:$0xff] }
 0x29e   : > { %6735 = vmatpush.bf16.msra.mxu0 %v8275_v22  ;;  %6704 = vmatmul.bf16.vlgmr.msrb.gmra.mxu1 %v9775_v58  ;;  %v8292_v58 = vld [vmem:[%s9623_s6 + $0x4c0] sm:$0xff]  ;;  %v8311_v22 = vld [vmem:[%s9623_s6 + $0x558] sm:$0xff] }
 0x29f   : > { %6748 = vmatpush.bf16.msra.mxu1 %v8283_v23  ;;  %6717 = vmatmul.bf16.vlgmr.msrb.gmra.mxu2 %v9773_v57  ;;  %v8284_v57 = vld [vmem:[%s9623_s6 + $0x480] sm:$0xff]  ;;  %v8319_v23 = vld [vmem:[%s9623_s6 + $0x598] sm:$0xff] }
 0x2a0   : > { %6761 = vmatpush.bf16.msra.mxu2 %v8291_v24  ;;  %6730 = vmatmul.bf16.vlgmr.msrb.gmra.mxu3 %v9779_v61  ;;  %v8323_v61 = vld [vmem:[%s9623_s6 + $0x5b8] sm:$0xff] }
 0x2a1   : > { %6774 = vmatpush.bf16.msra.mxu3 %v8299_v25  ;;  %v8327_v24 = vld [vmem:[%s9623_s6 + $0x5d8] sm:$0xff] }
 0x2a2   : > { %6736 = vmatpush.bf16.msra.mxu0 %v8274_v27 }
 0x2a3   : > { %6749 = vmatpush.bf16.msra.mxu1 %v8282_v28 }
 0x2a4   : > { %6762 = vmatpush.bf16.msra.mxu2 %v8290_v29  ;;  %v8302_v29 = vld [vmem:[%s9623_s6 + $0x510] sm:$0xff] }
 0x2a5   : > { %6775 = vmatpush.bf16.msra.mxu3 %v8298_v30  ;;  %v8310_v30 = vld [vmem:[%s9623_s6 + $0x550] sm:$0xff] }
 0x2a6   : > { %6737 = vmatpush.bf16.msra.mxu0 %v8273_v35  ;;  %v8301_v35 = vld [vmem:[%s9623_s6 + $0x508] sm:$0xff] }
 0x2a7   : > { %6750 = vmatpush.bf16.msra.mxu1 %v8281_v36  ;;  %v8309_v36 = vld [vmem:[%s9623_s6 + $0x548] sm:$0xff] }
 0x2a8   : > { %6763 = vmatpush.bf16.msra.mxu2 %v8289_v37  ;;  %v8317_v37 = vld [vmem:[%s9623_s6 + $0x588] sm:$0xff] }
 0x2a9   : > { %6776 = vmatpush.bf16.msra.mxu3 %v8297_v38  ;;  %v8325_v38 = vld [vmem:[%s9623_s6 + $0x5c8] sm:$0xff] }
 0x2aa   : > { %6738 = vmatpush.bf16.msra.mxu0 %v8272_v39 }
 0x2ab   : > { %6751 = vmatpush.bf16.msra.mxu1 %v8280_v40 }
 0x2ac   : > { %6764 = vmatpush.bf16.msra.mxu2 %v8288_v41  ;;  %v8300_v41 = vld [vmem:[%s9623_s6 + $0x500] sm:$0xff] }
 0x2ad   : > { %6777 = vmatpush.bf16.msra.mxu3 %v8296_v42  ;;  %v8308_v42 = vld [vmem:[%s9623_s6 + $0x540] sm:$0xff] }
 0x2ae   : > { %6739 = vmatpush.bf16.msra.mxu0 %v8271_v43  ;;  %v8316_v43 = vld [vmem:[%s9623_s6 + $0x580] sm:$0xff] }
 0x2af   : > { %6752 = vmatpush.bf16.msra.mxu1 %v8279_v44  ;;  %v8324_v44 = vld [vmem:[%s9623_s6 + $0x5c0] sm:$0xff] }
 0x2b0   : > { %6765 = vmatpush.bf16.msra.mxu2 %v8287_v45  ;;  %v8339_v45 = vld [vmem:[%s9623_s6 + $0x638] sm:$0xff] }
 0x2b1   : > { %6778 = vmatpush.bf16.msra.mxu3 %v8295_v46  ;;  %v8347_v46 = vld [vmem:[%s9623_s6 + $0x678] sm:$0xff] }
 0x2b2   : > { %6740 = vmatpush.bf16.msra.mxu0 %v8270_v47  ;;  %v8355_v47 = vld [vmem:[%s9623_s6 + $0x6b8] sm:$0xff] }
 0x2b3   : > { %6753 = vmatpush.bf16.msra.mxu1 %v8278_v48  ;;  %v8363_v48 = vld [vmem:[%s9623_s6 + $0x6f8] sm:$0xff] }
 0x2b4   : > { %6766 = vmatpush.bf16.msra.mxu2 %v8286_v49  ;;  %v8338_v49 = vld [vmem:[%s9623_s6 + $0x630] sm:$0xff] }
 0x2b5   : > { %6779 = vmatpush.bf16.msra.mxu3 %v8294_v50  ;;  %v8346_v50 = vld [vmem:[%s9623_s6 + $0x670] sm:$0xff] }
 0x2b6   : > { %6741 = vmatpush.bf16.msra.mxu0 %v8269_v51  ;;  %v8354_v51 = vld [vmem:[%s9623_s6 + $0x6b0] sm:$0xff] }
 0x2b7   : > { %6754 = vmatpush.bf16.msra.mxu1 %v8277_v52  ;;  %v8362_v52 = vld [vmem:[%s9623_s6 + $0x6f0] sm:$0xff] }
 0x2b8   : > { %6767 = vmatpush.bf16.msra.mxu2 %v8285_v53  ;;  %v8337_v53 = vld [vmem:[%s9623_s6 + $0x628] sm:$0xff] }
 0x2b9   : > { %6780 = vmatpush.bf16.msra.mxu3 %v8293_v54  ;;  %v8345_v54 = vld [vmem:[%s9623_s6 + $0x668] sm:$0xff] }
 0x2ba   : > { %6742 = vmatpush.bf16.msra.mxu0 %v8268_v55  ;;  %v6536_v13 = vpop.f32.mrf.mxu0  ;;  %v8353_v55 = vld [vmem:[%s9623_s6 + $0x6a8] sm:$0xff] }
 0x2bb   : > { %6755 = vmatpush.bf16.msra.mxu1 %v8276_v56  ;;  %v6537_v16 = vadd.f32 %v8453_v10, %v6536_v13  ;;  %v6549_v17 = vpop.f32.mrf.mxu1  ;;  %v8361_v56 = vld [vmem:[%s9623_s6 + $0x6e8] sm:$0xff]  ;;  %v8342_v10 = vld [vmem:[%s9623_s6 + $0x650] sm:$0xff] }
 0x2bc   : > { %6768 = vmatpush.bf16.msra.mxu2 %v8284_v57  ;;  %v8350_v13 = vld [vmem:[%s9623_s6 + $0x690] sm:$0xff] }
 0x2bd   : > { %6781 = vmatpush.bf16.msra.mxu3 %v8292_v58  ;;  %6743 = vmatmul.bf16.vlgmr.msra.gmra.mxu0 %v9818_v31  ;;  %v6550_v20 = vadd.f32 %v6549_v17, %v6537_v16  ;;  %v8336_v58 = vld [vmem:[%s9623_s6 + $0x620] sm:$0xff]  ;;  %v8341_v16 = vld [vmem:[%s9623_s6 + $0x648] sm:$0xff] }
 0x2be   : > { %6787 = vmatpush.bf16.msrb.mxu0 %v8307_v59  ;;  %6756 = vmatmul.bf16.vlgmr.msra.gmra.mxu1 %v9822_v33  ;;  %v8318_v33 = vld [vmem:[%s9623_s6 + $0x590] sm:$0xff]  ;;  %v8344_v59 = vld [vmem:[%s9623_s6 + $0x660] sm:$0xff]  ;;  %v8349_v17 = vld [vmem:[%s9623_s6 + $0x688] sm:$0xff] }
 0x2bf   : > { %6800 = vmatpush.bf16.msrb.mxu1 %v8315_v60  ;;  %6769 = vmatmul.bf16.vlgmr.msra.gmra.mxu2 %v9820_v32 }
 0x2c0   : > { %6813 = vmatpush.bf16.msrb.mxu2 %v8323_v61  ;;  %6782 = vmatmul.bf16.vlgmr.msra.gmra.mxu3 %v9824_v34  ;;  %v8326_v34 = vld [vmem:[%s9623_s6 + $0x5d0] sm:$0xff] }
 0x2c1   : > { %6826 = vmatpush.bf16.msrb.mxu3 %v8331_v62  ;;  %v8352_v62 = vld [vmem:[%s9623_s6 + $0x6a0] sm:$0xff] }
 0x2c2   : > { %6788 = vmatpush.bf16.msrb.mxu0 %v8306_v0  ;;  %v6562_v25 = vpop.f32.mrf.mxu2  ;;  %v6538_v28 = vpop.f32.mrf.mxu0 }
 0x2c3   : > { %6801 = vmatpush.bf16.msrb.mxu1 %v8314_v1  ;;  %v6563_v26 = vadd.f32 %v6562_v25, %v6550_v20  ;;  %v6575_v27 = vpop.f32.mrf.mxu3  ;;  %v6551_v32 = vpop.f32.mrf.mxu1  ;;  %v8335_v1 = vld [vmem:[%s9623_s6 + $0x618] sm:$0xff] }
 0x2c4   : > { %6814 = vmatpush.bf16.msrb.mxu2 %v8322_v2  ;;  %v8343_v2 = vld [vmem:[%s9623_s6 + $0x658] sm:$0xff]  ;;  %v4954_v32 = vld.sshfl [vmem:[#allocation1 + $0x18] sm:$0xff pattern:$0x73625140] }
 0x2c5   : > { %6827 = vmatpush.bf16.msrb.mxu3 %v8330_v3  ;;  %v6576_v31 = vadd.f32 %v6575_v27, %v6563_v26  ;;  %v8351_v3 = vld [vmem:[%s9623_s6 + $0x698] sm:$0xff] }
 0x2c6   : > { %6789 = vmatpush.bf16.msrb.mxu0 %v8305_v8  ;;  %v8371_v25 = vld [vmem:[%s9623_s6 + $0x738] sm:$0xff] }
 0x2c7   : > { %6802 = vmatpush.bf16.msrb.mxu1 %v8313_v9  ;;  %v8334_v9 = vld [vmem:[%s9623_s6 + $0x610] sm:$0xff]  ;;  %v8379_v26 = vld [vmem:[%s9623_s6 + $0x778] sm:$0xff] }
 0x2c8   : > { %6815 = vmatpush.bf16.msrb.mxu2 %v8321_v11  ;;  %v8387_v27 = vld [vmem:[%s9623_s6 + $0x7b8] sm:$0xff] }
 0x2c9   : > { %6828 = vmatpush.bf16.msrb.mxu3 %v8329_v12  ;;  %v8395_v28 = vld [vmem:[%s9623_s6 + $0x7f8] sm:$0xff] }
 0x2ca   : > { %6790 = vmatpush.bf16.msrb.mxu0 %v8304_v14  ;;  %v6564_v39 = vpop.f32.mrf.mxu2  ;;  %v8358_v14 = vld [vmem:[%s9623_s6 + $0x6d0] sm:$0xff] }
 0x2cb   : > { %6803 = vmatpush.bf16.msrb.mxu1 %v8312_v15  ;;  %v6577_v40 = vpop.f32.mrf.mxu3  ;;  %v8333_v15 = vld [vmem:[%s9623_s6 + $0x608] sm:$0xff] }
 0x2cc   : > { %6816 = vmatpush.bf16.msrb.mxu2 %v8320_v18  ;;  %v8357_v18 = vld [vmem:[%s9623_s6 + $0x6c8] sm:$0xff] }
 0x2cd   : > { %6829 = vmatpush.bf16.msrb.mxu3 %v8328_v19  ;;  %v8385_v39 = vld [vmem:[%s9623_s6 + $0x7a8] sm:$0xff] }
 0x2ce   : > { %6791 = vmatpush.bf16.msrb.mxu0 %v8303_v21  ;;  %v8332_v21 = vld [vmem:[%s9623_s6 + $0x600] sm:$0xff]  ;;  %v8393_v40 = vld [vmem:[%s9623_s6 + $0x7e8] sm:$0xff] }
 0x2cf   : > { %6804 = vmatpush.bf16.msrb.mxu1 %v8311_v22  ;;  %v8340_v22 = vld [vmem:[%s9623_s6 + $0x640] sm:$0xff] }
 0x2d0   : > { %6817 = vmatpush.bf16.msrb.mxu2 %v8319_v23  ;;  %v8348_v23 = vld [vmem:[%s9623_s6 + $0x680] sm:$0xff] }
 0x2d1   : > { %6830 = vmatpush.bf16.msrb.mxu3 %v8327_v24  ;;  %v8356_v24 = vld [vmem:[%s9623_s6 + $0x6c0] sm:$0xff] }
 0x2d2   : > { %6792 = vmatpush.bf16.msrb.mxu0 %v8302_v29  ;;  %v4951_v29 = vld.sshfl [vmem:[#allocation1] sm:$0xff pattern:$0x73625140] }
 0x2d3   : > { %6805 = vmatpush.bf16.msrb.mxu1 %v8310_v30  ;;  %v4953_v30 = vld.sshfl [vmem:[#allocation1 + $0x10] sm:$0xff pattern:$0x73625140] }
 0x2d4   : > { %6818 = vmatpush.bf16.msrb.mxu2 %v8318_v33  ;;  %v8370_v33 = vld [vmem:[%s9623_s6 + $0x730] sm:$0xff] }
 0x2d5   : > { %6831 = vmatpush.bf16.msrb.mxu3 %v8326_v34  ;;  %v8378_v34 = vld [vmem:[%s9623_s6 + $0x770] sm:$0xff] }
 0x2d6   : > { %6793 = vmatpush.bf16.msrb.mxu0 %v8301_v35  ;;  %v8386_v35 = vld [vmem:[%s9623_s6 + $0x7b0] sm:$0xff] }
 0x2d7   : > { %6806 = vmatpush.bf16.msrb.mxu1 %v8309_v36  ;;  %v8394_v36 = vld [vmem:[%s9623_s6 + $0x7f0] sm:$0xff] }
 0x2d8   : > { %6819 = vmatpush.bf16.msrb.mxu2 %v8317_v37  ;;  %v8369_v37 = vld [vmem:[%s9623_s6 + $0x728] sm:$0xff] }
 0x2d9   : > { %6832 = vmatpush.bf16.msrb.mxu3 %v8325_v38  ;;  %v8377_v38 = vld [vmem:[%s9623_s6 + $0x768] sm:$0xff] }
 0x2da   : > { %6794 = vmatpush.bf16.msrb.mxu0 %v8300_v41  ;;  %v6588_v57 = vpop.f32.mrf.mxu0 }
 0x2db   : > { %6807 = vmatpush.bf16.msrb.mxu1 %v8308_v42  ;;  %v6589_v60 = vadd.f32 %v6588_v57, %v6576_v31  ;;  %v6601_v61 = vpop.f32.mrf.mxu1  ;;  %v4952_v31 = vld.sshfl [vmem:[#allocation1 + $0x8] sm:$0xff pattern:$0x73625140] }
 0x2dc   : > { %6820 = vmatpush.bf16.msrb.mxu2 %v8316_v43  ;;  %v8368_v43 = vld [vmem:[%s9623_s6 + $0x720] sm:$0xff] }
 0x2dd   : > { %6833 = vmatpush.bf16.msrb.mxu3 %v8324_v44  ;;  %6795 = vmatmul.bf16.vlgmr.msrb.gmra.mxu0 %v9863_v4  ;;  %v6602_v0 = vadd.f32 %v6601_v61, %v6589_v60  ;;  %v8359_v4 = vld [vmem:[%s9623_s6 + $0x6d8] sm:$0xff]  ;;  %v8376_v44 = vld [vmem:[%s9623_s6 + $0x760] sm:$0xff]  ;;  %v8382_v61 = vld [vmem:[%s9623_s6 + $0x790] sm:$0xff] }
 0x2de   : > { %6839 = vmatpush.bf16.msra.mxu0 %v8339_v45  ;;  %6808 = vmatmul.bf16.vlgmr.msrb.gmra.mxu1 %v9867_v6 }
 0x2df   : > { %6852 = vmatpush.bf16.msra.mxu1 %v8347_v46  ;;  %6821 = vmatmul.bf16.vlgmr.msrb.gmra.mxu2 %v9865_v5  ;;  %v8384_v46 = vld [vmem:[%s9623_s6 + $0x7a0] sm:$0xff] }
 0x2e0   : > { %6865 = vmatpush.bf16.msra.mxu2 %v8355_v47  ;;  %6834 = vmatmul.bf16.vlgmr.msrb.gmra.mxu3 %v9869_v7  ;;  %v8392_v47 = vld [vmem:[%s9623_s6 + $0x7e0] sm:$0xff] }
 0x2e1   : > { %6878 = vmatpush.bf16.msra.mxu3 %v8363_v48 }
 0x2e2   : > { %6840 = vmatpush.bf16.msra.mxu0 %v8338_v49  ;;  %v6614_v5 = vpop.f32.mrf.mxu2  ;;  %v6590_v8 = vpop.f32.mrf.mxu0  ;;  %v8367_v49 = vld [vmem:[%s9623_s6 + $0x718] sm:$0xff] }
 0x2e3   : > { %6853 = vmatpush.bf16.msra.mxu1 %v8346_v50  ;;  %v6615_v6 = vadd.f32 %v6614_v5, %v6602_v0  ;;  %v6627_v7 = vpop.f32.mrf.mxu3  ;;  %v6603_v12 = vpop.f32.mrf.mxu1  ;;  %v8375_v50 = vld [vmem:[%s9623_s6 + $0x758] sm:$0xff]  ;;  %v8373_v0 = vld [vmem:[%s9623_s6 + $0x748] sm:$0xff]  ;;  %v8364_v5 = vld [vmem:[%s9623_s6 + $0x700] sm:$0xff] }
 0x2e4   : > { %6866 = vmatpush.bf16.msra.mxu2 %v8354_v51  ;;  %v8383_v51 = vld [vmem:[%s9623_s6 + $0x798] sm:$0xff]  ;;  %v8388_v8 = vld [vmem:[%s9623_s6 + $0x7c0] sm:$0xff]  ;;  %v4958_v12 = vld.sshfl [vmem:[#allocation1 + $0x38] sm:$0xff pattern:$0x73625140] }
 0x2e5   : > { %6879 = vmatpush.bf16.msra.mxu3 %v8362_v52  ;;  %v6628_v11 = vadd.f32 %v6627_v7, %v6615_v6  ;;  %v8391_v52 = vld [vmem:[%s9623_s6 + $0x7d8] sm:$0xff]  ;;  %v8372_v6 = vld [vmem:[%s9623_s6 + $0x740] sm:$0xff] }
 0x2e6   : > { %6841 = vmatpush.bf16.msra.mxu0 %v8337_v53  ;;  %v8380_v7 = vld [vmem:[%s9623_s6 + $0x780] sm:$0xff] }
 0x2e7   : > { %6854 = vmatpush.bf16.msra.mxu1 %v8345_v54 }
 0x2e8   : > { %6867 = vmatpush.bf16.msra.mxu2 %v8353_v55 }
 0x2e9   : > { %6880 = vmatpush.bf16.msra.mxu3 %v8361_v56 }
 0x2ea   : > { %6842 = vmatpush.bf16.msra.mxu0 %v8336_v58  ;;  %v6616_v19 = vpop.f32.mrf.mxu2  ;;  %v8366_v58 = vld [vmem:[%s9623_s6 + $0x710] sm:$0xff] }
 0x2eb   : > { %6855 = vmatpush.bf16.msra.mxu1 %v8344_v59  ;;  %v6629_v20 = vpop.f32.mrf.mxu3  ;;  %v8374_v59 = vld [vmem:[%s9623_s6 + $0x750] sm:$0xff] }
 0x2ec   : > { %6868 = vmatpush.bf16.msra.mxu2 %v8352_v62  ;;  %v8390_v62 = vld [vmem:[%s9623_s6 + $0x7d0] sm:$0xff] }
 0x2ed   : > { %6881 = vmatpush.bf16.msra.mxu3 %v8360_v63  ;;  %v8365_v63 = vld [vmem:[%s9623_s6 + $0x708] sm:$0xff] }
 0x2ee   : > { %6843 = vmatpush.bf16.msra.mxu0 %v8335_v1  ;;  %v8381_v1 = vld [vmem:[%s9623_s6 + $0x788] sm:$0xff] }
 0x2ef   : > { %6856 = vmatpush.bf16.msra.mxu1 %v8343_v2  ;;  %v8389_v2 = vld [vmem:[%s9623_s6 + $0x7c8] sm:$0xff] }
 0x2f0   : > { %6869 = vmatpush.bf16.msra.mxu2 %v8351_v3 }
 0x2f1   : > { %6882 = vmatpush.bf16.msra.mxu3 %v8359_v4 }
 0x2f2   : > { %6844 = vmatpush.bf16.msra.mxu0 %v8334_v9  ;;  %v4955_v9 = vld.sshfl [vmem:[#allocation1 + $0x20] sm:$0xff pattern:$0x73625140] }
 0x2f3   : > { %6857 = vmatpush.bf16.msra.mxu1 %v8342_v10  ;;  %v4956_v10 = vld.sshfl [vmem:[#allocation1 + $0x28] sm:$0xff pattern:$0x73625140] }
 0x2f4   : > { %6870 = vmatpush.bf16.msra.mxu2 %v8350_v13 }
 0x2f5   : > { %6883 = vmatpush.bf16.msra.mxu3 %v8358_v14 }
 0x2f6   : > { %6845 = vmatpush.bf16.msra.mxu0 %v8333_v15 }
 0x2f7   : > { %6858 = vmatpush.bf16.msra.mxu1 %v8341_v16 }
 0x2f8   : > { %6871 = vmatpush.bf16.msra.mxu2 %v8349_v17 }
 0x2f9   : > { %6884 = vmatpush.bf16.msra.mxu3 %v8357_v18 }
 0x2fa   : > { %6846 = vmatpush.bf16.msra.mxu0 %v8332_v21  ;;  %v6640_v41 = vpop.f32.mrf.mxu0 }
 0x2fb   : > { %6859 = vmatpush.bf16.msra.mxu1 %v8340_v22  ;;  %v6641_v42 = vadd.f32 %v6640_v41, %v6628_v11  ;;  %v6653_v45 = vpop.f32.mrf.mxu1  ;;  %v4957_v11 = vld.sshfl [vmem:[#allocation1 + $0x30] sm:$0xff pattern:$0x73625140] }
 0x2fc   : > { %6872 = vmatpush.bf16.msra.mxu2 %v8348_v23 }
 0x2fd   : > { %6885 = vmatpush.bf16.msra.mxu3 %v8356_v24  ;;  %6847 = vmatmul.bf16.vlgmr.msra.gmra.mxu0 %v4951_v29  ;;  %v6654_v48 = vadd.f32 %v6653_v45, %v6641_v42 }
 0x2fe   : > { %6891 = vmatpush.bf16.msrb.mxu0 %v8371_v25  ;;  %6860 = vmatmul.bf16.vlgmr.msra.gmra.mxu1 %v4952_v31 }
 0x2ff   : > { %6904 = vmatpush.bf16.msrb.mxu1 %v8379_v26  ;;  %6873 = vmatmul.bf16.vlgmr.msra.gmra.mxu2 %v4953_v30 }
 0x300   : > { %6917 = vmatpush.bf16.msrb.mxu2 %v8387_v27  ;;  %6886 = vmatmul.bf16.vlgmr.msra.gmra.mxu3 %v4954_v32 }
 0x301   : > { %6930 = vmatpush.bf16.msrb.mxu3 %v8395_v28 }
 0x302   : > { %6892 = vmatpush.bf16.msrb.mxu0 %v8370_v33  ;;  %v6666_v53 = vpop.f32.mrf.mxu2  ;;  %v6642_v56 = vpop.f32.mrf.mxu0 }
 0x303   : > { %6905 = vmatpush.bf16.msrb.mxu1 %v8378_v34  ;;  %v6667_v54 = vadd.f32 %v6666_v53, %v6654_v48  ;;  %v6679_v55 = vpop.f32.mrf.mxu3  ;;  %v6655_v60 = vpop.f32.mrf.mxu1 }
 0x304   : > { %6918 = vmatpush.bf16.msrb.mxu2 %v8386_v35  ;;  %v8514_v60 = vmov 4.0  }
 0x305   : > { %6931 = vmatpush.bf16.msrb.mxu3 %v8394_v36  ;;  %v6680_v57 = vadd.f32 %v6679_v55, %v6667_v54  ;;  %8454 = vrcp.f32 %v8514_v60 }
 0x306   : > { %6893 = vmatpush.bf16.msrb.mxu0 %v8369_v37 }
 0x307   : > { %6906 = vmatpush.bf16.msrb.mxu1 %v8377_v38 }
 0x308   : > { %6919 = vmatpush.bf16.msrb.mxu2 %v8385_v39 }
 0x309   : > { %6932 = vmatpush.bf16.msrb.mxu3 %v8393_v40 }
 0x30a   : > { %6894 = vmatpush.bf16.msrb.mxu0 %v8368_v43  ;;  %v6668_v3 = vpop.f32.mrf.mxu2 }
 0x30b   : > { %6907 = vmatpush.bf16.msrb.mxu1 %v8376_v44  ;;  %v6681_v4 = vpop.f32.mrf.mxu3 }
 0x30c   : > { %6920 = vmatpush.bf16.msrb.mxu2 %v8384_v46 }
 0x30d   : > { %6933 = vmatpush.bf16.msrb.mxu3 %v8392_v47 }
 0x30e   : > { %6895 = vmatpush.bf16.msrb.mxu0 %v8367_v49 }
 0x30f   : > { %6908 = vmatpush.bf16.msrb.mxu1 %v8375_v50 }
 0x310   : > { %6921 = vmatpush.bf16.msrb.mxu2 %v8383_v51 }
 0x311   : > { %6934 = vmatpush.bf16.msrb.mxu3 %v8391_v52 }
 0x312   : > { %6896 = vmatpush.bf16.msrb.mxu0 %v8366_v58 }
 0x313   : > { %6909 = vmatpush.bf16.msrb.mxu1 %v8374_v59 }
 0x314   : > { %6922 = vmatpush.bf16.msrb.mxu2 %v8382_v61 }
 0x315   : > { %6935 = vmatpush.bf16.msrb.mxu3 %v8390_v62 }
 0x316   : > { %6897 = vmatpush.bf16.msrb.mxu0 %v8365_v63 }
 0x317   : > { %6910 = vmatpush.bf16.msrb.mxu1 %v8373_v0 }
 0x318   : > { %6923 = vmatpush.bf16.msrb.mxu2 %v8381_v1  ;;  %v8455_v1 = vpop.eup %8454 }
 0x319   : > { %6936 = vmatpush.bf16.msrb.mxu3 %v8389_v2  ;;  %v6952_v3 = vmul.f32 4.0, %v8455_v1  ;;  %vm6956_vm1 = vweird.f32 %v8455_v1 }
 0x31a   : > { %6898 = vmatpush.bf16.msrb.mxu0 %v8364_v5  ;;  %v6692_v13 = vpop.f32.mrf.mxu0 }
 0x31b   : > { %6911 = vmatpush.bf16.msrb.mxu1 %v8372_v6  ;;  %v6693_v14 = vadd.f32 %v6692_v13, %v6680_v57  ;;  %v6705_v15 = vpop.f32.mrf.mxu1 }
 0x31c   : > { %6924 = vmatpush.bf16.msrb.mxu2 %v8380_v7 }
 0x31d   : > { %6937 = vmatpush.bf16.msrb.mxu3 %v8388_v8  ;;  %6899 = vmatmul.bf16.vlgmr.msrb.gmra.mxu0 %v4955_v9  ;;  %v6706_v16 = vadd.f32 %v6705_v15, %v6693_v14 }
 0x31e   : > { %6912 = vmatmul.bf16.vlgmr.msrb.gmra.mxu1 %v4956_v10  ;;  %v6953_v10 = vsub.f32 1.0, %v6952_v3 }
 0x31f   : > { %6925 = vmatmul.bf16.vlgmr.msrb.gmra.mxu2 %v4957_v11 }
 0x320   : > { %6938 = vmatmul.bf16.vlgmr.msrb.gmra.mxu3 %v4958_v12  ;;  %v6954_v13 = vmul.f32 %v8455_v1, %v6953_v10 }
 0x322   : > { %v6718_v17 = vpop.f32.mrf.mxu2  ;;  %v6694_v20 = vpop.f32.mrf.mxu0 }
 0x323   : > { %v6719_v18 = vadd.f32 %v6718_v17, %v6706_v16  ;;  %v6731_v19 = vpop.f32.mrf.mxu3  ;;  %v6707_v22 = vpop.f32.mrf.mxu1 }
 0x325   : > { %v6732_v21 = vadd.f32 %v6731_v19, %v6719_v18  ;;  %v6955_v18 = vadd.f32 %v8455_v1, %v6954_v13 }
 0x32a   : > { %v6720_v23 = vpop.f32.mrf.mxu2 }
 0x32b   : > { %v6733_v24 = vpop.f32.mrf.mxu3 }
 0x33a   : > { %v6744_v25 = vpop.f32.mrf.mxu0 }
 0x33b   : > { %v6745_v26 = vadd.f32 %v6744_v25, %v6732_v21  ;;  %v6757_v27 = vpop.f32.mrf.mxu1  ;;  %v6957_v21 = vsel %vm6956_vm1, %v8455_v1, %v6955_v18 }
 0x33d   : > { %v6758_v28 = vadd.f32 %v6757_v27, %v6745_v26 }
 0x342   : > { %v6770_v29 = vpop.f32.mrf.mxu2  ;;  %v6746_v32 = vpop.f32.mrf.mxu0 }
 0x343   : > { %v6771_v30 = vadd.f32 %v6770_v29, %v6758_v28  ;;  %v6783_v31 = vpop.f32.mrf.mxu3  ;;  %v6759_v34 = vpop.f32.mrf.mxu1 }
 0x345   : > { %v6784_v33 = vadd.f32 %v6783_v31, %v6771_v30 }
 0x34a   : > { %v6772_v35 = vpop.f32.mrf.mxu2 }
 0x34b   : > { %v6785_v36 = vpop.f32.mrf.mxu3 }
 0x35a   : > { %v6796_v37 = vpop.f32.mrf.mxu0 }
 0x35b   : > { %v6809_v38 = vpop.f32.mrf.mxu1  ;;  %v6797_v48 = vadd.f32 %v6796_v37, %v6784_v33 }
 0x35d   : > { %v6810_v52 = vadd.f32 %v6809_v38, %v6797_v48 }
 0x362   : > { %v6822_v39 = vpop.f32.mrf.mxu2  ;;  %v6798_v41 = vpop.f32.mrf.mxu0 }
 0x363   : > { %v6835_v40 = vpop.f32.mrf.mxu3  ;;  %v6811_v42 = vpop.f32.mrf.mxu1  ;;  %v6823_v53 = vadd.f32 %v6822_v39, %v6810_v52 }
 0x365   : > { %v6836_v56 = vadd.f32 %v6835_v40, %v6823_v53 }
 0x36a   : > { %v6824_v43 = vpop.f32.mrf.mxu2 }
 0x36b   : > { %v6837_v44 = vpop.f32.mrf.mxu3 }
 0x37a   : > { %v6848_v45 = vpop.f32.mrf.mxu0 }
 0x37b   : > { %v6861_v46 = vpop.f32.mrf.mxu1  ;;  %v6849_v57 = vadd.f32 %v6848_v45, %v6836_v56 }
 0x37d   : > { %v6862_v58 = vadd.f32 %v6861_v46, %v6849_v57 }
 0x382   : > { %v6874_v47 = vpop.f32.mrf.mxu2  ;;  %v6850_v50 = vpop.f32.mrf.mxu0 }
 0x383   : > { %v6887_v49 = vpop.f32.mrf.mxu3  ;;  %v6863_v51 = vpop.f32.mrf.mxu1  ;;  %v6875_v59 = vadd.f32 %v6874_v47, %v6862_v58 }
 0x385   : > { %v6888_v61 = vadd.f32 %v6887_v49, %v6875_v59 }
 0x38a   : > { %v6876_v54 = vpop.f32.mrf.mxu2 }
 0x38b   : > { %v6889_v55 = vpop.f32.mrf.mxu3 }
 0x39a   : > { %v6900_v62 = vpop.f32.mrf.mxu0 }
 0x39b   : > { %v6913_v63 = vpop.f32.mrf.mxu1  ;;  %v6901_v0 = vadd.f32 %v6900_v62, %v6888_v61 }
 0x39d   : > { %v6914_v2 = vadd.f32 %v6913_v63, %v6901_v0 }
 0x3a2   : > { %v6926_v4 = vpop.f32.mrf.mxu2  ;;  %v6902_v7 = vpop.f32.mrf.mxu0 }
 0x3a3   : > { %v6939_v5 = vpop.f32.mrf.mxu3  ;;  %v6927_v6 = vadd.f32 %v6926_v4, %v6914_v2  ;;  %v6915_v8 = vpop.f32.mrf.mxu1 }
 0x3a5   : > { %v6940_v9 = vadd.f32 %v6939_v5, %v6927_v6 }
 0x3a7   : > { %v6944_v11 = vsel %vm6943_vm0, %v6940_v9, 0.0 }
 0x3a8   : > { %v6945_v12 = vrot.slane %v6944_v11, 4 }
 0x3aa   : > { %v6946_v14 = vadd.f32 %v6945_v12, %v6944_v11  ;;  %v6928_v15 = vpop.f32.mrf.mxu2 }
 0x3ab   : > { %v6941_v16 = vpop.f32.mrf.mxu3 }
 0x3ac   : > { %v6947_v17 = vrot.slane %v6946_v14, 2 }
 0x3ae   : > { %v6948_v19 = vadd.f32 %v6947_v17, %v6946_v14 }
 0x3b0   : > { %v6949_v20 = vrot.slane %v6948_v19, 1 }
 0x3b2   : > { %v6950_v22 = vadd.f32 %v6949_v20, %v6948_v19 }
 0x3b4   : > { %v6958_v23 = vmul.f32 %v6957_v21, %v6950_v22 }
 0x3b6   : > { %v6959_v24 = vsub.f32 %v6940_v9, %v6958_v23 }
 0x3b8   : > { %v6960_v25 = vmul.f32 %v6959_v24, %v6959_v24 }
 0x3ba   : > { %v6961_v26 = vsel %vm6943_vm0, %v6960_v25, 0.0 }
 0x3bb   : > { %v6962_v27 = vrot.slane %v6961_v26, 4 }
 0x3bd   : > { %v6963_v28 = vadd.f32 %v6962_v27, %v6961_v26 }
 0x3bf   : > { %v6964_v29 = vrot.slane %v6963_v28, 2 }
 0x3c1   : > { %v6965_v30 = vadd.f32 %v6964_v29, %v6963_v28 }
 0x3c3   : > { %v6966_v31 = vrot.slane %v6965_v30, 1 }
 0x3c5   : > { %v6967_v32 = vadd.f32 %v6966_v31, %v6965_v30 }
 0x3c7   : > { %v6968_v33 = vmul.f32 %v6967_v32, %v6957_v21 }
 0x3c9   : > { %v6969_v34 = vadd.f32 1e-05, %v6968_v33 }
 0x3cb   : > { %8456 = vrsqrt.f32 %v6969_v34  ;;  %vm6976_vm3 = vweird.f32 %v6969_v34 }
 0x3d1   : > { %v8457_v35 = vpop.eup %8456 }
 0x3d2   : > { %v6971_v36 = vmul.f32 %v8457_v35, %v6969_v34  ;;  %vm6977_vm2 = vweird.f32 %v8457_v35 }
 0x3d3   : > { %vm6978_vm4 = vmor %vm6976_vm3, %vm6977_vm2 }
 0x3d4   : > { %v6972_v37 = vmul.f32 %v8457_v35, %v6971_v36 }
 0x3d6   : > { %v6973_v38 = vmul.f32 0.5, %v6972_v37 }
 0x3d8   : > { %v6974_v39 = vsub.f32 1.5, %v6973_v38 }
 0x3da   : > { %v6975_v40 = vmul.f32 %v8457_v35, %v6974_v39 }
 0x3dc   : > { %v6979_v41 = vsel %vm6978_vm4, %v8457_v35, %v6975_v40 }
 0x3dd   : > { %v6980_v42 = vmul.f32 %v6979_v41, %v6959_v24 }
 0x3df   : > { %vm6981_vm5 = vcmp.ge.f32.partialorder %v6980_v42, 0.0  ;;  %v6982_v43 = vmul.f32 0.2, %v6980_v42 }
 0x3e1   : > { %v6983_v44 = vsel %vm6981_vm5, %v6980_v42, %v6982_v43 }
 0x3e2   : > { %v6984_v45 = vpack.c.bf16 %v6983_v44, %v6983_v44 }
 0x3e4   : > { %6985 = vst [vmem:[%s4385_s30] sm:$0x3] %v6984_v45 }
 0x3e5 PF: > { %s13_s18 = sadd.s32 1, %s8512_s18   ;;  %s10004_s12 = smov %s8492_s13 }
 0x3e6   : > { %p10_p12 = scmp.ge.s32.totalorder %s13_s18, 10   ;;  %s10005_s13 = smov %s8584_s23 }
 0x3e7   : > { %s10006_s14 = smov %s8504_s16  ;;  %s10007_s15 = smov %s8508_s17 }
 0x3e8   : > { %s10008_s16 = smov %s10011_s19  ;;  %s10009_s17 = smov %s10015_s20 }
 0x3e9   :  { %12 = sbr.rel (!%p10_p12) target bundleno = 4 (0x4), region = 130 }

</bundles_post_ra>
